<compile_context>
chip_gen: v7x
topology: tpu7x:2x2x1
jax: 0.10.0
libtpu: 0.0.40
codegen_flags: <defaults>
</compile_context>

<pallas_src>
import functools

import jax
import jax.numpy as jnp
from jax import lax
from jax.experimental import pallas as pl
from jax.experimental.pallas import tpu as pltpu


def _round_up(a, b):
    return (a + b - 1) // b * b


def xcorr_dw_kernel(x_ref, z_ref, o_ref, *, RT, Wo, Hz, Wz):
    """One (batch, channel-tile, output-row-tile) block per grid step.

    x_ref : (Hx_pad, Wx, Ct)  search feature, channels-last (channels in lanes)
    z_ref : (Hz, Wz, Ct)      template feature (per-channel kernel)
    o_ref : (RT, Wo, Ct)      output row tile
    """
    Wx = x_ref.shape[1]
    Ct = o_ref.shape[-1]

    rt = pl.program_id(2)
    row0 = pl.multiple_of(rt * RT, RT)

    # Template tile loaded once (a handful of vregs); taps indexed statically below.
    z_all = z_ref[...].astype(jnp.float32)            # (Hz, Wz, Ct)

    # Full-width register accumulator (RT, Wx, Ct).  Columns >= Wo only ever see the
    # roll wrap-around and are dropped at the store; since Wo and Wx round up to the
    # same number of sublane tiles this costs no extra vregs.
    acc = jnp.zeros((RT, Wx, Ct), jnp.float32)

    for p in range(Hz):                                # static unroll: Hz is small
        # Only the RT rows this output-row tile needs for tap row p; dynamic start
        # lands solely on the leading (untiled) axis.
        slab = x_ref[pl.ds(row0 + p, RT)].astype(jnp.float32)   # (RT, Wx, Ct)
        for q in range(Wz):                            # static unroll: Wz is small
            if q > 0:
                # Incremental column shift on the XLU (sublane roll); equivalent to
                # shift=-1, brings column j+q of the original slab to column j.
                slab = pltpu.roll(slab, shift=Wx - 1, axis=1)
            acc = acc + slab * z_all[p, q][None, None, :]

    # Single lane-dense, full-block store.
    o_ref[...] = acc[:, :Wo, :].astype(o_ref.dtype)


def single_dw_forward(z, x):
    """SingleDW.forward(z, x) -> xcorr_depthwise(x, z).

    z : (B, C, Hz, Wz) template;  x : (B, C, Hx, Wx) search.
    Returns (B, C, Hx - Hz + 1, Wx - Wz + 1), dtype of x.
    """
    B, C, Hz, Wz = z.shape
    Bx, Cx, Hx, Wx = x.shape
    assert (B, C) == (Bx, Cx), "x and z must share batch / channel dims"
    Ho, Wo = Hx - Hz + 1, Wx - Wz + 1
    out_dtype = x.dtype

    # ---- tiling choices --------------------------------------------------------
    C_TILE = 128
    C_pad = _round_up(C, C_TILE)                       # lane-dense channel tiles
    n_ct = C_pad // C_TILE

    # Output-row tile sized so (acc + slab) stay comfortably inside the vreg file.
    Wx_r = _round_up(Wx, 8)
    RT = max(1, min(8, 128 // Wx_r, Ho))
    Ho_pad = _round_up(Ho, RT)
    n_rt = Ho_pad // RT
    Hx_pad = Ho_pad + Hz - 1                           # rows the kernel may touch

    # ---- layout: channels-last so channels sit in lanes; native dtype on the wire.
    # TODO(synk): in a channels-last model these transposes/pads would be fused into
    # the producer/consumer instead of being separate HBM round trips.
    x_cl = jnp.transpose(x, (0, 2, 3, 1))              # (B, Hx, Wx, C)
    z_cl = jnp.transpose(z, (0, 2, 3, 1))              # (B, Hz, Wz, C)
    x_cl = jnp.pad(x_cl, ((0, 0), (0, Hx_pad - Hx), (0, 0), (0, C_pad - C)))
    z_cl = jnp.pad(z_cl, ((0, 0), (0, 0), (0, 0), (0, C_pad - C)))

    kernel = functools.partial(xcorr_dw_kernel, RT=RT, Wo=Wo, Hz=Hz, Wz=Wz)

    out = pl.pallas_call(
        kernel,
        out_shape=jax.ShapeDtypeStruct((B, Ho_pad, Wo, C_pad), out_dtype),
        grid=(B, n_ct, n_rt),
        in_specs=[
            # x ignores the innermost row-tile axis -> revisited block, no re-DMA.
            pl.BlockSpec((None, Hx_pad, Wx, C_TILE), lambda b, c, r: (b, 0, 0, c)),
            pl.BlockSpec((None, Hz, Wz, C_TILE), lambda b, c, r: (b, 0, 0, c)),
        ],
        out_specs=pl.BlockSpec((None, RT, Wo, C_TILE), lambda b, c, r: (b, r, 0, c)),
        compiler_params=pltpu.CompilerParams(
            dimension_semantics=("parallel", "parallel", "parallel")),
    )(x_cl, z_cl)

    out = out[:, :Ho, :, :C]                           # drop row / channel padding
    return jnp.transpose(out, (0, 3, 1, 2))            # back to (B, C, Ho, Wo)


def xcorr_depthwise_reference(x, z):
    """Pure-JAX reference mirroring the PyTorch grouped conv2d exactly."""
    B, C, Hx, Wx = x.shape
    _, _, Hz, Wz = z.shape
    x_r = x.reshape(1, B * C, Hx, Wx).astype(jnp.float32)
    k_r = z.reshape(B * C, 1, Hz, Wz).astype(jnp.float32)
    out = lax.conv_general_dilated(
        x_r, k_r, window_strides=(1, 1), padding="VALID",
        dimension_numbers=("NCHW", "OIHW", "NCHW"),
        feature_group_count=B * C)
    return out.reshape(B, C, Hx - Hz + 1, Wx - Wz + 1)


if __name__ == "__main__":
    # Small deterministic example consistent with SingleDW (template z, search x).
    B, C = 2, 32
    Hx, Wx = 16, 16
    Hz, Wz = 8, 8

    key = jax.random.PRNGKey(0)
    kx, kz = jax.random.split(key)
    x = jax.random.normal(kx, (B, C, Hx, Wx), jnp.float32)   # search feature
    z = jax.random.normal(kz, (B, C, Hz, Wz), jnp.float32)   # template feature

    out = jax.block_until_ready(single_dw_forward(z, x))
    ref = jax.block_until_ready(xcorr_depthwise_reference(x, z))

    max_diff = float(jnp.max(jnp.abs(out - ref)))
    expected_shape = (B, C, Hx - Hz + 1, Wx - Wz + 1)
    if out.shape != expected_shape or max_diff > 1e-3:
        raise RuntimeError(f"mismatch: shape={out.shape}, max_diff={max_diff}")

    print("KERNEL_OK")
</pallas_src>

<mosaic_0001>
module attributes {stable_mosaic.version = 11 : i64} {
  func.func @xcorr_dw_kernel(%arg0: i32, %arg1: i32, %arg2: i32, %arg3: memref<1x23x16x128xf32, #tpu.memory_space<vmem>>, %arg4: memref<1x8x8x128xf32, #tpu.memory_space<vmem>>, %arg5: memref<1x8x9x128xf32, #tpu.memory_space<vmem>>) attributes {dimension_semantics = [#tpu.dimension_semantics<parallel>, #tpu.dimension_semantics<parallel>, #tpu.dimension_semantics<parallel>], iteration_bounds = array<i64: 2, 1, 2>, scalar_prefetch = 0 : i64, scratch_operands = 0 : i64, tpu.core_type = #tpu.core_type<tc>, window_params = [{transform_indices = @transform_0, window_bounds = array<i64: 1, 23, 16, 128>}, {transform_indices = @transform_1, window_bounds = array<i64: 1, 8, 8, 128>}, {transform_indices = @transform_2, window_bounds = array<i64: 1, 8, 9, 128>}]} {
    %c8_i32 = arith.constant 8 : i32
    %0 = arith.muli %arg2, %c8_i32 : i32
    %1 = tpu.assume_multiple %0, 8 : i32
    %c0 = arith.constant 0 : index
    %c0_0 = arith.constant 0 : index
    %c0_1 = arith.constant 0 : index
    %c0_2 = arith.constant 0 : index
    %2 = vector.load %arg4[%c0, %c0_0, %c0_1, %c0_2] : memref<1x8x8x128xf32, #tpu.memory_space<vmem>>, vector<1x8x8x128xf32>
    %3 = vector.shape_cast %2 : vector<1x8x8x128xf32> to vector<8x8x128xf32>
    %cst = arith.constant 0.000000e+00 : f32
    %4 = vector.broadcast %cst : f32 to vector<8x16x128xf32>
    %c0_i32 = arith.constant 0 : i32
    %5 = arith.addi %1, %c0_i32 : i32
    %c0_3 = arith.constant 0 : index
    %6 = arith.index_cast %5 : i32 to index
    %c0_4 = arith.constant 0 : index
    %c0_5 = arith.constant 0 : index
    %7 = vector.load %arg3[%c0_3, %6, %c0_4, %c0_5] : memref<1x23x16x128xf32, #tpu.memory_space<vmem>>, vector<1x8x16x128xf32>
    %8 = vector.shape_cast %7 : vector<1x8x16x128xf32> to vector<8x16x128xf32>
    %9 = vector.extract_strided_slice %3 {offsets = [0, 0, 0], sizes = [1, 1, 128], strides = [1, 1, 1]} : vector<8x8x128xf32> to vector<1x1x128xf32>
    %10 = vector.shape_cast %9 : vector<1x1x128xf32> to vector<128xf32>
    %11 = vector.shape_cast %10 : vector<128xf32> to vector<1x1x128xf32>
    %12 = vector.broadcast %11 : vector<1x1x128xf32> to vector<8x16x128xf32>
    %13 = arith.mulf %8, %12 : vector<8x16x128xf32>
    %14 = arith.addf %4, %13 : vector<8x16x128xf32>
    %c15_i32 = arith.constant 15 : i32
    %15 = tpu.dynamic_rotate %8 by %c15_i32 dim 1 : vector<8x16x128xf32>, i32 -> vector<8x16x128xf32>
    %16 = vector.extract_strided_slice %3 {offsets = [0, 1, 0], sizes = [1, 1, 128], strides = [1, 1, 1]} : vector<8x8x128xf32> to vector<1x1x128xf32>
    %17 = vector.shape_cast %16 : vector<1x1x128xf32> to vector<128xf32>
    %18 = vector.shape_cast %17 : vector<128xf32> to vector<1x1x128xf32>
    %19 = vector.broadcast %18 : vector<1x1x128xf32> to vector<8x16x128xf32>
    %20 = arith.mulf %15, %19 : vector<8x16x128xf32>
    %21 = arith.addf %14, %20 : vector<8x16x128xf32>
    %c15_i32_6 = arith.constant 15 : i32
    %22 = tpu.dynamic_rotate %15 by %c15_i32_6 dim 1 : vector<8x16x128xf32>, i32 -> vector<8x16x128xf32>
    %23 = vector.extract_strided_slice %3 {offsets = [0, 2, 0], sizes = [1, 1, 128], strides = [1, 1, 1]} : vector<8x8x128xf32> to vector<1x1x128xf32>
    %24 = vector.shape_cast %23 : vector<1x1x128xf32> to vector<128xf32>
    %25 = vector.shape_cast %24 : vector<128xf32> to vector<1x1x128xf32>
    %26 = vector.broadcast %25 : vector<1x1x128xf32> to vector<8x16x128xf32>
    %27 = arith.mulf %22, %26 : vector<8x16x128xf32>
    %28 = arith.addf %21, %27 : vector<8x16x128xf32>
    %c15_i32_7 = arith.constant 15 : i32
    %29 = tpu.dynamic_rotate %22 by %c15_i32_7 dim 1 : vector<8x16x128xf32>, i32 -> vector<8x16x128xf32>
    %30 = vector.extract_strided_slice %3 {offsets = [0, 3, 0], sizes = [1, 1, 128], strides = [1, 1, 1]} : vector<8x8x128xf32> to vector<1x1x128xf32>
    %31 = vector.shape_cast %30 : vector<1x1x128xf32> to vector<128xf32>
    %32 = vector.shape_cast %31 : vector<128xf32> to vector<1x1x128xf32>
    %33 = vector.broadcast %32 : vector<1x1x128xf32> to vector<8x16x128xf32>
    %34 = arith.mulf %29, %33 : vector<8x16x128xf32>
    %35 = arith.addf %28, %34 : vector<8x16x128xf32>
    %c15_i32_8 = arith.constant 15 : i32
    %36 = tpu.dynamic_rotate %29 by %c15_i32_8 dim 1 : vector<8x16x128xf32>, i32 -> vector<8x16x128xf32>
    %37 = vector.extract_strided_slice %3 {offsets = [0, 4, 0], sizes = [1, 1, 128], strides = [1, 1, 1]} : vector<8x8x128xf32> to vector<1x1x128xf32>
    %38 = vector.shape_cast %37 : vector<1x1x128xf32> to vector<128xf32>
    %39 = vector.shape_cast %38 : vector<128xf32> to vector<1x1x128xf32>
    %40 = vector.broadcast %39 : vector<1x1x128xf32> to vector<8x16x128xf32>
    %41 = arith.mulf %36, %40 : vector<8x16x128xf32>
    %42 = arith.addf %35, %41 : vector<8x16x128xf32>
    %c15_i32_9 = arith.constant 15 : i32
    %43 = tpu.dynamic_rotate %36 by %c15_i32_9 dim 1 : vector<8x16x128xf32>, i32 -> vector<8x16x128xf32>
    %44 = vector.extract_strided_slice %3 {offsets = [0, 5, 0], sizes = [1, 1, 128], strides = [1, 1, 1]} : vector<8x8x128xf32> to vector<1x1x128xf32>
    %45 = vector.shape_cast %44 : vector<1x1x128xf32> to vector<128xf32>
    %46 = vector.shape_cast %45 : vector<128xf32> to vector<1x1x128xf32>
    %47 = vector.broadcast %46 : vector<1x1x128xf32> to vector<8x16x128xf32>
    %48 = arith.mulf %43, %47 : vector<8x16x128xf32>
    %49 = arith.addf %42, %48 : vector<8x16x128xf32>
    %c15_i32_10 = arith.constant 15 : i32
    %50 = tpu.dynamic_rotate %43 by %c15_i32_10 dim 1 : vector<8x16x128xf32>, i32 -> vector<8x16x128xf32>
    %51 = vector.extract_strided_slice %3 {offsets = [0, 6, 0], sizes = [1, 1, 128], strides = [1, 1, 1]} : vector<8x8x128xf32> to vector<1x1x128xf32>
    %52 = vector.shape_cast %51 : vector<1x1x128xf32> to vector<128xf32>
    %53 = vector.shape_cast %52 : vector<128xf32> to vector<1x1x128xf32>
    %54 = vector.broadcast %53 : vector<1x1x128xf32> to vector<8x16x128xf32>
    %55 = arith.mulf %50, %54 : vector<8x16x128xf32>
    %56 = arith.addf %49, %55 : vector<8x16x128xf32>
    %c15_i32_11 = arith.constant 15 : i32
    %57 = tpu.dynamic_rotate %50 by %c15_i32_11 dim 1 : vector<8x16x128xf32>, i32 -> vector<8x16x128xf32>
    %58 = vector.extract_strided_slice %3 {offsets = [0, 7, 0], sizes = [1, 1, 128], strides = [1, 1, 1]} : vector<8x8x128xf32> to vector<1x1x128xf32>
    %59 = vector.shape_cast %58 : vector<1x1x128xf32> to vector<128xf32>
    %60 = vector.shape_cast %59 : vector<128xf32> to vector<1x1x128xf32>
    %61 = vector.broadcast %60 : vector<1x1x128xf32> to vector<8x16x128xf32>
    %62 = arith.mulf %57, %61 : vector<8x16x128xf32>
    %63 = arith.addf %56, %62 : vector<8x16x128xf32>
    %c1_i32 = arith.constant 1 : i32
    %64 = arith.addi %1, %c1_i32 : i32
    %c0_12 = arith.constant 0 : index
    %65 = arith.index_cast %64 : i32 to index
    %c0_13 = arith.constant 0 : index
    %c0_14 = arith.constant 0 : index
    %66 = vector.load %arg3[%c0_12, %65, %c0_13, %c0_14] : memref<1x23x16x128xf32, #tpu.memory_space<vmem>>, vector<1x8x16x128xf32>
    %67 = vector.shape_cast %66 : vector<1x8x16x128xf32> to vector<8x16x128xf32>
    %68 = vector.extract_strided_slice %3 {offsets = [1, 0, 0], sizes = [1, 1, 128], strides = [1, 1, 1]} : vector<8x8x128xf32> to vector<1x1x128xf32>
    %69 = vector.shape_cast %68 : vector<1x1x128xf32> to vector<128xf32>
    %70 = vector.shape_cast %69 : vector<128xf32> to vector<1x1x128xf32>
    %71 = vector.broadcast %70 : vector<1x1x128xf32> to vector<8x16x128xf32>
    %72 = arith.mulf %67, %71 : vector<8x16x128xf32>
    %73 = arith.addf %63, %72 : vector<8x16x128xf32>
    %c15_i32_15 = arith.constant 15 : i32
    %74 = tpu.dynamic_rotate %67 by %c15_i32_15 dim 1 : vector<8x16x128xf32>, i32 -> vector<8x16x128xf32>
    %75 = vector.extract_strided_slice %3 {offsets = [1, 1, 0], sizes = [1, 1, 128], strides = [1, 1, 1]} : vector<8x8x128xf32> to vector<1x1x128xf32>
    %76 = vector.shape_cast %75 : vector<1x1x128xf32> to vector<128xf32>
    %77 = vector.shape_cast %76 : vector<128xf32> to vector<1x1x128xf32>
    %78 = vector.broadcast %77 : vector<1x1x128xf32> to vector<8x16x128xf32>
    %79 = arith.mulf %74, %78 : vector<8x16x128xf32>
    %80 = arith.addf %73, %79 : vector<8x16x128xf32>
    %c15_i32_16 = arith.constant 15 : i32
    %81 = tpu.dynamic_rotate %74 by %c15_i32_16 dim 1 : vector<8x16x128xf32>, i32 -> vector<8x16x128xf32>
    %82 = vector.extract_strided_slice %3 {offsets = [1, 2, 0], sizes = [1, 1, 128], strides = [1, 1, 1]} : vector<8x8x128xf32> to vector<1x1x128xf32>
    %83 = vector.shape_cast %82 : vector<1x1x128xf32> to vector<128xf32>
    %84 = vector.shape_cast %83 : vector<128xf32> to vector<1x1x128xf32>
    %85 = vector.broadcast %84 : vector<1x1x128xf32> to vector<8x16x128xf32>
    %86 = arith.mulf %81, %85 : vector<8x16x128xf32>
    %87 = arith.addf %80, %86 : vector<8x16x128xf32>
    %c15_i32_17 = arith.constant 15 : i32
    %88 = tpu.dynamic_rotate %81 by %c15_i32_17 dim 1 : vector<8x16x128xf32>, i32 -> vector<8x16x128xf32>
    %89 = vector.extract_strided_slice %3 {offsets = [1, 3, 0], sizes = [1, 1, 128], strides = [1, 1, 1]} : vector<8x8x128xf32> to vector<1x1x128xf32>
    %90 = vector.shape_cast %89 : vector<1x1x128xf32> to vector<128xf32>
    %91 = vector.shape_cast %90 : vector<128xf32> to vector<1x1x128xf32>
    %92 = vector.broadcast %91 : vector<1x1x128xf32> to vector<8x16x128xf32>
    %93 = arith.mulf %88, %92 : vector<8x16x128xf32>
    %94 = arith.addf %87, %93 : vector<8x16x128xf32>
    %c15_i32_18 = arith.constant 15 : i32
    %95 = tpu.dynamic_rotate %88 by %c15_i32_18 dim 1 : vector<8x16x128xf32>, i32 -> vector<8x16x128xf32>
    %96 = vector.extract_strided_slice %3 {offsets = [1, 4, 0], sizes = [1, 1, 128], strides = [1, 1, 1]} : vector<8x8x128xf32> to vector<1x1x128xf32>
    %97 = vector.shape_cast %96 : vector<1x1x128xf32> to vector<128xf32>
    %98 = vector.shape_cast %97 : vector<128xf32> to vector<1x1x128xf32>
    %99 = vector.broadcast %98 : vector<1x1x128xf32> to vector<8x16x128xf32>
    %100 = arith.mulf %95, %99 : vector<8x16x128xf32>
    %101 = arith.addf %94, %100 : vector<8x16x128xf32>
    %c15_i32_19 = arith.constant 15 : i32
    %102 = tpu.dynamic_rotate %95 by %c15_i32_19 dim 1 : vector<8x16x128xf32>, i32 -> vector<8x16x128xf32>
    %103 = vector.extract_strided_slice %3 {offsets = [1, 5, 0], sizes = [1, 1, 128], strides = [1, 1, 1]} : vector<8x8x128xf32> to vector<1x1x128xf32>
    %104 = vector.shape_cast %103 : vector<1x1x128xf32> to vector<128xf32>
    %105 = vector.shape_cast %104 : vector<128xf32> to vector<1x1x128xf32>
    %106 = vector.broadcast %105 : vector<1x1x128xf32> to vector<8x16x128xf32>
    %107 = arith.mulf %102, %106 : vector<8x16x128xf32>
    %108 = arith.addf %101, %107 : vector<8x16x128xf32>
    %c15_i32_20 = arith.constant 15 : i32
    %109 = tpu.dynamic_rotate %102 by %c15_i32_20 dim 1 : vector<8x16x128xf32>, i32 -> vector<8x16x128xf32>
    %110 = vector.extract_strided_slice %3 {offsets = [1, 6, 0], sizes = [1, 1, 128], strides = [1, 1, 1]} : vector<8x8x128xf32> to vector<1x1x128xf32>
    %111 = vector.shape_cast %110 : vector<1x1x128xf32> to vector<128xf32>
    %112 = vector.shape_cast %111 : vector<128xf32> to vector<1x1x128xf32>
    %113 = vector.broadcast %112 : vector<1x1x128xf32> to vector<8x16x128xf32>
    %114 = arith.mulf %109, %113 : vector<8x16x128xf32>
    %115 = arith.addf %108, %114 : vector<8x16x128xf32>
    %c15_i32_21 = arith.constant 15 : i32
    %116 = tpu.dynamic_rotate %109 by %c15_i32_21 dim 1 : vector<8x16x128xf32>, i32 -> vector<8x16x128xf32>
    %117 = vector.extract_strided_slice %3 {offsets = [1, 7, 0], sizes = [1, 1, 128], strides = [1, 1, 1]} : vector<8x8x128xf32> to vector<1x1x128xf32>
    %118 = vector.shape_cast %117 : vector<1x1x128xf32> to vector<128xf32>
    %119 = vector.shape_cast %118 : vector<128xf32> to vector<1x1x128xf32>
    %120 = vector.broadcast %119 : vector<1x1x128xf32> to vector<8x16x128xf32>
    %121 = arith.mulf %116, %120 : vector<8x16x128xf32>
    %122 = arith.addf %115, %121 : vector<8x16x128xf32>
    %c2_i32 = arith.constant 2 : i32
    %123 = arith.addi %1, %c2_i32 : i32
    %c0_22 = arith.constant 0 : index
    %124 = arith.index_cast %123 : i32 to index
    %c0_23 = arith.constant 0 : index
    %c0_24 = arith.constant 0 : index
    %125 = vector.load %arg3[%c0_22, %124, %c0_23, %c0_24] : memref<1x23x16x128xf32, #tpu.memory_space<vmem>>, vector<1x8x16x128xf32>
    %126 = vector.shape_cast %125 : vector<1x8x16x128xf32> to vector<8x16x128xf32>
    %127 = vector.extract_strided_slice %3 {offsets = [2, 0, 0], sizes = [1, 1, 128], strides = [1, 1, 1]} : vector<8x8x128xf32> to vector<1x1x128xf32>
    %128 = vector.shape_cast %127 : vector<1x1x128xf32> to vector<128xf32>
    %129 = vector.shape_cast %128 : vector<128xf32> to vector<1x1x128xf32>
    %130 = vector.broadcast %129 : vector<1x1x128xf32> to vector<8x16x128xf32>
    %131 = arith.mulf %126, %130 : vector<8x16x128xf32>
    %132 = arith.addf %122, %131 : vector<8x16x128xf32>
    %c15_i32_25 = arith.constant 15 : i32
    %133 = tpu.dynamic_rotate %126 by %c15_i32_25 dim 1 : vector<8x16x128xf32>, i32 -> vector<8x16x128xf32>
    %134 = vector.extract_strided_slice %3 {offsets = [2, 1, 0], sizes = [1, 1, 128], strides = [1, 1, 1]} : vector<8x8x128xf32> to vector<1x1x128xf32>
    %135 = vector.shape_cast %134 : vector<1x1x128xf32> to vector<128xf32>
    %136 = vector.shape_cast %135 : vector<128xf32> to vector<1x1x128xf32>
    %137 = vector.broadcast %136 : vector<1x1x128xf32> to vector<8x16x128xf32>
    %138 = arith.mulf %133, %137 : vector<8x16x128xf32>
    %139 = arith.addf %132, %138 : vector<8x16x128xf32>
    %c15_i32_26 = arith.constant 15 : i32
    %140 = tpu.dynamic_rotate %133 by %c15_i32_26 dim 1 : vector<8x16x128xf32>, i32 -> vector<8x16x128xf32>
    %141 = vector.extract_strided_slice %3 {offsets = [2, 2, 0], sizes = [1, 1, 128], strides = [1, 1, 1]} : vector<8x8x128xf32> to vector<1x1x128xf32>
    %142 = vector.shape_cast %141 : vector<1x1x128xf32> to vector<128xf32>
    %143 = vector.shape_cast %142 : vector<128xf32> to vector<1x1x128xf32>
    %144 = vector.broadcast %143 : vector<1x1x128xf32> to vector<8x16x128xf32>
    %145 = arith.mulf %140, %144 : vector<8x16x128xf32>
    %146 = arith.addf %139, %145 : vector<8x16x128xf32>
    %c15_i32_27 = arith.constant 15 : i32
    %147 = tpu.dynamic_rotate %140 by %c15_i32_27 dim 1 : vector<8x16x128xf32>, i32 -> vector<8x16x128xf32>
    %148 = vector.extract_strided_slice %3 {offsets = [2, 3, 0], sizes = [1, 1, 128], strides = [1, 1, 1]} : vector<8x8x128xf32> to vector<1x1x128xf32>
    %149 = vector.shape_cast %148 : vector<1x1x128xf32> to vector<128xf32>
    %150 = vector.shape_cast %149 : vector<128xf32> to vector<1x1x128xf32>
    %151 = vector.broadcast %150 : vector<1x1x128xf32> to vector<8x16x128xf32>
    %152 = arith.mulf %147, %151 : vector<8x16x128xf32>
    %153 = arith.addf %146, %152 : vector<8x16x128xf32>
    %c15_i32_28 = arith.constant 15 : i32
    %154 = tpu.dynamic_rotate %147 by %c15_i32_28 dim 1 : vector<8x16x128xf32>, i32 -> vector<8x16x128xf32>
    %155 = vector.extract_strided_slice %3 {offsets = [2, 4, 0], sizes = [1, 1, 128], strides = [1, 1, 1]} : vector<8x8x128xf32> to vector<1x1x128xf32>
    %156 = vector.shape_cast %155 : vector<1x1x128xf32> to vector<128xf32>
    %157 = vector.shape_cast %156 : vector<128xf32> to vector<1x1x128xf32>
    %158 = vector.broadcast %157 : vector<1x1x128xf32> to vector<8x16x128xf32>
    %159 = arith.mulf %154, %158 : vector<8x16x128xf32>
    %160 = arith.addf %153, %159 : vector<8x16x128xf32>
    %c15_i32_29 = arith.constant 15 : i32
    %161 = tpu.dynamic_rotate %154 by %c15_i32_29 dim 1 : vector<8x16x128xf32>, i32 -> vector<8x16x128xf32>
    %162 = vector.extract_strided_slice %3 {offsets = [2, 5, 0], sizes = [1, 1, 128], strides = [1, 1, 1]} : vector<8x8x128xf32> to vector<1x1x128xf32>
    %163 = vector.shape_cast %162 : vector<1x1x128xf32> to vector<128xf32>
    %164 = vector.shape_cast %163 : vector<128xf32> to vector<1x1x128xf32>
    %165 = vector.broadcast %164 : vector<1x1x128xf32> to vector<8x16x128xf32>
    %166 = arith.mulf %161, %165 : vector<8x16x128xf32>
    %167 = arith.addf %160, %166 : vector<8x16x128xf32>
    %c15_i32_30 = arith.constant 15 : i32
    %168 = tpu.dynamic_rotate %161 by %c15_i32_30 dim 1 : vector<8x16x128xf32>, i32 -> vector<8x16x128xf32>
    %169 = vector.extract_strided_slice %3 {offsets = [2, 6, 0], sizes = [1, 1, 128], strides = [1, 1, 1]} : vector<8x8x128xf32> to vector<1x1x128xf32>
    %170 = vector.shape_cast %169 : vector<1x1x128xf32> to vector<128xf32>
    %171 = vector.shape_cast %170 : vector<128xf32> to vector<1x1x128xf32>
    %172 = vector.broadcast %171 : vector<1x1x128xf32> to vector<8x16x128xf32>
    %173 = arith.mulf %168, %172 : vector<8x16x128xf32>
    %174 = arith.addf %167, %173 : vector<8x16x128xf32>
    %c15_i32_31 = arith.constant 15 : i32
    %175 = tpu.dynamic_rotate %168 by %c15_i32_31 dim 1 : vector<8x16x128xf32>, i32 -> vector<8x16x128xf32>
    %176 = vector.extract_strided_slice %3 {offsets = [2, 7, 0], sizes = [1, 1, 128], strides = [1, 1, 1]} : vector<8x8x128xf32> to vector<1x1x128xf32>
    %177 = vector.shape_cast %176 : vector<1x1x128xf32> to vector<128xf32>
    %178 = vector.shape_cast %177 : vector<128xf32> to vector<1x1x128xf32>
    %179 = vector.broadcast %178 : vector<1x1x128xf32> to vector<8x16x128xf32>
    %180 = arith.mulf %175, %179 : vector<8x16x128xf32>
    %181 = arith.addf %174, %180 : vector<8x16x128xf32>
    %c3_i32 = arith.constant 3 : i32
    %182 = arith.addi %1, %c3_i32 : i32
    %c0_32 = arith.constant 0 : index
    %183 = arith.index_cast %182 : i32 to index
    %c0_33 = arith.constant 0 : index
    %c0_34 = arith.constant 0 : index
    %184 = vector.load %arg3[%c0_32, %183, %c0_33, %c0_34] : memref<1x23x16x128xf32, #tpu.memory_space<vmem>>, vector<1x8x16x128xf32>
    %185 = vector.shape_cast %184 : vector<1x8x16x128xf32> to vector<8x16x128xf32>
    %186 = vector.extract_strided_slice %3 {offsets = [3, 0, 0], sizes = [1, 1, 128], strides = [1, 1, 1]} : vector<8x8x128xf32> to vector<1x1x128xf32>
    %187 = vector.shape_cast %186 : vector<1x1x128xf32> to vector<128xf32>
    %188 = vector.shape_cast %187 : vector<128xf32> to vector<1x1x128xf32>
    %189 = vector.broadcast %188 : vector<1x1x128xf32> to vector<8x16x128xf32>
    %190 = arith.mulf %185, %189 : vector<8x16x128xf32>
    %191 = arith.addf %181, %190 : vector<8x16x128xf32>
    %c15_i32_35 = arith.constant 15 : i32
    %192 = tpu.dynamic_rotate %185 by %c15_i32_35 dim 1 : vector<8x16x128xf32>, i32 -> vector<8x16x128xf32>
    %193 = vector.extract_strided_slice %3 {offsets = [3, 1, 0], sizes = [1, 1, 128], strides = [1, 1, 1]} : vector<8x8x128xf32> to vector<1x1x128xf32>
    %194 = vector.shape_cast %193 : vector<1x1x128xf32> to vector<128xf32>
    %195 = vector.shape_cast %194 : vector<128xf32> to vector<1x1x128xf32>
    %196 = vector.broadcast %195 : vector<1x1x128xf32> to vector<8x16x128xf32>
    %197 = arith.mulf %192, %196 : vector<8x16x128xf32>
    %198 = arith.addf %191, %197 : vector<8x16x128xf32>
    %c15_i32_36 = arith.constant 15 : i32
    %199 = tpu.dynamic_rotate %192 by %c15_i32_36 dim 1 : vector<8x16x128xf32>, i32 -> vector<8x16x128xf32>
    %200 = vector.extract_strided_slice %3 {offsets = [3, 2, 0], sizes = [1, 1, 128], strides = [1, 1, 1]} : vector<8x8x128xf32> to vector<1x1x128xf32>
    %201 = vector.shape_cast %200 : vector<1x1x128xf32> to vector<128xf32>
    %202 = vector.shape_cast %201 : vector<128xf32> to vector<1x1x128xf32>
    %203 = vector.broadcast %202 : vector<1x1x128xf32> to vector<8x16x128xf32>
    %204 = arith.mulf %199, %203 : vector<8x16x128xf32>
    %205 = arith.addf %198, %204 : vector<8x16x128xf32>
    %c15_i32_37 = arith.constant 15 : i32
    %206 = tpu.dynamic_rotate %199 by %c15_i32_37 dim 1 : vector<8x16x128xf32>, i32 -> vector<8x16x128xf32>
    %207 = vector.extract_strided_slice %3 {offsets = [3, 3, 0], sizes = [1, 1, 128], strides = [1, 1, 1]} : vector<8x8x128xf32> to vector<1x1x128xf32>
    %208 = vector.shape_cast %207 : vector<1x1x128xf32> to vector<128xf32>
    %209 = vector.shape_cast %208 : vector<128xf32> to vector<1x1x128xf32>
    %210 = vector.broadcast %209 : vector<1x1x128xf32> to vector<8x16x128xf32>
    %211 = arith.mulf %206, %210 : vector<8x16x128xf32>
    %212 = arith.addf %205, %211 : vector<8x16x128xf32>
    %c15_i32_38 = arith.constant 15 : i32
    %213 = tpu.dynamic_rotate %206 by %c15_i32_38 dim 1 : vector<8x16x128xf32>, i32 -> vector<8x16x128xf32>
    %214 = vector.extract_strided_slice %3 {offsets = [3, 4, 0], sizes = [1, 1, 128], strides = [1, 1, 1]} : vector<8x8x128xf32> to vector<1x1x128xf32>
    %215 = vector.shape_cast %214 : vector<1x1x128xf32> to vector<128xf32>
    %216 = vector.shape_cast %215 : vector<128xf32> to vector<1x1x128xf32>
    %217 = vector.broadcast %216 : vector<1x1x128xf32> to vector<8x16x128xf32>
    %218 = arith.mulf %213, %217 : vector<8x16x128xf32>
    %219 = arith.addf %212, %218 : vector<8x16x128xf32>
    %c15_i32_39 = arith.constant 15 : i32
    %220 = tpu.dynamic_rotate %213 by %c15_i32_39 dim 1 : vector<8x16x128xf32>, i32 -> vector<8x16x128xf32>
    %221 = vector.extract_strided_slice %3 {offsets = [3, 5, 0], sizes = [1, 1, 128], strides = [1, 1, 1]} : vector<8x8x128xf32> to vector<1x1x128xf32>
    %222 = vector.shape_cast %221 : vector<1x1x128xf32> to vector<128xf32>
    %223 = vector.shape_cast %222 : vector<128xf32> to vector<1x1x128xf32>
    %224 = vector.broadcast %223 : vector<1x1x128xf32> to vector<8x16x128xf32>
    %225 = arith.mulf %220, %224 : vector<8x16x128xf32>
    %226 = arith.addf %219, %225 : vector<8x16x128xf32>
    %c15_i32_40 = arith.constant 15 : i32
    %227 = tpu.dynamic_rotate %220 by %c15_i32_40 dim 1 : vector<8x16x128xf32>, i32 -> vector<8x16x128xf32>
    %228 = vector.extract_strided_slice %3 {offsets = [3, 6, 0], sizes = [1, 1, 128], strides = [1, 1, 1]} : vector<8x8x128xf32> to vector<1x1x128xf32>
    %229 = vector.shape_cast %228 : vector<1x1x128xf32> to vector<128xf32>
    %230 = vector.shape_cast %229 : vector<128xf32> to vector<1x1x128xf32>
    %231 = vector.broadcast %230 : vector<1x1x128xf32> to vector<8x16x128xf32>
    %232 = arith.mulf %227, %231 : vector<8x16x128xf32>
    %233 = arith.addf %226, %232 : vector<8x16x128xf32>
    %c15_i32_41 = arith.constant 15 : i32
    %234 = tpu.dynamic_rotate %227 by %c15_i32_41 dim 1 : vector<8x16x128xf32>, i32 -> vector<8x16x128xf32>
    %235 = vector.extract_strided_slice %3 {offsets = [3, 7, 0], sizes = [1, 1, 128], strides = [1, 1, 1]} : vector<8x8x128xf32> to vector<1x1x128xf32>
    %236 = vector.shape_cast %235 : vector<1x1x128xf32> to vector<128xf32>
    %237 = vector.shape_cast %236 : vector<128xf32> to vector<1x1x128xf32>
    %238 = vector.broadcast %237 : vector<1x1x128xf32> to vector<8x16x128xf32>
    %239 = arith.mulf %234, %238 : vector<8x16x128xf32>
    %240 = arith.addf %233, %239 : vector<8x16x128xf32>
    %c4_i32 = arith.constant 4 : i32
    %241 = arith.addi %1, %c4_i32 : i32
    %c0_42 = arith.constant 0 : index
    %242 = arith.index_cast %241 : i32 to index
    %c0_43 = arith.constant 0 : index
    %c0_44 = arith.constant 0 : index
    %243 = vector.load %arg3[%c0_42, %242, %c0_43, %c0_44] : memref<1x23x16x128xf32, #tpu.memory_space<vmem>>, vector<1x8x16x128xf32>
    %244 = vector.shape_cast %243 : vector<1x8x16x128xf32> to vector<8x16x128xf32>
    %245 = vector.extract_strided_slice %3 {offsets = [4, 0, 0], sizes = [1, 1, 128], strides = [1, 1, 1]} : vector<8x8x128xf32> to vector<1x1x128xf32>
    %246 = vector.shape_cast %245 : vector<1x1x128xf32> to vector<128xf32>
    %247 = vector.shape_cast %246 : vector<128xf32> to vector<1x1x128xf32>
    %248 = vector.broadcast %247 : vector<1x1x128xf32> to vector<8x16x128xf32>
    %249 = arith.mulf %244, %248 : vector<8x16x128xf32>
    %250 = arith.addf %240, %249 : vector<8x16x128xf32>
    %c15_i32_45 = arith.constant 15 : i32
    %251 = tpu.dynamic_rotate %244 by %c15_i32_45 dim 1 : vector<8x16x128xf32>, i32 -> vector<8x16x128xf32>
    %252 = vector.extract_strided_slice %3 {offsets = [4, 1, 0], sizes = [1, 1, 128], strides = [1, 1, 1]} : vector<8x8x128xf32> to vector<1x1x128xf32>
    %253 = vector.shape_cast %252 : vector<1x1x128xf32> to vector<128xf32>
    %254 = vector.shape_cast %253 : vector<128xf32> to vector<1x1x128xf32>
    %255 = vector.broadcast %254 : vector<1x1x128xf32> to vector<8x16x128xf32>
    %256 = arith.mulf %251, %255 : vector<8x16x128xf32>
    %257 = arith.addf %250, %256 : vector<8x16x128xf32>
    %c15_i32_46 = arith.constant 15 : i32
    %258 = tpu.dynamic_rotate %251 by %c15_i32_46 dim 1 : vector<8x16x128xf32>, i32 -> vector<8x16x128xf32>
    %259 = vector.extract_strided_slice %3 {offsets = [4, 2, 0], sizes = [1, 1, 128], strides = [1, 1, 1]} : vector<8x8x128xf32> to vector<1x1x128xf32>
    %260 = vector.shape_cast %259 : vector<1x1x128xf32> to vector<128xf32>
    %261 = vector.shape_cast %260 : vector<128xf32> to vector<1x1x128xf32>
    %262 = vector.broadcast %261 : vector<1x1x128xf32> to vector<8x16x128xf32>
    %263 = arith.mulf %258, %262 : vector<8x16x128xf32>
    %264 = arith.addf %257, %263 : vector<8x16x128xf32>
    %c15_i32_47 = arith.constant 15 : i32
    %265 = tpu.dynamic_rotate %258 by %c15_i32_47 dim 1 : vector<8x16x128xf32>, i32 -> vector<8x16x128xf32>
    %266 = vector.extract_strided_slice %3 {offsets = [4, 3, 0], sizes = [1, 1, 128], strides = [1, 1, 1]} : vector<8x8x128xf32> to vector<1x1x128xf32>
    %267 = vector.shape_cast %266 : vector<1x1x128xf32> to vector<128xf32>
    %268 = vector.shape_cast %267 : vector<128xf32> to vector<1x1x128xf32>
    %269 = vector.broadcast %268 : vector<1x1x128xf32> to vector<8x16x128xf32>
    %270 = arith.mulf %265, %269 : vector<8x16x128xf32>
    %271 = arith.addf %264, %270 : vector<8x16x128xf32>
    %c15_i32_48 = arith.constant 15 : i32
    %272 = tpu.dynamic_rotate %265 by %c15_i32_48 dim 1 : vector<8x16x128xf32>, i32 -> vector<8x16x128xf32>
    %273 = vector.extract_strided_slice %3 {offsets = [4, 4, 0], sizes = [1, 1, 128], strides = [1, 1, 1]} : vector<8x8x128xf32> to vector<1x1x128xf32>
    %274 = vector.shape_cast %273 : vector<1x1x128xf32> to vector<128xf32>
    %275 = vector.shape_cast %274 : vector<128xf32> to vector<1x1x128xf32>
    %276 = vector.broadcast %275 : vector<1x1x128xf32> to vector<8x16x128xf32>
    %277 = arith.mulf %272, %276 : vector<8x16x128xf32>
    %278 = arith.addf %271, %277 : vector<8x16x128xf32>
    %c15_i32_49 = arith.constant 15 : i32
    %279 = tpu.dynamic_rotate %272 by %c15_i32_49 dim 1 : vector<8x16x128xf32>, i32 -> vector<8x16x128xf32>
    %280 = vector.extract_strided_slice %3 {offsets = [4, 5, 0], sizes = [1, 1, 128], strides = [1, 1, 1]} : vector<8x8x128xf32> to vector<1x1x128xf32>
    %281 = vector.shape_cast %280 : vector<1x1x128xf32> to vector<128xf32>
    %282 = vector.shape_cast %281 : vector<128xf32> to vector<1x1x128xf32>
    %283 = vector.broadcast %282 : vector<1x1x128xf32> to vector<8x16x128xf32>
    %284 = arith.mulf %279, %283 : vector<8x16x128xf32>
    %285 = arith.addf %278, %284 : vector<8x16x128xf32>
    %c15_i32_50 = arith.constant 15 : i32
    %286 = tpu.dynamic_rotate %279 by %c15_i32_50 dim 1 : vector<8x16x128xf32>, i32 -> vector<8x16x128xf32>
    %287 = vector.extract_strided_slice %3 {offsets = [4, 6, 0], sizes = [1, 1, 128], strides = [1, 1, 1]} : vector<8x8x128xf32> to vector<1x1x128xf32>
    %288 = vector.shape_cast %287 : vector<1x1x128xf32> to vector<128xf32>
    %289 = vector.shape_cast %288 : vector<128xf32> to vector<1x1x128xf32>
    %290 = vector.broadcast %289 : vector<1x1x128xf32> to vector<8x16x128xf32>
    %291 = arith.mulf %286, %290 : vector<8x16x128xf32>
    %292 = arith.addf %285, %291 : vector<8x16x128xf32>
    %c15_i32_51 = arith.constant 15 : i32
    %293 = tpu.dynamic_rotate %286 by %c15_i32_51 dim 1 : vector<8x16x128xf32>, i32 -> vector<8x16x128xf32>
    %294 = vector.extract_strided_slice %3 {offsets = [4, 7, 0], sizes = [1, 1, 128], strides = [1, 1, 1]} : vector<8x8x128xf32> to vector<1x1x128xf32>
    %295 = vector.shape_cast %294 : vector<1x1x128xf32> to vector<128xf32>
    %296 = vector.shape_cast %295 : vector<128xf32> to vector<1x1x128xf32>
    %297 = vector.broadcast %296 : vector<1x1x128xf32> to vector<8x16x128xf32>
    %298 = arith.mulf %293, %297 : vector<8x16x128xf32>
    %299 = arith.addf %292, %298 : vector<8x16x128xf32>
    %c5_i32 = arith.constant 5 : i32
    %300 = arith.addi %1, %c5_i32 : i32
    %c0_52 = arith.constant 0 : index
    %301 = arith.index_cast %300 : i32 to index
    %c0_53 = arith.constant 0 : index
    %c0_54 = arith.constant 0 : index
    %302 = vector.load %arg3[%c0_52, %301, %c0_53, %c0_54] : memref<1x23x16x128xf32, #tpu.memory_space<vmem>>, vector<1x8x16x128xf32>
    %303 = vector.shape_cast %302 : vector<1x8x16x128xf32> to vector<8x16x128xf32>
    %304 = vector.extract_strided_slice %3 {offsets = [5, 0, 0], sizes = [1, 1, 128], strides = [1, 1, 1]} : vector<8x8x128xf32> to vector<1x1x128xf32>
    %305 = vector.shape_cast %304 : vector<1x1x128xf32> to vector<128xf32>
    %306 = vector.shape_cast %305 : vector<128xf32> to vector<1x1x128xf32>
    %307 = vector.broadcast %306 : vector<1x1x128xf32> to vector<8x16x128xf32>
    %308 = arith.mulf %303, %307 : vector<8x16x128xf32>
    %309 = arith.addf %299, %308 : vector<8x16x128xf32>
    %c15_i32_55 = arith.constant 15 : i32
    %310 = tpu.dynamic_rotate %303 by %c15_i32_55 dim 1 : vector<8x16x128xf32>, i32 -> vector<8x16x128xf32>
    %311 = vector.extract_strided_slice %3 {offsets = [5, 1, 0], sizes = [1, 1, 128], strides = [1, 1, 1]} : vector<8x8x128xf32> to vector<1x1x128xf32>
    %312 = vector.shape_cast %311 : vector<1x1x128xf32> to vector<128xf32>
    %313 = vector.shape_cast %312 : vector<128xf32> to vector<1x1x128xf32>
    %314 = vector.broadcast %313 : vector<1x1x128xf32> to vector<8x16x128xf32>
    %315 = arith.mulf %310, %314 : vector<8x16x128xf32>
    %316 = arith.addf %309, %315 : vector<8x16x128xf32>
    %c15_i32_56 = arith.constant 15 : i32
    %317 = tpu.dynamic_rotate %310 by %c15_i32_56 dim 1 : vector<8x16x128xf32>, i32 -> vector<8x16x128xf32>
    %318 = vector.extract_strided_slice %3 {offsets = [5, 2, 0], sizes = [1, 1, 128], strides = [1, 1, 1]} : vector<8x8x128xf32> to vector<1x1x128xf32>
    %319 = vector.shape_cast %318 : vector<1x1x128xf32> to vector<128xf32>
    %320 = vector.shape_cast %319 : vector<128xf32> to vector<1x1x128xf32>
    %321 = vector.broadcast %320 : vector<1x1x128xf32> to vector<8x16x128xf32>
    %322 = arith.mulf %317, %321 : vector<8x16x128xf32>
    %323 = arith.addf %316, %322 : vector<8x16x128xf32>
    %c15_i32_57 = arith.constant 15 : i32
    %324 = tpu.dynamic_rotate %317 by %c15_i32_57 dim 1 : vector<8x16x128xf32>, i32 -> vector<8x16x128xf32>
    %325 = vector.extract_strided_slice %3 {offsets = [5, 3, 0], sizes = [1, 1, 128], strides = [1, 1, 1]} : vector<8x8x128xf32> to vector<1x1x128xf32>
    %326 = vector.shape_cast %325 : vector<1x1x128xf32> to vector<128xf32>
    %327 = vector.shape_cast %326 : vector<128xf32> to vector<1x1x128xf32>
    %328 = vector.broadcast %327 : vector<1x1x128xf32> to vector<8x16x128xf32>
    %329 = arith.mulf %324, %328 : vector<8x16x128xf32>
    %330 = arith.addf %323, %329 : vector<8x16x128xf32>
    %c15_i32_58 = arith.constant 15 : i32
    %331 = tpu.dynamic_rotate %324 by %c15_i32_58 dim 1 : vector<8x16x128xf32>, i32 -> vector<8x16x128xf32>
    %332 = vector.extract_strided_slice %3 {offsets = [5, 4, 0], sizes = [1, 1, 128], strides = [1, 1, 1]} : vector<8x8x128xf32> to vector<1x1x128xf32>
    %333 = vector.shape_cast %332 : vector<1x1x128xf32> to vector<128xf32>
    %334 = vector.shape_cast %333 : vector<128xf32> to vector<1x1x128xf32>
    %335 = vector.broadcast %334 : vector<1x1x128xf32> to vector<8x16x128xf32>
    %336 = arith.mulf %331, %335 : vector<8x16x128xf32>
    %337 = arith.addf %330, %336 : vector<8x16x128xf32>
    %c15_i32_59 = arith.constant 15 : i32
    %338 = tpu.dynamic_rotate %331 by %c15_i32_59 dim 1 : vector<8x16x128xf32>, i32 -> vector<8x16x128xf32>
    %339 = vector.extract_strided_slice %3 {offsets = [5, 5, 0], sizes = [1, 1, 128], strides = [1, 1, 1]} : vector<8x8x128xf32> to vector<1x1x128xf32>
    %340 = vector.shape_cast %339 : vector<1x1x128xf32> to vector<128xf32>
    %341 = vector.shape_cast %340 : vector<128xf32> to vector<1x1x128xf32>
    %342 = vector.broadcast %341 : vector<1x1x128xf32> to vector<8x16x128xf32>
    %343 = arith.mulf %338, %342 : vector<8x16x128xf32>
    %344 = arith.addf %337, %343 : vector<8x16x128xf32>
    %c15_i32_60 = arith.constant 15 : i32
    %345 = tpu.dynamic_rotate %338 by %c15_i32_60 dim 1 : vector<8x16x128xf32>, i32 -> vector<8x16x128xf32>
    %346 = vector.extract_strided_slice %3 {offsets = [5, 6, 0], sizes = [1, 1, 128], strides = [1, 1, 1]} : vector<8x8x128xf32> to vector<1x1x128xf32>
    %347 = vector.shape_cast %346 : vector<1x1x128xf32> to vector<128xf32>
    %348 = vector.shape_cast %347 : vector<128xf32> to vector<1x1x128xf32>
    %349 = vector.broadcast %348 : vector<1x1x128xf32> to vector<8x16x128xf32>
    %350 = arith.mulf %345, %349 : vector<8x16x128xf32>
    %351 = arith.addf %344, %350 : vector<8x16x128xf32>
    %c15_i32_61 = arith.constant 15 : i32
    %352 = tpu.dynamic_rotate %345 by %c15_i32_61 dim 1 : vector<8x16x128xf32>, i32 -> vector<8x16x128xf32>
    %353 = vector.extract_strided_slice %3 {offsets = [5, 7, 0], sizes = [1, 1, 128], strides = [1, 1, 1]} : vector<8x8x128xf32> to vector<1x1x128xf32>
    %354 = vector.shape_cast %353 : vector<1x1x128xf32> to vector<128xf32>
    %355 = vector.shape_cast %354 : vector<128xf32> to vector<1x1x128xf32>
    %356 = vector.broadcast %355 : vector<1x1x128xf32> to vector<8x16x128xf32>
    %357 = arith.mulf %352, %356 : vector<8x16x128xf32>
    %358 = arith.addf %351, %357 : vector<8x16x128xf32>
    %c6_i32 = arith.constant 6 : i32
    %359 = arith.addi %1, %c6_i32 : i32
    %c0_62 = arith.constant 0 : index
    %360 = arith.index_cast %359 : i32 to index
    %c0_63 = arith.constant 0 : index
    %c0_64 = arith.constant 0 : index
    %361 = vector.load %arg3[%c0_62, %360, %c0_63, %c0_64] : memref<1x23x16x128xf32, #tpu.memory_space<vmem>>, vector<1x8x16x128xf32>
    %362 = vector.shape_cast %361 : vector<1x8x16x128xf32> to vector<8x16x128xf32>
    %363 = vector.extract_strided_slice %3 {offsets = [6, 0, 0], sizes = [1, 1, 128], strides = [1, 1, 1]} : vector<8x8x128xf32> to vector<1x1x128xf32>
    %364 = vector.shape_cast %363 : vector<1x1x128xf32> to vector<128xf32>
    %365 = vector.shape_cast %364 : vector<128xf32> to vector<1x1x128xf32>
    %366 = vector.broadcast %365 : vector<1x1x128xf32> to vector<8x16x128xf32>
    %367 = arith.mulf %362, %366 : vector<8x16x128xf32>
    %368 = arith.addf %358, %367 : vector<8x16x128xf32>
    %c15_i32_65 = arith.constant 15 : i32
    %369 = tpu.dynamic_rotate %362 by %c15_i32_65 dim 1 : vector<8x16x128xf32>, i32 -> vector<8x16x128xf32>
    %370 = vector.extract_strided_slice %3 {offsets = [6, 1, 0], sizes = [1, 1, 128], strides = [1, 1, 1]} : vector<8x8x128xf32> to vector<1x1x128xf32>
    %371 = vector.shape_cast %370 : vector<1x1x128xf32> to vector<128xf32>
    %372 = vector.shape_cast %371 : vector<128xf32> to vector<1x1x128xf32>
    %373 = vector.broadcast %372 : vector<1x1x128xf32> to vector<8x16x128xf32>
    %374 = arith.mulf %369, %373 : vector<8x16x128xf32>
    %375 = arith.addf %368, %374 : vector<8x16x128xf32>
    %c15_i32_66 = arith.constant 15 : i32
    %376 = tpu.dynamic_rotate %369 by %c15_i32_66 dim 1 : vector<8x16x128xf32>, i32 -> vector<8x16x128xf32>
    %377 = vector.extract_strided_slice %3 {offsets = [6, 2, 0], sizes = [1, 1, 128], strides = [1, 1, 1]} : vector<8x8x128xf32> to vector<1x1x128xf32>
    %378 = vector.shape_cast %377 : vector<1x1x128xf32> to vector<128xf32>
    %379 = vector.shape_cast %378 : vector<128xf32> to vector<1x1x128xf32>
    %380 = vector.broadcast %379 : vector<1x1x128xf32> to vector<8x16x128xf32>
    %381 = arith.mulf %376, %380 : vector<8x16x128xf32>
    %382 = arith.addf %375, %381 : vector<8x16x128xf32>
    %c15_i32_67 = arith.constant 15 : i32
    %383 = tpu.dynamic_rotate %376 by %c15_i32_67 dim 1 : vector<8x16x128xf32>, i32 -> vector<8x16x128xf32>
    %384 = vector.extract_strided_slice %3 {offsets = [6, 3, 0], sizes = [1, 1, 128], strides = [1, 1, 1]} : vector<8x8x128xf32> to vector<1x1x128xf32>
    %385 = vector.shape_cast %384 : vector<1x1x128xf32> to vector<128xf32>
    %386 = vector.shape_cast %385 : vector<128xf32> to vector<1x1x128xf32>
    %387 = vector.broadcast %386 : vector<1x1x128xf32> to vector<8x16x128xf32>
    %388 = arith.mulf %383, %387 : vector<8x16x128xf32>
    %389 = arith.addf %382, %388 : vector<8x16x128xf32>
    %c15_i32_68 = arith.constant 15 : i32
    %390 = tpu.dynamic_rotate %383 by %c15_i32_68 dim 1 : vector<8x16x128xf32>, i32 -> vector<8x16x128xf32>
    %391 = vector.extract_strided_slice %3 {offsets = [6, 4, 0], sizes = [1, 1, 128], strides = [1, 1, 1]} : vector<8x8x128xf32> to vector<1x1x128xf32>
    %392 = vector.shape_cast %391 : vector<1x1x128xf32> to vector<128xf32>
    %393 = vector.shape_cast %392 : vector<128xf32> to vector<1x1x128xf32>
    %394 = vector.broadcast %393 : vector<1x1x128xf32> to vector<8x16x128xf32>
    %395 = arith.mulf %390, %394 : vector<8x16x128xf32>
    %396 = arith.addf %389, %395 : vector<8x16x128xf32>
    %c15_i32_69 = arith.constant 15 : i32
    %397 = tpu.dynamic_rotate %390 by %c15_i32_69 dim 1 : vector<8x16x128xf32>, i32 -> vector<8x16x128xf32>
    %398 = vector.extract_strided_slice %3 {offsets = [6, 5, 0], sizes = [1, 1, 128], strides = [1, 1, 1]} : vector<8x8x128xf32> to vector<1x1x128xf32>
    %399 = vector.shape_cast %398 : vector<1x1x128xf32> to vector<128xf32>
    %400 = vector.shape_cast %399 : vector<128xf32> to vector<1x1x128xf32>
    %401 = vector.broadcast %400 : vector<1x1x128xf32> to vector<8x16x128xf32>
    %402 = arith.mulf %397, %401 : vector<8x16x128xf32>
    %403 = arith.addf %396, %402 : vector<8x16x128xf32>
    %c15_i32_70 = arith.constant 15 : i32
    %404 = tpu.dynamic_rotate %397 by %c15_i32_70 dim 1 : vector<8x16x128xf32>, i32 -> vector<8x16x128xf32>
    %405 = vector.extract_strided_slice %3 {offsets = [6, 6, 0], sizes = [1, 1, 128], strides = [1, 1, 1]} : vector<8x8x128xf32> to vector<1x1x128xf32>
    %406 = vector.shape_cast %405 : vector<1x1x128xf32> to vector<128xf32>
    %407 = vector.shape_cast %406 : vector<128xf32> to vector<1x1x128xf32>
    %408 = vector.broadcast %407 : vector<1x1x128xf32> to vector<8x16x128xf32>
    %409 = arith.mulf %404, %408 : vector<8x16x128xf32>
    %410 = arith.addf %403, %409 : vector<8x16x128xf32>
    %c15_i32_71 = arith.constant 15 : i32
    %411 = tpu.dynamic_rotate %404 by %c15_i32_71 dim 1 : vector<8x16x128xf32>, i32 -> vector<8x16x128xf32>
    %412 = vector.extract_strided_slice %3 {offsets = [6, 7, 0], sizes = [1, 1, 128], strides = [1, 1, 1]} : vector<8x8x128xf32> to vector<1x1x128xf32>
    %413 = vector.shape_cast %412 : vector<1x1x128xf32> to vector<128xf32>
    %414 = vector.shape_cast %413 : vector<128xf32> to vector<1x1x128xf32>
    %415 = vector.broadcast %414 : vector<1x1x128xf32> to vector<8x16x128xf32>
    %416 = arith.mulf %411, %415 : vector<8x16x128xf32>
    %417 = arith.addf %410, %416 : vector<8x16x128xf32>
    %c7_i32 = arith.constant 7 : i32
    %418 = arith.addi %1, %c7_i32 : i32
    %c0_72 = arith.constant 0 : index
    %419 = arith.index_cast %418 : i32 to index
    %c0_73 = arith.constant 0 : index
    %c0_74 = arith.constant 0 : index
    %420 = vector.load %arg3[%c0_72, %419, %c0_73, %c0_74] : memref<1x23x16x128xf32, #tpu.memory_space<vmem>>, vector<1x8x16x128xf32>
    %421 = vector.shape_cast %420 : vector<1x8x16x128xf32> to vector<8x16x128xf32>
    %422 = vector.extract_strided_slice %3 {offsets = [7, 0, 0], sizes = [1, 1, 128], strides = [1, 1, 1]} : vector<8x8x128xf32> to vector<1x1x128xf32>
    %423 = vector.shape_cast %422 : vector<1x1x128xf32> to vector<128xf32>
    %424 = vector.shape_cast %423 : vector<128xf32> to vector<1x1x128xf32>
    %425 = vector.broadcast %424 : vector<1x1x128xf32> to vector<8x16x128xf32>
    %426 = arith.mulf %421, %425 : vector<8x16x128xf32>
    %427 = arith.addf %417, %426 : vector<8x16x128xf32>
    %c15_i32_75 = arith.constant 15 : i32
    %428 = tpu.dynamic_rotate %421 by %c15_i32_75 dim 1 : vector<8x16x128xf32>, i32 -> vector<8x16x128xf32>
    %429 = vector.extract_strided_slice %3 {offsets = [7, 1, 0], sizes = [1, 1, 128], strides = [1, 1, 1]} : vector<8x8x128xf32> to vector<1x1x128xf32>
    %430 = vector.shape_cast %429 : vector<1x1x128xf32> to vector<128xf32>
    %431 = vector.shape_cast %430 : vector<128xf32> to vector<1x1x128xf32>
    %432 = vector.broadcast %431 : vector<1x1x128xf32> to vector<8x16x128xf32>
    %433 = arith.mulf %428, %432 : vector<8x16x128xf32>
    %434 = arith.addf %427, %433 : vector<8x16x128xf32>
    %c15_i32_76 = arith.constant 15 : i32
    %435 = tpu.dynamic_rotate %428 by %c15_i32_76 dim 1 : vector<8x16x128xf32>, i32 -> vector<8x16x128xf32>
    %436 = vector.extract_strided_slice %3 {offsets = [7, 2, 0], sizes = [1, 1, 128], strides = [1, 1, 1]} : vector<8x8x128xf32> to vector<1x1x128xf32>
    %437 = vector.shape_cast %436 : vector<1x1x128xf32> to vector<128xf32>
    %438 = vector.shape_cast %437 : vector<128xf32> to vector<1x1x128xf32>
    %439 = vector.broadcast %438 : vector<1x1x128xf32> to vector<8x16x128xf32>
    %440 = arith.mulf %435, %439 : vector<8x16x128xf32>
    %441 = arith.addf %434, %440 : vector<8x16x128xf32>
    %c15_i32_77 = arith.constant 15 : i32
    %442 = tpu.dynamic_rotate %435 by %c15_i32_77 dim 1 : vector<8x16x128xf32>, i32 -> vector<8x16x128xf32>
    %443 = vector.extract_strided_slice %3 {offsets = [7, 3, 0], sizes = [1, 1, 128], strides = [1, 1, 1]} : vector<8x8x128xf32> to vector<1x1x128xf32>
    %444 = vector.shape_cast %443 : vector<1x1x128xf32> to vector<128xf32>
    %445 = vector.shape_cast %444 : vector<128xf32> to vector<1x1x128xf32>
    %446 = vector.broadcast %445 : vector<1x1x128xf32> to vector<8x16x128xf32>
    %447 = arith.mulf %442, %446 : vector<8x16x128xf32>
    %448 = arith.addf %441, %447 : vector<8x16x128xf32>
    %c15_i32_78 = arith.constant 15 : i32
    %449 = tpu.dynamic_rotate %442 by %c15_i32_78 dim 1 : vector<8x16x128xf32>, i32 -> vector<8x16x128xf32>
    %450 = vector.extract_strided_slice %3 {offsets = [7, 4, 0], sizes = [1, 1, 128], strides = [1, 1, 1]} : vector<8x8x128xf32> to vector<1x1x128xf32>
    %451 = vector.shape_cast %450 : vector<1x1x128xf32> to vector<128xf32>
    %452 = vector.shape_cast %451 : vector<128xf32> to vector<1x1x128xf32>
    %453 = vector.broadcast %452 : vector<1x1x128xf32> to vector<8x16x128xf32>
    %454 = arith.mulf %449, %453 : vector<8x16x128xf32>
    %455 = arith.addf %448, %454 : vector<8x16x128xf32>
    %c15_i32_79 = arith.constant 15 : i32
    %456 = tpu.dynamic_rotate %449 by %c15_i32_79 dim 1 : vector<8x16x128xf32>, i32 -> vector<8x16x128xf32>
    %457 = vector.extract_strided_slice %3 {offsets = [7, 5, 0], sizes = [1, 1, 128], strides = [1, 1, 1]} : vector<8x8x128xf32> to vector<1x1x128xf32>
    %458 = vector.shape_cast %457 : vector<1x1x128xf32> to vector<128xf32>
    %459 = vector.shape_cast %458 : vector<128xf32> to vector<1x1x128xf32>
    %460 = vector.broadcast %459 : vector<1x1x128xf32> to vector<8x16x128xf32>
    %461 = arith.mulf %456, %460 : vector<8x16x128xf32>
    %462 = arith.addf %455, %461 : vector<8x16x128xf32>
    %c15_i32_80 = arith.constant 15 : i32
    %463 = tpu.dynamic_rotate %456 by %c15_i32_80 dim 1 : vector<8x16x128xf32>, i32 -> vector<8x16x128xf32>
    %464 = vector.extract_strided_slice %3 {offsets = [7, 6, 0], sizes = [1, 1, 128], strides = [1, 1, 1]} : vector<8x8x128xf32> to vector<1x1x128xf32>
    %465 = vector.shape_cast %464 : vector<1x1x128xf32> to vector<128xf32>
    %466 = vector.shape_cast %465 : vector<128xf32> to vector<1x1x128xf32>
    %467 = vector.broadcast %466 : vector<1x1x128xf32> to vector<8x16x128xf32>
    %468 = arith.mulf %463, %467 : vector<8x16x128xf32>
    %469 = arith.addf %462, %468 : vector<8x16x128xf32>
    %c15_i32_81 = arith.constant 15 : i32
    %470 = tpu.dynamic_rotate %463 by %c15_i32_81 dim 1 : vector<8x16x128xf32>, i32 -> vector<8x16x128xf32>
    %471 = vector.extract_strided_slice %3 {offsets = [7, 7, 0], sizes = [1, 1, 128], strides = [1, 1, 1]} : vector<8x8x128xf32> to vector<1x1x128xf32>
    %472 = vector.shape_cast %471 : vector<1x1x128xf32> to vector<128xf32>
    %473 = vector.shape_cast %472 : vector<128xf32> to vector<1x1x128xf32>
    %474 = vector.broadcast %473 : vector<1x1x128xf32> to vector<8x16x128xf32>
    %475 = arith.mulf %470, %474 : vector<8x16x128xf32>
    %476 = arith.addf %469, %475 : vector<8x16x128xf32>
    %477 = vector.extract_strided_slice %476 {offsets = [0, 0, 0], sizes = [8, 9, 128], strides = [1, 1, 1]} : vector<8x16x128xf32> to vector<8x9x128xf32>
    %c0_82 = arith.constant 0 : index
    %c0_83 = arith.constant 0 : index
    %c0_84 = arith.constant 0 : index
    %c0_85 = arith.constant 0 : index
    %478 = vector.load %arg5[%c0_82, %c0_83, %c0_84, %c0_85] : memref<1x8x9x128xf32, #tpu.memory_space<vmem>>, vector<1x8x9x128xf32>
    %479 = vector.shape_cast %478 : vector<1x8x9x128xf32> to vector<8x9x128xf32>
    %480 = vector.shape_cast %477 : vector<8x9x128xf32> to vector<1x8x9x128xf32>
    tpu.vector_store %arg5[%c0_82, %c0_83, %c0_84, %c0_85], %480 {strides = array<i32>} : memref<1x8x9x128xf32, #tpu.memory_space<vmem>>, vector<1x8x9x128xf32>,
    return
  }
  func.func @transform_0(%arg0: i32, %arg1: i32, %arg2: i32) -> (i32, i32, i32, i32) {
    %c0_i32 = arith.constant 0 : i32
    %c0_i32_0 = arith.constant 0 : i32
    %c0_i32_1 = arith.constant 0 : i32
    return %arg0, %c0_i32, %c0_i32_0, %arg1 : i32, i32, i32, i32
  }
  func.func @transform_1(%arg0: i32, %arg1: i32, %arg2: i32) -> (i32, i32, i32, i32) {
    %c0_i32 = arith.constant 0 : i32
    %c0_i32_0 = arith.constant 0 : i32
    %c0_i32_1 = arith.constant 0 : i32
    return %arg0, %c0_i32, %c0_i32_0, %arg1 : i32, i32, i32, i32
  }
  func.func @transform_2(%arg0: i32, %arg1: i32, %arg2: i32) -> (i32, i32, i32, i32) {
    %c0_i32 = arith.constant 0 : i32
    %c0_i32_0 = arith.constant 0 : i32
    return %arg0, %arg2, %c0_i32, %arg1 : i32, i32, i32, i32
  }
}

</mosaic_0001>

<bundles_post_ra>
// kernel: tpu_custom_call.1
= control target key start
LH: loop header
LB: loop body
LE: loop exit
PB: predicated region body
PF: predicated region fallthrough
CT: control target
= control target key end

     0   :  { %7 = vsyncpa [#allocation3], 0  ;;  %s9986_s0 = inlined_call_operand.hbm [shape: f32[2,23,16,128], index: 0, kind: input, shape index: {}]   ;;  %s9987_s1 = inlined_call_operand.hbm [shape: f32[2,8,8,128], index: 1, kind: input, shape index: {}]   ;;  %s9988_s2 = inlined_call_operand.vmem [shape: f32[2,16,9,128], index: 2, kind: output, shape index: {}]  }
   0x1   :  { %9 = vsyncpa [#allocation3 + $0x1], 0 }
   0x2   :  { %10 = vsyncpa [#allocation5], 0 }
   0x3   :  { %12 = vsyncpa [#allocation5 + $0x1], 0  ;;  %s5082_s9 = smov 0   ;;  %s5084_s10 = smov 0  }
   0x4   :  { %s5086_s11 = smov 0   ;;  %s5088_s12 = smov 0  }
   0x5   :  { %s5090_s13 = smov 0   ;;  %s5092_s14 = smov 0  }
   0x6   :  { %s5094_s15 = smov 0   ;;  %s5096_s16 = smov 0  }
   0x7 LB: > { %s4696_s17 = sadd.s32 4294967295, %s5061_s16   ;;  %s30_s18 = sadd.s32 1, %s5053_s14  ;;  %s5061_s16 = sphi %s5096_s16, %s18_s16   ;;  %s5057_s15 = sphi %s5094_s15, %s11389_s15   ;;  %s5053_s14 = sphi %s5092_s14, %s11388_s14   ;;  %s5049_s13 = sphi %s5090_s13, %s11387_s13   ;;  %s5045_s12 = sphi %s5088_s12, %s11386_s12   ;;  %s5041_s11 = sphi %s5086_s11, %s11385_s11   ;;  %s5037_s10 = sphi %s5084_s10, %s11384_s10   ;;  %s5033_s9 = sphi %s5082_s9, %s11383_s9  }
   0x8   : > { %p31_p0 = scmp.ge.s32.totalorder %s30_s18, 2  ;;  %s37_s19 = sadd.s32 1, %s5057_s15 }
   0x9   : > { %s46_s20 = sadd.s32 1, %s5041_s11  ;;  %p53_p1 = scmp.ne.s32.totalorder %s5041_s11, %s5037_s10 }
   0xa   : > { %s11391_s18 = smov (%p31_p0, %s30_s18), 0  ;;  %s11393_s19 = smov (!%p31_p0, %s37_s19), %s5057_s15 }
   0xb   : > { %p54_p2 = scmp.eq.s32.totalorder %s5061_s16, 0  ;;  %p59_p3 = scmp.ne.s32.totalorder %s5037_s10, %s5033_s9 }
   0xc   : > { %p39_p4 = scmp.ge.s32.totalorder %s11393_s19, 2  ;;  %p60_p5 = scmp.eq.s32.totalorder %s4696_s17, 0 }
   0xd   : > { %p55_p6 = por %p54_p2, %p53_p1  ;;  %p4863_p8 = scmp.lt.s32.totalorder %s5061_s16, 4 }
   0xe   : > { %s11395_s19 = smov (%p39_p4, %s11393_s19), 0  ;;  %p5133_p7 = por %p60_p5, %p59_p3 }
   0xf   : > { %s41_s22 = ssub.s32 %s5057_s15, %s11395_s19  ;;  %s5141_s23 = sand.u32 1, %s5041_s11  }
  0x10   : > { %s10446_s21 = scalar_select %p5133_p7, 1, 0 }
  0x11   : > { %p44_p9 = scmp.eq.s32.totalorder %s41_s22, 0  ;;  %s4849_s24 = smul.u32 368, %s5141_s23 }
  0x12   : > { %p5144_p10 = pnand %p4863_p8, %p55_p6  ;;  %s4850_s27 = smul.u32 5888, %s5057_s15 }
  0x13   : > { %s5149_s26 = scalar_select %p44_p9, %s5041_s11, %s46_s20  }
  0x14   : > { %s145_s28 = scalar_lea.vmem [#allocation2], %s4849_s24  ;;  %s5155_s4 = scalar_lea.hbm %s9986_s0, %s4850_s27 }
  0x15   : > { %s153_s29 = sshll.u32 %s145_s28, 4  ;;  %s142_s5 = scalar_lea.sflag [#allocation3], %s5141_s23  ;;  %s5157_s29 = int_to_ptr.vmem [resolvable:$true] %s153_s29 }
  0x16   : > { %s4931_s6 = scalar_lea.hbm %s5155_s4, 5888  ;;  %p4933_p12 = pneg %p5144_p10 }
  0x17   : > { %p4932_p11 = scmp.ne.s32.totalorder %s5155_s4, %s4931_s6  ;;  %s4936_s9 = scalar_lea.hbm %s9986_s0, 11776 }
  0x18   : > { %p4937_p1 = scmp.lt.u32.totalorder %s5155_s4, %s9986_s0  ;;  %p4938_p2 = scmp.lt.u32.totalorder %s4936_s9, %s4931_s6 }
  0x19   : > { %p4934_p13 = pnand %p4933_p12, %p4932_p11  ;;  %p4940_p4 = scmp.lt.u32.totalorder %s4931_s6, %s5155_s4 }
  0x1a   : > { %p4939_p3 = por %p4938_p2, %p4937_p1 }
  0x1b   : > { %p4935_p0 = pneg %p4934_p13 }
  0x1c   : > { %p4941_p5 = por %p4940_p4, %p4939_p3 }
  0x1e   : > { %p4942_p6 = pnand %p4941_p5, %p4935_p0 }
  0x20   : > { %4945 = shalt.err (!%p4942_p6)
}
  0x21   : > { %s4946_s22 = scalar_lea.vmem %s5157_s29, 5888  ;;  %s5063_s24 = smov [#allocation2]  }
  0x22   : > { %p4947_p8 = scmp.ne.s32.totalorder %s5157_s29, %s4946_s22  ;;  %s4951_s27 = sshll.u32 %s5063_s24, 4  ;;  %s4952_s27 = int_to_ptr.vmem [resolvable:$false] %s4951_s27 }
  0x23   : > { %s4953_s28 = scalar_lea.vmem %s4952_s27, 11776  ;;  %p4954_p13 = scmp.lt.s32.totalorder %s5157_s29, %s4952_s27 }
  0x24   : > { %p4949_p9 = pnand %p4947_p8, %p4933_p12  ;;  %p4955_p1 = scmp.lt.s32.totalorder %s4953_s28, %s4946_s22 }
  0x26   : > { %p4950_p11 = pneg %p4949_p9  ;;  %p4956_p2 = por %p4955_p1, %p4954_p13 }
  0x28   : > { %p4957_p3 = pnand %p4956_p2, %p4950_p11 }
  0x2a   : > { %4960 = shalt.err (!%p4957_p3)
}
  0x2b   : > { %s5064_s30 = smov 128   ;;  %s5065_s3 = smov 8  }
  0x2c   : > { %4859 = dma.hbm_to_vmem [thread:$0]  (!%p5144_p10), %s5155_s4, 5888, %s5157_s29, %s142_s5, %s5064_s30, %s5064_s30, %s5065_s3  }
  0x2d   : > { %p4704_p0 = scmp.ge.s32.totalorder %s5061_s16, 1  ;;  %p183_p4 = scmp.lt.s32.totalorder %s5061_s16, 5 }
  0x2e   : > { %s4701_s6 = sshll.u32 %s5141_s23, 6  ;;  %s4840_s8 = sshll.u32 %s5057_s15, 10 }
  0x2f   : > { %p5193_p5 = pnand %p4704_p0, %p183_p4  ;;  %s167_s9 = scalar_lea.vmem [#allocation4], %s4701_s6 }
  0x30   : > { %s175_s17 = sshll.u32 %s167_s9, 4  ;;  %s5201_s24 = scalar_lea.hbm %s9987_s1, %s4840_s8  ;;  %s5203_s17 = int_to_ptr.vmem [resolvable:$true] %s175_s17 }
  0x31   : > { %s164_s29 = scalar_lea.sflag [#allocation5], %s5141_s23  ;;  %s4961_s4 = scalar_lea.hbm %s5201_s24, 1024 }
  0x32   : > { %p4962_p6 = scmp.ne.s32.totalorder %s5201_s24, %s4961_s4  ;;  %s4966_s28 = scalar_lea.hbm %s9987_s1, 2048 }
  0x33   : > { %p4967_p11 = scmp.lt.u32.totalorder %s5201_s24, %s9987_s1  ;;  %p4968_p13 = scmp.lt.u32.totalorder %s4966_s28, %s4961_s4 }
  0x34   : > { %p4964_p8 = pnand %p4962_p6, %p4933_p12  ;;  %p4970_p2 = scmp.lt.u32.totalorder %s4961_s4, %s5201_s24 }
  0x35   : > { %p4969_p1 = por %p4968_p13, %p4967_p11 }
  0x36   : > { %p4965_p9 = pneg %p4964_p8 }
  0x37   : > { %p4971_p3 = por %p4970_p2, %p4969_p1 }
  0x39   : > { %p4972_p0 = pnand %p4971_p3, %p4965_p9 }
  0x3b   : > { %4975 = shalt.err (!%p4972_p0)
}
  0x3c   : > { %s4976_s9 = scalar_lea.vmem %s5203_s17, 1024  ;;  %s5066_s20 = smov [#allocation4]  }
  0x3d   : > { %p4977_p4 = scmp.ne.s32.totalorder %s5203_s17, %s4976_s9  ;;  %s4981_s22 = sshll.u32 %s5066_s20, 4  ;;  %s4982_s22 = int_to_ptr.vmem [resolvable:$false] %s4981_s22 }
  0x3e   : > { %s4983_s5 = scalar_lea.vmem %s4982_s22, 2048  ;;  %p4984_p7 = scmp.lt.s32.totalorder %s5203_s17, %s4982_s22 }
  0x3f   : > { %p4979_p6 = pnand %p4977_p4, %p4933_p12  ;;  %p4985_p11 = scmp.lt.s32.totalorder %s4983_s5, %s4976_s9 }
  0x41   : > { %p4980_p8 = pneg %p4979_p6  ;;  %p4986_p13 = por %p4985_p11, %p4984_p7 }
  0x43   : > { %p4987_p1 = pnand %p4986_p13, %p4980_p8 }
  0x45   : > { %4990 = shalt.err (!%p4987_p1)
}
  0x46   : > { %4862 = dma.hbm_to_vmem [thread:$0]  (!%p5144_p10), %s5201_s24, 1024, %s5203_s17, %s164_s29, %s5064_s30, %s5064_s30, %s5065_s3  }
  0x47   : > { %187 = sbr.rel (%p5193_p5) target bundleno = 914 (0x392), region = 28 }
  0x4e   : > { %s189_s4 = sand.u32 1, %s5037_s10   ;;  %p10449_p7 = scmp.ne.s32.totalorder %s10446_s21, 0 }
  0x4f   : > { %s4851_s27 = smul.u32 368, %s189_s4  ;;  %s190_s28 = scalar_lea.sflag [#allocation3], %s189_s4 }
  0x51   : > { %s193_s6 = scalar_lea.vmem [#allocation2], %s4851_s27 }
  0x52   : > { %5024 = dma.done.wait (%p10449_p7), %s190_s28, 5888  }
  0x53   : > { %5026 = vsyncadd (%p10449_p7), %s190_s28, 4294961408  ;;  %s4705_s25 = sshll.u32 %s189_s4, 6  ;;  %s199_s23 = scalar_lea.sflag [#allocation5], %s189_s4 }
  0x54   : > { %s5241_s8 = scalar_lea.vmem [#allocation4], %s4705_s25 }
  0x55   : > { %5028 = dma.done.wait (%p10449_p7), %s199_s23, 1024  }
  0x56   : > { %5030 = vsyncadd (%p10449_p7), %s199_s23, 4294966272  ;;  %v277_v0 = vlaneseq  ;;  %s4841_s30 = sshll.u32 %s5045_s12, 7  ;;  %v251_v10 = vld [vmem:[%s5241_s8] sm:$0xff]  ;;  %v252_v11 = vld [vmem:[%s5241_s8 + $0x8] sm:$0xff]  ;;  %s4706_s3 = sshll.u32 %s5045_s12, 3 }
  0x57   : > { %s5271_s21 = scalar_lea.vmem %s193_s6, %s4841_s30 [#allocation2]  ;;  %p237_p10 = scmp.lt.s32.totalorder %s5049_s13, 1 }
  0x58   : > { %v5247_v1 = vshrl.u32 %v277_v0, 7  ;;  %v5290_v16 = vld [vmem:[%s5271_s21] sm:$0xff]  ;;  %v262_v21 = vld [vmem:[%s5271_s21 + $0x8] sm:$0xff]  ;;  %v5306_v22 = vld [vmem:[%s5271_s21 + $0x10] sm:$0xff]  ;;  %p9844_p12 = scmp.lt.s32.totalorder %s4706_s3, 15 }
  0x59   : > { %v5309_v23 = vld [vmem:[%s5271_s21 + $0x18] sm:$0xff]  ;;  %v313_v25 = vrot.slane %v5290_v16, 1  ;;  %v5322_v28 = vld [vmem:[%s5271_s21 + $0x20] sm:$0xff]  ;;  %v5325_v29 = vld [vmem:[%s5271_s21 + $0x28] sm:$0xff]  ;;  %v314_v34 = vrot.slane %v5306_v22, 1  ;;  %v321_v62 = vrot.slane %v262_v21, 1 }
  0x5a   : > { %10450 = vst [vmem:[#allocation8_spill] sm:$0xff] %v5247_v1  ;;  %v5251_v2 = vsub.s32 0, %v5247_v1  ;;  %v5254_v3 = vsub.s32 1, %v5247_v1  ;;  %v5257_v4 = vsub.s32 2, %v5247_v1  ;;  %v5260_v5 = vsub.s32 3, %v5247_v1  ;;  %10459 = vst [vmem:[#allocation17_spill] sm:$0xff] %v5309_v23 }
  0x5b   : > { %v5263_v6 = vsub.s32 4, %v5247_v1  ;;  %v5266_v7 = vsub.s32 5, %v5247_v1  ;;  %v5269_v8 = vsub.s32 6, %v5247_v1  ;;  %v5274_v9 = vsub.s32 7, %v5247_v1  ;;  %10461 = vst [vmem:[#allocation19_spill] sm:$0xff] %v5322_v28  ;;  %10462 = vst [vmem:[#allocation20_spill] sm:$0xff] %v5325_v29 }
  0x5c   : > { %10451 = vst [vmem:[#allocation9_spill] sm:$0xff] %v5251_v2  ;;  %10452 = vst [vmem:[#allocation10_spill] sm:$0xff] %v5254_v3  ;;  %vm331_vm0 = vcmp.lt.s32.totalorder %v5247_v1, 7  ;;  %v280_v12 = vrot.slane %v251_v10, %v5251_v2  ;;  %v5281_v13 = vrot.slane %v251_v10, %v5254_v3  ;;  %v5284_v14 = vrot.slane %v251_v10, %v5257_v4  ;;  %v5328_v30 = vld [vmem:[%s5271_s21 + $0x30] sm:$0xff]  ;;  %v5340_v35 = vld [vmem:[%s5271_s21 + $0x38] sm:$0xff]  ;;  %s11397_s13 = smov (!%p237_p10, %s5049_s13), 1 }
  0x5d   : > { %10453 = vst [vmem:[#allocation11_spill] sm:$0xff] %v5257_v4  ;;  %10454 = vst [vmem:[#allocation12_spill] sm:$0xff] %v5260_v5  ;;  %v5287_v15 = vrot.slane %v251_v10, %v5260_v5  ;;  %v5293_v17 = vrot.slane %v251_v10, %v5263_v6  ;;  %v5296_v18 = vrot.slane %v251_v10, %v5266_v7  ;;  %v5343_v36 = vld [vmem:[%s5271_s21 + $0x40] sm:$0xff]  ;;  %v5346_v37 = vld [vmem:[%s5271_s21 + $0x48] sm:$0xff]  ;;  %v315_v41 = vrot.slane %v5322_v28, 1  ;;  %s11399_s3 = smov (!%p9844_p12, %s4706_s3), 15 }
  0x5e   : > { %10455 = vst [vmem:[#allocation13_spill] sm:$0xff] %v5263_v6  ;;  %10456 = vst [vmem:[#allocation14_spill] sm:$0xff] %v5266_v7  ;;  %v5299_v19 = vrot.slane %v251_v10, %v5269_v8  ;;  %v5302_v20 = vrot.slane %v251_v10, %v5274_v9  ;;  %v5312_v24 = vmul.f32 %v280_v12, %v5290_v16  ;;  %v5359_v42 = vld [vmem:[%s5271_s21 + $0x50] sm:$0xff]  ;;  %v5362_v43 = vld [vmem:[%s5271_s21 + $0x58] sm:$0xff]  ;;  %v316_v48 = vrot.slane %v5328_v30, 1  ;;  %s4707_s12 = sshll.u32 %s11399_s3, 1 }
  0x5f   : > { %10457 = vst [vmem:[#allocation15_spill] sm:$0xff] %v5269_v8  ;;  %10458 = vst [vmem:[#allocation16_spill] sm:$0xff] %v5274_v9  ;;  %v5316_v26 = vrot.slane %v252_v11, %v5251_v2  ;;  %v5319_v27 = vrot.slane %v252_v11, %v5254_v3  ;;  %v5330_v31 = vmul.f32 %v280_v12, %v262_v21  ;;  %v5365_v44 = vld [vmem:[%s5271_s21 + $0x60] sm:$0xff]  ;;  %v5378_v49 = vld [vmem:[%s5271_s21 + $0x68] sm:$0xff]  ;;  %v317_v55 = vrot.slane %v5343_v36, 1  ;;  %s4708_s17 = sshll.u32 %s11397_s13, 5 }
  0x60   : > { %10463 = vst [vmem:[#allocation21_spill] sm:$0xff] %v5328_v30  ;;  %v5333_v32 = vmul.f32 %v280_v12, %v5306_v22  ;;  %v5336_v33 = vmul.f32 %v280_v12, %v5309_v23  ;;  %10464 = vst [vmem:[#allocation22_spill] sm:$0xff] %v5340_v35  ;;  %v5349_v38 = vmul.f32 %v280_v12, %v5322_v28  ;;  %v5381_v50 = vld [vmem:[%s5271_s21 + $0x70] sm:$0xff]  ;;  %v5384_v51 = vld [vmem:[%s5271_s21 + $0x78] sm:$0xff]  ;;  %v318_v59 = vrot.slane %v5359_v42, 1  ;;  %s246_s24 = sadd.s32 %s4708_s17, %s4707_s12 }
  0x61   : > { %10460 = vst [vmem:[#allocation18_spill] sm:$0xff] %v5319_v27  ;;  %10465 = vst [vmem:[#allocation23_spill] sm:$0xff] %v5343_v36  ;;  %v5352_v39 = vmul.f32 %v280_v12, %v5325_v29  ;;  %v5355_v40 = vmul.f32 %v280_v12, %v5328_v30  ;;  %v5368_v45 = vmul.f32 %v280_v12, %v5340_v35  ;;  %v319_v60 = vrot.slane %v5365_v44, 1  ;;  %s4709_s13 = sshll.u32 %s246_s24, 3 }
  0x62   : > { %10466 = vst [vmem:[#allocation24_spill] sm:$0xff] %v5346_v37  ;;  %10467 = vst [vmem:[#allocation25_spill] sm:$0xff] %v5359_v42  ;;  %v5371_v46 = vmul.f32 %v280_v12, %v5343_v36  ;;  %v5374_v47 = vmul.f32 %v280_v12, %v5346_v37  ;;  %v291_v52 = vmul.f32 %v280_v12, %v5359_v42  ;;  %v320_v61 = vrot.slane %v5381_v50, 1  ;;  %s9938_s20 = scalar_lea.vmem %s9988_s2, %s4709_s13 }
  0x63   : > { %10468 = vst [vmem:[#allocation26_spill] sm:$0xff] %v5362_v43  ;;  %10469 = vst [vmem:[#allocation27_spill] sm:$0xff] %v5365_v44  ;;  %v292_v53 = vmul.f32 %v280_v12, %v5362_v43  ;;  %v293_v54 = vmul.f32 %v280_v12, %v5365_v44  ;;  %v294_v56 = vmul.f32 %v280_v12, %v5378_v49  ;;  %v322_v63 = vrot.slane %v5309_v23, 1 }
  0x64   : > { %10470 = vst [vmem:[#allocation28_spill] sm:$0xff] %v5378_v49  ;;  %10471 = vst [vmem:[#allocation29_spill] sm:$0xff] %v5381_v50  ;;  %v295_v57 = vmul.f32 %v280_v12, %v5381_v50  ;;  %v296_v58 = vmul.f32 %v280_v12, %v5384_v51  ;;  %v323_v0 = vrot.slane %v5325_v29, 1  ;;  %v324_v10 = vrot.slane %v5340_v35, 1 }
  0x65   : > { %10472 = vst [vmem:[#allocation30_spill] sm:$0xff] %v5384_v51  ;;  %v325_v11 = vrot.slane %v5346_v37, 1  ;;  %v326_v16 = vrot.slane %v5362_v43, 1  ;;  %v327_v3 = vrot.slane %v5378_v49, 1  ;;  %v328_v12 = vrot.slane %v5384_v51, 1 }
  0x66   : > { %v5405_v2 = vsel %vm331_vm0, %v313_v25, %v321_v62  ;;  %v5409_v21 = vsel %vm331_vm0, %v314_v34, %v322_v63  ;;  %v5413_v9 = vsel %vm331_vm0, %v315_v41, %v323_v0  ;;  %v5417_v8 = vsel %vm331_vm0, %v316_v48, %v324_v10 }
  0x67   : > { %10473 = vst [vmem:[#allocation31_spill] sm:$0xff] %v5413_v9  ;;  %10474 = vst [vmem:[#allocation32_spill] sm:$0xff] %v5417_v8  ;;  %v5421_v7 = vsel %vm331_vm0, %v317_v55, %v325_v11  ;;  %v5425_v6 = vsel %vm331_vm0, %v318_v59, %v326_v16  ;;  %v5429_v5 = vsel %vm331_vm0, %v319_v60, %v327_v3 }
  0x68   : > { %10475 = vst [vmem:[#allocation33_spill] sm:$0xff] %v5421_v7  ;;  %10476 = vst [vmem:[#allocation34_spill] sm:$0xff] %v5425_v6  ;;  %v5433_v4 = vsel %vm331_vm0, %v320_v61, %v328_v12  ;;  %v5437_v27 = vsel %vm331_vm0, %v321_v62, %v313_v25  ;;  %v5441_v51 = vsel %vm331_vm0, %v322_v63, %v314_v34 }
  0x69   : > { %10477 = vst [vmem:[#allocation35_spill] sm:$0xff] %v5429_v5  ;;  %10478 = vst [vmem:[#allocation36_spill] sm:$0xff] %v5433_v4  ;;  %v5445_v50 = vsel %vm331_vm0, %v323_v0, %v315_v41  ;;  %v5449_v49 = vsel %vm331_vm0, %v324_v10, %v316_v48  ;;  %v5453_v44 = vsel %vm331_vm0, %v325_v11, %v317_v55 }
  0x6a   : > { %10479 = vst [vmem:[#allocation37_spill] sm:$0xff] %v5441_v51  ;;  %10480 = vst [vmem:[#allocation38_spill] sm:$0xff] %v5445_v50  ;;  %v5457_v25 = vsel %vm331_vm0, %v326_v16, %v318_v59  ;;  %v5461_v34 = vsel %vm331_vm0, %v327_v3, %v319_v60  ;;  %v5465_v41 = vsel %vm331_vm0, %v328_v12, %v320_v61 }
  0x6b   : > { %10481 = vst [vmem:[#allocation39_spill] sm:$0xff] %v5449_v49  ;;  %10482 = vst [vmem:[#allocation40_spill] sm:$0xff] %v5453_v44  ;;  %v352_v48 = vmul.f32 %v5281_v13, %v5405_v2  ;;  %v353_v62 = vmul.f32 %v5281_v13, %v5437_v27  ;;  %v354_v55 = vmul.f32 %v5281_v13, %v5409_v21 }
  0x6c   : > { %10483 = vst [vmem:[#allocation41_spill] sm:$0xff] %v5457_v25  ;;  %10484 = vst [vmem:[#allocation42_spill] sm:$0xff] %v5461_v34  ;;  %v355_v59 = vmul.f32 %v5281_v13, %v5441_v51  ;;  %v356_v3 = vmul.f32 %v5281_v13, %v5413_v9  ;;  %v357_v60 = vmul.f32 %v5281_v13, %v5445_v50 }
  0x6d   : > { %10485 = vst [vmem:[#allocation43_spill] sm:$0xff] %v5465_v41  ;;  %v358_v61 = vmul.f32 %v5281_v13, %v5417_v8  ;;  %v359_v63 = vmul.f32 %v5281_v13, %v5449_v49  ;;  %v360_v0 = vmul.f32 %v5281_v13, %v5421_v7  ;;  %v361_v10 = vmul.f32 %v5281_v13, %v5453_v44 }
  0x6e   : > { %v362_v11 = vmul.f32 %v5281_v13, %v5425_v6  ;;  %v363_v16 = vmul.f32 %v5281_v13, %v5457_v25  ;;  %v364_v12 = vmul.f32 %v5281_v13, %v5429_v5  ;;  %v365_v43 = vmul.f32 %v5281_v13, %v5461_v34 }
  0x6f   : > { %v366_v42 = vmul.f32 %v5281_v13, %v5433_v4  ;;  %v367_v37 = vmul.f32 %v5281_v13, %v5465_v41  ;;  %v5500_v36 = vadd.f32 %v352_v48, %v5312_v24  ;;  %v5503_v35 = vadd.f32 %v353_v62, %v5330_v31 }
  0x70   : > { %v5506_v30 = vadd.f32 %v354_v55, %v5333_v32  ;;  %v5509_v29 = vadd.f32 %v355_v59, %v5336_v33  ;;  %v5512_v28 = vadd.f32 %v356_v3, %v5349_v38  ;;  %v5515_v23 = vadd.f32 %v357_v60, %v5352_v39 }
  0x71   : > { %v5518_v13 = vadd.f32 %v358_v61, %v5355_v40  ;;  %v5521_v24 = vadd.f32 %v359_v63, %v5368_v45  ;;  %v5524_v31 = vadd.f32 %v360_v0, %v5371_v46  ;;  %v5527_v32 = vadd.f32 %v361_v10, %v5374_v47 }
  0x72   : > { %v5529_v33 = vadd.f32 %v362_v11, %v291_v52  ;;  %v5531_v48 = vadd.f32 %v363_v16, %v292_v53  ;;  %v5533_v38 = vadd.f32 %v364_v12, %v293_v54  ;;  %v5535_v39 = vadd.f32 %v365_v43, %v294_v56 }
  0x73   : > { %v5537_v62 = vadd.f32 %v366_v42, %v295_v57  ;;  %v5539_v40 = vadd.f32 %v367_v37, %v296_v58  ;;  %v384_v45 = vrot.slane %v5405_v2, 1  ;;  %v385_v46 = vrot.slane %v5409_v21, 1 }
  0x74   : > { %v386_v55 = vrot.slane %v5413_v9, 1  ;;  %v387_v47 = vrot.slane %v5417_v8, 1  ;;  %v388_v52 = vrot.slane %v5421_v7, 1  ;;  %v389_v53 = vrot.slane %v5425_v6, 1 }
  0x75   : > { %v390_v54 = vrot.slane %v5429_v5, 1  ;;  %v391_v43 = vrot.slane %v5433_v4, 1  ;;  %v392_v42 = vrot.slane %v5437_v27, 1  ;;  %v393_v37 = vrot.slane %v5441_v51, 1 }
  0x76   : > { %v394_v2 = vrot.slane %v5445_v50, 1  ;;  %v395_v56 = vrot.slane %v5449_v49, 1  ;;  %v396_v57 = vrot.slane %v5453_v44, 1  ;;  %v397_v58 = vrot.slane %v5457_v25, 1 }
  0x77   : > { %v398_v59 = vrot.slane %v5461_v34, 1  ;;  %v399_v3 = vrot.slane %v5465_v41, 1  ;;  %v5559_v60 = vsel %vm331_vm0, %v384_v45, %v392_v42  ;;  %v5563_v27 = vsel %vm331_vm0, %v385_v46, %v393_v37 }
  0x78   : > { %v5567_v61 = vsel %vm331_vm0, %v386_v55, %v394_v2  ;;  %v5571_v63 = vsel %vm331_vm0, %v387_v47, %v395_v56  ;;  %v5575_v0 = vsel %vm331_vm0, %v388_v52, %v396_v57  ;;  %v5579_v10 = vsel %vm331_vm0, %v389_v53, %v397_v58 }
  0x79   : > { %10486 = vst [vmem:[#allocation44_spill] sm:$0xff] %v5567_v61  ;;  %10487 = vst [vmem:[#allocation45_spill] sm:$0xff] %v5571_v63  ;;  %v5583_v11 = vsel %vm331_vm0, %v390_v54, %v398_v59  ;;  %v5587_v16 = vsel %vm331_vm0, %v391_v43, %v399_v3  ;;  %v5591_v12 = vsel %vm331_vm0, %v392_v42, %v384_v45 }
  0x7a   : > { %10488 = vst [vmem:[#allocation46_spill] sm:$0xff] %v5575_v0  ;;  %10489 = vst [vmem:[#allocation47_spill] sm:$0xff] %v5579_v10  ;;  %v5595_v41 = vsel %vm331_vm0, %v393_v37, %v385_v46  ;;  %v5599_v4 = vsel %vm331_vm0, %v394_v2, %v386_v55  ;;  %v5603_v34 = vsel %vm331_vm0, %v395_v56, %v387_v47 }
  0x7b   : > { %10490 = vst [vmem:[#allocation48_spill] sm:$0xff] %v5583_v11  ;;  %10491 = vst [vmem:[#allocation49_spill] sm:$0xff] %v5587_v16  ;;  %v5607_v5 = vsel %vm331_vm0, %v396_v57, %v388_v52  ;;  %v5611_v45 = vsel %vm331_vm0, %v397_v58, %v389_v53  ;;  %v5615_v46 = vsel %vm331_vm0, %v398_v59, %v390_v54 }
  0x7c   : > { %10492 = vst [vmem:[#allocation50_spill] sm:$0xff] %v5595_v41  ;;  %10493 = vst [vmem:[#allocation51_spill] sm:$0xff] %v5599_v4  ;;  %v5619_v55 = vsel %vm331_vm0, %v399_v3, %v391_v43  ;;  %v420_v47 = vmul.f32 %v5284_v14, %v5559_v60  ;;  %v421_v42 = vmul.f32 %v5284_v14, %v5591_v12 }
  0x7d   : > { %10494 = vst [vmem:[#allocation52_spill] sm:$0xff] %v5603_v34  ;;  %10495 = vst [vmem:[#allocation53_spill] sm:$0xff] %v5607_v5  ;;  %v422_v52 = vmul.f32 %v5284_v14, %v5563_v27  ;;  %v423_v53 = vmul.f32 %v5284_v14, %v5595_v41  ;;  %v424_v54 = vmul.f32 %v5284_v14, %v5567_v61 }
  0x7e   : > { %10496 = vst [vmem:[#allocation54_spill] sm:$0xff] %v5611_v45  ;;  %10497 = vst [vmem:[#allocation55_spill] sm:$0xff] %v5615_v46  ;;  %v425_v37 = vmul.f32 %v5284_v14, %v5599_v4  ;;  %v426_v43 = vmul.f32 %v5284_v14, %v5571_v63  ;;  %v427_v2 = vmul.f32 %v5284_v14, %v5603_v34 }
  0x7f   : > { %10498 = vst [vmem:[#allocation56_spill] sm:$0xff] %v5619_v55  ;;  %v428_v56 = vmul.f32 %v5284_v14, %v5575_v0  ;;  %v429_v57 = vmul.f32 %v5284_v14, %v5607_v5  ;;  %v430_v58 = vmul.f32 %v5284_v14, %v5579_v10  ;;  %v431_v59 = vmul.f32 %v5284_v14, %v5611_v45 }
  0x80   : > { %v432_v3 = vmul.f32 %v5284_v14, %v5583_v11  ;;  %v433_v25 = vmul.f32 %v5284_v14, %v5615_v46  ;;  %v434_v6 = vmul.f32 %v5284_v14, %v5587_v16  ;;  %v435_v44 = vmul.f32 %v5284_v14, %v5619_v55 }
  0x81   : > { %v5654_v7 = vadd.f32 %v420_v47, %v5500_v36  ;;  %v5657_v49 = vadd.f32 %v421_v42, %v5503_v35  ;;  %v5660_v8 = vadd.f32 %v422_v52, %v5506_v30  ;;  %v5663_v50 = vadd.f32 %v423_v53, %v5509_v29 }
  0x82   : > { %v5666_v9 = vadd.f32 %v424_v54, %v5512_v28  ;;  %v5669_v51 = vadd.f32 %v425_v37, %v5515_v23  ;;  %v5672_v14 = vadd.f32 %v426_v43, %v5518_v13  ;;  %v5675_v36 = vadd.f32 %v427_v2, %v5521_v24 }
  0x83   : > { %v5678_v35 = vadd.f32 %v428_v56, %v5524_v31  ;;  %v5681_v30 = vadd.f32 %v429_v57, %v5527_v32  ;;  %v5684_v29 = vadd.f32 %v430_v58, %v5529_v33  ;;  %v5687_v28 = vadd.f32 %v431_v59, %v5531_v48 }
  0x84   : > { %v5690_v23 = vadd.f32 %v432_v3, %v5533_v38  ;;  %v5693_v13 = vadd.f32 %v433_v25, %v5535_v39  ;;  %v5696_v24 = vadd.f32 %v434_v6, %v5537_v62  ;;  %v5699_v31 = vadd.f32 %v435_v44, %v5539_v40 }
  0x85   : > { %v452_v32 = vrot.slane %v5559_v60, 1  ;;  %v453_v33 = vrot.slane %v5563_v27, 1  ;;  %v454_v47 = vrot.slane %v5567_v61, 1  ;;  %v455_v48 = vrot.slane %v5571_v63, 1 }
  0x86   : > { %v456_v38 = vrot.slane %v5575_v0, 1  ;;  %v457_v42 = vrot.slane %v5579_v10, 1  ;;  %v458_v25 = vrot.slane %v5583_v11, 1  ;;  %v459_v6 = vrot.slane %v5587_v16, 1 }
  0x87   : > { %v460_v39 = vrot.slane %v5591_v12, 1  ;;  %v461_v44 = vrot.slane %v5595_v41, 1  ;;  %v462_v62 = vrot.slane %v5599_v4, 1  ;;  %v463_v40 = vrot.slane %v5603_v34, 1 }
  0x88   : > { %v464_v60 = vrot.slane %v5607_v5, 1  ;;  %v465_v52 = vrot.slane %v5611_v45, 1  ;;  %v466_v53 = vrot.slane %v5615_v46, 1  ;;  %v467_v54 = vrot.slane %v5619_v55, 1 }
  0x89   : > { %v5719_v37 = vsel %vm331_vm0, %v452_v32, %v460_v39  ;;  %v5723_v12 = vsel %vm331_vm0, %v453_v33, %v461_v44  ;;  %v5727_v43 = vsel %vm331_vm0, %v454_v47, %v462_v62  ;;  %v5731_v2 = vsel %vm331_vm0, %v455_v48, %v463_v40 }
  0x8a   : > { %10499 = vst [vmem:[#allocation57_spill] sm:$0xff] %v5727_v43  ;;  %10500 = vst [vmem:[#allocation58_spill] sm:$0xff] %v5731_v2  ;;  %v5735_v56 = vsel %vm331_vm0, %v456_v38, %v464_v60  ;;  %v5739_v57 = vsel %vm331_vm0, %v457_v42, %v465_v52  ;;  %v5743_v58 = vsel %vm331_vm0, %v458_v25, %v466_v53 }
  0x8b   : > { %10501 = vst [vmem:[#allocation59_spill] sm:$0xff] %v5735_v56  ;;  %10502 = vst [vmem:[#allocation60_spill] sm:$0xff] %v5739_v57  ;;  %v5747_v59 = vsel %vm331_vm0, %v459_v6, %v467_v54  ;;  %v5751_v3 = vsel %vm331_vm0, %v460_v39, %v452_v32  ;;  %v5755_v55 = vsel %vm331_vm0, %v461_v44, %v453_v33 }
  0x8c   : > { %10503 = vst [vmem:[#allocation61_spill] sm:$0xff] %v5743_v58  ;;  %10504 = vst [vmem:[#allocation62_spill] sm:$0xff] %v5747_v59  ;;  %v5759_v16 = vsel %vm331_vm0, %v462_v62, %v454_v47  ;;  %v5763_v46 = vsel %vm331_vm0, %v463_v40, %v455_v48  ;;  %v5767_v11 = vsel %vm331_vm0, %v464_v60, %v456_v38 }
  0x8d   : > { %10505 = vst [vmem:[#allocation63_spill] sm:$0xff] %v5755_v55  ;;  %10506 = vst [vmem:[#allocation64_spill] sm:$0xff] %v5759_v16  ;;  %v5771_v32 = vsel %vm331_vm0, %v465_v52, %v457_v42  ;;  %v5775_v33 = vsel %vm331_vm0, %v466_v53, %v458_v25  ;;  %v5779_v47 = vsel %vm331_vm0, %v467_v54, %v459_v6 }
  0x8e   : > { %10507 = vst [vmem:[#allocation65_spill] sm:$0xff] %v5763_v46  ;;  %10508 = vst [vmem:[#allocation66_spill] sm:$0xff] %v5767_v11  ;;  %v488_v48 = vmul.f32 %v5287_v15, %v5719_v37  ;;  %v489_v39 = vmul.f32 %v5287_v15, %v5751_v3  ;;  %v490_v38 = vmul.f32 %v5287_v15, %v5723_v12 }
  0x8f   : > { %10509 = vst [vmem:[#allocation67_spill] sm:$0xff] %v5771_v32  ;;  %10510 = vst [vmem:[#allocation68_spill] sm:$0xff] %v5775_v33  ;;  %v491_v42 = vmul.f32 %v5287_v15, %v5755_v55  ;;  %v492_v25 = vmul.f32 %v5287_v15, %v5727_v43  ;;  %v493_v44 = vmul.f32 %v5287_v15, %v5759_v16 }
  0x90   : > { %10511 = vst [vmem:[#allocation69_spill] sm:$0xff] %v5779_v47  ;;  %v494_v6 = vmul.f32 %v5287_v15, %v5731_v2  ;;  %v495_v62 = vmul.f32 %v5287_v15, %v5763_v46  ;;  %v496_v40 = vmul.f32 %v5287_v15, %v5735_v56  ;;  %v497_v60 = vmul.f32 %v5287_v15, %v5767_v11 }
  0x91   : > { %v498_v52 = vmul.f32 %v5287_v15, %v5739_v57  ;;  %v499_v53 = vmul.f32 %v5287_v15, %v5771_v32  ;;  %v500_v54 = vmul.f32 %v5287_v15, %v5743_v58  ;;  %v501_v45 = vmul.f32 %v5287_v15, %v5775_v33 }
  0x92   : > { %v502_v10 = vmul.f32 %v5287_v15, %v5747_v59  ;;  %v503_v5 = vmul.f32 %v5287_v15, %v5779_v47  ;;  %v5814_v0 = vadd.f32 %v488_v48, %v5654_v7  ;;  %v5817_v34 = vadd.f32 %v489_v39, %v5657_v49 }
  0x93   : > { %v5820_v63 = vadd.f32 %v490_v38, %v5660_v8  ;;  %v5823_v4 = vadd.f32 %v491_v42, %v5663_v50  ;;  %v5826_v61 = vadd.f32 %v492_v25, %v5666_v9  ;;  %v5829_v41 = vadd.f32 %v493_v44, %v5669_v51 }
  0x94   : > { %v5832_v15 = vadd.f32 %v494_v6, %v5672_v14  ;;  %v5835_v7 = vadd.f32 %v495_v62, %v5675_v36  ;;  %v5838_v49 = vadd.f32 %v496_v40, %v5678_v35  ;;  %v5841_v8 = vadd.f32 %v497_v60, %v5681_v30 }
  0x95   : > { %v5844_v50 = vadd.f32 %v498_v52, %v5684_v29  ;;  %v5847_v9 = vadd.f32 %v499_v53, %v5687_v28  ;;  %v5850_v51 = vadd.f32 %v500_v54, %v5690_v23  ;;  %v5853_v14 = vadd.f32 %v501_v45, %v5693_v13 }
  0x96   : > { %v5856_v36 = vadd.f32 %v502_v10, %v5696_v24  ;;  %v5859_v35 = vadd.f32 %v503_v5, %v5699_v31  ;;  %v520_v30 = vrot.slane %v5719_v37, 1  ;;  %v521_v29 = vrot.slane %v5723_v12, 1 }
  0x97   : > { %v522_v48 = vrot.slane %v5727_v43, 1  ;;  %v523_v28 = vrot.slane %v5731_v2, 1  ;;  %v524_v23 = vrot.slane %v5735_v56, 1  ;;  %v525_v39 = vrot.slane %v5739_v57, 1 }
  0x98   : > { %v526_v45 = vrot.slane %v5743_v58, 1  ;;  %v527_v10 = vrot.slane %v5747_v59, 1  ;;  %v528_v13 = vrot.slane %v5751_v3, 1  ;;  %v529_v5 = vrot.slane %v5755_v55, 1 }
  0x99   : > { %v530_v24 = vrot.slane %v5759_v16, 1  ;;  %v531_v31 = vrot.slane %v5763_v46, 1  ;;  %v532_v37 = vrot.slane %v5767_v11, 1  ;;  %v533_v38 = vrot.slane %v5771_v32, 1 }
  0x9a   : > { %v534_v42 = vrot.slane %v5775_v33, 1  ;;  %v535_v25 = vrot.slane %v5779_v47, 1  ;;  %v5879_v44 = vsel %vm331_vm0, %v520_v30, %v528_v13  ;;  %v5883_v3 = vsel %vm331_vm0, %v521_v29, %v529_v5 }
  0x9b   : > { %v5887_v6 = vsel %vm331_vm0, %v522_v48, %v530_v24  ;;  %v5891_v62 = vsel %vm331_vm0, %v523_v28, %v531_v31  ;;  %v5895_v40 = vsel %vm331_vm0, %v524_v23, %v532_v37  ;;  %v5899_v60 = vsel %vm331_vm0, %v525_v39, %v533_v38 }
  0x9c   : > { %10512 = vst [vmem:[#allocation70_spill] sm:$0xff] %v5887_v6  ;;  %10513 = vst [vmem:[#allocation71_spill] sm:$0xff] %v5891_v62  ;;  %v5903_v52 = vsel %vm331_vm0, %v526_v45, %v534_v42  ;;  %v5907_v53 = vsel %vm331_vm0, %v527_v10, %v535_v25  ;;  %v5911_v54 = vsel %vm331_vm0, %v528_v13, %v520_v30 }
  0x9d   : > { %10514 = vst [vmem:[#allocation72_spill] sm:$0xff] %v5895_v40  ;;  %10515 = vst [vmem:[#allocation73_spill] sm:$0xff] %v5899_v60  ;;  %v5915_v47 = vsel %vm331_vm0, %v529_v5, %v521_v29  ;;  %v5919_v59 = vsel %vm331_vm0, %v530_v24, %v522_v48  ;;  %v5923_v33 = vsel %vm331_vm0, %v531_v31, %v523_v28 }
  0x9e   : > { %10516 = vst [vmem:[#allocation74_spill] sm:$0xff] %v5903_v52  ;;  %10517 = vst [vmem:[#allocation75_spill] sm:$0xff] %v5907_v53  ;;  %v5927_v58 = vsel %vm331_vm0, %v532_v37, %v524_v23  ;;  %v5931_v30 = vsel %vm331_vm0, %v533_v38, %v525_v39  ;;  %v5935_v29 = vsel %vm331_vm0, %v534_v42, %v526_v45 }
  0x9f   : > { %10518 = vst [vmem:[#allocation76_spill] sm:$0xff] %v5915_v47  ;;  %10519 = vst [vmem:[#allocation77_spill] sm:$0xff] %v5919_v59  ;;  %v5939_v48 = vsel %vm331_vm0, %v535_v25, %v527_v10  ;;  %v556_v28 = vmul.f32 %v5293_v17, %v5879_v44  ;;  %v557_v13 = vmul.f32 %v5293_v17, %v5911_v54 }
  0xa0   : > { %10520 = vst [vmem:[#allocation78_spill] sm:$0xff] %v5923_v33  ;;  %10521 = vst [vmem:[#allocation79_spill] sm:$0xff] %v5927_v58  ;;  %v558_v23 = vmul.f32 %v5293_v17, %v5883_v3  ;;  %v559_v39 = vmul.f32 %v5293_v17, %v5915_v47  ;;  %v560_v45 = vmul.f32 %v5293_v17, %v5887_v6 }
  0xa1   : > { %10522 = vst [vmem:[#allocation80_spill] sm:$0xff] %v5931_v30  ;;  %10523 = vst [vmem:[#allocation81_spill] sm:$0xff] %v5935_v29  ;;  %v561_v5 = vmul.f32 %v5293_v17, %v5919_v59  ;;  %v562_v10 = vmul.f32 %v5293_v17, %v5891_v62  ;;  %v563_v24 = vmul.f32 %v5293_v17, %v5923_v33 }
  0xa2   : > { %10524 = vst [vmem:[#allocation82_spill] sm:$0xff] %v5939_v48  ;;  %v564_v31 = vmul.f32 %v5293_v17, %v5895_v40  ;;  %v565_v37 = vmul.f32 %v5293_v17, %v5927_v58  ;;  %v566_v38 = vmul.f32 %v5293_v17, %v5899_v60  ;;  %v567_v42 = vmul.f32 %v5293_v17, %v5931_v30 }
  0xa3   : > { %v568_v25 = vmul.f32 %v5293_v17, %v5903_v52  ;;  %v569_v32 = vmul.f32 %v5293_v17, %v5935_v29  ;;  %v570_v57 = vmul.f32 %v5293_v17, %v5907_v53  ;;  %v571_v11 = vmul.f32 %v5293_v17, %v5939_v48 }
  0xa4   : > { %v5974_v56 = vadd.f32 %v556_v28, %v5814_v0  ;;  %v5977_v46 = vadd.f32 %v557_v13, %v5817_v34  ;;  %v5980_v2 = vadd.f32 %v558_v23, %v5820_v63  ;;  %v5983_v16 = vadd.f32 %v559_v39, %v5823_v4 }
  0xa5   : > { %v5986_v43 = vadd.f32 %v560_v45, %v5826_v61  ;;  %v5989_v55 = vadd.f32 %v561_v5, %v5829_v41  ;;  %v5992_v17 = vadd.f32 %v562_v10, %v5832_v15  ;;  %v5995_v0 = vadd.f32 %v563_v24, %v5835_v7 }
  0xa6   : > { %v5998_v34 = vadd.f32 %v564_v31, %v5838_v49  ;;  %v6001_v63 = vadd.f32 %v565_v37, %v5841_v8  ;;  %v6004_v4 = vadd.f32 %v566_v38, %v5844_v50  ;;  %v6007_v61 = vadd.f32 %v567_v42, %v5847_v9 }
  0xa7   : > { %v6010_v41 = vadd.f32 %v568_v25, %v5850_v51  ;;  %v6013_v15 = vadd.f32 %v569_v32, %v5853_v14  ;;  %v6016_v7 = vadd.f32 %v570_v57, %v5856_v36  ;;  %v6019_v49 = vadd.f32 %v571_v11, %v5859_v35 }
  0xa8   : > { %v588_v8 = vrot.slane %v5879_v44, 1  ;;  %v589_v50 = vrot.slane %v5883_v3, 1  ;;  %v590_v28 = vrot.slane %v5887_v6, 1  ;;  %v591_v9 = vrot.slane %v5891_v62, 1 }
  0xa9   : > { %v592_v51 = vrot.slane %v5895_v40, 1  ;;  %v593_v13 = vrot.slane %v5899_v60, 1  ;;  %v594_v32 = vrot.slane %v5903_v52, 1  ;;  %v595_v57 = vrot.slane %v5907_v53, 1 }
  0xaa   : > { %v596_v14 = vrot.slane %v5911_v54, 1  ;;  %v597_v11 = vrot.slane %v5915_v47, 1  ;;  %v598_v36 = vrot.slane %v5919_v59, 1  ;;  %v599_v35 = vrot.slane %v5923_v33, 1 }
  0xab   : > { %v600_v44 = vrot.slane %v5927_v58, 1  ;;  %v601_v23 = vrot.slane %v5931_v30, 1  ;;  %v602_v39 = vrot.slane %v5935_v29, 1  ;;  %v603_v45 = vrot.slane %v5939_v48, 1 }
  0xac   : > { %v6039_v5 = vsel %vm331_vm0, %v588_v8, %v596_v14  ;;  %v6043_v54 = vsel %vm331_vm0, %v589_v50, %v597_v11  ;;  %v6047_v10 = vsel %vm331_vm0, %v590_v28, %v598_v36  ;;  %v6051_v24 = vsel %vm331_vm0, %v591_v9, %v599_v35 }
  0xad   : > { %10525 = vst [vmem:[#allocation83_spill] sm:$0xff] %v6047_v10  ;;  %10526 = vst [vmem:[#allocation84_spill] sm:$0xff] %v6051_v24  ;;  %v6055_v31 = vsel %vm331_vm0, %v592_v51, %v600_v44  ;;  %v6059_v37 = vsel %vm331_vm0, %v593_v13, %v601_v23  ;;  %v6063_v38 = vsel %vm331_vm0, %v594_v32, %v602_v39 }
  0xae   : > { %10527 = vst [vmem:[#allocation85_spill] sm:$0xff] %v6055_v31  ;;  %10528 = vst [vmem:[#allocation86_spill] sm:$0xff] %v6059_v37  ;;  %v6067_v42 = vsel %vm331_vm0, %v595_v57, %v603_v45  ;;  %v6071_v25 = vsel %vm331_vm0, %v596_v14, %v588_v8  ;;  %v6075_v48 = vsel %vm331_vm0, %v597_v11, %v589_v50 }
  0xaf   : > { %10529 = vst [vmem:[#allocation87_spill] sm:$0xff] %v6063_v38  ;;  %10530 = vst [vmem:[#allocation88_spill] sm:$0xff] %v6067_v42  ;;  %v6079_v53 = vsel %vm331_vm0, %v598_v36, %v590_v28  ;;  %v6083_v29 = vsel %vm331_vm0, %v599_v35, %v591_v9  ;;  %v6087_v52 = vsel %vm331_vm0, %v600_v44, %v592_v51 }
  0xb0   : > { %10531 = vst [vmem:[#allocation89_spill] sm:$0xff] %v6075_v48  ;;  %10532 = vst [vmem:[#allocation90_spill] sm:$0xff] %v6079_v53  ;;  %v6091_v8 = vsel %vm331_vm0, %v601_v23, %v593_v13  ;;  %v6095_v50 = vsel %vm331_vm0, %v602_v39, %v594_v32  ;;  %v6099_v28 = vsel %vm331_vm0, %v603_v45, %v595_v57 }
  0xb1   : > { %10533 = vst [vmem:[#allocation91_spill] sm:$0xff] %v6083_v29  ;;  %10534 = vst [vmem:[#allocation92_spill] sm:$0xff] %v6087_v52  ;;  %v624_v9 = vmul.f32 %v5296_v18, %v6039_v5  ;;  %v625_v14 = vmul.f32 %v5296_v18, %v6071_v25  ;;  %v626_v51 = vmul.f32 %v5296_v18, %v6043_v54 }
  0xb2   : > { %10535 = vst [vmem:[#allocation93_spill] sm:$0xff] %v6091_v8  ;;  %10536 = vst [vmem:[#allocation94_spill] sm:$0xff] %v6095_v50  ;;  %v627_v13 = vmul.f32 %v5296_v18, %v6075_v48  ;;  %v628_v32 = vmul.f32 %v5296_v18, %v6047_v10  ;;  %v629_v11 = vmul.f32 %v5296_v18, %v6079_v53 }
  0xb3   : > { %10537 = vst [vmem:[#allocation95_spill] sm:$0xff] %v6099_v28  ;;  %v630_v57 = vmul.f32 %v5296_v18, %v6051_v24  ;;  %v631_v36 = vmul.f32 %v5296_v18, %v6083_v29  ;;  %v632_v35 = vmul.f32 %v5296_v18, %v6055_v31  ;;  %v633_v44 = vmul.f32 %v5296_v18, %v6087_v52 }
  0xb4   : > { %v634_v23 = vmul.f32 %v5296_v18, %v6059_v37  ;;  %v635_v39 = vmul.f32 %v5296_v18, %v6091_v8  ;;  %v636_v45 = vmul.f32 %v5296_v18, %v6063_v38  ;;  %v637_v30 = vmul.f32 %v5296_v18, %v6095_v50 }
  0xb5   : > { %v638_v60 = vmul.f32 %v5296_v18, %v6067_v42  ;;  %v639_v58 = vmul.f32 %v5296_v18, %v6099_v28  ;;  %v6134_v40 = vadd.f32 %v624_v9, %v5974_v56  ;;  %v6137_v33 = vadd.f32 %v625_v14, %v5977_v46 }
  0xb6   : > { %v6140_v62 = vadd.f32 %v626_v51, %v5980_v2  ;;  %v6143_v59 = vadd.f32 %v627_v13, %v5983_v16  ;;  %v6146_v6 = vadd.f32 %v628_v32, %v5986_v43  ;;  %v6149_v47 = vadd.f32 %v629_v11, %v5989_v55 }
  0xb7   : > { %v6152_v18 = vadd.f32 %v630_v57, %v5992_v17  ;;  %v6155_v56 = vadd.f32 %v631_v36, %v5995_v0  ;;  %v6158_v46 = vadd.f32 %v632_v35, %v5998_v34  ;;  %v6161_v2 = vadd.f32 %v633_v44, %v6001_v63 }
  0xb8   : > { %v6164_v16 = vadd.f32 %v634_v23, %v6004_v4  ;;  %v6167_v43 = vadd.f32 %v635_v39, %v6007_v61  ;;  %v6170_v55 = vadd.f32 %v636_v45, %v6010_v41  ;;  %v6173_v17 = vadd.f32 %v637_v30, %v6013_v15 }
  0xb9   : > { %v6176_v0 = vadd.f32 %v638_v60, %v6016_v7  ;;  %v6179_v34 = vadd.f32 %v639_v58, %v6019_v49  ;;  %v656_v63 = vrot.slane %v6039_v5, 1  ;;  %v657_v4 = vrot.slane %v6043_v54, 1 }
  0xba   : > { %v658_v9 = vrot.slane %v6047_v10, 1  ;;  %v659_v61 = vrot.slane %v6051_v24, 1  ;;  %v660_v41 = vrot.slane %v6055_v31, 1  ;;  %v661_v14 = vrot.slane %v6059_v37, 1 }
  0xbb   : > { %v662_v30 = vrot.slane %v6063_v38, 1  ;;  %v663_v60 = vrot.slane %v6067_v42, 1  ;;  %v664_v15 = vrot.slane %v6071_v25, 1  ;;  %v665_v58 = vrot.slane %v6075_v48, 1 }
  0xbc   : > { %v666_v7 = vrot.slane %v6079_v53, 1  ;;  %v667_v49 = vrot.slane %v6083_v29, 1  ;;  %v668_v5 = vrot.slane %v6087_v52, 1  ;;  %v669_v51 = vrot.slane %v6091_v8, 1 }
  0xbd   : > { %v670_v13 = vrot.slane %v6095_v50, 1  ;;  %v671_v32 = vrot.slane %v6099_v28, 1  ;;  %v6199_v11 = vsel %vm331_vm0, %v656_v63, %v664_v15  ;;  %v6203_v25 = vsel %vm331_vm0, %v657_v4, %v665_v58 }
  0xbe   : > { %v6207_v57 = vsel %vm331_vm0, %v658_v9, %v666_v7  ;;  %v6211_v36 = vsel %vm331_vm0, %v659_v61, %v667_v49  ;;  %v6215_v35 = vsel %vm331_vm0, %v660_v41, %v668_v5  ;;  %v6219_v44 = vsel %vm331_vm0, %v661_v14, %v669_v51 }
  0xbf   : > { %10538 = vst [vmem:[#allocation96_spill] sm:$0xff] %v6211_v36  ;;  %10539 = vst [vmem:[#allocation97_spill] sm:$0xff] %v6215_v35  ;;  %v6223_v23 = vsel %vm331_vm0, %v662_v30, %v670_v13  ;;  %v6227_v39 = vsel %vm331_vm0, %v663_v60, %v671_v32  ;;  %v6231_v45 = vsel %vm331_vm0, %v664_v15, %v656_v63 }
  0xc0   : > { %10540 = vst [vmem:[#allocation98_spill] sm:$0xff] %v6219_v44  ;;  %10541 = vst [vmem:[#allocation99_spill] sm:$0xff] %v6223_v23  ;;  %v6235_v28 = vsel %vm331_vm0, %v665_v58, %v657_v4  ;;  %v6239_v42 = vsel %vm331_vm0, %v666_v7, %v658_v9  ;;  %v6243_v50 = vsel %vm331_vm0, %v667_v49, %v659_v61 }
  0xc1   : > { %10542 = vst [vmem:[#allocation100_spill] sm:$0xff] %v6227_v39  ;;  %10543 = vst [vmem:[#allocation101_spill] sm:$0xff] %v6243_v50  ;;  %v6247_v38 = vsel %vm331_vm0, %v668_v5, %v660_v41  ;;  %v6251_v63 = vsel %vm331_vm0, %v669_v51, %v661_v14  ;;  %v6255_v4 = vsel %vm331_vm0, %v670_v13, %v662_v30 }
  0xc2   : > { %10544 = vst [vmem:[#allocation102_spill] sm:$0xff] %v6247_v38  ;;  %10545 = vst [vmem:[#allocation103_spill] sm:$0xff] %v6251_v63  ;;  %v6259_v9 = vsel %vm331_vm0, %v671_v32, %v663_v60  ;;  %v692_v61 = vmul.f32 %v5299_v19, %v6199_v11  ;;  %v693_v15 = vmul.f32 %v5299_v19, %v6231_v45 }
  0xc3   : > { %10546 = vst [vmem:[#allocation104_spill] sm:$0xff] %v6255_v4  ;;  %10547 = vst [vmem:[#allocation105_spill] sm:$0xff] %v6259_v9  ;;  %v694_v41 = vmul.f32 %v5299_v19, %v6203_v25  ;;  %v695_v14 = vmul.f32 %v5299_v19, %v6235_v28  ;;  %v696_v30 = vmul.f32 %v5299_v19, %v6207_v57 }
  0xc4   : > { %v697_v58 = vmul.f32 %v5299_v19, %v6239_v42  ;;  %v698_v60 = vmul.f32 %v5299_v19, %v6211_v36  ;;  %v699_v7 = vmul.f32 %v5299_v19, %v6243_v50  ;;  %v700_v49 = vmul.f32 %v5299_v19, %v6215_v35 }
  0xc5   : > { %v701_v5 = vmul.f32 %v5299_v19, %v6247_v38  ;;  %v702_v51 = vmul.f32 %v5299_v19, %v6219_v44  ;;  %v703_v13 = vmul.f32 %v5299_v19, %v6251_v63  ;;  %v704_v32 = vmul.f32 %v5299_v19, %v6223_v23 }
  0xc6   : > { %v705_v8 = vmul.f32 %v5299_v19, %v6255_v4  ;;  %v706_v37 = vmul.f32 %v5299_v19, %v6227_v39  ;;  %v707_v52 = vmul.f32 %v5299_v19, %v6259_v9  ;;  %v6294_v31 = vadd.f32 %v692_v61, %v6134_v40 }
  0xc7   : > { %v6297_v29 = vadd.f32 %v693_v15, %v6137_v33  ;;  %v6300_v24 = vadd.f32 %v694_v41, %v6140_v62  ;;  %v6303_v53 = vadd.f32 %v695_v14, %v6143_v59  ;;  %v6306_v10 = vadd.f32 %v696_v30, %v6146_v6 }
  0xc8   : > { %v6309_v48 = vadd.f32 %v697_v58, %v6149_v47  ;;  %v6312_v19 = vadd.f32 %v698_v60, %v6152_v18  ;;  %v6315_v40 = vadd.f32 %v699_v7, %v6155_v56  ;;  %v6318_v33 = vadd.f32 %v700_v49, %v6158_v46 }
  0xc9   : > { %v6321_v62 = vadd.f32 %v701_v5, %v6161_v2  ;;  %v6324_v59 = vadd.f32 %v702_v51, %v6164_v16  ;;  %v6327_v6 = vadd.f32 %v703_v13, %v6167_v43  ;;  %v6330_v47 = vadd.f32 %v704_v32, %v6170_v55 }
  0xca   : > { %v6333_v18 = vadd.f32 %v705_v8, %v6173_v17  ;;  %v6336_v56 = vadd.f32 %v706_v37, %v6176_v0  ;;  %v6339_v46 = vadd.f32 %v707_v52, %v6179_v34  ;;  %v724_v2 = vrot.slane %v6199_v11, 1 }
  0xcb   : > { %v725_v16 = vrot.slane %v6203_v25, 1  ;;  %v726_v61 = vrot.slane %v6207_v57, 1  ;;  %v727_v43 = vrot.slane %v6211_v36, 1  ;;  %v728_v55 = vrot.slane %v6215_v35, 1 }
  0xcc   : > { %v729_v15 = vrot.slane %v6219_v44, 1  ;;  %v730_v8 = vrot.slane %v6223_v23, 1  ;;  %v731_v37 = vrot.slane %v6227_v39, 1  ;;  %v732_v17 = vrot.slane %v6231_v45, 1 }
  0xcd   : > { %v733_v52 = vrot.slane %v6235_v28, 1  ;;  %v734_v0 = vrot.slane %v6239_v42, 1  ;;  %v735_v34 = vrot.slane %v6243_v50, 1  ;;  %v736_v11 = vrot.slane %v6247_v38, 1 }
  0xce   : > { %v737_v41 = vrot.slane %v6251_v63, 1  ;;  %v738_v14 = vrot.slane %v6255_v4, 1  ;;  %v739_v30 = vrot.slane %v6259_v9, 1  ;;  %v740_v58 = vsel %vm331_vm0, %v724_v2, %v732_v17 }
  0xcf   : > { %v6361_v45 = vsel %vm331_vm0, %v725_v16, %v733_v52  ;;  %v6365_v60 = vsel %vm331_vm0, %v726_v61, %v734_v0  ;;  %v6369_v7 = vsel %vm331_vm0, %v727_v43, %v735_v34  ;;  %v6373_v49 = vsel %vm331_vm0, %v728_v55, %v736_v11 }
  0xd0   : > { %10548 = vst [vmem:[#allocation106_spill] sm:$0xff] %v6361_v45  ;;  %10549 = vst [vmem:[#allocation107_spill] sm:$0xff] %v6365_v60  ;;  %v6377_v5 = vsel %vm331_vm0, %v729_v15, %v737_v41  ;;  %v6381_v51 = vsel %vm331_vm0, %v730_v8, %v738_v14  ;;  %v6385_v13 = vsel %vm331_vm0, %v731_v37, %v739_v30 }
  0xd1   : > { %10550 = vst [vmem:[#allocation108_spill] sm:$0xff] %v6369_v7  ;;  %10551 = vst [vmem:[#allocation109_spill] sm:$0xff] %v6373_v49  ;;  %v748_v32 = vsel %vm331_vm0, %v732_v17, %v724_v2  ;;  %v6391_v9 = vsel %vm331_vm0, %v733_v52, %v725_v16  ;;  %v6395_v39 = vsel %vm331_vm0, %v734_v0, %v726_v61 }
  0xd2   : > { %10552 = vst [vmem:[#allocation110_spill] sm:$0xff] %v6377_v5  ;;  %10553 = vst [vmem:[#allocation111_spill] sm:$0xff] %v6381_v51  ;;  %v6399_v4 = vsel %vm331_vm0, %v735_v34, %v727_v43  ;;  %v6403_v23 = vsel %vm331_vm0, %v736_v11, %v728_v55  ;;  %v6407_v63 = vsel %vm331_vm0, %v737_v41, %v729_v15 }
  0xd3   : > { %10554 = vst [vmem:[#allocation112_spill] sm:$0xff] %v6385_v13  ;;  %10555 = vst [vmem:[#allocation113_spill] sm:$0xff] %v6391_v9  ;;  %v6411_v2 = vsel %vm331_vm0, %v738_v14, %v730_v8  ;;  %v6415_v16 = vsel %vm331_vm0, %v739_v30, %v731_v37  ;;  %v760_v61 = vmul.f32 %v5302_v20, %v740_v58 }
  0xd4   : > { %10556 = vst [vmem:[#allocation114_spill] sm:$0xff] %v6395_v39  ;;  %10557 = vst [vmem:[#allocation115_spill] sm:$0xff] %v6399_v4  ;;  %v761_v43 = vmul.f32 %v5302_v20, %v748_v32  ;;  %v762_v55 = vmul.f32 %v5302_v20, %v6361_v45  ;;  %v763_v17 = vmul.f32 %v5302_v20, %v6391_v9 }
  0xd5   : > { %10558 = vst [vmem:[#allocation116_spill] sm:$0xff] %v6403_v23  ;;  %10559 = vst [vmem:[#allocation117_spill] sm:$0xff] %v6407_v63  ;;  %v764_v15 = vmul.f32 %v5302_v20, %v6365_v60  ;;  %v765_v8 = vmul.f32 %v5302_v20, %v6395_v39  ;;  %v766_v37 = vmul.f32 %v5302_v20, %v6369_v7 }
  0xd6   : > { %10560 = vst [vmem:[#allocation118_spill] sm:$0xff] %v6411_v2  ;;  %10561 = vst [vmem:[#allocation119_spill] sm:$0xff] %v6415_v16  ;;  %v767_v52 = vmul.f32 %v5302_v20, %v6399_v4  ;;  %v768_v0 = vmul.f32 %v5302_v20, %v6373_v49  ;;  %v769_v34 = vmul.f32 %v5302_v20, %v6403_v23 }
  0xd7   : > { %v770_v11 = vmul.f32 %v5302_v20, %v6377_v5  ;;  %v771_v41 = vmul.f32 %v5302_v20, %v6407_v63  ;;  %v772_v14 = vmul.f32 %v5302_v20, %v6381_v51  ;;  %v773_v30 = vmul.f32 %v5302_v20, %v6411_v2 }
  0xd8   : > { %v774_v58 = vmul.f32 %v5302_v20, %v6385_v13  ;;  %v775_v32 = vmul.f32 %v5302_v20, %v6415_v16  ;;  %v776_v23 = vadd.f32 %v760_v61, %v6294_v31  ;;  %v777_v49 = vadd.f32 %v761_v43, %v6297_v29  ;;  %v10564_v61 = vld [vmem:[#allocation20_spill] sm:$0xff]  ;;  %v10565_v43 = vld [vmem:[#allocation21_spill] sm:$0xff] }
  0xd9   : > { %v778_v5 = vadd.f32 %v762_v55, %v6300_v24  ;;  %v779_v63 = vadd.f32 %v763_v17, %v6303_v53  ;;  %v780_v4 = vadd.f32 %v764_v15, %v6306_v10  ;;  %v781_v51 = vadd.f32 %v765_v8, %v6309_v48  ;;  %v10567_v55 = vld [vmem:[#allocation23_spill] sm:$0xff]  ;;  %v10568_v17 = vld [vmem:[#allocation24_spill] sm:$0xff]  ;;  %v10569_v15 = vld [vmem:[#allocation25_spill] sm:$0xff] }
  0xda   : > { %v782_v2 = vadd.f32 %v766_v37, %v6312_v19  ;;  %v783_v7 = vadd.f32 %v767_v52, %v6315_v40  ;;  %v784_v13 = vadd.f32 %v768_v0, %v6318_v33  ;;  %v785_v20 = vadd.f32 %v769_v34, %v6321_v62  ;;  %v10562_v40 = vld [vmem:[#allocation17_spill] sm:$0xff]  ;;  %v10563_v62 = vld [vmem:[#allocation19_spill] sm:$0xff]  ;;  %v10570_v37 = vld [vmem:[#allocation26_spill] sm:$0xff] }
  0xdb   : > { %v786_v31 = vadd.f32 %v770_v11, %v6324_v59  ;;  %v787_v29 = vadd.f32 %v771_v41, %v6327_v6  ;;  %v788_v53 = vadd.f32 %v772_v14, %v6330_v47  ;;  %v789_v10 = vadd.f32 %v773_v30, %v6333_v18  ;;  %v10566_v18 = vld [vmem:[#allocation22_spill] sm:$0xff]  ;;  %v6484_v0 = vld [vmem:[%s5271_s21 + $0x80] sm:$0xff]  ;;  %v6487_v34 = vld [vmem:[%s5271_s21 + $0x88] sm:$0xff] }
  0xdc   : > { %v790_v48 = vadd.f32 %v774_v58, %v6336_v56  ;;  %v791_v24 = vadd.f32 %v775_v32, %v6339_v46  ;;  %v815_v19 = vmul.f32 %v5316_v26, %v5306_v22  ;;  %v816_v33 = vmul.f32 %v5316_v26, %v10562_v40  ;;  %10571 = vst [vmem:[#allocation17_spill] sm:$0xff] %v6484_v0  ;;  %v10573_v11 = vld [vmem:[#allocation27_spill] sm:$0xff]  ;;  %v10574_v14 = vld [vmem:[#allocation28_spill] sm:$0xff]  ;;  %v10575_v58 = vld [vmem:[#allocation29_spill] sm:$0xff] }
  0xdd   : > { %v817_v59 = vmul.f32 %v5316_v26, %v10563_v62  ;;  %v818_v6 = vmul.f32 %v5316_v26, %v10564_v61  ;;  %v819_v47 = vmul.f32 %v5316_v26, %v10565_v43  ;;  %v820_v56 = vmul.f32 %v5316_v26, %v10566_v18  ;;  %10572 = vst [vmem:[#allocation19_spill] sm:$0xff] %v6487_v34  ;;  %v10576_v40 = vld [vmem:[#allocation30_spill] sm:$0xff] }
  0xde   : > { %v821_v46 = vmul.f32 %v5316_v26, %v10567_v55  ;;  %v822_v22 = vmul.f32 %v5316_v26, %v10568_v17  ;;  %v823_v8 = vmul.f32 %v5316_v26, %v10569_v15  ;;  %v824_v52 = vmul.f32 %v5316_v26, %v10570_v37 }
  0xdf   : > { %v825_v41 = vmul.f32 %v5316_v26, %v10573_v11  ;;  %v826_v30 = vmul.f32 %v5316_v26, %v10574_v14  ;;  %v827_v32 = vmul.f32 %v5316_v26, %v10575_v58  ;;  %v828_v62 = vmul.f32 %v5316_v26, %v10576_v40 }
  0xe0   : > { %v829_v61 = vmul.f32 %v6484_v0, %v5316_v26  ;;  %v830_v43 = vmul.f32 %v6487_v34, %v5316_v26  ;;  %v831_v18 = vadd.f32 %v815_v19, %v776_v23  ;;  %v832_v55 = vadd.f32 %v816_v33, %v777_v49  ;;  %v10577_v23 = vld [vmem:[#allocation18_spill] sm:$0xff] }
  0xe1   : > { %v833_v17 = vadd.f32 %v817_v59, %v778_v5  ;;  %v834_v15 = vadd.f32 %v818_v6, %v779_v63  ;;  %v835_v37 = vadd.f32 %v819_v47, %v780_v4  ;;  %v836_v11 = vadd.f32 %v820_v56, %v781_v51  ;;  %v10578_v63 = vld [vmem:[#allocation37_spill] sm:$0xff]  ;;  %v10579_v5 = vld [vmem:[#allocation31_spill] sm:$0xff]  ;;  %v10580_v51 = vld [vmem:[#allocation38_spill] sm:$0xff] }
  0xe2   : > { %v837_v16 = vadd.f32 %v821_v46, %v782_v2  ;;  %v838_v14 = vadd.f32 %v822_v22, %v783_v7  ;;  %v839_v39 = vadd.f32 %v823_v8, %v784_v13  ;;  %v840_v60 = vadd.f32 %v824_v52, %v785_v20  ;;  %v10587_v33 = vld [vmem:[#allocation34_spill] sm:$0xff]  ;;  %v10588_v6 = vld [vmem:[#allocation41_spill] sm:$0xff]  ;;  %v10591_v8 = vld [vmem:[#allocation36_spill] sm:$0xff] }
  0xe3   : > { %v841_v58 = vadd.f32 %v825_v41, %v786_v31  ;;  %v842_v9 = vadd.f32 %v826_v30, %v787_v29  ;;  %v843_v45 = vadd.f32 %v827_v32, %v788_v53  ;;  %v844_v40 = vadd.f32 %v828_v62, %v789_v10  ;;  %v10583_v31 = vld [vmem:[#allocation32_spill] sm:$0xff]  ;;  %v10584_v29 = vld [vmem:[#allocation39_spill] sm:$0xff]  ;;  %v10585_v10 = vld [vmem:[#allocation33_spill] sm:$0xff] }
  0xe4   : > { %v845_v44 = vadd.f32 %v829_v61, %v790_v48  ;;  %v846_v38 = vadd.f32 %v830_v43, %v791_v24  ;;  %v854_v35 = vrot.slane %v6484_v0, 1  ;;  %v862_v26 = vrot.slane %v6487_v34, 1  ;;  %v10586_v24 = vld [vmem:[#allocation40_spill] sm:$0xff]  ;;  %v10590_v46 = vld [vmem:[#allocation42_spill] sm:$0xff]  ;;  %v10592_v41 = vld [vmem:[#allocation43_spill] sm:$0xff] }
  0xe5   : > { %v883_v49 = vmul.f32 %v10577_v23, %v5409_v21  ;;  %v884_v4 = vmul.f32 %v10577_v23, %v10578_v63  ;;  %v885_v7 = vmul.f32 %v10577_v23, %v10579_v5  ;;  %v886_v13 = vmul.f32 %v10577_v23, %v10580_v51 }
  0xe6   : > { %v6513_v2 = vsel %vm331_vm0, %v854_v35, %v862_v26  ;;  %v6517_v20 = vsel %vm331_vm0, %v862_v26, %v854_v35  ;;  %v887_v21 = vmul.f32 %v10577_v23, %v10583_v31  ;;  %v888_v53 = vmul.f32 %v10577_v23, %v10584_v29  ;;  %v10589_v35 = vld [vmem:[#allocation35_spill] sm:$0xff] }
  0xe7   : > { %10581 = vst [vmem:[#allocation20_spill] sm:$0xff] %v6513_v2  ;;  %10582 = vst [vmem:[#allocation21_spill] sm:$0xff] %v6517_v20  ;;  %v889_v48 = vmul.f32 %v10577_v23, %v10585_v10  ;;  %v890_v19 = vmul.f32 %v10577_v23, %v10586_v24  ;;  %v891_v59 = vmul.f32 %v10577_v23, %v10587_v33  ;;  %v922_v34 = vrot.slane %v6513_v2, 1 }
  0xe8   : > { %v892_v47 = vmul.f32 %v10577_v23, %v10588_v6  ;;  %v893_v56 = vmul.f32 %v10577_v23, %v10589_v35  ;;  %v894_v22 = vmul.f32 %v10577_v23, %v10590_v46  ;;  %v895_v52 = vmul.f32 %v10577_v23, %v10591_v8 }
  0xe9   : > { %v896_v30 = vmul.f32 %v10577_v23, %v10592_v41  ;;  %v897_v32 = vmul.f32 %v10577_v23, %v6513_v2  ;;  %v898_v62 = vmul.f32 %v10577_v23, %v6517_v20  ;;  %v899_v61 = vadd.f32 %v883_v49, %v831_v18  ;;  %v10602_v49 = vld [vmem:[#allocation50_spill] sm:$0xff] }
  0xea   : > { %v900_v43 = vadd.f32 %v884_v4, %v832_v55  ;;  %v901_v26 = vadd.f32 %v885_v7, %v833_v17  ;;  %v902_v63 = vadd.f32 %v886_v13, %v834_v15  ;;  %v903_v5 = vadd.f32 %v887_v21, %v835_v37  ;;  %v4930_v55 = vld [vmem:[%s5241_s8 + $0x8] sm:$0xff]  ;;  %v10593_v17 = vld [vmem:[#allocation11_spill] sm:$0xff]  ;;  %v10594_v15 = vld [vmem:[#allocation12_spill] sm:$0xff] }
  0xeb   : > { %v904_v51 = vadd.f32 %v888_v53, %v836_v11  ;;  %v905_v31 = vadd.f32 %v889_v48, %v837_v16  ;;  %v906_v29 = vadd.f32 %v890_v19, %v838_v14  ;;  %v907_v10 = vadd.f32 %v891_v59, %v839_v39  ;;  %v10595_v11 = vld [vmem:[#allocation13_spill] sm:$0xff]  ;;  %v10596_v39 = vld [vmem:[#allocation14_spill] sm:$0xff]  ;;  %v10600_v14 = vld [vmem:[#allocation16_spill] sm:$0xff] }
  0xec   : > { %v908_v24 = vadd.f32 %v892_v47, %v840_v60  ;;  %v909_v33 = vadd.f32 %v893_v56, %v841_v58  ;;  %v910_v6 = vadd.f32 %v894_v22, %v842_v9  ;;  %v911_v35 = vadd.f32 %v895_v52, %v843_v45  ;;  %v10603_v7 = vld [vmem:[#allocation44_spill] sm:$0xff]  ;;  %v10604_v21 = vld [vmem:[#allocation51_spill] sm:$0xff]  ;;  %v10605_v48 = vld [vmem:[#allocation45_spill] sm:$0xff] }
  0xed   : > { %v912_v46 = vadd.f32 %v896_v30, %v844_v40  ;;  %v913_v8 = vadd.f32 %v897_v32, %v845_v44  ;;  %v914_v41 = vadd.f32 %v898_v62, %v846_v38  ;;  %v930_v18 = vrot.slane %v6517_v20, 1  ;;  %v10599_v44 = vld [vmem:[#allocation15_spill] sm:$0xff]  ;;  %v10606_v59 = vld [vmem:[#allocation52_spill] sm:$0xff]  ;;  %v10608_v22 = vld [vmem:[#allocation53_spill] sm:$0xff] }
  0xee   : > { %v950_v23 = vrot.slane %v4930_v55, %v10593_v17  ;;  %v1018_v37 = vrot.slane %v4930_v55, %v10594_v15  ;;  %v6549_v16 = vrot.slane %v4930_v55, %v10595_v11  ;;  %v6552_v60 = vrot.slane %v4930_v55, %v10596_v39  ;;  %v10609_v30 = vld [vmem:[#allocation47_spill] sm:$0xff]  ;;  %v10610_v62 = vld [vmem:[#allocation54_spill] sm:$0xff]  ;;  %v10614_v39 = vld [vmem:[#allocation56_spill] sm:$0xff] }
  0xef   : > { %v6556_v9 = vsel %vm331_vm0, %v922_v34, %v930_v18  ;;  %v6560_v38 = vsel %vm331_vm0, %v930_v18, %v922_v34  ;;  %v6563_v45 = vrot.slane %v4930_v55, %v10599_v44  ;;  %v6566_v58 = vrot.slane %v4930_v55, %v10600_v14  ;;  %v10607_v34 = vld [vmem:[#allocation46_spill] sm:$0xff]  ;;  %v10611_v55 = vld [vmem:[#allocation48_spill] sm:$0xff]  ;;  %v10612_v14 = vld [vmem:[#allocation55_spill] sm:$0xff] }
  0xf0   : > { %10597 = vst [vmem:[#allocation22_spill] sm:$0xff] %v6556_v9  ;;  %10598 = vst [vmem:[#allocation23_spill] sm:$0xff] %v6560_v38  ;;  %v951_v40 = vmul.f32 %v950_v23, %v5563_v27  ;;  %v952_v4 = vmul.f32 %v950_v23, %v10602_v49  ;;  %v953_v13 = vmul.f32 %v950_v23, %v10603_v7  ;;  %v10613_v44 = vld [vmem:[#allocation49_spill] sm:$0xff]  ;;  %v990_v36 = vrot.slane %v6556_v9, 1 }
  0xf1   : > { %10601 = vst [vmem:[#allocation24_spill] sm:$0xff] %v6566_v58  ;;  %v954_v53 = vmul.f32 %v950_v23, %v10604_v21  ;;  %v955_v19 = vmul.f32 %v950_v23, %v10605_v48  ;;  %v956_v47 = vmul.f32 %v950_v23, %v10606_v59  ;;  %v957_v56 = vmul.f32 %v950_v23, %v10607_v34 }
  0xf2   : > { %v958_v52 = vmul.f32 %v950_v23, %v10608_v22  ;;  %v959_v32 = vmul.f32 %v950_v23, %v10609_v30  ;;  %v960_v18 = vmul.f32 %v950_v23, %v10610_v62  ;;  %v961_v27 = vmul.f32 %v950_v23, %v10611_v55 }
  0xf3   : > { %v962_v49 = vmul.f32 %v950_v23, %v10612_v14  ;;  %v963_v7 = vmul.f32 %v950_v23, %v10613_v44  ;;  %v964_v21 = vmul.f32 %v950_v23, %v10614_v39  ;;  %v965_v48 = vmul.f32 %v950_v23, %v6556_v9 }
  0xf4   : > { %v966_v59 = vmul.f32 %v950_v23, %v6560_v38  ;;  %v967_v11 = vadd.f32 %v951_v40, %v899_v61  ;;  %v968_v34 = vadd.f32 %v952_v4, %v900_v43  ;;  %v969_v15 = vadd.f32 %v953_v13, %v901_v26  ;;  %v10615_v43 = vld [vmem:[#allocation63_spill] sm:$0xff]  ;;  %v10624_v40 = vld [vmem:[#allocation60_spill] sm:$0xff] }
  0xf5   : > { %v970_v22 = vadd.f32 %v954_v53, %v902_v63  ;;  %v971_v17 = vadd.f32 %v955_v19, %v903_v5  ;;  %v972_v30 = vadd.f32 %v956_v47, %v904_v51  ;;  %v973_v20 = vadd.f32 %v957_v56, %v905_v31  ;;  %v10616_v63 = vld [vmem:[#allocation57_spill] sm:$0xff]  ;;  %v10617_v51 = vld [vmem:[#allocation64_spill] sm:$0xff]  ;;  %v10625_v13 = vld [vmem:[#allocation67_spill] sm:$0xff] }
  0xf6   : > { %v974_v62 = vadd.f32 %v958_v52, %v906_v29  ;;  %v975_v2 = vadd.f32 %v959_v32, %v907_v10  ;;  %v976_v55 = vadd.f32 %v960_v18, %v908_v24  ;;  %v977_v0 = vadd.f32 %v961_v27, %v909_v33  ;;  %v10618_v29 = vld [vmem:[#allocation58_spill] sm:$0xff]  ;;  %v10619_v24 = vld [vmem:[#allocation65_spill] sm:$0xff]  ;;  %v10627_v56 = vld [vmem:[#allocation68_spill] sm:$0xff] }
  0xf7   : > { %v978_v14 = vadd.f32 %v962_v49, %v910_v6  ;;  %v979_v58 = vadd.f32 %v963_v7, %v911_v35  ;;  %v980_v44 = vadd.f32 %v964_v21, %v912_v46  ;;  %v981_v50 = vadd.f32 %v965_v48, %v913_v8  ;;  %v10622_v46 = vld [vmem:[#allocation59_spill] sm:$0xff]  ;;  %v10623_v8 = vld [vmem:[#allocation66_spill] sm:$0xff]  ;;  %v10626_v19 = vld [vmem:[#allocation61_spill] sm:$0xff] }
  0xf8   : > { %v982_v39 = vadd.f32 %v966_v59, %v914_v41  ;;  %v998_v23 = vrot.slane %v6560_v38, 1  ;;  %v1019_v61 = vmul.f32 %v1018_v37, %v5723_v12  ;;  %v1020_v26 = vmul.f32 %v1018_v37, %v10615_v43  ;;  %v10628_v32 = vld [vmem:[#allocation62_spill] sm:$0xff]  ;;  %v10629_v27 = vld [vmem:[#allocation69_spill] sm:$0xff] }
  0xf9   : > { %v1021_v5 = vmul.f32 %v1018_v37, %v10616_v63  ;;  %v1022_v31 = vmul.f32 %v1018_v37, %v10617_v51  ;;  %v1023_v10 = vmul.f32 %v1018_v37, %v10618_v29  ;;  %v1024_v33 = vmul.f32 %v1018_v37, %v10619_v24 }
  0xfa   : > { %v6594_v6 = vsel %vm331_vm0, %v990_v36, %v998_v23  ;;  %v6598_v35 = vsel %vm331_vm0, %v998_v23, %v990_v36  ;;  %v1025_v12 = vmul.f32 %v1018_v37, %v10622_v46  ;;  %v1026_v41 = vmul.f32 %v1018_v37, %v10623_v8 }
  0xfb   : > { %10620 = vst [vmem:[#allocation25_spill] sm:$0xff] %v6594_v6  ;;  %10621 = vst [vmem:[#allocation26_spill] sm:$0xff] %v6598_v35  ;;  %v1027_v4 = vmul.f32 %v1018_v37, %v10624_v40  ;;  %v1028_v53 = vmul.f32 %v1018_v37, %v10625_v13  ;;  %v1029_v47 = vmul.f32 %v1018_v37, %v10626_v19 }
  0xfc   : > { %v1030_v52 = vmul.f32 %v1018_v37, %v10627_v56  ;;  %v1031_v18 = vmul.f32 %v1018_v37, %v10628_v32  ;;  %v1032_v49 = vmul.f32 %v1018_v37, %v10629_v27  ;;  %v1033_v7 = vmul.f32 %v1018_v37, %v6594_v6 }
  0xfd   : > { %v1034_v36 = vmul.f32 %v1018_v37, %v6598_v35  ;;  %v1035_v21 = vadd.f32 %v1019_v61, %v967_v11  ;;  %v1036_v48 = vadd.f32 %v1020_v26, %v968_v34  ;;  %v1037_v59 = vadd.f32 %v1021_v5, %v969_v15  ;;  %v10630_v11 = vld [vmem:[#allocation76_spill] sm:$0xff]  ;;  %v10632_v34 = vld [vmem:[#allocation77_spill] sm:$0xff] }
  0xfe   : > { %v1038_v23 = vadd.f32 %v1022_v31, %v970_v22  ;;  %v1039_v43 = vadd.f32 %v1023_v10, %v971_v17  ;;  %v1040_v63 = vadd.f32 %v1024_v33, %v972_v30  ;;  %v1041_v51 = vadd.f32 %v1025_v12, %v973_v20  ;;  %v10631_v20 = vld [vmem:[#allocation70_spill] sm:$0xff]  ;;  %v10639_v61 = vld [vmem:[#allocation73_spill] sm:$0xff]  ;;  %v10640_v5 = vld [vmem:[#allocation80_spill] sm:$0xff] }
  0xff   : > { %v1042_v29 = vadd.f32 %v1026_v41, %v974_v62  ;;  %v1043_v24 = vadd.f32 %v1027_v4, %v975_v2  ;;  %v1044_v46 = vadd.f32 %v1028_v53, %v976_v55  ;;  %v1045_v8 = vadd.f32 %v1029_v47, %v977_v0  ;;  %v10634_v22 = vld [vmem:[#allocation78_spill] sm:$0xff]  ;;  %v10637_v55 = vld [vmem:[#allocation72_spill] sm:$0xff]  ;;  %v10642_v12 = vld [vmem:[#allocation81_spill] sm:$0xff] }
 0x100   : > { %v1046_v40 = vadd.f32 %v1030_v52, %v978_v14  ;;  %v1047_v13 = vadd.f32 %v1031_v18, %v979_v58  ;;  %v1048_v19 = vadd.f32 %v1032_v49, %v980_v44  ;;  %v1049_v56 = vadd.f32 %v1033_v7, %v981_v50  ;;  %v10633_v58 = vld [vmem:[#allocation71_spill] sm:$0xff]  ;;  %v10641_v10 = vld [vmem:[#allocation74_spill] sm:$0xff] }
 0x101   : > { %v1050_v32 = vadd.f32 %v1034_v36, %v982_v39  ;;  %v1058_v27 = vrot.slane %v6594_v6, 1  ;;  %v1066_v37 = vrot.slane %v6598_v35, 1  ;;  %v1087_v15 = vmul.f32 %v6549_v16, %v5883_v3  ;;  %v10638_v44 = vld [vmem:[#allocation79_spill] sm:$0xff]  ;;  %v10644_v47 = vld [vmem:[#allocation82_spill] sm:$0xff] }
 0x102   : > { %v1088_v17 = vmul.f32 %v6549_v16, %v10630_v11  ;;  %v1089_v2 = vmul.f32 %v6549_v16, %v10631_v20  ;;  %v1090_v0 = vmul.f32 %v6549_v16, %v10632_v34  ;;  %v1091_v50 = vmul.f32 %v6549_v16, %v10633_v58  ;;  %v10643_v4 = vld [vmem:[#allocation75_spill] sm:$0xff] }
 0x103   : > { %v1092_v30 = vmul.f32 %v6549_v16, %v10634_v22  ;;  %v6626_v62 = vsel %vm331_vm0, %v1058_v27, %v1066_v37  ;;  %v6630_v3 = vsel %vm331_vm0, %v1066_v37, %v1058_v27  ;;  %v1093_v14 = vmul.f32 %v6549_v16, %v10637_v55 }
 0x104   : > { %10635 = vst [vmem:[#allocation27_spill] sm:$0xff] %v6626_v62  ;;  %10636 = vst [vmem:[#allocation28_spill] sm:$0xff] %v6630_v3  ;;  %v1094_v39 = vmul.f32 %v6549_v16, %v10638_v44  ;;  %v1095_v26 = vmul.f32 %v6549_v16, %v10639_v61  ;;  %v1096_v31 = vmul.f32 %v6549_v16, %v10640_v5 }
 0x105   : > { %v1097_v33 = vmul.f32 %v6549_v16, %v10641_v10  ;;  %v1098_v41 = vmul.f32 %v6549_v16, %v10642_v12  ;;  %v1099_v53 = vmul.f32 %v6549_v16, %v10643_v4  ;;  %v1100_v52 = vmul.f32 %v6549_v16, %v10644_v47 }
 0x106   : > { %v1101_v18 = vmul.f32 %v6549_v16, %v6626_v62  ;;  %v1102_v49 = vmul.f32 %v6549_v16, %v6630_v3  ;;  %v1103_v7 = vadd.f32 %v1087_v15, %v1035_v21  ;;  %v1104_v36 = vadd.f32 %v1088_v17, %v1036_v48  ;;  %v10645_v48 = vld [vmem:[#allocation89_spill] sm:$0xff]  ;;  %v10654_v15 = vld [vmem:[#allocation86_spill] sm:$0xff] }
 0x107   : > { %v1105_v27 = vadd.f32 %v1089_v2, %v1037_v59  ;;  %v1106_v37 = vadd.f32 %v1090_v0, %v1038_v23  ;;  %v1107_v11 = vadd.f32 %v1091_v50, %v1039_v43  ;;  %v1108_v20 = vadd.f32 %v1092_v30, %v1040_v63  ;;  %v10646_v23 = vld [vmem:[#allocation83_spill] sm:$0xff]  ;;  %v10647_v63 = vld [vmem:[#allocation90_spill] sm:$0xff]  ;;  %v10655_v2 = vld [vmem:[#allocation93_spill] sm:$0xff] }
 0x108   : > { %v1109_v34 = vadd.f32 %v1093_v14, %v1041_v51  ;;  %v1110_v58 = vadd.f32 %v1094_v39, %v1042_v29  ;;  %v1111_v22 = vadd.f32 %v1095_v26, %v1043_v24  ;;  %v1112_v55 = vadd.f32 %v1096_v31, %v1044_v46  ;;  %v10648_v29 = vld [vmem:[#allocation84_spill] sm:$0xff]  ;;  %v10649_v46 = vld [vmem:[#allocation91_spill] sm:$0xff]  ;;  %v10657_v14 = vld [vmem:[#allocation94_spill] sm:$0xff] }
 0x109   : > { %v1113_v44 = vadd.f32 %v1097_v33, %v1045_v8  ;;  %v1114_v61 = vadd.f32 %v1098_v41, %v1046_v40  ;;  %v1115_v5 = vadd.f32 %v1099_v53, %v1047_v13  ;;  %v1116_v10 = vadd.f32 %v1100_v52, %v1048_v19  ;;  %v10652_v13 = vld [vmem:[#allocation85_spill] sm:$0xff]  ;;  %v10656_v50 = vld [vmem:[#allocation87_spill] sm:$0xff]  ;;  %v10658_v26 = vld [vmem:[#allocation88_spill] sm:$0xff] }
 0x10a   : > { %v1117_v12 = vadd.f32 %v1101_v18, %v1049_v56  ;;  %v1118_v4 = vadd.f32 %v1102_v49, %v1050_v32  ;;  %v1126_v47 = vrot.slane %v6626_v62, 1  ;;  %v1134_v16 = vrot.slane %v6630_v3, 1  ;;  %v10653_v56 = vld [vmem:[#allocation92_spill] sm:$0xff]  ;;  %v10659_v33 = vld [vmem:[#allocation95_spill] sm:$0xff] }
 0x10b   : > { %v1155_v21 = vmul.f32 %v6552_v60, %v6043_v54  ;;  %v1156_v59 = vmul.f32 %v6552_v60, %v10645_v48  ;;  %v1157_v43 = vmul.f32 %v6552_v60, %v10646_v23  ;;  %v1158_v51 = vmul.f32 %v6552_v60, %v10647_v63 }
 0x10c   : > { %v1159_v24 = vmul.f32 %v6552_v60, %v10648_v29  ;;  %v1160_v8 = vmul.f32 %v6552_v60, %v10649_v46  ;;  %v6668_v40 = vsel %vm331_vm0, %v1126_v47, %v1134_v16  ;;  %v6672_v54 = vsel %vm331_vm0, %v1134_v16, %v1126_v47 }
 0x10d   : > { %10650 = vst [vmem:[#allocation29_spill] sm:$0xff] %v6668_v40  ;;  %10651 = vst [vmem:[#allocation30_spill] sm:$0xff] %v6672_v54  ;;  %v1161_v19 = vmul.f32 %v6552_v60, %v10652_v13  ;;  %v1162_v32 = vmul.f32 %v6552_v60, %v10653_v56  ;;  %v1163_v17 = vmul.f32 %v6552_v60, %v10654_v15 }
 0x10e   : > { %v1164_v0 = vmul.f32 %v6552_v60, %v10655_v2  ;;  %v1165_v30 = vmul.f32 %v6552_v60, %v10656_v50  ;;  %v1166_v39 = vmul.f32 %v6552_v60, %v10657_v14  ;;  %v1167_v31 = vmul.f32 %v6552_v60, %v10658_v26 }
 0x10f   : > { %v1168_v41 = vmul.f32 %v6552_v60, %v10659_v33  ;;  %v1169_v53 = vmul.f32 %v6552_v60, %v6668_v40  ;;  %v1170_v52 = vmul.f32 %v6552_v60, %v6672_v54  ;;  %v1171_v18 = vadd.f32 %v1155_v21, %v1103_v7  ;;  %v10669_v21 = vld [vmem:[#allocation104_spill] sm:$0xff] }
 0x110   : > { %v1172_v49 = vadd.f32 %v1156_v59, %v1104_v36  ;;  %v1173_v47 = vadd.f32 %v1157_v43, %v1105_v27  ;;  %v1174_v16 = vadd.f32 %v1158_v51, %v1106_v37  ;;  %v1175_v48 = vadd.f32 %v1159_v24, %v1107_v11  ;;  %v10660_v11 = vld [vmem:[#allocation96_spill] sm:$0xff]  ;;  %v10671_v24 = vld [vmem:[#allocation105_spill] sm:$0xff] }
 0x111   : > { %v1176_v23 = vadd.f32 %v1160_v8, %v1108_v20  ;;  %v1177_v63 = vadd.f32 %v1161_v19, %v1109_v34  ;;  %v1178_v29 = vadd.f32 %v1162_v32, %v1110_v58  ;;  %v1179_v46 = vadd.f32 %v1163_v17, %v1111_v22  ;;  %v10661_v34 = vld [vmem:[#allocation101_spill] sm:$0xff]  ;;  %v10670_v43 = vld [vmem:[#allocation100_spill] sm:$0xff] }
 0x112   : > { %v1180_v13 = vadd.f32 %v1164_v0, %v1112_v55  ;;  %v1181_v56 = vadd.f32 %v1165_v30, %v1113_v44  ;;  %v1182_v15 = vadd.f32 %v1166_v39, %v1114_v61  ;;  %v1183_v2 = vadd.f32 %v1167_v31, %v1115_v5  ;;  %v10665_v55 = vld [vmem:[#allocation102_spill] sm:$0xff]  ;;  %v10667_v5 = vld [vmem:[#allocation103_spill] sm:$0xff] }
 0x113   : > { %v1184_v50 = vadd.f32 %v1168_v41, %v1116_v10  ;;  %v1185_v14 = vadd.f32 %v1169_v53, %v1117_v12  ;;  %v1186_v26 = vadd.f32 %v1170_v52, %v1118_v4  ;;  %v1194_v33 = vrot.slane %v6668_v40, 1  ;;  %v10666_v44 = vld [vmem:[#allocation98_spill] sm:$0xff]  ;;  %v10668_v12 = vld [vmem:[#allocation99_spill] sm:$0xff] }
 0x114   : > { %v1202_v60 = vrot.slane %v6672_v54, 1  ;;  %v1223_v7 = vmul.f32 %v6563_v45, %v6203_v25  ;;  %v1224_v36 = vmul.f32 %v6563_v45, %v6235_v28  ;;  %v1225_v27 = vmul.f32 %v6563_v45, %v6207_v57  ;;  %v10664_v28 = vld [vmem:[#allocation97_spill] sm:$0xff] }
 0x115   : > { %v1226_v37 = vmul.f32 %v6563_v45, %v6239_v42  ;;  %v1227_v20 = vmul.f32 %v6563_v45, %v10660_v11  ;;  %v1228_v58 = vmul.f32 %v6563_v45, %v10661_v34  ;;  %v1229_v57 = vmul.f32 %v6563_v45, %v10664_v28 }
 0x116   : > { %v6710_v22 = vsel %vm331_vm0, %v1194_v33, %v1202_v60  ;;  %v6714_v25 = vsel %vm331_vm0, %v1202_v60, %v1194_v33  ;;  %v1230_v42 = vmul.f32 %v6563_v45, %v10665_v55  ;;  %v1231_v61 = vmul.f32 %v6563_v45, %v10666_v44 }
 0x117   : > { %10662 = vst [vmem:[#allocation18_spill] sm:$0xff] %v6710_v22  ;;  %10663 = vst [vmem:[#allocation37_spill] sm:$0xff] %v6714_v25  ;;  %v1232_v10 = vmul.f32 %v6563_v45, %v10667_v5  ;;  %v1233_v4 = vmul.f32 %v6563_v45, %v10668_v12  ;;  %v1234_v59 = vmul.f32 %v6563_v45, %v10669_v21  ;;  %v1262_v12 = vrot.slane %v6710_v22, 1  ;;  %v10687_v21 = vld [vmem:[#allocation112_spill] sm:$0xff] }
 0x118   : > { %v1235_v51 = vmul.f32 %v6563_v45, %v10670_v43  ;;  %v1236_v8 = vmul.f32 %v6563_v45, %v10671_v24  ;;  %v1237_v19 = vmul.f32 %v6563_v45, %v6710_v22  ;;  %v1238_v32 = vmul.f32 %v6563_v45, %v6714_v25  ;;  %v10688_v43 = vld [vmem:[#allocation119_spill] sm:$0xff] }
 0x119   : > { %v1239_v17 = vadd.f32 %v1223_v7, %v1171_v18  ;;  %v1240_v0 = vadd.f32 %v1224_v36, %v1172_v49  ;;  %v1241_v30 = vadd.f32 %v1225_v27, %v1173_v47  ;;  %v1242_v39 = vadd.f32 %v1226_v37, %v1174_v16  ;;  %v10672_v18 = vld [vmem:[#allocation106_spill] sm:$0xff]  ;;  %v10673_v49 = vld [vmem:[#allocation24_spill] sm:$0xff]  ;;  %v10674_v16 = vld [vmem:[#allocation113_spill] sm:$0xff] }
 0x11a   : > { %v1243_v31 = vadd.f32 %v1227_v20, %v1175_v48  ;;  %v1244_v41 = vadd.f32 %v1228_v58, %v1176_v23  ;;  %v1245_v53 = vadd.f32 %v1229_v57, %v1177_v63  ;;  %v1246_v52 = vadd.f32 %v1230_v42, %v1178_v29  ;;  %v10675_v23 = vld [vmem:[#allocation107_spill] sm:$0xff]  ;;  %v10676_v29 = vld [vmem:[#allocation114_spill] sm:$0xff]  ;;  %v10682_v36 = vld [vmem:[#allocation116_spill] sm:$0xff] }
 0x11b   : > { %v1247_v33 = vadd.f32 %v1231_v61, %v1179_v46  ;;  %v1248_v60 = vadd.f32 %v1232_v10, %v1180_v13  ;;  %v1249_v11 = vadd.f32 %v1233_v4, %v1181_v56  ;;  %v1250_v34 = vadd.f32 %v1234_v59, %v1182_v15  ;;  %v10677_v13 = vld [vmem:[#allocation108_spill] sm:$0xff]  ;;  %v10678_v15 = vld [vmem:[#allocation115_spill] sm:$0xff]  ;;  %v10683_v37 = vld [vmem:[#allocation110_spill] sm:$0xff] }
 0x11c   : > { %v1251_v28 = vadd.f32 %v1235_v51, %v1183_v2  ;;  %v1252_v55 = vadd.f32 %v1236_v8, %v1184_v50  ;;  %v1253_v44 = vadd.f32 %v1237_v19, %v1185_v14  ;;  %v1254_v5 = vadd.f32 %v1238_v32, %v1186_v26  ;;  %v10681_v26 = vld [vmem:[#allocation109_spill] sm:$0xff]  ;;  %v10685_v42 = vld [vmem:[#allocation111_spill] sm:$0xff]  ;;  %v10686_v10 = vld [vmem:[#allocation118_spill] sm:$0xff] }
 0x11d   : > { %v1270_v45 = vrot.slane %v6714_v25, 1  ;;  %v1291_v47 = vmul.f32 %v10673_v49, %v10672_v18  ;;  %v1292_v48 = vmul.f32 %v10673_v49, %v10674_v16  ;;  %v1293_v63 = vmul.f32 %v10673_v49, %v10675_v23  ;;  %v10684_v58 = vld [vmem:[#allocation117_spill] sm:$0xff]  ;;  %v6779_v19 = vld [vmem:[%s5241_s8 + $0x10] sm:$0xff]  ;;  %v6782_v16 = vld [vmem:[%s5271_s21 + $0x20] sm:$0xff] }
 0x11e   : > { %v1294_v46 = vmul.f32 %v10673_v49, %v10676_v29  ;;  %v1295_v56 = vmul.f32 %v10673_v49, %v10677_v13  ;;  %v1296_v2 = vmul.f32 %v10673_v49, %v10678_v15  ;;  %v1297_v7 = vmul.f32 %v10673_v49, %v10681_v26  ;;  %10689 = vst [vmem:[#allocation32_spill] sm:$0xff] %v6779_v19  ;;  %v6785_v26 = vld [vmem:[%s5271_s21 + $0x30] sm:$0xff] }
 0x11f   : > { %v6752_v50 = vsel %vm331_vm0, %v1262_v12, %v1270_v45  ;;  %v6756_v14 = vsel %vm331_vm0, %v1270_v45, %v1262_v12  ;;  %v1298_v27 = vmul.f32 %v10673_v49, %v10682_v36  ;;  %v1299_v20 = vmul.f32 %v10673_v49, %v10683_v37  ;;  %10690 = vst [vmem:[#allocation39_spill] sm:$0xff] %v6785_v26  ;;  %v6788_v36 = vld [vmem:[%s5271_s21 + $0x40] sm:$0xff] }
 0x120   : > { %10679 = vst [vmem:[#allocation31_spill] sm:$0xff] %v6752_v50  ;;  %10680 = vst [vmem:[#allocation38_spill] sm:$0xff] %v6756_v14  ;;  %v1300_v57 = vmul.f32 %v10673_v49, %v10684_v58  ;;  %v1301_v61 = vmul.f32 %v10673_v49, %v10685_v42  ;;  %v1302_v4 = vmul.f32 %v10673_v49, %v10686_v10  ;;  %v6825_v42 = vld [vmem:[%s5271_s21 + $0x68] sm:$0xff] }
 0x121   : > { %v1303_v59 = vmul.f32 %v10673_v49, %v10687_v21  ;;  %v1304_v51 = vmul.f32 %v10673_v49, %v10688_v43  ;;  %v1305_v24 = vmul.f32 %v10673_v49, %v6752_v50  ;;  %v1306_v8 = vmul.f32 %v10673_v49, %v6756_v14  ;;  %10691 = vst [vmem:[#allocation33_spill] sm:$0xff] %v6788_v36  ;;  %v6791_v49 = vld [vmem:[%s5271_s21 + $0x50] sm:$0xff]  ;;  %v6835_v43 = vld [vmem:[%s5271_s21 + $0x98] sm:$0xff] }
 0x122   : > { %v1307_v32 = vadd.f32 %v1291_v47, %v1239_v17  ;;  %v1308_v12 = vadd.f32 %v1292_v48, %v1240_v0  ;;  %v1309_v45 = vadd.f32 %v1293_v63, %v1241_v30  ;;  %v1310_v18 = vadd.f32 %v1294_v46, %v1242_v39  ;;  %10692 = vst [vmem:[#allocation40_spill] sm:$0xff] %v6791_v49  ;;  %v6794_v48 = vld [vmem:[%s5271_s21 + $0x60] sm:$0xff]  ;;  %v6797_v39 = vld [vmem:[%s5271_s21 + $0x70] sm:$0xff]  ;;  %v10696_v46 = vld [vmem:[#allocation9_spill] sm:$0xff] }
 0x123   : > { %v1311_v23 = vadd.f32 %v1295_v56, %v1243_v31  ;;  %v1312_v29 = vadd.f32 %v1296_v2, %v1244_v41  ;;  %v1313_v13 = vadd.f32 %v1297_v7, %v1245_v53  ;;  %v1314_v15 = vadd.f32 %v1298_v27, %v1246_v52  ;;  %10693 = vst [vmem:[#allocation34_spill] sm:$0xff] %v6794_v48  ;;  %v6800_v31 = vld [vmem:[%s5271_s21 + $0x90] sm:$0xff]  ;;  %v6809_v2 = vld [vmem:[%s5271_s21 + $0x38] sm:$0xff] }
 0x124   : > { %v1315_v17 = vadd.f32 %v1299_v20, %v1247_v33  ;;  %v1316_v0 = vadd.f32 %v1300_v57, %v1248_v60  ;;  %v1317_v47 = vadd.f32 %v1301_v61, %v1249_v11  ;;  %v1318_v30 = vadd.f32 %v1302_v4, %v1250_v34  ;;  %10694 = vst [vmem:[#allocation41_spill] sm:$0xff] %v6797_v39  ;;  %v4733_v34 = vld [vmem:[%s5271_s21 + $0x28] sm:$0xff]  ;;  %v6819_v27 = vld [vmem:[%s5271_s21 + $0x58] sm:$0xff] }
 0x125   : > { %10695 = vst [vmem:[#allocation35_spill] sm:$0xff] %v6800_v31  ;;  %v1319_v41 = vadd.f32 %v1303_v59, %v1251_v28  ;;  %v1320_v53 = vadd.f32 %v1304_v51, %v1252_v55  ;;  %v1321_v52 = vadd.f32 %v1305_v24, %v1253_v44  ;;  %v1322_v63 = vadd.f32 %v1306_v8, %v1254_v5  ;;  %v6816_v5 = vld [vmem:[%s5271_s21 + $0x48] sm:$0xff]  ;;  %v6828_v61 = vld [vmem:[%s5271_s21 + $0x78] sm:$0xff] }
 0x126   : > { %v1345_v56 = vrot.slane %v6779_v19, %v10696_v46  ;;  %v1378_v33 = vrot.slane %v6782_v16, 1  ;;  %v1379_v60 = vrot.slane %v6785_v26, 1  ;;  %v1380_v11 = vrot.slane %v6788_v36, 1  ;;  %10697 = vst [vmem:[#allocation42_spill] sm:$0xff] %v6828_v61  ;;  %10698 = vst [vmem:[#allocation36_spill] sm:$0xff] %v6835_v43  ;;  %v10700_v50 = vld [vmem:[#allocation19_spill] sm:$0xff] }
 0x127   : > { %v1381_v7 = vrot.slane %v6791_v49, 1  ;;  %v1382_v28 = vrot.slane %v6794_v48, 1  ;;  %v1383_v55 = vrot.slane %v6797_v39, 1  ;;  %v1385_v44 = vrot.slane %v6800_v31, 1 }
 0x128   : > { %v1346_v37 = vmul.f32 %v6782_v16, %v1345_v56  ;;  %v1347_v20 = vmul.f32 %v4733_v34, %v1345_v56  ;;  %v1348_v58 = vmul.f32 %v6785_v26, %v1345_v56  ;;  %v1349_v57 = vmul.f32 %v6809_v2, %v1345_v56  ;;  %v10699_v26 = vld [vmem:[#allocation17_spill] sm:$0xff] }
 0x129   : > { %v1350_v10 = vmul.f32 %v6788_v36, %v1345_v56  ;;  %v1351_v4 = vmul.f32 %v6816_v5, %v1345_v56  ;;  %v1352_v21 = vmul.f32 %v6791_v49, %v1345_v56  ;;  %v1353_v59 = vmul.f32 %v6819_v27, %v1345_v56 }
 0x12a   : > { %v1354_v51 = vmul.f32 %v6794_v48, %v1345_v56  ;;  %v1355_v24 = vmul.f32 %v6825_v42, %v1345_v56  ;;  %v1356_v8 = vmul.f32 %v6797_v39, %v1345_v56  ;;  %v1357_v16 = vmul.f32 %v6828_v61, %v1345_v56 }
 0x12b   : > { %v1358_v14 = vmul.f32 %v10699_v26, %v1345_v56  ;;  %v1359_v36 = vmul.f32 %v10700_v50, %v1345_v56  ;;  %v1360_v46 = vmul.f32 %v6800_v31, %v1345_v56  ;;  %v1361_v49 = vmul.f32 %v6835_v43, %v1345_v56 }
 0x12c   : > { %v1362_v25 = vadd.f32 %v1346_v37, %v1307_v32  ;;  %v1363_v22 = vadd.f32 %v1347_v20, %v1308_v12  ;;  %v1364_v54 = vadd.f32 %v1348_v58, %v1309_v45  ;;  %v1365_v40 = vadd.f32 %v1349_v57, %v1310_v18 }
 0x12d   : > { %v1366_v3 = vadd.f32 %v1350_v10, %v1311_v23  ;;  %v1367_v48 = vadd.f32 %v1351_v4, %v1312_v29  ;;  %v1368_v62 = vadd.f32 %v1352_v21, %v1313_v13  ;;  %v1369_v35 = vadd.f32 %v1353_v59, %v1314_v15  ;;  %v10701_v18 = vld [vmem:[#allocation42_spill] sm:$0xff]  ;;  %v10703_v15 = vld [vmem:[#allocation32_spill] sm:$0xff]  ;;  %v10718_v59 = vld [vmem:[#allocation21_spill] sm:$0xff] }
 0x12e   : > { %v1370_v6 = vadd.f32 %v1354_v51, %v1315_v17  ;;  %v1371_v39 = vadd.f32 %v1355_v24, %v1316_v0  ;;  %v1372_v38 = vadd.f32 %v1356_v8, %v1317_v47  ;;  %v1373_v9 = vadd.f32 %v1357_v16, %v1318_v30  ;;  %v10702_v13 = vld [vmem:[#allocation10_spill] sm:$0xff]  ;;  %v10717_v4 = vld [vmem:[#allocation20_spill] sm:$0xff] }
 0x12f   : > { %v1374_v1 = vadd.f32 %v1358_v14, %v1319_v41  ;;  %v1375_v26 = vadd.f32 %v1359_v36, %v1320_v53  ;;  %v1376_v19 = vadd.f32 %v1360_v46, %v1321_v52  ;;  %v1377_v50 = vadd.f32 %v1361_v49, %v1322_v63 }
 0x130   : > { %v1386_v61 = vrot.slane %v4733_v34, 1  ;;  %v1387_v31 = vrot.slane %v6809_v2, 1  ;;  %v1388_v32 = vrot.slane %v6816_v5, 1  ;;  %v1389_v12 = vrot.slane %v6819_v27, 1 }
 0x131   : > { %v1390_v45 = vrot.slane %v6825_v42, 1  ;;  %v1391_v23 = vrot.slane %v10701_v18, 1  ;;  %v1393_v29 = vrot.slane %v6835_v43, 1  ;;  %v1413_v17 = vrot.slane %v10703_v15, %v10702_v13 }
 0x132   : > { %v6855_v36 = vsel %vm331_vm0, %v1378_v33, %v1386_v61  ;;  %v6859_v49 = vsel %vm331_vm0, %v1379_v60, %v1387_v31  ;;  %v6863_v0 = vsel %vm331_vm0, %v1380_v11, %v1388_v32  ;;  %v6867_v47 = vsel %vm331_vm0, %v1381_v7, %v1389_v12 }
 0x133   : > { %10705 = vst [vmem:[#allocation43_spill] sm:$0xff] %v6859_v49  ;;  %10706 = vst [vmem:[#allocation50_spill] sm:$0xff] %v6863_v0  ;;  %v6871_v30 = vsel %vm331_vm0, %v1382_v28, %v1390_v45  ;;  %v6875_v41 = vsel %vm331_vm0, %v1383_v55, %v1391_v23  ;;  %v6879_v53 = vsel %vm331_vm0, %v1385_v44, %v1393_v29 }
 0x134   : > { %10707 = vst [vmem:[#allocation44_spill] sm:$0xff] %v6867_v47  ;;  %10708 = vst [vmem:[#allocation51_spill] sm:$0xff] %v6871_v30  ;;  %v1402_v52 = vsel %vm331_vm0, %v1386_v61, %v1378_v33  ;;  %v6885_v63 = vsel %vm331_vm0, %v1387_v31, %v1379_v60  ;;  %v6889_v46 = vsel %vm331_vm0, %v1388_v32, %v1380_v11 }
 0x135   : > { %10709 = vst [vmem:[#allocation45_spill] sm:$0xff] %v6875_v41  ;;  %10710 = vst [vmem:[#allocation52_spill] sm:$0xff] %v6879_v53  ;;  %v6893_v56 = vsel %vm331_vm0, %v1389_v12, %v1381_v7  ;;  %v6897_v34 = vsel %vm331_vm0, %v1390_v45, %v1382_v28  ;;  %v6901_v37 = vsel %vm331_vm0, %v1391_v23, %v1383_v55 }
 0x136   : > { %10711 = vst [vmem:[#allocation46_spill] sm:$0xff] %v6885_v63  ;;  %10712 = vst [vmem:[#allocation53_spill] sm:$0xff] %v6889_v46  ;;  %v6905_v31 = vsel %vm331_vm0, %v1393_v29, %v1385_v44  ;;  %v1414_v33 = vmul.f32 %v1413_v17, %v6855_v36  ;;  %v1415_v60 = vmul.f32 %v1413_v17, %v1402_v52 }
 0x137   : > { %10713 = vst [vmem:[#allocation47_spill] sm:$0xff] %v6893_v56  ;;  %10714 = vst [vmem:[#allocation54_spill] sm:$0xff] %v6897_v34  ;;  %v1416_v11 = vmul.f32 %v1413_v17, %v6859_v49  ;;  %v1417_v7 = vmul.f32 %v1413_v17, %v6885_v63  ;;  %v1418_v20 = vmul.f32 %v1413_v17, %v6863_v0 }
 0x138   : > { %10715 = vst [vmem:[#allocation48_spill] sm:$0xff] %v6901_v37  ;;  %10716 = vst [vmem:[#allocation55_spill] sm:$0xff] %v6905_v31  ;;  %v1419_v28 = vmul.f32 %v1413_v17, %v6889_v46  ;;  %v1420_v58 = vmul.f32 %v1413_v17, %v6867_v47  ;;  %v1421_v55 = vmul.f32 %v1413_v17, %v6893_v56 }
 0x139   : > { %v1422_v57 = vmul.f32 %v1413_v17, %v6871_v30  ;;  %v1423_v44 = vmul.f32 %v1413_v17, %v6897_v34  ;;  %v1424_v61 = vmul.f32 %v1413_v17, %v6875_v41  ;;  %v1425_v10 = vmul.f32 %v1413_v17, %v6901_v37 }
 0x13a   : > { %v1426_v21 = vmul.f32 %v1413_v17, %v10717_v4  ;;  %v1427_v51 = vmul.f32 %v1413_v17, %v10718_v59  ;;  %v1428_v24 = vmul.f32 %v1413_v17, %v6879_v53  ;;  %v1429_v8 = vmul.f32 %v1413_v17, %v6905_v31 }
 0x13b   : > { %v6922_v16 = vadd.f32 %v1414_v33, %v1362_v25  ;;  %v6924_v32 = vadd.f32 %v1415_v60, %v1363_v22  ;;  %v6926_v12 = vadd.f32 %v1416_v11, %v1364_v54  ;;  %v6928_v45 = vadd.f32 %v1417_v7, %v1365_v40 }
 0x13c   : > { %v6930_v23 = vadd.f32 %v1418_v20, %v1366_v3  ;;  %v6932_v29 = vadd.f32 %v1419_v28, %v1367_v48  ;;  %v6934_v13 = vadd.f32 %v1420_v58, %v1368_v62  ;;  %v6936_v4 = vadd.f32 %v1421_v55, %v1369_v35 }
 0x13d   : > { %v6938_v59 = vadd.f32 %v1422_v57, %v1370_v6  ;;  %v6940_v43 = vadd.f32 %v1423_v44, %v1371_v39  ;;  %v6942_v25 = vadd.f32 %v1424_v61, %v1372_v38  ;;  %v6944_v22 = vadd.f32 %v1425_v10, %v1373_v9 }
 0x13e   : > { %v6946_v54 = vadd.f32 %v1426_v21, %v1374_v1  ;;  %v6948_v40 = vadd.f32 %v1427_v51, %v1375_v26  ;;  %v6950_v3 = vadd.f32 %v1428_v24, %v1376_v19  ;;  %v6952_v48 = vadd.f32 %v1429_v8, %v1377_v50  ;;  %v10731_v8 = vld [vmem:[#allocation11_spill] sm:$0xff] }
 0x13f   : > { %v1446_v62 = vrot.slane %v6855_v36, 1  ;;  %v1447_v35 = vrot.slane %v6859_v49, 1  ;;  %v1448_v6 = vrot.slane %v6863_v0, 1  ;;  %v1449_v39 = vrot.slane %v6867_v47, 1 }
 0x140   : > { %v1450_v38 = vrot.slane %v6871_v30, 1  ;;  %v1451_v9 = vrot.slane %v6875_v41, 1  ;;  %v1453_v1 = vrot.slane %v6879_v53, 1  ;;  %v1454_v26 = vrot.slane %v1402_v52, 1  ;;  %v10732_v41 = vld [vmem:[#allocation22_spill] sm:$0xff] }
 0x141   : > { %v1455_v19 = vrot.slane %v6885_v63, 1  ;;  %v1456_v50 = vrot.slane %v6889_v46, 1  ;;  %v1457_v17 = vrot.slane %v6893_v56, 1  ;;  %v1458_v36 = vrot.slane %v6897_v34, 1  ;;  %v10733_v34 = vld [vmem:[#allocation23_spill] sm:$0xff] }
 0x142   : > { %v1459_v33 = vrot.slane %v6901_v37, 1  ;;  %v1461_v60 = vrot.slane %v6905_v31, 1  ;;  %v6969_v11 = vsel %vm331_vm0, %v1446_v62, %v1454_v26  ;;  %v1470_v20 = vsel %vm331_vm0, %v1454_v26, %v1446_v62 }
 0x143   : > { %v6973_v7 = vsel %vm331_vm0, %v1447_v35, %v1455_v19  ;;  %v6977_v52 = vsel %vm331_vm0, %v1448_v6, %v1456_v50  ;;  %v6983_v28 = vsel %vm331_vm0, %v1449_v39, %v1457_v17  ;;  %v6987_v58 = vsel %vm331_vm0, %v1450_v38, %v1458_v36 }
 0x144   : > { %10719 = vst [vmem:[#allocation49_spill] sm:$0xff] %v6973_v7  ;;  %10720 = vst [vmem:[#allocation56_spill] sm:$0xff] %v6977_v52  ;;  %v6991_v55 = vsel %vm331_vm0, %v1451_v9, %v1459_v33  ;;  %v6995_v57 = vsel %vm331_vm0, %v1453_v1, %v1461_v60  ;;  %v6999_v44 = vsel %vm331_vm0, %v1455_v19, %v1447_v35  ;;  %v1514_v35 = vrot.slane %v6969_v11, 1 }
 0x145   : > { %10721 = vst [vmem:[#allocation63_spill] sm:$0xff] %v6983_v28  ;;  %10722 = vst [vmem:[#allocation57_spill] sm:$0xff] %v6987_v58  ;;  %v7003_v61 = vsel %vm331_vm0, %v1456_v50, %v1448_v6  ;;  %v7007_v10 = vsel %vm331_vm0, %v1457_v17, %v1449_v39  ;;  %v7011_v21 = vsel %vm331_vm0, %v1458_v36, %v1450_v38  ;;  %v1515_v6 = vrot.slane %v6973_v7, 1 }
 0x146   : > { %10723 = vst [vmem:[#allocation64_spill] sm:$0xff] %v6991_v55  ;;  %10724 = vst [vmem:[#allocation58_spill] sm:$0xff] %v6995_v57  ;;  %v7015_v51 = vsel %vm331_vm0, %v1459_v33, %v1451_v9  ;;  %v7019_v24 = vsel %vm331_vm0, %v1461_v60, %v1453_v1  ;;  %v1481_v62 = vrot.slane %v10703_v15, %v10731_v8  ;;  %v1516_v39 = vrot.slane %v6977_v52, 1 }
 0x147   : > { %10725 = vst [vmem:[#allocation65_spill] sm:$0xff] %v6999_v44  ;;  %10726 = vst [vmem:[#allocation59_spill] sm:$0xff] %v7003_v61  ;;  %v1517_v38 = vrot.slane %v6983_v28, 1  ;;  %v1518_v26 = vrot.slane %v6987_v58, 1 }
 0x148   : > { %10727 = vst [vmem:[#allocation66_spill] sm:$0xff] %v7007_v10  ;;  %10728 = vst [vmem:[#allocation60_spill] sm:$0xff] %v7011_v21  ;;  %v1482_v9 = vmul.f32 %v1481_v62, %v6969_v11  ;;  %v1483_v19 = vmul.f32 %v1481_v62, %v1470_v20  ;;  %v1484_v50 = vmul.f32 %v1481_v62, %v6973_v7 }
 0x149   : > { %10729 = vst [vmem:[#allocation67_spill] sm:$0xff] %v7015_v51  ;;  %10730 = vst [vmem:[#allocation61_spill] sm:$0xff] %v7019_v24  ;;  %v1485_v1 = vmul.f32 %v1481_v62, %v6999_v44  ;;  %v1486_v17 = vmul.f32 %v1481_v62, %v6977_v52  ;;  %v1487_v36 = vmul.f32 %v1481_v62, %v7003_v61 }
 0x14a   : > { %v1488_v33 = vmul.f32 %v1481_v62, %v6983_v28  ;;  %v1489_v60 = vmul.f32 %v1481_v62, %v7007_v10  ;;  %v1490_v31 = vmul.f32 %v1481_v62, %v6987_v58  ;;  %v1491_v53 = vmul.f32 %v1481_v62, %v7011_v21 }
 0x14b   : > { %v1492_v37 = vmul.f32 %v1481_v62, %v6991_v55  ;;  %v1493_v11 = vmul.f32 %v1481_v62, %v7015_v51  ;;  %v1494_v7 = vmul.f32 %v1481_v62, %v10732_v41  ;;  %v1495_v30 = vmul.f32 %v1481_v62, %v10733_v34 }
 0x14c   : > { %v1496_v52 = vmul.f32 %v1481_v62, %v6995_v57  ;;  %v1497_v56 = vmul.f32 %v1481_v62, %v7019_v24  ;;  %v1498_v28 = vadd.f32 %v1482_v9, %v6922_v16  ;;  %v1499_v47 = vadd.f32 %v1483_v19, %v6924_v32 }
 0x14d   : > { %v1500_v58 = vadd.f32 %v1484_v50, %v6926_v12  ;;  %v1501_v46 = vadd.f32 %v1485_v1, %v6928_v45  ;;  %v1502_v0 = vadd.f32 %v1486_v17, %v6930_v23  ;;  %v1503_v63 = vadd.f32 %v1487_v36, %v6932_v29  ;;  %v10746_v1 = vld [vmem:[#allocation12_spill] sm:$0xff] }
 0x14e   : > { %v1504_v41 = vadd.f32 %v1488_v33, %v6934_v13  ;;  %v1505_v34 = vadd.f32 %v1489_v60, %v6936_v4  ;;  %v1506_v49 = vadd.f32 %v1490_v31, %v6938_v59  ;;  %v1507_v62 = vadd.f32 %v1491_v53, %v6940_v43 }
 0x14f   : > { %v1508_v16 = vadd.f32 %v1492_v37, %v6942_v25  ;;  %v1509_v32 = vadd.f32 %v1493_v11, %v6944_v22  ;;  %v1510_v12 = vadd.f32 %v1494_v7, %v6946_v54  ;;  %v1511_v45 = vadd.f32 %v1495_v30, %v6948_v40 }
 0x150   : > { %v1512_v23 = vadd.f32 %v1496_v52, %v6950_v3  ;;  %v1513_v29 = vadd.f32 %v1497_v56, %v6952_v48  ;;  %v1519_v13 = vrot.slane %v6991_v55, 1  ;;  %v1521_v4 = vrot.slane %v6995_v57, 1 }
 0x151   : > { %v1522_v9 = vrot.slane %v1470_v20, 1  ;;  %v1523_v31 = vrot.slane %v6999_v44, 1  ;;  %v1524_v43 = vrot.slane %v7003_v61, 1  ;;  %v1525_v53 = vrot.slane %v7007_v10, 1 }
 0x152   : > { %v1526_v37 = vrot.slane %v7011_v21, 1  ;;  %v1527_v59 = vrot.slane %v7015_v51, 1  ;;  %v1529_v30 = vrot.slane %v7019_v24, 1  ;;  %v10748_v24 = vld [vmem:[#allocation26_spill] sm:$0xff] }
 0x153   : > { %v7069_v56 = vsel %vm331_vm0, %v1514_v35, %v1522_v9  ;;  %v7073_v25 = vsel %vm331_vm0, %v1515_v6, %v1523_v31  ;;  %v1538_v22 = vsel %vm331_vm0, %v1522_v9, %v1514_v35  ;;  %v7079_v54 = vsel %vm331_vm0, %v1516_v39, %v1524_v43 }
 0x154   : > { %10734 = vst [vmem:[#allocation68_spill] sm:$0xff] %v7073_v25  ;;  %10735 = vst [vmem:[#allocation62_spill] sm:$0xff] %v7079_v54  ;;  %v7083_v40 = vsel %vm331_vm0, %v1517_v38, %v1525_v53  ;;  %v7087_v3 = vsel %vm331_vm0, %v1518_v26, %v1526_v37  ;;  %v7091_v48 = vsel %vm331_vm0, %v1519_v13, %v1527_v59  ;;  %v1582_v17 = vrot.slane %v7069_v56, 1 }
 0x155   : > { %10736 = vst [vmem:[#allocation69_spill] sm:$0xff] %v7083_v40  ;;  %10737 = vst [vmem:[#allocation76_spill] sm:$0xff] %v7087_v3  ;;  %v7095_v7 = vsel %vm331_vm0, %v1521_v4, %v1529_v30  ;;  %v7099_v52 = vsel %vm331_vm0, %v1523_v31, %v1515_v6  ;;  %v7103_v20 = vsel %vm331_vm0, %v1524_v43, %v1516_v39  ;;  %v1584_v36 = vrot.slane %v7079_v54, 1 }
 0x156   : > { %10738 = vst [vmem:[#allocation70_spill] sm:$0xff] %v7091_v48  ;;  %10739 = vst [vmem:[#allocation77_spill] sm:$0xff] %v7095_v7  ;;  %v7107_v35 = vsel %vm331_vm0, %v1525_v53, %v1517_v38  ;;  %v7111_v19 = vsel %vm331_vm0, %v1526_v37, %v1518_v26  ;;  %v7115_v50 = vsel %vm331_vm0, %v1527_v59, %v1519_v13  ;;  %v1583_v38 = vrot.slane %v7073_v25, 1 }
 0x157   : > { %10740 = vst [vmem:[#allocation71_spill] sm:$0xff] %v7099_v52  ;;  %10741 = vst [vmem:[#allocation78_spill] sm:$0xff] %v7103_v20  ;;  %v7119_v6 = vsel %vm331_vm0, %v1529_v30, %v1521_v4  ;;  %v1549_v39 = vrot.slane %v10703_v15, %v10746_v1  ;;  %v1585_v26 = vrot.slane %v7083_v40, 1 }
 0x158   : > { %10742 = vst [vmem:[#allocation72_spill] sm:$0xff] %v7107_v35  ;;  %10743 = vst [vmem:[#allocation79_spill] sm:$0xff] %v7111_v19 }
 0x159   : > { %10744 = vst [vmem:[#allocation73_spill] sm:$0xff] %v7115_v50  ;;  %10745 = vst [vmem:[#allocation80_spill] sm:$0xff] %v7119_v6  ;;  %v1550_v33 = vmul.f32 %v1549_v39, %v7069_v56  ;;  %v1551_v60 = vmul.f32 %v1549_v39, %v1538_v22  ;;  %v1552_v11 = vmul.f32 %v1549_v39, %v7073_v25  ;;  %v10747_v56 = vld [vmem:[#allocation25_spill] sm:$0xff] }
 0x15a   : > { %v1553_v13 = vmul.f32 %v1549_v39, %v7099_v52  ;;  %v1554_v4 = vmul.f32 %v1549_v39, %v7079_v54  ;;  %v1555_v9 = vmul.f32 %v1549_v39, %v7103_v20  ;;  %v1556_v31 = vmul.f32 %v1549_v39, %v7083_v40 }
 0x15b   : > { %v1557_v43 = vmul.f32 %v1549_v39, %v7107_v35  ;;  %v1558_v53 = vmul.f32 %v1549_v39, %v7087_v3  ;;  %v1559_v37 = vmul.f32 %v1549_v39, %v7111_v19  ;;  %v1560_v59 = vmul.f32 %v1549_v39, %v7091_v48 }
 0x15c   : > { %v1561_v30 = vmul.f32 %v1549_v39, %v7115_v50  ;;  %v1562_v25 = vmul.f32 %v1549_v39, %v10747_v56  ;;  %v1563_v57 = vmul.f32 %v1549_v39, %v10748_v24  ;;  %v1564_v54 = vmul.f32 %v1549_v39, %v7095_v7 }
 0x15d   : > { %v1565_v51 = vmul.f32 %v1549_v39, %v7119_v6  ;;  %v7142_v55 = vadd.f32 %v1550_v33, %v1498_v28  ;;  %v7144_v40 = vadd.f32 %v1551_v60, %v1499_v47  ;;  %v7146_v21 = vadd.f32 %v1552_v11, %v1500_v58 }
 0x15e   : > { %v7148_v10 = vadd.f32 %v1553_v13, %v1501_v46  ;;  %v7150_v61 = vadd.f32 %v1554_v4, %v1502_v0  ;;  %v7152_v44 = vadd.f32 %v1555_v9, %v1503_v63  ;;  %v7154_v1 = vadd.f32 %v1556_v31, %v1504_v41  ;;  %v10761_v31 = vld [vmem:[#allocation13_spill] sm:$0xff] }
 0x15f   : > { %v7156_v56 = vadd.f32 %v1557_v43, %v1505_v34  ;;  %v7158_v24 = vadd.f32 %v1558_v53, %v1506_v49  ;;  %v7160_v8 = vadd.f32 %v1559_v37, %v1507_v62  ;;  %v7162_v28 = vadd.f32 %v1560_v59, %v1508_v16 }
 0x160   : > { %v7164_v47 = vadd.f32 %v1561_v30, %v1509_v32  ;;  %v7166_v58 = vadd.f32 %v1562_v25, %v1510_v12  ;;  %v7168_v46 = vadd.f32 %v1563_v57, %v1511_v45  ;;  %v7170_v0 = vadd.f32 %v1564_v54, %v1512_v23 }
 0x161   : > { %v7172_v63 = vadd.f32 %v1565_v51, %v1513_v29  ;;  %v1586_v41 = vrot.slane %v7087_v3, 1  ;;  %v1587_v34 = vrot.slane %v7091_v48, 1  ;;  %v1589_v49 = vrot.slane %v7095_v7, 1  ;;  %v10762_v7 = vld [vmem:[#allocation27_spill] sm:$0xff] }
 0x162   : > { %v1590_v62 = vrot.slane %v1538_v22, 1  ;;  %v1591_v16 = vrot.slane %v7099_v52, 1  ;;  %v1592_v32 = vrot.slane %v7103_v20, 1  ;;  %v1593_v12 = vrot.slane %v7107_v35, 1 }
 0x163   : > { %v1594_v57 = vrot.slane %v7111_v19, 1  ;;  %v1595_v45 = vrot.slane %v7115_v50, 1  ;;  %v1597_v51 = vrot.slane %v7119_v6, 1  ;;  %v10763_v50 = vld [vmem:[#allocation28_spill] sm:$0xff] }
 0x164   : > { %v7185_v23 = vsel %vm331_vm0, %v1582_v17, %v1590_v62  ;;  %v7189_v29 = vsel %vm331_vm0, %v1590_v62, %v1582_v17  ;;  %v7193_v25 = vsel %vm331_vm0, %v1583_v38, %v1591_v16  ;;  %v7197_v22 = vsel %vm331_vm0, %v1584_v36, %v1592_v32 }
 0x165   : > { %10749 = vst [vmem:[#allocation74_spill] sm:$0xff] %v7193_v25  ;;  %10750 = vst [vmem:[#allocation81_spill] sm:$0xff] %v7197_v22  ;;  %v7201_v54 = vsel %vm331_vm0, %v1585_v26, %v1593_v12  ;;  %v7205_v39 = vsel %vm331_vm0, %v1586_v41, %v1594_v57  ;;  %v7209_v17 = vsel %vm331_vm0, %v1587_v34, %v1595_v45  ;;  %v1650_v43 = vrot.slane %v7185_v23, 1 }
 0x166   : > { %10751 = vst [vmem:[#allocation75_spill] sm:$0xff] %v7201_v54  ;;  %10752 = vst [vmem:[#allocation82_spill] sm:$0xff] %v7205_v39  ;;  %v7213_v33 = vsel %vm331_vm0, %v1589_v49, %v1597_v51  ;;  %v7217_v60 = vsel %vm331_vm0, %v1591_v16, %v1583_v38  ;;  %v7221_v11 = vsel %vm331_vm0, %v1592_v32, %v1584_v36  ;;  %v1652_v53 = vrot.slane %v7197_v22, 1 }
 0x167   : > { %10753 = vst [vmem:[#allocation89_spill] sm:$0xff] %v7209_v17  ;;  %10754 = vst [vmem:[#allocation83_spill] sm:$0xff] %v7213_v33  ;;  %v7225_v13 = vsel %vm331_vm0, %v1593_v12, %v1585_v26  ;;  %v7229_v4 = vsel %vm331_vm0, %v1594_v57, %v1586_v41  ;;  %v7233_v9 = vsel %vm331_vm0, %v1595_v45, %v1587_v34  ;;  %v1651_v26 = vrot.slane %v7193_v25, 1 }
 0x168   : > { %10755 = vst [vmem:[#allocation90_spill] sm:$0xff] %v7217_v60  ;;  %10756 = vst [vmem:[#allocation84_spill] sm:$0xff] %v7221_v11  ;;  %v7237_v38 = vsel %vm331_vm0, %v1597_v51, %v1589_v49  ;;  %v1617_v36 = vrot.slane %v10703_v15, %v10761_v31  ;;  %v1653_v37 = vrot.slane %v7201_v54, 1  ;;  %v1654_v59 = vrot.slane %v7205_v39, 1 }
 0x169   : > { %10757 = vst [vmem:[#allocation91_spill] sm:$0xff] %v7225_v13  ;;  %10758 = vst [vmem:[#allocation85_spill] sm:$0xff] %v7229_v4  ;;  %v1655_v30 = vrot.slane %v7209_v17, 1  ;;  %v1657_v41 = vrot.slane %v7213_v33, 1 }
 0x16a   : > { %10759 = vst [vmem:[#allocation92_spill] sm:$0xff] %v7233_v9  ;;  %10760 = vst [vmem:[#allocation86_spill] sm:$0xff] %v7237_v38  ;;  %v1618_v34 = vmul.f32 %v1617_v36, %v7185_v23  ;;  %v1619_v49 = vmul.f32 %v1617_v36, %v7189_v29  ;;  %v1620_v62 = vmul.f32 %v1617_v36, %v7193_v25 }
 0x16b   : > { %v1621_v16 = vmul.f32 %v1617_v36, %v7217_v60  ;;  %v1622_v32 = vmul.f32 %v1617_v36, %v7197_v22  ;;  %v1623_v12 = vmul.f32 %v1617_v36, %v7221_v11  ;;  %v1624_v57 = vmul.f32 %v1617_v36, %v7201_v54 }
 0x16c   : > { %v1625_v45 = vmul.f32 %v1617_v36, %v7225_v13  ;;  %v1626_v51 = vmul.f32 %v1617_v36, %v7205_v39  ;;  %v1627_v31 = vmul.f32 %v1617_v36, %v7229_v4  ;;  %v1628_v23 = vmul.f32 %v1617_v36, %v7209_v17 }
 0x16d   : > { %v1629_v6 = vmul.f32 %v1617_v36, %v7233_v9  ;;  %v1630_v25 = vmul.f32 %v1617_v36, %v10762_v7  ;;  %v1631_v48 = vmul.f32 %v1617_v36, %v10763_v50  ;;  %v1632_v22 = vmul.f32 %v1617_v36, %v7213_v33 }
 0x16e   : > { %v1633_v19 = vmul.f32 %v1617_v36, %v7237_v38  ;;  %v1634_v54 = vadd.f32 %v1618_v34, %v7142_v55  ;;  %v1635_v3 = vadd.f32 %v1619_v49, %v7144_v40  ;;  %v1636_v39 = vadd.f32 %v1620_v62, %v7146_v21 }
 0x16f   : > { %v1637_v35 = vadd.f32 %v1621_v16, %v7148_v10  ;;  %v1638_v17 = vadd.f32 %v1622_v32, %v7150_v61  ;;  %v1639_v20 = vadd.f32 %v1623_v12, %v7152_v44  ;;  %v1640_v7 = vadd.f32 %v1624_v57, %v7154_v1 }
 0x170   : > { %v1641_v50 = vadd.f32 %v1625_v45, %v7156_v56  ;;  %v1642_v33 = vadd.f32 %v1626_v51, %v7158_v24  ;;  %v1643_v36 = vadd.f32 %v1627_v31, %v7160_v8  ;;  %v1644_v55 = vadd.f32 %v1628_v23, %v7162_v28 }
 0x171   : > { %v1645_v40 = vadd.f32 %v1629_v6, %v7164_v47  ;;  %v1646_v21 = vadd.f32 %v1630_v25, %v7166_v58  ;;  %v1647_v10 = vadd.f32 %v1631_v48, %v7168_v46  ;;  %v1648_v61 = vadd.f32 %v1632_v22, %v7170_v0  ;;  %v10764_v58 = vld [vmem:[#allocation14_spill] sm:$0xff] }
 0x172   : > { %v1649_v44 = vadd.f32 %v1633_v19, %v7172_v63  ;;  %v1658_v1 = vrot.slane %v7189_v29, 1  ;;  %v1659_v56 = vrot.slane %v7217_v60, 1  ;;  %v1660_v24 = vrot.slane %v7221_v11, 1 }
 0x173   : > { %v1661_v8 = vrot.slane %v7225_v13, 1  ;;  %v1662_v28 = vrot.slane %v7229_v4, 1  ;;  %v1663_v6 = vrot.slane %v7233_v9, 1  ;;  %v1665_v47 = vrot.slane %v7237_v38, 1 }
 0x174   : > { %v1685_v48 = vrot.slane %v10703_v15, %v10764_v58  ;;  %v7291_v19 = vsel %vm331_vm0, %v1650_v43, %v1658_v1  ;;  %v7295_v46 = vsel %vm331_vm0, %v1651_v26, %v1659_v56  ;;  %v7299_v0 = vsel %vm331_vm0, %v1652_v53, %v1660_v24 }
 0x175   : > { %v7303_v63 = vsel %vm331_vm0, %v1653_v37, %v1661_v8  ;;  %v7307_v29 = vsel %vm331_vm0, %v1654_v59, %v1662_v28  ;;  %v7311_v25 = vsel %vm331_vm0, %v1655_v30, %v1663_v6  ;;  %v7315_v22 = vsel %vm331_vm0, %v1657_v41, %v1665_v47 }
 0x176   : > { %10765 = vst [vmem:[#allocation93_spill] sm:$0xff] %v7303_v63  ;;  %10766 = vst [vmem:[#allocation87_spill] sm:$0xff] %v7307_v29  ;;  %v1674_v31 = vsel %vm331_vm0, %v1658_v1, %v1650_v43  ;;  %v7321_v34 = vsel %vm331_vm0, %v1659_v56, %v1651_v26  ;;  %v7325_v49 = vsel %vm331_vm0, %v1660_v24, %v1652_v53  ;;  %v10774_v56 = vld [vmem:[#allocation29_spill] sm:$0xff] }
 0x177   : > { %10767 = vst [vmem:[#allocation94_spill] sm:$0xff] %v7311_v25  ;;  %10768 = vst [vmem:[#allocation88_spill] sm:$0xff] %v7315_v22  ;;  %v7329_v62 = vsel %vm331_vm0, %v1661_v8, %v1653_v37  ;;  %v7333_v16 = vsel %vm331_vm0, %v1662_v28, %v1654_v59  ;;  %v7337_v32 = vsel %vm331_vm0, %v1663_v6, %v1655_v30  ;;  %v10775_v8 = vld [vmem:[#allocation30_spill] sm:$0xff] }
 0x178   : > { %10769 = vst [vmem:[#allocation95_spill] sm:$0xff] %v7325_v49  ;;  %10770 = vst [vmem:[#allocation96_spill] sm:$0xff] %v7329_v62  ;;  %v7341_v43 = vsel %vm331_vm0, %v1665_v47, %v1657_v41  ;;  %v1686_v26 = vmul.f32 %v1685_v48, %v7291_v19  ;;  %v1687_v53 = vmul.f32 %v1685_v48, %v1674_v31 }
 0x179   : > { %10771 = vst [vmem:[#allocation101_spill] sm:$0xff] %v7333_v16  ;;  %10772 = vst [vmem:[#allocation97_spill] sm:$0xff] %v7337_v32  ;;  %v1688_v12 = vmul.f32 %v1685_v48, %v7295_v46  ;;  %v1689_v37 = vmul.f32 %v1685_v48, %v7321_v34  ;;  %v1690_v57 = vmul.f32 %v1685_v48, %v7299_v0 }
 0x17a   : > { %10773 = vst [vmem:[#allocation102_spill] sm:$0xff] %v7341_v43  ;;  %v1691_v59 = vmul.f32 %v1685_v48, %v7325_v49  ;;  %v1692_v45 = vmul.f32 %v1685_v48, %v7303_v63  ;;  %v1693_v30 = vmul.f32 %v1685_v48, %v7329_v62  ;;  %v1694_v51 = vmul.f32 %v1685_v48, %v7307_v29 }
 0x17b   : > { %v1695_v41 = vmul.f32 %v1685_v48, %v7333_v16  ;;  %v1696_v23 = vmul.f32 %v1685_v48, %v7311_v25  ;;  %v1697_v1 = vmul.f32 %v1685_v48, %v7337_v32  ;;  %v1698_v24 = vmul.f32 %v1685_v48, %v10774_v56 }
 0x17c   : > { %v1699_v28 = vmul.f32 %v1685_v48, %v10775_v8  ;;  %v1700_v6 = vmul.f32 %v1685_v48, %v7315_v22  ;;  %v1701_v47 = vmul.f32 %v1685_v48, %v7341_v43  ;;  %v7358_v38 = vadd.f32 %v1686_v26, %v1634_v54 }
 0x17d   : > { %v7360_v9 = vadd.f32 %v1687_v53, %v1635_v3  ;;  %v7362_v4 = vadd.f32 %v1688_v12, %v1636_v39  ;;  %v7364_v13 = vadd.f32 %v1689_v37, %v1637_v35  ;;  %v7366_v11 = vadd.f32 %v1690_v57, %v1638_v17 }
 0x17e   : > { %v7368_v60 = vadd.f32 %v1691_v59, %v1639_v20  ;;  %v7370_v58 = vadd.f32 %v1692_v45, %v1640_v7  ;;  %v7372_v56 = vadd.f32 %v1693_v30, %v1641_v50  ;;  %v7374_v8 = vadd.f32 %v1694_v51, %v1642_v33 }
 0x17f   : > { %v7376_v52 = vadd.f32 %v1695_v41, %v1643_v36  ;;  %v7378_v54 = vadd.f32 %v1696_v23, %v1644_v55  ;;  %v7380_v3 = vadd.f32 %v1697_v1, %v1645_v40  ;;  %v7382_v39 = vadd.f32 %v1698_v24, %v1646_v21 }
 0x180   : > { %v7384_v35 = vadd.f32 %v1699_v28, %v1647_v10  ;;  %v7386_v17 = vadd.f32 %v1700_v6, %v1648_v61  ;;  %v7388_v20 = vadd.f32 %v1701_v47, %v1649_v44  ;;  %v1718_v7 = vrot.slane %v7291_v19, 1  ;;  %v10787_v47 = vld [vmem:[#allocation15_spill] sm:$0xff] }
 0x181   : > { %v1719_v50 = vrot.slane %v7295_v46, 1  ;;  %v1720_v33 = vrot.slane %v7299_v0, 1  ;;  %v1721_v36 = vrot.slane %v7303_v63, 1  ;;  %v1722_v55 = vrot.slane %v7307_v29, 1 }
 0x182   : > { %v1723_v40 = vrot.slane %v7311_v25, 1  ;;  %v1725_v21 = vrot.slane %v7315_v22, 1  ;;  %v1726_v10 = vrot.slane %v1674_v31, 1  ;;  %v1727_v61 = vrot.slane %v7321_v34, 1  ;;  %v10788_v25 = vld [vmem:[#allocation18_spill] sm:$0xff] }
 0x183   : > { %v1728_v44 = vrot.slane %v7325_v49, 1  ;;  %v1729_v48 = vrot.slane %v7329_v62, 1  ;;  %v1730_v19 = vrot.slane %v7333_v16, 1  ;;  %v1731_v26 = vrot.slane %v7337_v32, 1  ;;  %v10789_v16 = vld [vmem:[#allocation37_spill] sm:$0xff] }
 0x184   : > { %v1733_v53 = vrot.slane %v7341_v43, 1  ;;  %v7405_v12 = vsel %vm331_vm0, %v1718_v7, %v1726_v10  ;;  %v7409_v37 = vsel %vm331_vm0, %v1719_v50, %v1727_v61  ;;  %v7417_v57 = vsel %vm331_vm0, %v1726_v10, %v1718_v7 }
 0x185   : > { %10776 = vst [vmem:[#allocation98_spill] sm:$0xff] %v7409_v37  ;;  %v7413_v31 = vsel %vm331_vm0, %v1720_v33, %v1728_v44  ;;  %v7421_v59 = vsel %vm331_vm0, %v1721_v36, %v1729_v48  ;;  %v7425_v45 = vsel %vm331_vm0, %v1722_v55, %v1730_v19  ;;  %v7429_v30 = vsel %vm331_vm0, %v1723_v40, %v1731_v26 }
 0x186   : > { %10777 = vst [vmem:[#allocation103_spill] sm:$0xff] %v7413_v31  ;;  %10778 = vst [vmem:[#allocation99_spill] sm:$0xff] %v7421_v59  ;;  %v7433_v51 = vsel %vm331_vm0, %v1725_v21, %v1733_v53  ;;  %v7437_v41 = vsel %vm331_vm0, %v1727_v61, %v1719_v50  ;;  %v7441_v23 = vsel %vm331_vm0, %v1728_v44, %v1720_v33  ;;  %v1786_v50 = vrot.slane %v7405_v12, 1 }
 0x187   : > { %10779 = vst [vmem:[#allocation104_spill] sm:$0xff] %v7425_v45  ;;  %10780 = vst [vmem:[#allocation100_spill] sm:$0xff] %v7429_v30  ;;  %v7445_v1 = vsel %vm331_vm0, %v1729_v48, %v1721_v36  ;;  %v7449_v24 = vsel %vm331_vm0, %v1730_v19, %v1722_v55  ;;  %v7453_v28 = vsel %vm331_vm0, %v1731_v26, %v1723_v40  ;;  %v1787_v33 = vrot.slane %v7409_v37, 1 }
 0x188   : > { %10781 = vst [vmem:[#allocation105_spill] sm:$0xff] %v7433_v51  ;;  %10782 = vst [vmem:[#allocation106_spill] sm:$0xff] %v7441_v23  ;;  %v7457_v6 = vsel %vm331_vm0, %v1733_v53, %v1725_v21  ;;  %v1753_v7 = vrot.slane %v10703_v15, %v10787_v47  ;;  %v1788_v36 = vrot.slane %v7413_v31, 1  ;;  %v1789_v55 = vrot.slane %v7421_v59, 1 }
 0x189   : > { %10783 = vst [vmem:[#allocation24_spill] sm:$0xff] %v7445_v1  ;;  %10784 = vst [vmem:[#allocation113_spill] sm:$0xff] %v7449_v24  ;;  %v1790_v10 = vrot.slane %v7425_v45, 1 }
 0x18a   : > { %10785 = vst [vmem:[#allocation107_spill] sm:$0xff] %v7453_v28  ;;  %10786 = vst [vmem:[#allocation114_spill] sm:$0xff] %v7457_v6  ;;  %v1754_v40 = vmul.f32 %v1753_v7, %v7405_v12  ;;  %v1755_v61 = vmul.f32 %v1753_v7, %v7417_v57  ;;  %v1756_v21 = vmul.f32 %v1753_v7, %v7409_v37 }
 0x18b   : > { %v1757_v44 = vmul.f32 %v1753_v7, %v7437_v41  ;;  %v1758_v48 = vmul.f32 %v1753_v7, %v7413_v31  ;;  %v1759_v19 = vmul.f32 %v1753_v7, %v7441_v23  ;;  %v1760_v26 = vmul.f32 %v1753_v7, %v7421_v59 }
 0x18c   : > { %v1761_v53 = vmul.f32 %v1753_v7, %v7445_v1  ;;  %v1762_v43 = vmul.f32 %v1753_v7, %v7425_v45  ;;  %v1763_v22 = vmul.f32 %v1753_v7, %v7449_v24  ;;  %v1764_v12 = vmul.f32 %v1753_v7, %v7429_v30 }
 0x18d   : > { %v1765_v32 = vmul.f32 %v1753_v7, %v7453_v28  ;;  %v1766_v37 = vmul.f32 %v1753_v7, %v10788_v25  ;;  %v1767_v29 = vmul.f32 %v1753_v7, %v10789_v16  ;;  %v1768_v31 = vmul.f32 %v1753_v7, %v7433_v51 }
 0x18e   : > { %v1769_v62 = vmul.f32 %v1753_v7, %v7457_v6  ;;  %v7483_v59 = vadd.f32 %v1754_v40, %v7358_v38  ;;  %v7486_v63 = vadd.f32 %v1755_v61, %v7360_v9  ;;  %v7489_v45 = vadd.f32 %v1756_v21, %v7362_v4  ;;  %v7567_v21 = vld [vmem:[%s5271_s21 + $0x80] sm:$0xff] }
 0x18f   : > { %v7492_v49 = vadd.f32 %v1757_v44, %v7364_v13  ;;  %v7495_v25 = vadd.f32 %v1758_v48, %v7366_v11  ;;  %v7498_v16 = vadd.f32 %v1759_v19, %v7368_v60  ;;  %v7501_v7 = vadd.f32 %v1760_v26, %v7370_v58  ;;  %10795 = vst [vmem:[#allocation117_spill] sm:$0xff] %v7567_v21  ;;  %v7570_v44 = vld [vmem:[%s5271_s21 + $0x88] sm:$0xff] }
 0x190   : > { %v7504_v38 = vadd.f32 %v1761_v53, %v7372_v56  ;;  %v7507_v9 = vadd.f32 %v1762_v43, %v7374_v8  ;;  %v7510_v4 = vadd.f32 %v1763_v22, %v7376_v52  ;;  %v7513_v13 = vadd.f32 %v1764_v12, %v7378_v54  ;;  %10796 = vst [vmem:[#allocation111_spill] sm:$0xff] %v7570_v44 }
 0x191   : > { %v7516_v11 = vadd.f32 %v1765_v32, %v7380_v3  ;;  %v7519_v60 = vadd.f32 %v1766_v37, %v7382_v39  ;;  %v7522_v58 = vadd.f32 %v1767_v29, %v7384_v35  ;;  %v7525_v56 = vadd.f32 %v1768_v31, %v7386_v17  ;;  %v7539_v39 = vld [vmem:[%s5241_s8 + $0x18] sm:$0xff] }
 0x192   : > { %v7528_v43 = vadd.f32 %v1769_v62, %v7388_v20  ;;  %v1791_v52 = vrot.slane %v7429_v30, 1  ;;  %v1793_v22 = vrot.slane %v7433_v51, 1  ;;  %v1794_v32 = vrot.slane %v7417_v57, 1 }
 0x193   : > { %v1795_v8 = vrot.slane %v7437_v41, 1  ;;  %v1796_v29 = vrot.slane %v7441_v23, 1  ;;  %v1797_v54 = vrot.slane %v7445_v1, 1  ;;  %v1798_v3 = vrot.slane %v7449_v24, 1 }
 0x194   : > { %v1799_v62 = vrot.slane %v7453_v28, 1  ;;  %v1801_v35 = vrot.slane %v7457_v6, 1  ;;  %v1802_v17 = vsel %vm331_vm0, %v1786_v50, %v1794_v32  ;;  %v1810_v37 = vsel %vm331_vm0, %v1794_v32, %v1786_v50  ;;  %v7573_v50 = vld [vmem:[%s5271_s21 + $0xa0] sm:$0xff]  ;;  %v10808_v28 = vld [vmem:[#allocation38_spill] sm:$0xff] }
 0x195   : > { %v7546_v20 = vsel %vm331_vm0, %v1787_v33, %v1795_v8  ;;  %v7552_v31 = vsel %vm331_vm0, %v1788_v36, %v1796_v29  ;;  %v7556_v57 = vsel %vm331_vm0, %v1789_v55, %v1797_v54  ;;  %v7560_v40 = vsel %vm331_vm0, %v1790_v10, %v1798_v3  ;;  %10797 = vst [vmem:[#allocation118_spill] sm:$0xff] %v7573_v50 }
 0x196   : > { %10790 = vst [vmem:[#allocation108_spill] sm:$0xff] %v7546_v20  ;;  %10791 = vst [vmem:[#allocation115_spill] sm:$0xff] %v7552_v31  ;;  %v7564_v61 = vsel %vm331_vm0, %v1791_v52, %v1799_v62  ;;  %v7577_v48 = vsel %vm331_vm0, %v1793_v22, %v1801_v35  ;;  %v7581_v19 = vsel %vm331_vm0, %v1795_v8, %v1787_v33  ;;  %v10805_v8 = vld [vmem:[#allocation16_spill] sm:$0xff] }
 0x197   : > { %10792 = vst [vmem:[#allocation109_spill] sm:$0xff] %v7556_v57  ;;  %10793 = vst [vmem:[#allocation116_spill] sm:$0xff] %v7560_v40  ;;  %v7585_v26 = vsel %vm331_vm0, %v1796_v29, %v1788_v36  ;;  %v7589_v53 = vsel %vm331_vm0, %v1797_v54, %v1789_v55  ;;  %v7593_v12 = vsel %vm331_vm0, %v1798_v3, %v1790_v10  ;;  %v10806_v29 = vld [vmem:[#allocation9_spill] sm:$0xff] }
 0x198   : > { %10794 = vst [vmem:[#allocation110_spill] sm:$0xff] %v7564_v61  ;;  %10798 = vst [vmem:[#allocation112_spill] sm:$0xff] %v7577_v48  ;;  %v7597_v32 = vsel %vm331_vm0, %v1799_v62, %v1791_v52  ;;  %v7601_v33 = vsel %vm331_vm0, %v1801_v35, %v1793_v22  ;;  %v1821_v36 = vrot.slane %v10703_v15, %v10805_v8 }
 0x199   : > { %10799 = vst [vmem:[#allocation119_spill] sm:$0xff] %v7581_v19  ;;  %10800 = vst [vmem:[#allocation17_spill] sm:$0xff] %v7585_v26  ;;  %v1876_v6 = vrot.slane %v7539_v39, %v10806_v29 }
 0x19a   : > { %10801 = vst [vmem:[#allocation19_spill] sm:$0xff] %v7589_v53  ;;  %10802 = vst [vmem:[#allocation42_spill] sm:$0xff] %v7593_v12  ;;  %v1822_v3 = vmul.f32 %v1821_v36, %v1802_v17  ;;  %v1823_v51 = vmul.f32 %v1821_v36, %v1810_v37  ;;  %v1824_v52 = vmul.f32 %v1821_v36, %v7546_v20  ;;  %v10807_v37 = vld [vmem:[#allocation31_spill] sm:$0xff] }
 0x19b   : > { %10803 = vst [vmem:[#allocation32_spill] sm:$0xff] %v7597_v32  ;;  %10804 = vst [vmem:[#allocation8_spill] sm:$0xff] %v7601_v33  ;;  %v1825_v62 = vmul.f32 %v1821_v36, %v7581_v19  ;;  %v1826_v22 = vmul.f32 %v1821_v36, %v7552_v31  ;;  %v1827_v35 = vmul.f32 %v1821_v36, %v7585_v26 }
 0x19c   : > { %v1828_v15 = vmul.f32 %v1821_v36, %v7556_v57  ;;  %v1829_v29 = vmul.f32 %v1821_v36, %v7589_v53  ;;  %v1830_v55 = vmul.f32 %v1821_v36, %v7560_v40  ;;  %v1831_v54 = vmul.f32 %v1821_v36, %v7593_v12 }
 0x19d   : > { %v1832_v10 = vmul.f32 %v1821_v36, %v7564_v61  ;;  %v1833_v17 = vmul.f32 %v1821_v36, %v7597_v32  ;;  %v1834_v20 = vmul.f32 %v1821_v36, %v10807_v37  ;;  %v1835_v19 = vmul.f32 %v1821_v36, %v10808_v28 }
 0x19e   : > { %v1836_v31 = vmul.f32 %v1821_v36, %v7577_v48  ;;  %v1837_v26 = vmul.f32 %v1821_v36, %v7601_v33  ;;  %v1838_v57 = vadd.f32 %v1822_v3, %v7483_v59  ;;  %v1839_v53 = vadd.f32 %v1823_v51, %v7486_v63 }
 0x19f   : > { %v1840_v40 = vadd.f32 %v1824_v52, %v7489_v45  ;;  %v1841_v12 = vadd.f32 %v1825_v62, %v7492_v49  ;;  %v1842_v61 = vadd.f32 %v1826_v22, %v7495_v25  ;;  %v1843_v32 = vadd.f32 %v1827_v35, %v7498_v16  ;;  %v10809_v16 = vld [vmem:[#allocation39_spill] sm:$0xff] }
 0x1a0   : > { %v1844_v37 = vadd.f32 %v1828_v15, %v7501_v7  ;;  %v1845_v28 = vadd.f32 %v1829_v29, %v7504_v38  ;;  %v1846_v48 = vadd.f32 %v1830_v55, %v7507_v9  ;;  %v1847_v36 = vadd.f32 %v1831_v54, %v7510_v4  ;;  %v10810_v9 = vld [vmem:[#allocation33_spill] sm:$0xff]  ;;  %v10811_v55 = vld [vmem:[#allocation40_spill] sm:$0xff]  ;;  %v10812_v54 = vld [vmem:[#allocation34_spill] sm:$0xff] }
 0x1a1   : > { %v1848_v59 = vadd.f32 %v1832_v10, %v7513_v13  ;;  %v1849_v63 = vadd.f32 %v1833_v17, %v7516_v11  ;;  %v1850_v45 = vadd.f32 %v1834_v20, %v7519_v60  ;;  %v1851_v49 = vadd.f32 %v1835_v19, %v7522_v58  ;;  %v7649_v20 = vld [vmem:[%s5271_s21 + $0xa8] sm:$0xff]  ;;  %v10816_v10 = vld [vmem:[#allocation36_spill] sm:$0xff] }
 0x1a2   : > { %v1852_v51 = vadd.f32 %v1836_v31, %v7525_v56  ;;  %v1853_v25 = vadd.f32 %v1837_v26, %v7528_v43  ;;  %v1877_v7 = vmul.f32 %v10809_v16, %v1876_v6  ;;  %v1878_v38 = vmul.f32 %v6809_v2, %v1876_v6  ;;  %10813 = vst [vmem:[#allocation20_spill] sm:$0xff] %v7649_v20  ;;  %v10814_v56 = vld [vmem:[#allocation41_spill] sm:$0xff]  ;;  %v10815_v26 = vld [vmem:[#allocation35_spill] sm:$0xff] }
 0x1a3   : > { %v1879_v29 = vmul.f32 %v10810_v9, %v1876_v6  ;;  %v1880_v4 = vmul.f32 %v6816_v5, %v1876_v6  ;;  %v1881_v13 = vmul.f32 %v10811_v55, %v1876_v6  ;;  %v1882_v11 = vmul.f32 %v6819_v27, %v1876_v6 }
 0x1a4   : > { %v1883_v60 = vmul.f32 %v10812_v54, %v1876_v6  ;;  %v1884_v58 = vmul.f32 %v6825_v42, %v1876_v6  ;;  %v1885_v43 = vmul.f32 %v10814_v56, %v1876_v6  ;;  %v1886_v31 = vmul.f32 %v10701_v18, %v1876_v6 }
 0x1a5   : > { %v1887_v2 = vmul.f32 %v7567_v21, %v1876_v6  ;;  %v1888_v19 = vmul.f32 %v7570_v44, %v1876_v6  ;;  %v1889_v5 = vmul.f32 %v10815_v26, %v1876_v6  ;;  %v1890_v3 = vmul.f32 %v10816_v10, %v1876_v6 }
 0x1a6   : > { %v1891_v27 = vmul.f32 %v7573_v50, %v1876_v6  ;;  %v1892_v52 = vmul.f32 %v7649_v20, %v1876_v6  ;;  %v1893_v62 = vadd.f32 %v1877_v7, %v1838_v57  ;;  %v1894_v42 = vadd.f32 %v1878_v38, %v1839_v53  ;;  %v10830_v38 = vld [vmem:[#allocation43_spill] sm:$0xff] }
 0x1a7   : > { %v1895_v22 = vadd.f32 %v1879_v29, %v1840_v40  ;;  %v1896_v35 = vadd.f32 %v1880_v4, %v1841_v12  ;;  %v1897_v15 = vadd.f32 %v1881_v13, %v1842_v61  ;;  %v1898_v17 = vadd.f32 %v1882_v11, %v1843_v32  ;;  %v10823_v12 = vld [vmem:[#allocation10_spill] sm:$0xff] }
 0x1a8   : > { %v1899_v16 = vadd.f32 %v1883_v60, %v1844_v37  ;;  %v1900_v18 = vadd.f32 %v1884_v58, %v1845_v28  ;;  %v1901_v9 = vadd.f32 %v1885_v43, %v1846_v48  ;;  %v1902_v55 = vadd.f32 %v1886_v31, %v1847_v36  ;;  %v10824_v36 = vld [vmem:[#allocation11_spill] sm:$0xff]  ;;  %v10831_v4 = vld [vmem:[#allocation46_spill] sm:$0xff]  ;;  %v10833_v58 = vld [vmem:[#allocation53_spill] sm:$0xff] }
 0x1a9   : > { %v1903_v54 = vadd.f32 %v1887_v2, %v1848_v59  ;;  %v1904_v56 = vadd.f32 %v1888_v19, %v1849_v63  ;;  %v1905_v33 = vadd.f32 %v1889_v5, %v1850_v45  ;;  %v1906_v26 = vadd.f32 %v1890_v3, %v1851_v49  ;;  %v10825_v63 = vld [vmem:[#allocation12_spill] sm:$0xff]  ;;  %v10832_v11 = vld [vmem:[#allocation50_spill] sm:$0xff]  ;;  %v10835_v19 = vld [vmem:[#allocation47_spill] sm:$0xff] }
 0x1aa   : > { %v1907_v30 = vadd.f32 %v1891_v27, %v1852_v51  ;;  %v1908_v10 = vadd.f32 %v1892_v52, %v1853_v25  ;;  %v1924_v24 = vrot.slane %v7649_v20, 1  ;;  %v10817_v6 = vrot.slane %v7570_v44, 1  ;;  %v10834_v31 = vld [vmem:[#allocation44_spill] sm:$0xff]  ;;  %v10836_v3 = vld [vmem:[#allocation51_spill] sm:$0xff]  ;;  %v10837_v52 = vld [vmem:[#allocation54_spill] sm:$0xff] }
 0x1ab   : > { %v10818_v57 = vrot.slane %v7567_v21, 1  ;;  %v1944_v32 = vrot.slane %v7539_v39, %v10823_v12  ;;  %v2012_v59 = vrot.slane %v7539_v39, %v10824_v36  ;;  %v7684_v45 = vrot.slane %v7539_v39, %v10825_v63 }
 0x1ac   : > { %v10821_v48 = vmov %v10817_v6  ;;  %v10826_v49 = vrot.slane %v7573_v50, 1 }
 0x1ad   : > { %v7666_v40 = vsel %vm331_vm0, %v10818_v57, %v10817_v6  ;;  %v10820_v61 = vmov %v10818_v57  ;;  %v1945_v29 = vmul.f32 %v1944_v32, %v10830_v38  ;;  %v1946_v13 = vmul.f32 %v1944_v32, %v10831_v4  ;;  %v10838_v57 = vld [vmem:[#allocation45_spill] sm:$0xff]  ;;  %v10840_v38 = vld [vmem:[#allocation52_spill] sm:$0xff] }
 0x1ae   : > { %10819 = vst [vmem:[#allocation21_spill] sm:$0xff] %v7666_v40  ;;  %v7674_v53 = vsel %vm331_vm0, %v10821_v48, %v10820_v61  ;;  %v1982_v37 = vrot.slane %v7666_v40, 1  ;;  %v7690_v51 = vsel %vm331_vm0, %v10826_v49, %v1924_v24  ;;  %v10828_v25 = vmov %v10826_v49 }
 0x1af   : > { %10822 = vst [vmem:[#allocation22_spill] sm:$0xff] %v7674_v53  ;;  %v1990_v28 = vrot.slane %v7674_v53, 1  ;;  %10827 = vst [vmem:[#allocation23_spill] sm:$0xff] %v7690_v51  ;;  %v7696_v7 = vsel %vm331_vm0, %v1924_v24, %v10828_v25  ;;  %v1947_v60 = vmul.f32 %v1944_v32, %v10832_v11  ;;  %v1948_v43 = vmul.f32 %v1944_v32, %v10833_v58  ;;  %v10839_v24 = vld [vmem:[#allocation48_spill] sm:$0xff]  ;;  %v10841_v11 = vld [vmem:[#allocation55_spill] sm:$0xff] }
 0x1b0   : > { %10829 = vst [vmem:[#allocation25_spill] sm:$0xff] %v7696_v7  ;;  %v1949_v2 = vmul.f32 %v1944_v32, %v10834_v31  ;;  %v1950_v5 = vmul.f32 %v1944_v32, %v10835_v19  ;;  %v1951_v27 = vmul.f32 %v1944_v32, %v10836_v3  ;;  %v1952_v6 = vmul.f32 %v1944_v32, %v10837_v52 }
 0x1b1   : > { %v1953_v61 = vmul.f32 %v1944_v32, %v10838_v57  ;;  %v1954_v48 = vmul.f32 %v1944_v32, %v10839_v24  ;;  %v1955_v49 = vmul.f32 %v1944_v32, %v7666_v40  ;;  %v1956_v25 = vmul.f32 %v1944_v32, %v7674_v53 }
 0x1b2   : > { %v1957_v4 = vmul.f32 %v1944_v32, %v10840_v38  ;;  %v1958_v58 = vmul.f32 %v1944_v32, %v10841_v11  ;;  %v1959_v31 = vmul.f32 %v1944_v32, %v7690_v51  ;;  %v1960_v19 = vmul.f32 %v1944_v32, %v7696_v7 }
 0x1b3   : > { %v1961_v63 = vadd.f32 %v1945_v29, %v1893_v62  ;;  %v1962_v3 = vadd.f32 %v1946_v13, %v1894_v42  ;;  %v1963_v36 = vadd.f32 %v1947_v60, %v1895_v22  ;;  %v1964_v52 = vadd.f32 %v1948_v43, %v1896_v35  ;;  %v10844_v22 = vld [vmem:[#allocation49_spill] sm:$0xff]  ;;  %v10853_v29 = vld [vmem:[#allocation60_spill] sm:$0xff] }
 0x1b4   : > { %v1965_v12 = vadd.f32 %v1949_v2, %v1897_v15  ;;  %v1966_v57 = vadd.f32 %v1950_v5, %v1898_v17  ;;  %v1967_v20 = vadd.f32 %v1951_v27, %v1899_v16  ;;  %v1968_v24 = vadd.f32 %v1952_v6, %v1900_v18  ;;  %v10845_v15 = vld [vmem:[#allocation65_spill] sm:$0xff]  ;;  %v10848_v16 = vld [vmem:[#allocation56_spill] sm:$0xff]  ;;  %v10855_v2 = vld [vmem:[#allocation67_spill] sm:$0xff] }
 0x1b5   : > { %v1969_v50 = vadd.f32 %v1953_v61, %v1901_v9  ;;  %v1970_v40 = vadd.f32 %v1954_v48, %v1902_v55  ;;  %v1971_v44 = vadd.f32 %v1955_v49, %v1903_v54  ;;  %v1972_v53 = vadd.f32 %v1956_v25, %v1904_v56  ;;  %v10849_v9 = vld [vmem:[#allocation59_spill] sm:$0xff]  ;;  %v10854_v60 = vld [vmem:[#allocation64_spill] sm:$0xff]  ;;  %v10856_v6 = vld [vmem:[#allocation58_spill] sm:$0xff] }
 0x1b6   : > { %v1973_v21 = vadd.f32 %v1957_v4, %v1905_v33  ;;  %v1974_v38 = vadd.f32 %v1958_v58, %v1906_v26  ;;  %v1975_v1 = vadd.f32 %v1959_v31, %v1907_v30  ;;  %v1976_v11 = vadd.f32 %v1960_v19, %v1908_v10  ;;  %v10850_v54 = vld [vmem:[#allocation63_spill] sm:$0xff]  ;;  %v10851_v26 = vld [vmem:[#allocation66_spill] sm:$0xff]  ;;  %v10857_v48 = vld [vmem:[#allocation61_spill] sm:$0xff] }
 0x1b7   : > { %v1984_v23 = vrot.slane %v7690_v51, 1  ;;  %v1992_v32 = vrot.slane %v7696_v7, 1  ;;  %v7718_v62 = vsel %vm331_vm0, %v1982_v37, %v1990_v28  ;;  %v7722_v42 = vsel %vm331_vm0, %v1990_v28, %v1982_v37  ;;  %v10852_v37 = vld [vmem:[#allocation57_spill] sm:$0xff] }
 0x1b8   : > { %10842 = vst [vmem:[#allocation26_spill] sm:$0xff] %v7718_v62  ;;  %10843 = vst [vmem:[#allocation27_spill] sm:$0xff] %v7722_v42  ;;  %v2013_v35 = vmul.f32 %v2012_v59, %v10844_v22  ;;  %v2014_v17 = vmul.f32 %v2012_v59, %v10845_v15  ;;  %v2015_v18 = vmul.f32 %v2012_v59, %v10848_v16  ;;  %v2050_v7 = vrot.slane %v7718_v62, 1 }
 0x1b9   : > { %v7728_v30 = vsel %vm331_vm0, %v1984_v23, %v1992_v32  ;;  %v7732_v33 = vsel %vm331_vm0, %v1992_v32, %v1984_v23  ;;  %v2016_v55 = vmul.f32 %v2012_v59, %v10849_v9  ;;  %v2017_v56 = vmul.f32 %v2012_v59, %v10850_v54 }
 0x1ba   : > { %10846 = vst [vmem:[#allocation28_spill] sm:$0xff] %v7728_v30  ;;  %10847 = vst [vmem:[#allocation29_spill] sm:$0xff] %v7732_v33  ;;  %v2018_v10 = vmul.f32 %v2012_v59, %v10851_v26  ;;  %v2019_v28 = vmul.f32 %v2012_v59, %v10852_v37  ;;  %v2020_v13 = vmul.f32 %v2012_v59, %v10853_v29 }
 0x1bb   : > { %v2021_v43 = vmul.f32 %v2012_v59, %v10854_v60  ;;  %v2022_v5 = vmul.f32 %v2012_v59, %v10855_v2  ;;  %v2023_v27 = vmul.f32 %v2012_v59, %v7718_v62  ;;  %v2024_v23 = vmul.f32 %v2012_v59, %v7722_v42 }
 0x1bc   : > { %v2025_v61 = vmul.f32 %v2012_v59, %v10856_v6  ;;  %v2026_v49 = vmul.f32 %v2012_v59, %v10857_v48  ;;  %v2027_v25 = vmul.f32 %v2012_v59, %v7728_v30  ;;  %v2028_v4 = vmul.f32 %v2012_v59, %v7732_v33 }
 0x1bd   : > { %v2029_v58 = vadd.f32 %v2013_v35, %v1961_v63  ;;  %v2030_v31 = vadd.f32 %v2014_v17, %v1962_v3  ;;  %v2031_v19 = vadd.f32 %v2015_v18, %v1963_v36  ;;  %v2032_v32 = vadd.f32 %v2016_v55, %v1964_v52  ;;  %v10859_v3 = vld [vmem:[#allocation71_spill] sm:$0xff]  ;;  %v10867_v35 = vld [vmem:[#allocation72_spill] sm:$0xff] }
 0x1be   : > { %v2033_v22 = vadd.f32 %v2017_v56, %v1965_v12  ;;  %v2034_v15 = vadd.f32 %v2018_v10, %v1966_v57  ;;  %v2035_v16 = vadd.f32 %v2019_v28, %v1967_v20  ;;  %v2036_v9 = vadd.f32 %v2020_v13, %v1968_v24  ;;  %v10858_v12 = vld [vmem:[#allocation68_spill] sm:$0xff]  ;;  %v10869_v56 = vld [vmem:[#allocation79_spill] sm:$0xff]  ;;  %v10870_v28 = vld [vmem:[#allocation70_spill] sm:$0xff] }
 0x1bf   : > { %v2037_v54 = vadd.f32 %v2021_v43, %v1969_v50  ;;  %v2038_v26 = vadd.f32 %v2022_v5, %v1970_v40  ;;  %v2039_v37 = vadd.f32 %v2023_v27, %v1971_v44  ;;  %v2040_v29 = vadd.f32 %v2024_v23, %v1972_v53  ;;  %v10860_v44 = vld [vmem:[#allocation62_spill] sm:$0xff]  ;;  %v10868_v18 = vld [vmem:[#allocation76_spill] sm:$0xff]  ;;  %v10871_v13 = vld [vmem:[#allocation73_spill] sm:$0xff] }
 0x1c0   : > { %v2041_v60 = vadd.f32 %v2025_v61, %v1973_v21  ;;  %v2042_v2 = vadd.f32 %v2026_v49, %v1974_v38  ;;  %v2043_v6 = vadd.f32 %v2027_v25, %v1975_v1  ;;  %v2044_v48 = vadd.f32 %v2028_v4, %v1976_v11  ;;  %v10861_v40 = vld [vmem:[#allocation78_spill] sm:$0xff]  ;;  %v10866_v38 = vld [vmem:[#allocation69_spill] sm:$0xff]  ;;  %v10873_v49 = vld [vmem:[#allocation80_spill] sm:$0xff] }
 0x1c1   : > { %v2052_v59 = vrot.slane %v7728_v30, 1  ;;  %v2058_v63 = vrot.slane %v7722_v42, 1  ;;  %v2060_v36 = vrot.slane %v7732_v33, 1  ;;  %v2081_v20 = vmul.f32 %v7684_v45, %v10858_v12  ;;  %v10872_v23 = vld [vmem:[#allocation77_spill] sm:$0xff] }
 0x1c2   : > { %v2082_v50 = vmul.f32 %v7684_v45, %v10859_v3  ;;  %v2083_v21 = vmul.f32 %v7684_v45, %v10860_v44  ;;  %v2084_v1 = vmul.f32 %v7684_v45, %v10861_v40  ;;  %v2085_v11 = vmul.f32 %v7684_v45, %v10866_v38 }
 0x1c3   : > { %v7762_v53 = vsel %vm331_vm0, %v2050_v7, %v2058_v63  ;;  %v7766_v52 = vsel %vm331_vm0, %v2052_v59, %v2060_v36  ;;  %v7770_v57 = vsel %vm331_vm0, %v2058_v63, %v2050_v7  ;;  %v7774_v24 = vsel %vm331_vm0, %v2060_v36, %v2052_v59 }
 0x1c4   : > { %10862 = vst [vmem:[#allocation30_spill] sm:$0xff] %v7762_v53  ;;  %10863 = vst [vmem:[#allocation18_spill] sm:$0xff] %v7766_v52  ;;  %v2086_v17 = vmul.f32 %v7684_v45, %v10867_v35  ;;  %v2087_v55 = vmul.f32 %v7684_v45, %v10868_v18  ;;  %v2088_v10 = vmul.f32 %v7684_v45, %v10869_v56  ;;  %v2118_v42 = vrot.slane %v7762_v53, 1 }
 0x1c5   : > { %10864 = vst [vmem:[#allocation37_spill] sm:$0xff] %v7770_v57  ;;  %10865 = vst [vmem:[#allocation31_spill] sm:$0xff] %v7774_v24  ;;  %v2089_v7 = vmul.f32 %v7684_v45, %v10870_v28  ;;  %v2090_v43 = vmul.f32 %v7684_v45, %v10871_v13  ;;  %v2091_v5 = vmul.f32 %v7684_v45, %v7762_v53 }
 0x1c6   : > { %v2092_v27 = vmul.f32 %v7684_v45, %v7770_v57  ;;  %v2093_v61 = vmul.f32 %v7684_v45, %v10872_v23  ;;  %v2094_v25 = vmul.f32 %v7684_v45, %v10873_v49  ;;  %v2095_v4 = vmul.f32 %v7684_v45, %v7766_v52 }
 0x1c7   : > { %v2096_v59 = vmul.f32 %v7684_v45, %v7774_v24  ;;  %v2097_v63 = vadd.f32 %v2081_v20, %v2029_v58  ;;  %v2098_v36 = vadd.f32 %v2082_v50, %v2030_v31  ;;  %v2099_v12 = vadd.f32 %v2083_v21, %v2031_v19  ;;  %v10874_v19 = vld [vmem:[#allocation13_spill] sm:$0xff]  ;;  %v10883_v50 = vld [vmem:[#allocation84_spill] sm:$0xff] }
 0x1c8   : > { %v2100_v3 = vadd.f32 %v2084_v1, %v2032_v32  ;;  %v2101_v44 = vadd.f32 %v2085_v11, %v2033_v22  ;;  %v2102_v40 = vadd.f32 %v2086_v17, %v2034_v15  ;;  %v2103_v38 = vadd.f32 %v2087_v55, %v2035_v16  ;;  %v10875_v22 = vld [vmem:[#allocation14_spill] sm:$0xff]  ;;  %v10884_v1 = vld [vmem:[#allocation75_spill] sm:$0xff] }
 0x1c9   : > { %v2104_v35 = vadd.f32 %v2088_v10, %v2036_v9  ;;  %v2105_v18 = vadd.f32 %v2089_v7, %v2037_v54  ;;  %v2106_v56 = vadd.f32 %v2090_v43, %v2038_v26  ;;  %v2107_v28 = vadd.f32 %v2091_v5, %v2039_v37  ;;  %v10885_v17 = vld [vmem:[#allocation91_spill] sm:$0xff]  ;;  %v10886_v10 = vld [vmem:[#allocation82_spill] sm:$0xff]  ;;  %v10888_v5 = vld [vmem:[#allocation89_spill] sm:$0xff] }
 0x1ca   : > { %v2108_v13 = vadd.f32 %v2092_v27, %v2040_v29  ;;  %v2109_v23 = vadd.f32 %v2093_v61, %v2041_v60  ;;  %v2110_v49 = vadd.f32 %v2094_v25, %v2042_v2  ;;  %v2111_v33 = vadd.f32 %v2095_v4, %v2043_v6  ;;  %v10880_v60 = vld [vmem:[#allocation74_spill] sm:$0xff]  ;;  %v10889_v61 = vld [vmem:[#allocation92_spill] sm:$0xff] }
 0x1cb   : > { %v2112_v30 = vadd.f32 %v2096_v59, %v2044_v48  ;;  %v2120_v45 = vrot.slane %v7766_v52, 1  ;;  %v2126_v58 = vrot.slane %v7770_v57, 1  ;;  %v2128_v31 = vrot.slane %v7774_v24, 1  ;;  %v10882_v48 = vld [vmem:[#allocation81_spill] sm:$0xff] }
 0x1cc   : > { %v2148_v32 = vrot.slane %v7539_v39, %v10874_v19  ;;  %v2216_v15 = vrot.slane %v7539_v39, %v10875_v22  ;;  %v7810_v16 = vrot.slane %v7539_v39, %v10787_v47  ;;  %v7814_v9 = vrot.slane %v7539_v39, %v10805_v8  ;;  %v10881_v39 = vld [vmem:[#allocation90_spill] sm:$0xff] }
 0x1cd   : > { %v7818_v54 = vsel %vm331_vm0, %v2118_v42, %v2126_v58  ;;  %v7822_v26 = vsel %vm331_vm0, %v2120_v45, %v2128_v31  ;;  %v7826_v37 = vsel %vm331_vm0, %v2126_v58, %v2118_v42  ;;  %v7830_v29 = vsel %vm331_vm0, %v2128_v31, %v2120_v45  ;;  %v10887_v42 = vld [vmem:[#allocation85_spill] sm:$0xff]  ;;  %v10890_v45 = vld [vmem:[#allocation83_spill] sm:$0xff]  ;;  %v10891_v31 = vld [vmem:[#allocation86_spill] sm:$0xff] }
 0x1ce   : > { %10876 = vst [vmem:[#allocation38_spill] sm:$0xff] %v7818_v54  ;;  %10877 = vst [vmem:[#allocation39_spill] sm:$0xff] %v7822_v26  ;;  %v2149_v2 = vmul.f32 %v2148_v32, %v10880_v60  ;;  %v2150_v6 = vmul.f32 %v2148_v32, %v10881_v39  ;;  %v2151_v20 = vmul.f32 %v2148_v32, %v10882_v48  ;;  %v2186_v53 = vrot.slane %v7818_v54, 1 }
 0x1cf   : > { %10878 = vst [vmem:[#allocation33_spill] sm:$0xff] %v7826_v37  ;;  %10879 = vst [vmem:[#allocation40_spill] sm:$0xff] %v7830_v29  ;;  %v2152_v21 = vmul.f32 %v2148_v32, %v10883_v50  ;;  %v2153_v11 = vmul.f32 %v2148_v32, %v10884_v1  ;;  %v2154_v55 = vmul.f32 %v2148_v32, %v10885_v17 }
 0x1d0   : > { %v2155_v7 = vmul.f32 %v2148_v32, %v10886_v10  ;;  %v2156_v43 = vmul.f32 %v2148_v32, %v10887_v42  ;;  %v2157_v27 = vmul.f32 %v2148_v32, %v10888_v5  ;;  %v2158_v25 = vmul.f32 %v2148_v32, %v10889_v61 }
 0x1d1   : > { %v2159_v4 = vmul.f32 %v2148_v32, %v7818_v54  ;;  %v2160_v59 = vmul.f32 %v2148_v32, %v7826_v37  ;;  %v2161_v58 = vmul.f32 %v2148_v32, %v10890_v45  ;;  %v2162_v60 = vmul.f32 %v2148_v32, %v10891_v31 }
 0x1d2   : > { %v2163_v39 = vmul.f32 %v2148_v32, %v7822_v26  ;;  %v2164_v48 = vmul.f32 %v2148_v32, %v7830_v29  ;;  %v2165_v50 = vadd.f32 %v2149_v2, %v2097_v63  ;;  %v2166_v1 = vadd.f32 %v2150_v6, %v2098_v36  ;;  %v10901_v2 = vld [vmem:[#allocation94_spill] sm:$0xff] }
 0x1d3   : > { %v2167_v17 = vadd.f32 %v2151_v20, %v2099_v12  ;;  %v2168_v10 = vadd.f32 %v2152_v21, %v2100_v3  ;;  %v2169_v42 = vadd.f32 %v2153_v11, %v2101_v44  ;;  %v2170_v5 = vadd.f32 %v2154_v55, %v2102_v40  ;;  %v10892_v40 = vld [vmem:[#allocation95_spill] sm:$0xff]  ;;  %v10902_v20 = vld [vmem:[#allocation97_spill] sm:$0xff]  ;;  %v10903_v55 = vld [vmem:[#allocation88_spill] sm:$0xff] }
 0x1d4   : > { %v2171_v8 = vadd.f32 %v2155_v7, %v2103_v38  ;;  %v2172_v61 = vadd.f32 %v2156_v43, %v2104_v35  ;;  %v2173_v47 = vadd.f32 %v2157_v27, %v2105_v18  ;;  %v2174_v22 = vadd.f32 %v2158_v25, %v2106_v56  ;;  %v10898_v18 = vld [vmem:[#allocation96_spill] sm:$0xff]  ;;  %v10904_v43 = vld [vmem:[#allocation102_spill] sm:$0xff] }
 0x1d5   : > { %v2175_v19 = vadd.f32 %v2159_v4, %v2107_v28  ;;  %v2176_v24 = vadd.f32 %v2160_v59, %v2108_v13  ;;  %v2177_v52 = vadd.f32 %v2161_v58, %v2109_v23  ;;  %v2178_v45 = vadd.f32 %v2162_v60, %v2110_v49  ;;  %v10899_v28 = vld [vmem:[#allocation87_spill] sm:$0xff]  ;;  %v10900_v23 = vld [vmem:[#allocation101_spill] sm:$0xff] }
 0x1d6   : > { %v2179_v57 = vadd.f32 %v2163_v39, %v2111_v33  ;;  %v2180_v31 = vadd.f32 %v2164_v48, %v2112_v30  ;;  %v2188_v32 = vrot.slane %v7822_v26, 1  ;;  %v2194_v63 = vrot.slane %v7826_v37, 1 }
 0x1d7   : > { %v2196_v36 = vrot.slane %v7830_v29, 1  ;;  %v2217_v12 = vmul.f32 %v2216_v15, %v7295_v46  ;;  %v2218_v3 = vmul.f32 %v2216_v15, %v7321_v34  ;;  %v2219_v44 = vmul.f32 %v2216_v15, %v7299_v0  ;;  %v10897_v34 = vld [vmem:[#allocation93_spill] sm:$0xff] }
 0x1d8   : > { %v2220_v38 = vmul.f32 %v2216_v15, %v10892_v40  ;;  %v7858_v33 = vsel %vm331_vm0, %v2186_v53, %v2194_v63  ;;  %v7866_v35 = vsel %vm331_vm0, %v2194_v63, %v2186_v53  ;;  %v2221_v0 = vmul.f32 %v2216_v15, %v10897_v34 }
 0x1d9   : > { %10893 = vst [vmem:[#allocation34_spill] sm:$0xff] %v7858_v33  ;;  %v7862_v30 = vsel %vm331_vm0, %v2188_v32, %v2196_v36  ;;  %10895 = vst [vmem:[#allocation35_spill] sm:$0xff] %v7866_v35  ;;  %v7870_v46 = vsel %vm331_vm0, %v2196_v36, %v2188_v32  ;;  %v2222_v56 = vmul.f32 %v2216_v15, %v10898_v18 }
 0x1da   : > { %10894 = vst [vmem:[#allocation41_spill] sm:$0xff] %v7862_v30  ;;  %10896 = vst [vmem:[#allocation36_spill] sm:$0xff] %v7870_v46  ;;  %v2223_v13 = vmul.f32 %v2216_v15, %v10899_v28  ;;  %v2224_v49 = vmul.f32 %v2216_v15, %v10900_v23  ;;  %v2225_v6 = vmul.f32 %v2216_v15, %v10901_v2 }
 0x1db   : > { %v2226_v21 = vmul.f32 %v2216_v15, %v10902_v20  ;;  %v2227_v11 = vmul.f32 %v2216_v15, %v7858_v33  ;;  %v2228_v53 = vmul.f32 %v2216_v15, %v7866_v35  ;;  %v2229_v7 = vmul.f32 %v2216_v15, %v10903_v55 }
 0x1dc   : > { %v2230_v27 = vmul.f32 %v2216_v15, %v10904_v43  ;;  %v2231_v25 = vmul.f32 %v2216_v15, %v7862_v30  ;;  %v2232_v4 = vmul.f32 %v2216_v15, %v7870_v46  ;;  %v2233_v59 = vadd.f32 %v2217_v12, %v2165_v50  ;;  %v10914_v12 = vld [vmem:[#allocation104_spill] sm:$0xff] }
 0x1dd   : > { %v2234_v58 = vadd.f32 %v2218_v3, %v2166_v1  ;;  %v2235_v60 = vadd.f32 %v2219_v44, %v2167_v17  ;;  %v2236_v39 = vadd.f32 %v2220_v38, %v2168_v10  ;;  %v2237_v48 = vadd.f32 %v2221_v0, %v2169_v42  ;;  %v10905_v17 = vld [vmem:[#allocation98_spill] sm:$0xff]  ;;  %v10915_v44 = vld [vmem:[#allocation113_spill] sm:$0xff]  ;;  %v10916_v0 = vld [vmem:[#allocation100_spill] sm:$0xff] }
 0x1de   : > { %v2238_v32 = vadd.f32 %v2222_v56, %v2170_v5  ;;  %v2239_v63 = vadd.f32 %v2223_v13, %v2171_v8  ;;  %v2240_v36 = vadd.f32 %v2224_v49, %v2172_v61  ;;  %v2241_v40 = vadd.f32 %v2225_v6, %v2173_v47  ;;  %v10912_v5 = vld [vmem:[#allocation99_spill] sm:$0xff] }
 0x1df   : > { %v2242_v34 = vadd.f32 %v2226_v21, %v2174_v22  ;;  %v2243_v18 = vadd.f32 %v2227_v11, %v2175_v19  ;;  %v2244_v28 = vadd.f32 %v2228_v53, %v2176_v24  ;;  %v2245_v23 = vadd.f32 %v2229_v7, %v2177_v52  ;;  %v10906_v19 = vld [vmem:[#allocation103_spill] sm:$0xff]  ;;  %v10907_v24 = vld [vmem:[#allocation106_spill] sm:$0xff]  ;;  %v10918_v11 = vld [vmem:[#allocation105_spill] sm:$0xff] }
 0x1e0   : > { %v2246_v2 = vadd.f32 %v2230_v27, %v2178_v45  ;;  %v2247_v20 = vadd.f32 %v2231_v25, %v2179_v57  ;;  %v2248_v55 = vadd.f32 %v2232_v4, %v2180_v31  ;;  %v2254_v43 = vrot.slane %v7858_v33, 1  ;;  %v10913_v45 = vld [vmem:[#allocation24_spill] sm:$0xff]  ;;  %v10917_v13 = vld [vmem:[#allocation107_spill] sm:$0xff]  ;;  %v10919_v7 = vld [vmem:[#allocation114_spill] sm:$0xff] }
 0x1e1   : > { %v2256_v15 = vrot.slane %v7862_v30, 1  ;;  %v2262_v50 = vrot.slane %v7866_v35, 1  ;;  %v2264_v1 = vrot.slane %v7870_v46, 1  ;;  %v2285_v8 = vmul.f32 %v7810_v16, %v10905_v17 }
 0x1e2   : > { %v2286_v47 = vmul.f32 %v7810_v16, %v7437_v41  ;;  %v2287_v52 = vmul.f32 %v7810_v16, %v10906_v19  ;;  %v2288_v57 = vmul.f32 %v7810_v16, %v10907_v24  ;;  %v2289_v61 = vmul.f32 %v7810_v16, %v10912_v5 }
 0x1e3   : > { %v7898_v22 = vsel %vm331_vm0, %v2254_v43, %v2262_v50  ;;  %v7902_v10 = vsel %vm331_vm0, %v2256_v15, %v2264_v1  ;;  %v7906_v42 = vsel %vm331_vm0, %v2262_v50, %v2254_v43  ;;  %v7910_v41 = vsel %vm331_vm0, %v2264_v1, %v2256_v15 }
 0x1e4   : > { %10908 = vst [vmem:[#allocation43_spill] sm:$0xff] %v7898_v22  ;;  %10909 = vst [vmem:[#allocation46_spill] sm:$0xff] %v7902_v10  ;;  %v2290_v31 = vmul.f32 %v7810_v16, %v10913_v45  ;;  %v2291_v3 = vmul.f32 %v7810_v16, %v10914_v12  ;;  %v2292_v38 = vmul.f32 %v7810_v16, %v10915_v44  ;;  %v2322_v30 = vrot.slane %v7898_v22, 1 }
 0x1e5   : > { %10910 = vst [vmem:[#allocation50_spill] sm:$0xff] %v7906_v42  ;;  %10911 = vst [vmem:[#allocation53_spill] sm:$0xff] %v7910_v41  ;;  %v2293_v56 = vmul.f32 %v7810_v16, %v10916_v0  ;;  %v2294_v49 = vmul.f32 %v7810_v16, %v10917_v13  ;;  %v2295_v6 = vmul.f32 %v7810_v16, %v7898_v22 }
 0x1e6   : > { %v2296_v21 = vmul.f32 %v7810_v16, %v7906_v42  ;;  %v2297_v53 = vmul.f32 %v7810_v16, %v10918_v11  ;;  %v2298_v27 = vmul.f32 %v7810_v16, %v10919_v7  ;;  %v2299_v25 = vmul.f32 %v7810_v16, %v7902_v10 }
 0x1e7   : > { %v2300_v4 = vmul.f32 %v7810_v16, %v7910_v41  ;;  %v2301_v43 = vadd.f32 %v2285_v8, %v2233_v59  ;;  %v2302_v15 = vadd.f32 %v2286_v47, %v2234_v58  ;;  %v2303_v50 = vadd.f32 %v2287_v52, %v2235_v60  ;;  %v10920_v60 = vld [vmem:[#allocation108_spill] sm:$0xff]  ;;  %v10929_v8 = vld [vmem:[#allocation19_spill] sm:$0xff] }
 0x1e8   : > { %v2304_v1 = vadd.f32 %v2288_v57, %v2236_v39  ;;  %v2305_v17 = vadd.f32 %v2289_v61, %v2237_v48  ;;  %v2306_v19 = vadd.f32 %v2290_v31, %v2238_v32  ;;  %v2307_v24 = vadd.f32 %v2291_v3, %v2239_v63  ;;  %v10921_v48 = vld [vmem:[#allocation119_spill] sm:$0xff]  ;;  %v10930_v52 = vld [vmem:[#allocation116_spill] sm:$0xff]  ;;  %v10931_v61 = vld [vmem:[#allocation42_spill] sm:$0xff] }
 0x1e9   : > { %v2308_v5 = vadd.f32 %v2292_v38, %v2240_v36  ;;  %v2309_v45 = vadd.f32 %v2293_v56, %v2241_v40  ;;  %v2310_v12 = vadd.f32 %v2294_v49, %v2242_v34  ;;  %v2311_v44 = vadd.f32 %v2295_v6, %v2243_v18  ;;  %v10922_v63 = vld [vmem:[#allocation115_spill] sm:$0xff]  ;;  %v10923_v40 = vld [vmem:[#allocation17_spill] sm:$0xff]  ;;  %v10932_v3 = vld [vmem:[#allocation110_spill] sm:$0xff] }
 0x1ea   : > { %v2312_v0 = vadd.f32 %v2296_v21, %v2244_v28  ;;  %v2313_v13 = vadd.f32 %v2297_v53, %v2245_v23  ;;  %v2314_v11 = vadd.f32 %v2298_v27, %v2246_v2  ;;  %v2315_v7 = vadd.f32 %v2299_v25, %v2247_v20  ;;  %v10928_v20 = vld [vmem:[#allocation109_spill] sm:$0xff]  ;;  %v10933_v38 = vld [vmem:[#allocation32_spill] sm:$0xff] }
 0x1eb   : > { %v2316_v46 = vadd.f32 %v2300_v4, %v2248_v55  ;;  %v2324_v16 = vrot.slane %v7902_v10, 1  ;;  %v2330_v59 = vrot.slane %v7906_v42, 1  ;;  %v2332_v58 = vrot.slane %v7910_v41, 1  ;;  %v10934_v21 = vld [vmem:[#allocation112_spill] sm:$0xff] }
 0x1ec   : > { %v2353_v39 = vmul.f32 %v7814_v9, %v10920_v60  ;;  %v2354_v32 = vmul.f32 %v7814_v9, %v10921_v48  ;;  %v2355_v36 = vmul.f32 %v7814_v9, %v10922_v63  ;;  %v2356_v34 = vmul.f32 %v7814_v9, %v10923_v40  ;;  %v10935_v27 = vld [vmem:[#allocation8_spill] sm:$0xff] }
 0x1ed   : > { %v7950_v18 = vsel %vm331_vm0, %v2322_v30, %v2330_v59  ;;  %v7954_v28 = vsel %vm331_vm0, %v2324_v16, %v2332_v58  ;;  %v7958_v23 = vsel %vm331_vm0, %v2330_v59, %v2322_v30  ;;  %v7962_v2 = vsel %vm331_vm0, %v2332_v58, %v2324_v16  ;;  %v7989_v59 = vld [vmem:[%s5241_s8 + $0x20] sm:$0xff] }
 0x1ee   : > { %10924 = vst [vmem:[#allocation44_spill] sm:$0xff] %v7950_v18  ;;  %10925 = vst [vmem:[#allocation47_spill] sm:$0xff] %v7954_v28  ;;  %v2357_v55 = vmul.f32 %v7814_v9, %v10928_v20  ;;  %v2358_v47 = vmul.f32 %v7814_v9, %v10929_v8  ;;  %v2359_v57 = vmul.f32 %v7814_v9, %v10930_v52  ;;  %v7992_v40 = vld [vmem:[%s5271_s21 + $0x40] sm:$0xff] }
 0x1ef   : > { %10926 = vst [vmem:[#allocation51_spill] sm:$0xff] %v7958_v23  ;;  %10927 = vst [vmem:[#allocation54_spill] sm:$0xff] %v7962_v2  ;;  %v2360_v31 = vmul.f32 %v7814_v9, %v10931_v61  ;;  %v2361_v30 = vmul.f32 %v7814_v9, %v10932_v3  ;;  %v2362_v56 = vmul.f32 %v7814_v9, %v10933_v38  ;;  %v7995_v3 = vld [vmem:[%s5271_s21 + $0x48] sm:$0xff]  ;;  %v7998_v38 = vld [vmem:[%s5271_s21 + $0x50] sm:$0xff] }
 0x1f0   : > { %v2363_v49 = vmul.f32 %v7814_v9, %v7950_v18  ;;  %v2364_v6 = vmul.f32 %v7814_v9, %v7958_v23  ;;  %v2365_v53 = vmul.f32 %v7814_v9, %v10934_v21  ;;  %v2366_v25 = vmul.f32 %v7814_v9, %v10935_v27  ;;  %10936 = vst [vmem:[#allocation45_spill] sm:$0xff] %v7989_v59  ;;  %v10951_v18 = vld [vmem:[#allocation20_spill] sm:$0xff] }
 0x1f1   : > { %v2367_v4 = vmul.f32 %v7814_v9, %v7954_v28  ;;  %v2368_v16 = vmul.f32 %v7814_v9, %v7962_v2  ;;  %v2369_v58 = vadd.f32 %v2353_v39, %v2301_v43  ;;  %v2370_v60 = vadd.f32 %v2354_v32, %v2302_v15  ;;  %10937 = vst [vmem:[#allocation48_spill] sm:$0xff] %v7998_v38  ;;  %v8001_v9 = vld [vmem:[%s5271_s21 + $0x60] sm:$0xff]  ;;  %v10950_v28 = vld [vmem:[#allocation118_spill] sm:$0xff] }
 0x1f2   : > { %v2371_v48 = vadd.f32 %v2355_v36, %v2303_v50  ;;  %v2372_v63 = vadd.f32 %v2356_v34, %v2304_v1  ;;  %v2373_v20 = vadd.f32 %v2357_v55, %v2305_v17  ;;  %v2374_v8 = vadd.f32 %v2358_v47, %v2306_v19  ;;  %10938 = vst [vmem:[#allocation52_spill] sm:$0xff] %v8001_v9  ;;  %v8004_v50 = vld [vmem:[%s5271_s21 + $0x70] sm:$0xff]  ;;  %v10942_v34 = vld [vmem:[#allocation9_spill] sm:$0xff] }
 0x1f3   : > { %v2375_v52 = vadd.f32 %v2359_v57, %v2307_v24  ;;  %v2376_v61 = vadd.f32 %v2360_v31, %v2308_v5  ;;  %v2377_v43 = vadd.f32 %v2361_v30, %v2309_v45  ;;  %v2378_v39 = vadd.f32 %v2362_v56, %v2310_v12  ;;  %10939 = vst [vmem:[#allocation55_spill] sm:$0xff] %v8004_v50  ;;  %v8007_v1 = vld [vmem:[%s5271_s21 + $0x90] sm:$0xff]  ;;  %v8028_v57 = vld [vmem:[%s5271_s21 + $0x78] sm:$0xff] }
 0x1f4   : > { %v2379_v15 = vadd.f32 %v2363_v49, %v2311_v44  ;;  %v2380_v32 = vadd.f32 %v2364_v6, %v2312_v0  ;;  %10940 = vst [vmem:[#allocation49_spill] sm:$0xff] %v8007_v1  ;;  %v8010_v17 = vld [vmem:[%s5271_s21 + $0xb0] sm:$0xff]  ;;  %v2381_v19 = vadd.f32 %v2365_v53, %v2313_v13  ;;  %v2382_v24 = vadd.f32 %v2366_v25, %v2314_v11  ;;  %v8018_v0 = vld [vmem:[%s5271_s21 + $0x58] sm:$0xff] }
 0x1f5   : > { %10941 = vst [vmem:[#allocation65_spill] sm:$0xff] %v8010_v17  ;;  %v2383_v5 = vadd.f32 %v2367_v4, %v2315_v7  ;;  %v2384_v36 = vadd.f32 %v2368_v16, %v2316_v46  ;;  %v2407_v55 = vrot.slane %v7989_v59, %v10942_v34  ;;  %v2440_v45 = vrot.slane %v7992_v40, 1  ;;  %10943 = vst [vmem:[#allocation56_spill] sm:$0xff] %v8018_v0  ;;  %v8025_v7 = vld [vmem:[%s5271_s21 + $0x68] sm:$0xff]  ;;  %v8035_v6 = vld [vmem:[%s5271_s21 + $0x98] sm:$0xff] }
 0x1f6   : > { %v2441_v12 = vrot.slane %v7998_v38, 1  ;;  %v2442_v44 = vrot.slane %v8001_v9, 1  ;;  %v2443_v47 = vrot.slane %v8004_v50, 1  ;;  %v2445_v13 = vrot.slane %v8007_v1, 1  ;;  %10944 = vst [vmem:[#allocation59_spill] sm:$0xff] %v8025_v7  ;;  %10945 = vst [vmem:[#allocation63_spill] sm:$0xff] %v8028_v57 }
 0x1f7   : > { %v2447_v11 = vrot.slane %v8010_v17, 1  ;;  %v2448_v46 = vrot.slane %v7995_v3, 1  ;;  %v2408_v31 = vmul.f32 %v7992_v40, %v2407_v55  ;;  %v2409_v30 = vmul.f32 %v7995_v3, %v2407_v55  ;;  %10946 = vst [vmem:[#allocation66_spill] sm:$0xff] %v8035_v6  ;;  %v8042_v4 = vld [vmem:[%s5271_s21 + $0xb8] sm:$0xff]  ;;  %v10948_v16 = vld [vmem:[#allocation117_spill] sm:$0xff] }
 0x1f8   : > { %v2410_v56 = vmul.f32 %v7998_v38, %v2407_v55  ;;  %v2411_v49 = vmul.f32 %v8018_v0, %v2407_v55  ;;  %v2412_v21 = vmul.f32 %v8001_v9, %v2407_v55  ;;  %v2413_v53 = vmul.f32 %v8025_v7, %v2407_v55  ;;  %10947 = vst [vmem:[#allocation57_spill] sm:$0xff] %v8042_v4  ;;  %v10949_v34 = vld [vmem:[#allocation111_spill] sm:$0xff] }
 0x1f9   : > { %v2414_v27 = vmul.f32 %v8004_v50, %v2407_v55  ;;  %v2415_v25 = vmul.f32 %v8028_v57, %v2407_v55  ;;  %v2416_v40 = vmul.f32 %v10948_v16, %v2407_v55  ;;  %v2417_v3 = vmul.f32 %v10949_v34, %v2407_v55 }
 0x1fa   : > { %v2418_v38 = vmul.f32 %v8007_v1, %v2407_v55  ;;  %v2419_v2 = vmul.f32 %v8035_v6, %v2407_v55  ;;  %v2420_v23 = vmul.f32 %v10950_v28, %v2407_v55  ;;  %v2421_v9 = vmul.f32 %v10951_v18, %v2407_v55 }
 0x1fb   : > { %v2422_v41 = vmul.f32 %v8010_v17, %v2407_v55  ;;  %v2423_v50 = vmul.f32 %v8042_v4, %v2407_v55  ;;  %v2424_v10 = vadd.f32 %v2408_v31, %v2369_v58  ;;  %v2425_v42 = vadd.f32 %v2409_v30, %v2370_v60  ;;  %v10965_v30 = vld [vmem:[#allocation23_spill] sm:$0xff] }
 0x1fc   : > { %v2426_v22 = vadd.f32 %v2410_v56, %v2371_v48  ;;  %v2427_v35 = vadd.f32 %v2411_v49, %v2372_v63  ;;  %v2428_v33 = vadd.f32 %v2412_v21, %v2373_v20  ;;  %v2429_v16 = vadd.f32 %v2413_v53, %v2374_v8  ;;  %v10966_v49 = vld [vmem:[#allocation25_spill] sm:$0xff] }
 0x1fd   : > { %v2430_v29 = vadd.f32 %v2414_v27, %v2375_v52  ;;  %v2431_v34 = vadd.f32 %v2415_v25, %v2376_v61  ;;  %v2432_v26 = vadd.f32 %v2416_v40, %v2377_v43  ;;  %v2433_v1 = vadd.f32 %v2417_v3, %v2378_v39 }
 0x1fe   : > { %v2434_v37 = vadd.f32 %v2418_v38, %v2379_v15  ;;  %v2435_v54 = vadd.f32 %v2419_v2, %v2380_v32  ;;  %v2436_v62 = vadd.f32 %v2420_v23, %v2381_v19  ;;  %v2437_v28 = vadd.f32 %v2421_v9, %v2382_v24 }
 0x1ff   : > { %v2438_v51 = vadd.f32 %v2422_v41, %v2383_v5  ;;  %v2439_v18 = vadd.f32 %v2423_v50, %v2384_v36  ;;  %v2449_v17 = vrot.slane %v8018_v0, 1  ;;  %v2450_v55 = vrot.slane %v8025_v7, 1  ;;  %v10952_v41 = vld [vmem:[#allocation10_spill] sm:$0xff] }
 0x200   : > { %v2451_v58 = vrot.slane %v8028_v57, 1  ;;  %v2453_v60 = vrot.slane %v8035_v6, 1  ;;  %v2455_v48 = vrot.slane %v8042_v4, 1  ;;  %v8059_v63 = vsel %vm331_vm0, %v2440_v45, %v2448_v46 }
 0x201   : > { %v8063_v23 = vsel %vm331_vm0, %v2448_v46, %v2440_v45  ;;  %v2475_v2 = vrot.slane %v7989_v59, %v10952_v41  ;;  %v8069_v20 = vsel %vm331_vm0, %v2441_v12, %v2449_v17  ;;  %v8073_v8 = vsel %vm331_vm0, %v2442_v44, %v2450_v55 }
 0x202   : > { %10953 = vst [vmem:[#allocation60_spill] sm:$0xff] %v8069_v20  ;;  %10954 = vst [vmem:[#allocation64_spill] sm:$0xff] %v8073_v8  ;;  %v8077_v52 = vsel %vm331_vm0, %v2443_v47, %v2451_v58  ;;  %v8081_v61 = vsel %vm331_vm0, %v2445_v13, %v2453_v60  ;;  %v8085_v38 = vsel %vm331_vm0, %v2447_v11, %v2455_v48  ;;  %v2508_v41 = vrot.slane %v8059_v63, 1 }
 0x203   : > { %10955 = vst [vmem:[#allocation67_spill] sm:$0xff] %v8077_v52  ;;  %10956 = vst [vmem:[#allocation58_spill] sm:$0xff] %v8081_v61  ;;  %v8089_v9 = vsel %vm331_vm0, %v2449_v17, %v2441_v12  ;;  %v8093_v43 = vsel %vm331_vm0, %v2450_v55, %v2442_v44  ;;  %v8097_v39 = vsel %vm331_vm0, %v2451_v58, %v2443_v47  ;;  %v10963_v44 = vld [vmem:[#allocation21_spill] sm:$0xff] }
 0x204   : > { %10957 = vst [vmem:[#allocation61_spill] sm:$0xff] %v8085_v38  ;;  %10958 = vst [vmem:[#allocation68_spill] sm:$0xff] %v8089_v9  ;;  %v8101_v15 = vsel %vm331_vm0, %v2453_v60, %v2445_v13  ;;  %v8105_v32 = vsel %vm331_vm0, %v2455_v48, %v2447_v11  ;;  %v2476_v50 = vmul.f32 %v2475_v2, %v8059_v63  ;;  %v10964_v13 = vld [vmem:[#allocation22_spill] sm:$0xff] }
 0x205   : > { %10959 = vst [vmem:[#allocation71_spill] sm:$0xff] %v8093_v43  ;;  %10960 = vst [vmem:[#allocation62_spill] sm:$0xff] %v8097_v39  ;;  %v2477_v17 = vmul.f32 %v2475_v2, %v8063_v23  ;;  %v2478_v19 = vmul.f32 %v2475_v2, %v8069_v20  ;;  %v2479_v24 = vmul.f32 %v2475_v2, %v8089_v9 }
 0x206   : > { %10961 = vst [vmem:[#allocation78_spill] sm:$0xff] %v8101_v15  ;;  %10962 = vst [vmem:[#allocation69_spill] sm:$0xff] %v8105_v32  ;;  %v2480_v5 = vmul.f32 %v2475_v2, %v8073_v8  ;;  %v2481_v36 = vmul.f32 %v2475_v2, %v8093_v43  ;;  %v2482_v45 = vmul.f32 %v2475_v2, %v8077_v52 }
 0x207   : > { %v2483_v12 = vmul.f32 %v2475_v2, %v8097_v39  ;;  %v2484_v47 = vmul.f32 %v2475_v2, %v10963_v44  ;;  %v2485_v11 = vmul.f32 %v2475_v2, %v10964_v13  ;;  %v2486_v46 = vmul.f32 %v2475_v2, %v8081_v61 }
 0x208   : > { %v2487_v31 = vmul.f32 %v2475_v2, %v8101_v15  ;;  %v2488_v56 = vmul.f32 %v2475_v2, %v10965_v30  ;;  %v2489_v21 = vmul.f32 %v2475_v2, %v10966_v49  ;;  %v2490_v53 = vmul.f32 %v2475_v2, %v8085_v38 }
 0x209   : > { %v2491_v27 = vmul.f32 %v2475_v2, %v8105_v32  ;;  %v2492_v25 = vadd.f32 %v2476_v50, %v2424_v10  ;;  %v2493_v40 = vadd.f32 %v2477_v17, %v2425_v42  ;;  %v2494_v3 = vadd.f32 %v2478_v19, %v2426_v22  ;;  %v10967_v42 = vld [vmem:[#allocation11_spill] sm:$0xff] }
 0x20a   : > { %v2495_v55 = vadd.f32 %v2479_v24, %v2427_v35  ;;  %v2496_v58 = vadd.f32 %v2480_v5, %v2428_v33  ;;  %v2497_v60 = vadd.f32 %v2481_v36, %v2429_v16  ;;  %v2498_v48 = vadd.f32 %v2482_v45, %v2430_v29  ;;  %v10968_v16 = vld [vmem:[#allocation12_spill] sm:$0xff] }
 0x20b   : > { %v2499_v44 = vadd.f32 %v2483_v12, %v2431_v34  ;;  %v2500_v13 = vadd.f32 %v2484_v47, %v2432_v26  ;;  %v2501_v4 = vadd.f32 %v2485_v11, %v2433_v1  ;;  %v2502_v6 = vadd.f32 %v2486_v46, %v2434_v37 }
 0x20c   : > { %v2503_v57 = vadd.f32 %v2487_v31, %v2435_v54  ;;  %v2504_v7 = vadd.f32 %v2488_v56, %v2436_v62  ;;  %v2505_v30 = vadd.f32 %v2489_v21, %v2437_v28  ;;  %v2506_v0 = vadd.f32 %v2490_v53, %v2438_v51 }
 0x20d   : > { %v2507_v49 = vadd.f32 %v2491_v27, %v2439_v18  ;;  %v2509_v2 = vrot.slane %v8069_v20, 1  ;;  %v2510_v10 = vrot.slane %v8073_v8, 1  ;;  %v2511_v35 = vrot.slane %v8077_v52, 1  ;;  %v10980_v27 = vld [vmem:[#allocation26_spill] sm:$0xff] }
 0x20e   : > { %v2513_v33 = vrot.slane %v8081_v61, 1  ;;  %v2515_v29 = vrot.slane %v8085_v38, 1  ;;  %v2516_v26 = vrot.slane %v8063_v23, 1  ;;  %v2517_v54 = vrot.slane %v8089_v9, 1 }
 0x20f   : > { %v2518_v62 = vrot.slane %v8093_v43, 1  ;;  %v2519_v51 = vrot.slane %v8097_v39, 1  ;;  %v2521_v37 = vrot.slane %v8101_v15, 1  ;;  %v2523_v22 = vrot.slane %v8105_v32, 1 }
 0x210   : > { %v2543_v1 = vrot.slane %v7989_v59, %v10967_v42  ;;  %v8139_v34 = vrot.slane %v7989_v59, %v10968_v16  ;;  %v2524_v28 = vsel %vm331_vm0, %v2508_v41, %v2516_v26  ;;  %v8145_v18 = vsel %vm331_vm0, %v2509_v2, %v2517_v54 }
 0x211   : > { %10970 = vst [vmem:[#allocation76_spill] sm:$0xff] %v8145_v18  ;;  %v8149_v63 = vsel %vm331_vm0, %v2510_v10, %v2518_v62  ;;  %v8153_v23 = vsel %vm331_vm0, %v2511_v35, %v2519_v51  ;;  %v8157_v50 = vsel %vm331_vm0, %v2513_v33, %v2521_v37  ;;  %v8161_v17 = vsel %vm331_vm0, %v2515_v29, %v2523_v22 }
 0x212   : > { %10969 = vst [vmem:[#allocation72_spill] sm:$0xff] %v8139_v34  ;;  %10971 = vst [vmem:[#allocation79_spill] sm:$0xff] %v8149_v63  ;;  %v2532_v19 = vsel %vm331_vm0, %v2516_v26, %v2508_v41  ;;  %v8167_v24 = vsel %vm331_vm0, %v2517_v54, %v2509_v2  ;;  %v8171_v5 = vsel %vm331_vm0, %v2518_v62, %v2510_v10  ;;  %v10981_v10 = vld [vmem:[#allocation27_spill] sm:$0xff]  ;;  %v10982_v26 = vld [vmem:[#allocation28_spill] sm:$0xff]  ;;  %v2576_v59 = vrot.slane %v2524_v28, 1 }
 0x213   : > { %10972 = vst [vmem:[#allocation70_spill] sm:$0xff] %v8153_v23  ;;  %10973 = vst [vmem:[#allocation73_spill] sm:$0xff] %v8157_v50  ;;  %v8175_v36 = vsel %vm331_vm0, %v2519_v51, %v2511_v35  ;;  %v8179_v45 = vsel %vm331_vm0, %v2521_v37, %v2513_v33  ;;  %v8183_v12 = vsel %vm331_vm0, %v2523_v22, %v2515_v29  ;;  %v10983_v62 = vld [vmem:[#allocation29_spill] sm:$0xff]  ;;  %v2577_v34 = vrot.slane %v8145_v18, 1 }
 0x214   : > { %10974 = vst [vmem:[#allocation77_spill] sm:$0xff] %v8161_v17  ;;  %10975 = vst [vmem:[#allocation80_spill] sm:$0xff] %v8167_v24  ;;  %v2544_v41 = vmul.f32 %v2543_v1, %v2524_v28  ;;  %v2545_v47 = vmul.f32 %v2543_v1, %v2532_v19  ;;  %v2546_v11 = vmul.f32 %v2543_v1, %v8145_v18 }
 0x215   : > { %10976 = vst [vmem:[#allocation74_spill] sm:$0xff] %v8171_v5  ;;  %10977 = vst [vmem:[#allocation90_spill] sm:$0xff] %v8175_v36  ;;  %v2547_v46 = vmul.f32 %v2543_v1, %v8167_v24  ;;  %v2548_v31 = vmul.f32 %v2543_v1, %v8149_v63  ;;  %v2549_v56 = vmul.f32 %v2543_v1, %v8171_v5 }
 0x216   : > { %10978 = vst [vmem:[#allocation81_spill] sm:$0xff] %v8179_v45  ;;  %10979 = vst [vmem:[#allocation84_spill] sm:$0xff] %v8183_v12  ;;  %v2550_v21 = vmul.f32 %v2543_v1, %v8153_v23  ;;  %v2551_v53 = vmul.f32 %v2543_v1, %v8175_v36  ;;  %v2552_v2 = vmul.f32 %v2543_v1, %v10980_v27 }
 0x217   : > { %v2553_v35 = vmul.f32 %v2543_v1, %v10981_v10  ;;  %v2554_v33 = vmul.f32 %v2543_v1, %v8157_v50  ;;  %v2555_v29 = vmul.f32 %v2543_v1, %v8179_v45  ;;  %v2556_v54 = vmul.f32 %v2543_v1, %v10982_v26 }
 0x218   : > { %v2557_v51 = vmul.f32 %v2543_v1, %v10983_v62  ;;  %v2558_v37 = vmul.f32 %v2543_v1, %v8161_v17  ;;  %v2559_v22 = vmul.f32 %v2543_v1, %v8183_v12  ;;  %v2560_v16 = vadd.f32 %v2544_v41, %v2492_v25 }
 0x219   : > { %v2561_v42 = vadd.f32 %v2545_v47, %v2493_v40  ;;  %v2562_v32 = vadd.f32 %v2546_v11, %v2494_v3  ;;  %v2563_v38 = vadd.f32 %v2547_v46, %v2495_v55  ;;  %v2564_v15 = vadd.f32 %v2548_v31, %v2496_v58  ;;  %v10994_v47 = vld [vmem:[#allocation72_spill] sm:$0xff] }
 0x21a   : > { %v2565_v27 = vadd.f32 %v2549_v56, %v2497_v60  ;;  %v2566_v61 = vadd.f32 %v2550_v21, %v2498_v48  ;;  %v2567_v10 = vadd.f32 %v2551_v53, %v2499_v44  ;;  %v2568_v39 = vadd.f32 %v2552_v2, %v2500_v13 }
 0x21b   : > { %v2569_v52 = vadd.f32 %v2553_v35, %v2501_v4  ;;  %v2570_v43 = vadd.f32 %v2554_v33, %v2502_v6  ;;  %v2571_v8 = vadd.f32 %v2555_v29, %v2503_v57  ;;  %v2572_v9 = vadd.f32 %v2556_v54, %v2504_v7  ;;  %v10995_v33 = vld [vmem:[#allocation30_spill] sm:$0xff]  ;;  %v10996_v54 = vld [vmem:[#allocation37_spill] sm:$0xff] }
 0x21c   : > { %v2573_v26 = vadd.f32 %v2557_v51, %v2505_v30  ;;  %v2574_v20 = vadd.f32 %v2558_v37, %v2506_v0  ;;  %v2575_v62 = vadd.f32 %v2559_v22, %v2507_v49  ;;  %v2578_v25 = vrot.slane %v8149_v63, 1 }
 0x21d   : > { %v2579_v40 = vrot.slane %v8153_v23, 1  ;;  %v2581_v3 = vrot.slane %v8157_v50, 1  ;;  %v2583_v55 = vrot.slane %v8161_v17, 1  ;;  %v2584_v58 = vrot.slane %v2532_v19, 1 }
 0x21e   : > { %v2585_v4 = vrot.slane %v8167_v24, 1  ;;  %v2586_v57 = vrot.slane %v8171_v5, 1  ;;  %v2587_v7 = vrot.slane %v8175_v36, 1  ;;  %v2589_v0 = vrot.slane %v8179_v45, 1 }
 0x21f   : > { %v2591_v6 = vrot.slane %v8183_v12, 1  ;;  %v2592_v60 = vsel %vm331_vm0, %v2576_v59, %v2584_v58  ;;  %v2600_v44 = vsel %vm331_vm0, %v2584_v58, %v2576_v59  ;;  %v2620_v29 = vmul.f32 %v10994_v47, %v10995_v33 }
 0x220   : > { %v8213_v48 = vsel %vm331_vm0, %v2577_v34, %v2585_v4  ;;  %v8219_v13 = vsel %vm331_vm0, %v2585_v4, %v2577_v34  ;;  %v8223_v30 = vsel %vm331_vm0, %v2578_v25, %v2586_v57  ;;  %v8227_v49 = vsel %vm331_vm0, %v2579_v40, %v2587_v7 }
 0x221   : > { %10984 = vst [vmem:[#allocation75_spill] sm:$0xff] %v8213_v48  ;;  %10985 = vst [vmem:[#allocation91_spill] sm:$0xff] %v8219_v13  ;;  %v8231_v1 = vsel %vm331_vm0, %v2581_v3, %v2589_v0  ;;  %v8235_v28 = vsel %vm331_vm0, %v2583_v55, %v2591_v6  ;;  %v8239_v59 = vsel %vm331_vm0, %v2586_v57, %v2578_v25  ;;  %v10997_v25 = vld [vmem:[#allocation18_spill] sm:$0xff] }
 0x222   : > { %10986 = vst [vmem:[#allocation82_spill] sm:$0xff] %v8223_v30  ;;  %10987 = vst [vmem:[#allocation85_spill] sm:$0xff] %v8227_v49  ;;  %v8243_v34 = vsel %vm331_vm0, %v2587_v7, %v2579_v40  ;;  %v8247_v19 = vsel %vm331_vm0, %v2589_v0, %v2581_v3  ;;  %v8251_v41 = vsel %vm331_vm0, %v2591_v6, %v2583_v55  ;;  %v10998_v3 = vld [vmem:[#allocation31_spill] sm:$0xff] }
 0x223   : > { %10988 = vst [vmem:[#allocation89_spill] sm:$0xff] %v8231_v1  ;;  %10989 = vst [vmem:[#allocation92_spill] sm:$0xff] %v8235_v28  ;;  %v2612_v11 = vmul.f32 %v10994_v47, %v2592_v60  ;;  %v2613_v46 = vmul.f32 %v10994_v47, %v2600_v44  ;;  %v2614_v31 = vmul.f32 %v10994_v47, %v8213_v48 }
 0x224   : > { %10990 = vst [vmem:[#allocation83_spill] sm:$0xff] %v8239_v59  ;;  %10991 = vst [vmem:[#allocation86_spill] sm:$0xff] %v8243_v34  ;;  %v2615_v56 = vmul.f32 %v10994_v47, %v8219_v13  ;;  %v2616_v21 = vmul.f32 %v10994_v47, %v8223_v30  ;;  %v2617_v53 = vmul.f32 %v10994_v47, %v8239_v59 }
 0x225   : > { %10992 = vst [vmem:[#allocation95_spill] sm:$0xff] %v8247_v19  ;;  %10993 = vst [vmem:[#allocation93_spill] sm:$0xff] %v8251_v41  ;;  %v2618_v2 = vmul.f32 %v10994_v47, %v8227_v49  ;;  %v2619_v35 = vmul.f32 %v10994_v47, %v8243_v34  ;;  %v2621_v51 = vmul.f32 %v10994_v47, %v10996_v54 }
 0x226   : > { %v2622_v37 = vmul.f32 %v10994_v47, %v8231_v1  ;;  %v2623_v22 = vmul.f32 %v10994_v47, %v8247_v19  ;;  %v2624_v40 = vmul.f32 %v10994_v47, %v10997_v25  ;;  %v2625_v55 = vmul.f32 %v10994_v47, %v10998_v3 }
 0x227   : > { %v2626_v58 = vmul.f32 %v10994_v47, %v8235_v28  ;;  %v2627_v4 = vmul.f32 %v10994_v47, %v8251_v41  ;;  %v8283_v57 = vadd.f32 %v2612_v11, %v2560_v16  ;;  %v8285_v7 = vadd.f32 %v2613_v46, %v2561_v42 }
 0x228   : > { %v8287_v0 = vadd.f32 %v2614_v31, %v2562_v32  ;;  %v8289_v6 = vadd.f32 %v2615_v56, %v2563_v38  ;;  %v8291_v33 = vadd.f32 %v2616_v21, %v2564_v15  ;;  %v8293_v54 = vadd.f32 %v2617_v53, %v2565_v27 }
 0x229   : > { %v8295_v25 = vadd.f32 %v2618_v2, %v2566_v61  ;;  %v8297_v3 = vadd.f32 %v2619_v35, %v2567_v10  ;;  %v8299_v12 = vadd.f32 %v2620_v29, %v2568_v39  ;;  %v8301_v17 = vadd.f32 %v2621_v51, %v2569_v52 }
 0x22a   : > { %v8303_v16 = vadd.f32 %v2622_v37, %v2570_v43  ;;  %v8305_v42 = vadd.f32 %v2623_v22, %v2571_v8  ;;  %v8307_v32 = vadd.f32 %v2624_v40, %v2572_v9  ;;  %v8309_v38 = vadd.f32 %v2625_v55, %v2573_v26  ;;  %v11009_v22 = vld [vmem:[#allocation13_spill] sm:$0xff] }
 0x22b   : > { %v8311_v15 = vadd.f32 %v2626_v58, %v2574_v20  ;;  %v8313_v27 = vadd.f32 %v2627_v4, %v2575_v62  ;;  %v2644_v61 = vrot.slane %v2592_v60, 1  ;;  %v2645_v10 = vrot.slane %v8213_v48, 1  ;;  %v11010_v40 = vld [vmem:[#allocation45_spill] sm:$0xff] }
 0x22c   : > { %v2646_v39 = vrot.slane %v8223_v30, 1  ;;  %v2647_v52 = vrot.slane %v8227_v49, 1  ;;  %v2649_v43 = vrot.slane %v8231_v1, 1  ;;  %v2651_v8 = vrot.slane %v8235_v28, 1  ;;  %v11011_v28 = vld [vmem:[#allocation38_spill] sm:$0xff]  ;;  %v11012_v1 = vld [vmem:[#allocation33_spill] sm:$0xff] }
 0x22d   : > { %v2652_v47 = vrot.slane %v2600_v44, 1  ;;  %v2653_v9 = vrot.slane %v8219_v13, 1  ;;  %v2654_v26 = vrot.slane %v8239_v59, 1  ;;  %v2655_v20 = vrot.slane %v8243_v34, 1  ;;  %v11014_v59 = vld [vmem:[#allocation40_spill] sm:$0xff] }
 0x22e   : > { %v2657_v62 = vrot.slane %v8247_v19, 1  ;;  %v2659_v60 = vrot.slane %v8251_v41, 1  ;;  %v2679_v55 = vrot.slane %v11010_v40, %v11009_v22 }
 0x22f   : > { %v2660_v11 = vsel %vm331_vm0, %v2644_v61, %v2652_v47  ;;  %v8329_v46 = vsel %vm331_vm0, %v2645_v10, %v2653_v9  ;;  %v2668_v44 = vsel %vm331_vm0, %v2652_v47, %v2644_v61  ;;  %v8335_v31 = vsel %vm331_vm0, %v2653_v9, %v2645_v10 }
 0x230   : > { %10999 = vst [vmem:[#allocation96_spill] sm:$0xff] %v8329_v46  ;;  %11000 = vst [vmem:[#allocation87_spill] sm:$0xff] %v8335_v31  ;;  %v8339_v56 = vsel %vm331_vm0, %v2646_v39, %v2654_v26  ;;  %v8343_v21 = vsel %vm331_vm0, %v2647_v52, %v2655_v20  ;;  %v8347_v53 = vsel %vm331_vm0, %v2649_v43, %v2657_v62  ;;  %v2712_v58 = vrot.slane %v2660_v11, 1 }
 0x231   : > { %11001 = vst [vmem:[#allocation101_spill] sm:$0xff] %v8339_v56  ;;  %11002 = vst [vmem:[#allocation94_spill] sm:$0xff] %v8343_v21  ;;  %v8351_v2 = vsel %vm331_vm0, %v2651_v8, %v2659_v60  ;;  %v8355_v35 = vsel %vm331_vm0, %v2654_v26, %v2646_v39  ;;  %v8359_v29 = vsel %vm331_vm0, %v2655_v20, %v2647_v52  ;;  %v2713_v4 = vrot.slane %v8329_v46, 1 }
 0x232   : > { %11003 = vst [vmem:[#allocation97_spill] sm:$0xff] %v8347_v53  ;;  %11004 = vst [vmem:[#allocation88_spill] sm:$0xff] %v8351_v2  ;;  %v8363_v51 = vsel %vm331_vm0, %v2657_v62, %v2649_v43  ;;  %v8367_v37 = vsel %vm331_vm0, %v2659_v60, %v2651_v8  ;;  %v2714_v61 = vrot.slane %v8339_v56, 1  ;;  %v2715_v10 = vrot.slane %v8343_v21, 1 }
 0x233   : > { %11005 = vst [vmem:[#allocation102_spill] sm:$0xff] %v8355_v35  ;;  %11006 = vst [vmem:[#allocation98_spill] sm:$0xff] %v8359_v29  ;;  %v2717_v39 = vrot.slane %v8347_v53, 1  ;;  %v2719_v52 = vrot.slane %v8351_v2, 1  ;;  %v2720_v43 = vrot.slane %v2668_v44, 1  ;;  %v2680_v47 = vmul.f32 %v2679_v55, %v2660_v11 }
 0x234   : > { %11007 = vst [vmem:[#allocation103_spill] sm:$0xff] %v8363_v51  ;;  %11008 = vst [vmem:[#allocation106_spill] sm:$0xff] %v8367_v37  ;;  %v2681_v9 = vmul.f32 %v2679_v55, %v2668_v44  ;;  %v2682_v8 = vmul.f32 %v2679_v55, %v8329_v46  ;;  %v2683_v26 = vmul.f32 %v2679_v55, %v8335_v31  ;;  %v11013_v44 = vld [vmem:[#allocation39_spill] sm:$0xff] }
 0x235   : > { %v2684_v20 = vmul.f32 %v2679_v55, %v8339_v56  ;;  %v2685_v62 = vmul.f32 %v2679_v55, %v8355_v35  ;;  %v2686_v60 = vmul.f32 %v2679_v55, %v8343_v21  ;;  %v2687_v41 = vmul.f32 %v2679_v55, %v8359_v29 }
 0x236   : > { %v2688_v19 = vmul.f32 %v2679_v55, %v11011_v28  ;;  %v2689_v34 = vmul.f32 %v2679_v55, %v11012_v1  ;;  %v2690_v49 = vmul.f32 %v2679_v55, %v8347_v53  ;;  %v2691_v11 = vmul.f32 %v2679_v55, %v8363_v51 }
 0x237   : > { %v2692_v46 = vmul.f32 %v2679_v55, %v11013_v44  ;;  %v2693_v30 = vmul.f32 %v2679_v55, %v11014_v59  ;;  %v2694_v56 = vmul.f32 %v2679_v55, %v8351_v2  ;;  %v2695_v13 = vmul.f32 %v2679_v55, %v8367_v37 }
 0x238   : > { %v2696_v21 = vadd.f32 %v2680_v47, %v8283_v57  ;;  %v2697_v48 = vadd.f32 %v2681_v9, %v8285_v7  ;;  %v2698_v28 = vadd.f32 %v2682_v8, %v8287_v0  ;;  %v2699_v1 = vadd.f32 %v2683_v26, %v8289_v6  ;;  %v11025_v26 = vld [vmem:[#allocation34_spill] sm:$0xff] }
 0x239   : > { %v2700_v53 = vadd.f32 %v2684_v20, %v8291_v33  ;;  %v2701_v45 = vadd.f32 %v2685_v62, %v8293_v54  ;;  %v2702_v44 = vadd.f32 %v2686_v60, %v8295_v25  ;;  %v2703_v59 = vadd.f32 %v2687_v41, %v8297_v3 }
 0x23a   : > { %v2704_v2 = vadd.f32 %v2688_v19, %v8299_v12  ;;  %v2705_v55 = vadd.f32 %v2689_v34, %v8301_v17  ;;  %v2706_v57 = vadd.f32 %v2690_v49, %v8303_v16  ;;  %v2707_v7 = vadd.f32 %v2691_v11, %v8305_v42  ;;  %v11015_v19 = vld [vmem:[#allocation14_spill] sm:$0xff] }
 0x23b   : > { %v2708_v0 = vadd.f32 %v2692_v46, %v8307_v32  ;;  %v2709_v6 = vadd.f32 %v2693_v30, %v8309_v38  ;;  %v2710_v33 = vadd.f32 %v2694_v56, %v8311_v15  ;;  %v2711_v54 = vadd.f32 %v2695_v13, %v8313_v27 }
 0x23c   : > { %v2721_v25 = vrot.slane %v8335_v31, 1  ;;  %v2722_v41 = vrot.slane %v8355_v35, 1  ;;  %v2723_v12 = vrot.slane %v8359_v29, 1  ;;  %v2725_v17 = vrot.slane %v8363_v51, 1 }
 0x23d   : > { %v2727_v49 = vrot.slane %v8367_v37, 1  ;;  %v8413_v34 = vsel %vm331_vm0, %v2712_v58, %v2720_v43  ;;  %v8417_v30 = vsel %vm331_vm0, %v2720_v43, %v2712_v58  ;;  %v2747_v13 = vrot.slane %v11010_v40, %v11015_v19 }
 0x23e   : > { %v8423_v3 = vsel %vm331_vm0, %v2713_v4, %v2721_v25  ;;  %v8427_v16 = vsel %vm331_vm0, %v2714_v61, %v2722_v41  ;;  %v8431_v42 = vsel %vm331_vm0, %v2715_v10, %v2723_v12  ;;  %v8435_v32 = vsel %vm331_vm0, %v2717_v39, %v2725_v17 }
 0x23f   : > { %11016 = vst [vmem:[#allocation99_spill] sm:$0xff] %v8427_v16  ;;  %11017 = vst [vmem:[#allocation24_spill] sm:$0xff] %v8431_v42  ;;  %v8439_v38 = vsel %vm331_vm0, %v2719_v52, %v2727_v49  ;;  %v8443_v15 = vsel %vm331_vm0, %v2721_v25, %v2713_v4  ;;  %v8447_v27 = vsel %vm331_vm0, %v2722_v41, %v2714_v61  ;;  %v11027_v25 = vld [vmem:[#allocation41_spill] sm:$0xff]  ;;  %v2780_v22 = vrot.slane %v8413_v34, 1 }
 0x240   : > { %11018 = vst [vmem:[#allocation104_spill] sm:$0xff] %v8435_v32  ;;  %11019 = vst [vmem:[#allocation113_spill] sm:$0xff] %v8439_v38  ;;  %v8451_v46 = vsel %vm331_vm0, %v2723_v12, %v2715_v10  ;;  %v8455_v56 = vsel %vm331_vm0, %v2725_v17, %v2717_v39  ;;  %v8459_v58 = vsel %vm331_vm0, %v2727_v49, %v2719_v52  ;;  %v11026_v52 = vld [vmem:[#allocation35_spill] sm:$0xff]  ;;  %v11028_v12 = vld [vmem:[#allocation36_spill] sm:$0xff] }
 0x241   : > { %11020 = vst [vmem:[#allocation100_spill] sm:$0xff] %v8443_v15  ;;  %11021 = vst [vmem:[#allocation107_spill] sm:$0xff] %v8447_v27  ;;  %v2748_v43 = vmul.f32 %v2747_v13, %v8413_v34  ;;  %v2749_v4 = vmul.f32 %v2747_v13, %v8417_v30  ;;  %v2750_v47 = vmul.f32 %v2747_v13, %v8423_v3 }
 0x242   : > { %11022 = vst [vmem:[#allocation105_spill] sm:$0xff] %v8451_v46  ;;  %11023 = vst [vmem:[#allocation114_spill] sm:$0xff] %v8455_v56  ;;  %v2751_v61 = vmul.f32 %v2747_v13, %v8443_v15  ;;  %v2752_v9 = vmul.f32 %v2747_v13, %v8427_v16  ;;  %v2753_v10 = vmul.f32 %v2747_v13, %v8447_v27 }
 0x243   : > { %11024 = vst [vmem:[#allocation108_spill] sm:$0xff] %v8459_v58  ;;  %v2754_v8 = vmul.f32 %v2747_v13, %v8431_v42  ;;  %v2755_v39 = vmul.f32 %v2747_v13, %v8451_v46  ;;  %v2756_v20 = vmul.f32 %v2747_v13, %v11025_v26  ;;  %v2757_v62 = vmul.f32 %v2747_v13, %v11026_v52 }
 0x244   : > { %v2758_v60 = vmul.f32 %v2747_v13, %v8435_v32  ;;  %v2759_v11 = vmul.f32 %v2747_v13, %v8455_v56  ;;  %v2760_v41 = vmul.f32 %v2747_v13, %v11027_v25  ;;  %v2761_v17 = vmul.f32 %v2747_v13, %v11028_v12 }
 0x245   : > { %v2762_v49 = vmul.f32 %v2747_v13, %v8439_v38  ;;  %v2763_v37 = vmul.f32 %v2747_v13, %v8459_v58  ;;  %v2764_v51 = vadd.f32 %v2748_v43, %v2696_v21  ;;  %v2765_v29 = vadd.f32 %v2749_v4, %v2697_v48 }
 0x246   : > { %v2766_v35 = vadd.f32 %v2750_v47, %v2698_v28  ;;  %v2767_v31 = vadd.f32 %v2751_v61, %v2699_v1  ;;  %v2768_v50 = vadd.f32 %v2752_v9, %v2700_v53  ;;  %v2769_v26 = vadd.f32 %v2753_v10, %v2701_v45 }
 0x247   : > { %v2770_v36 = vadd.f32 %v2754_v8, %v2702_v44  ;;  %v2771_v52 = vadd.f32 %v2755_v39, %v2703_v59  ;;  %v2772_v23 = vadd.f32 %v2756_v20, %v2704_v2  ;;  %v2773_v5 = vadd.f32 %v2757_v62, %v2705_v55  ;;  %v11029_v55 = vld [vmem:[#allocation15_spill] sm:$0xff] }
 0x248   : > { %v2774_v63 = vadd.f32 %v2758_v60, %v2706_v57  ;;  %v2775_v24 = vadd.f32 %v2759_v11, %v2707_v7  ;;  %v2776_v18 = vadd.f32 %v2760_v41, %v2708_v0  ;;  %v2777_v25 = vadd.f32 %v2761_v17, %v2709_v6  ;;  %v11030_v7 = vld [vmem:[#allocation16_spill] sm:$0xff]  ;;  %v11040_v17 = vld [vmem:[#allocation43_spill] sm:$0xff] }
 0x249   : > { %v2778_v19 = vadd.f32 %v2762_v49, %v2710_v33  ;;  %v2779_v12 = vadd.f32 %v2763_v37, %v2711_v54  ;;  %v2781_v13 = vrot.slane %v8423_v3, 1  ;;  %v2782_v48 = vrot.slane %v8427_v16, 1 }
 0x24a   : > { %v2783_v21 = vrot.slane %v8431_v42, 1  ;;  %v2785_v45 = vrot.slane %v8435_v32, 1  ;;  %v2787_v53 = vrot.slane %v8439_v38, 1  ;;  %v2788_v2 = vrot.slane %v8417_v30, 1 }
 0x24b   : > { %v2789_v28 = vrot.slane %v8443_v15, 1  ;;  %v2790_v1 = vrot.slane %v8447_v27, 1  ;;  %v2791_v37 = vrot.slane %v8451_v46, 1  ;;  %v2793_v44 = vrot.slane %v8455_v56, 1 }
 0x24c   : > { %v2795_v59 = vrot.slane %v8459_v58, 1  ;;  %v2815_v57 = vrot.slane %v11010_v40, %v11029_v55  ;;  %v8493_v0 = vrot.slane %v11010_v40, %v11030_v7  ;;  %v2796_v6 = vsel %vm331_vm0, %v2780_v22, %v2788_v2 }
 0x24d   : > { %v8499_v33 = vsel %vm331_vm0, %v2781_v13, %v2789_v28  ;;  %v8503_v54 = vsel %vm331_vm0, %v2782_v48, %v2790_v1  ;;  %v8507_v34 = vsel %vm331_vm0, %v2783_v21, %v2791_v37  ;;  %v8511_v30 = vsel %vm331_vm0, %v2785_v45, %v2793_v44 }
 0x24e   : > { %11031 = vst [vmem:[#allocation119_spill] sm:$0xff] %v8503_v54  ;;  %11032 = vst [vmem:[#allocation115_spill] sm:$0xff] %v8507_v34  ;;  %v8515_v40 = vsel %vm331_vm0, %v2787_v53, %v2795_v59  ;;  %v2804_v43 = vsel %vm331_vm0, %v2788_v2, %v2780_v22  ;;  %v8521_v4 = vsel %vm331_vm0, %v2789_v28, %v2781_v13  ;;  %v11041_v13 = vld [vmem:[#allocation50_spill] sm:$0xff]  ;;  %v11043_v28 = vld [vmem:[#allocation53_spill] sm:$0xff] }
 0x24f   : > { %11033 = vst [vmem:[#allocation17_spill] sm:$0xff] %v8511_v30  ;;  %11034 = vst [vmem:[#allocation109_spill] sm:$0xff] %v8515_v40  ;;  %v8525_v47 = vsel %vm331_vm0, %v2790_v1, %v2782_v48  ;;  %v8529_v61 = vsel %vm331_vm0, %v2791_v37, %v2783_v21  ;;  %v8533_v9 = vsel %vm331_vm0, %v2793_v44, %v2785_v45 }
 0x250   : > { %11035 = vst [vmem:[#allocation19_spill] sm:$0xff] %v8521_v4  ;;  %11036 = vst [vmem:[#allocation116_spill] sm:$0xff] %v8525_v47  ;;  %v8537_v10 = vsel %vm331_vm0, %v2795_v59, %v2787_v53  ;;  %v2816_v22 = vmul.f32 %v2815_v57, %v2796_v6  ;;  %v2817_v8 = vmul.f32 %v2815_v57, %v2804_v43  ;;  %v11042_v53 = vld [vmem:[#allocation46_spill] sm:$0xff] }
 0x251   : > { %11037 = vst [vmem:[#allocation42_spill] sm:$0xff] %v8529_v61  ;;  %11038 = vst [vmem:[#allocation110_spill] sm:$0xff] %v8533_v9  ;;  %v2818_v39 = vmul.f32 %v2815_v57, %v8499_v33  ;;  %v2819_v20 = vmul.f32 %v2815_v57, %v8521_v4  ;;  %v2820_v62 = vmul.f32 %v2815_v57, %v8503_v54 }
 0x252   : > { %11039 = vst [vmem:[#allocation32_spill] sm:$0xff] %v8537_v10  ;;  %v2821_v60 = vmul.f32 %v2815_v57, %v8525_v47  ;;  %v2822_v11 = vmul.f32 %v2815_v57, %v8507_v34  ;;  %v2823_v41 = vmul.f32 %v2815_v57, %v8529_v61  ;;  %v2824_v49 = vmul.f32 %v2815_v57, %v11040_v17 }
 0x253   : > { %v2825_v48 = vmul.f32 %v2815_v57, %v11041_v13  ;;  %v2826_v21 = vmul.f32 %v2815_v57, %v8511_v30  ;;  %v2827_v45 = vmul.f32 %v2815_v57, %v8533_v9  ;;  %v2828_v2 = vmul.f32 %v2815_v57, %v11042_v53 }
 0x254   : > { %v2829_v1 = vmul.f32 %v2815_v57, %v11043_v28  ;;  %v2830_v37 = vmul.f32 %v2815_v57, %v8515_v40  ;;  %v2831_v44 = vmul.f32 %v2815_v57, %v8537_v10  ;;  %v2832_v59 = vadd.f32 %v2816_v22, %v2764_v51 }
 0x255   : > { %v2833_v7 = vadd.f32 %v2817_v8, %v2765_v29  ;;  %v2834_v55 = vadd.f32 %v2818_v39, %v2766_v35  ;;  %v2835_v58 = vadd.f32 %v2819_v20, %v2767_v31  ;;  %v2836_v38 = vadd.f32 %v2820_v62, %v2768_v50 }
 0x256   : > { %v2837_v17 = vadd.f32 %v2821_v60, %v2769_v26  ;;  %v2838_v56 = vadd.f32 %v2822_v11, %v2770_v36  ;;  %v2839_v13 = vadd.f32 %v2823_v41, %v2771_v52  ;;  %v2840_v32 = vadd.f32 %v2824_v49, %v2772_v23 }
 0x257   : > { %v2841_v46 = vadd.f32 %v2825_v48, %v2773_v5  ;;  %v2842_v42 = vadd.f32 %v2826_v21, %v2774_v63  ;;  %v2843_v27 = vadd.f32 %v2827_v45, %v2775_v24  ;;  %v8553_v16 = vadd.f32 %v2828_v2, %v2776_v18 }
 0x258   : > { %v8555_v53 = vadd.f32 %v2829_v1, %v2777_v25  ;;  %v8557_v28 = vadd.f32 %v2830_v37, %v2778_v19  ;;  %v8559_v15 = vadd.f32 %v2831_v44, %v2779_v12  ;;  %v2848_v51 = vrot.slane %v2796_v6, 1  ;;  %v11054_v1 = vld [vmem:[#allocation44_spill] sm:$0xff]  ;;  %v11055_v44 = vld [vmem:[#allocation51_spill] sm:$0xff] }
 0x259   : > { %v2849_v35 = vrot.slane %v8499_v33, 1  ;;  %v2850_v50 = vrot.slane %v8503_v54, 1  ;;  %v2851_v36 = vrot.slane %v8507_v34, 1  ;;  %v2853_v23 = vrot.slane %v8511_v30, 1 }
 0x25a   : > { %v2855_v63 = vrot.slane %v8515_v40, 1  ;;  %v2856_v24 = vrot.slane %v2804_v43, 1  ;;  %v2857_v18 = vrot.slane %v8521_v4, 1  ;;  %v2858_v5 = vrot.slane %v8525_v47, 1 }
 0x25b   : > { %v2859_v31 = vrot.slane %v8529_v61, 1  ;;  %v2861_v29 = vrot.slane %v8533_v9, 1  ;;  %v2863_v19 = vrot.slane %v8537_v10, 1  ;;  %v2892_v37 = vmul.f32 %v8493_v0, %v11054_v1 }
 0x25c   : > { %v2864_v26 = vsel %vm331_vm0, %v2848_v51, %v2856_v24  ;;  %v8575_v52 = vsel %vm331_vm0, %v2849_v35, %v2857_v18  ;;  %v2872_v25 = vsel %vm331_vm0, %v2856_v24, %v2848_v51  ;;  %v8581_v12 = vsel %vm331_vm0, %v2857_v18, %v2849_v35 }
 0x25d   : > { %11044 = vst [vmem:[#allocation112_spill] sm:$0xff] %v8575_v52  ;;  %11045 = vst [vmem:[#allocation8_spill] sm:$0xff] %v8581_v12  ;;  %v8585_v57 = vsel %vm331_vm0, %v2850_v50, %v2858_v5  ;;  %v8589_v6 = vsel %vm331_vm0, %v2851_v36, %v2859_v31  ;;  %v8593_v43 = vsel %vm331_vm0, %v2853_v23, %v2861_v29 }
 0x25e   : > { %11046 = vst [vmem:[#allocation117_spill] sm:$0xff] %v8585_v57  ;;  %11047 = vst [vmem:[#allocation111_spill] sm:$0xff] %v8589_v6  ;;  %v8597_v22 = vsel %vm331_vm0, %v2855_v63, %v2863_v19  ;;  %v8601_v8 = vsel %vm331_vm0, %v2858_v5, %v2850_v50  ;;  %v8605_v39 = vsel %vm331_vm0, %v2859_v31, %v2851_v36  ;;  %v11056_v36 = vld [vmem:[#allocation47_spill] sm:$0xff]  ;;  %v8646_v31 = vld [vmem:[%s5241_s8 + $0x28] sm:$0xff] }
 0x25f   : > { %11048 = vst [vmem:[#allocation118_spill] sm:$0xff] %v8593_v43  ;;  %11049 = vst [vmem:[#allocation20_spill] sm:$0xff] %v8597_v22  ;;  %v8609_v20 = vsel %vm331_vm0, %v2861_v29, %v2853_v23  ;;  %v8613_v62 = vsel %vm331_vm0, %v2863_v19, %v2855_v63  ;;  %v2884_v60 = vmul.f32 %v8493_v0, %v2864_v26  ;;  %v11057_v63 = vld [vmem:[#allocation54_spill] sm:$0xff] }
 0x260   : > { %11050 = vst [vmem:[#allocation21_spill] sm:$0xff] %v8601_v8  ;;  %11051 = vst [vmem:[#allocation22_spill] sm:$0xff] %v8605_v39  ;;  %v2885_v11 = vmul.f32 %v8493_v0, %v2872_v25  ;;  %v2886_v41 = vmul.f32 %v8493_v0, %v8575_v52  ;;  %v2887_v49 = vmul.f32 %v8493_v0, %v8581_v12  ;;  %v11074_v12 = vld [vmem:[#allocation65_spill] sm:$0xff] }
 0x261   : > { %11052 = vst [vmem:[#allocation23_spill] sm:$0xff] %v8609_v20  ;;  %11053 = vst [vmem:[#allocation25_spill] sm:$0xff] %v8613_v62  ;;  %v2888_v48 = vmul.f32 %v8493_v0, %v8585_v57  ;;  %v2889_v21 = vmul.f32 %v8493_v0, %v8601_v8  ;;  %v2890_v45 = vmul.f32 %v8493_v0, %v8589_v6  ;;  %v11073_v57 = vld [vmem:[#allocation66_spill] sm:$0xff]  ;;  %v11075_v52 = vld [vmem:[#allocation57_spill] sm:$0xff] }
 0x262   : > { %v2891_v2 = vmul.f32 %v8493_v0, %v8605_v39  ;;  %v2893_v51 = vmul.f32 %v8493_v0, %v11055_v44  ;;  %v2894_v35 = vmul.f32 %v8493_v0, %v8593_v43  ;;  %v2895_v50 = vmul.f32 %v8493_v0, %v8609_v20  ;;  %v8652_v43 = vld [vmem:[%s5271_s21 + $0xa0] sm:$0xff] }
 0x263   : > { %v2896_v23 = vmul.f32 %v8493_v0, %v11056_v36  ;;  %v2897_v24 = vmul.f32 %v8493_v0, %v11057_v63  ;;  %v2898_v18 = vmul.f32 %v8493_v0, %v8597_v22  ;;  %v2899_v5 = vmul.f32 %v8493_v0, %v8613_v62  ;;  %v8649_v63 = vld [vmem:[%s5271_s21 + $0x80] sm:$0xff]  ;;  %11059 = vst [vmem:[#allocation27_spill] sm:$0xff] %v8652_v43 }
 0x264   : > { %v2900_v29 = vadd.f32 %v2884_v60, %v2832_v59  ;;  %v2901_v19 = vadd.f32 %v2885_v11, %v2833_v7  ;;  %v2902_v26 = vadd.f32 %v2886_v41, %v2834_v55  ;;  %v2903_v25 = vadd.f32 %v2887_v49, %v2835_v58  ;;  %11058 = vst [vmem:[#allocation26_spill] sm:$0xff] %v8649_v63  ;;  %v8655_v22 = vld [vmem:[%s5271_s21 + $0xc0] sm:$0xff]  ;;  %v8658_v59 = vld [vmem:[%s5271_s21 + $0x88] sm:$0xff] }
 0x265   : > { %v2904_v1 = vadd.f32 %v2888_v48, %v2836_v38  ;;  %v2905_v44 = vadd.f32 %v2889_v21, %v2837_v17  ;;  %v2906_v36 = vadd.f32 %v2890_v45, %v2838_v56  ;;  %v2907_v20 = vadd.f32 %v2891_v2, %v2839_v13  ;;  %11060 = vst [vmem:[#allocation28_spill] sm:$0xff] %v8655_v22  ;;  %v8661_v7 = vld [vmem:[%s5271_s21 + $0xa8] sm:$0xff]  ;;  %v11066_v41 = vld [vmem:[#allocation48_spill] sm:$0xff]  ;;  %v11069_v2 = vld [vmem:[#allocation59_spill] sm:$0xff] }
 0x266   : > { %v2908_v0 = vadd.f32 %v2892_v37, %v2840_v32  ;;  %v2909_v62 = vadd.f32 %v2893_v51, %v2841_v46  ;;  %v2910_v39 = vadd.f32 %v2894_v35, %v2842_v42  ;;  %v2911_v6 = vadd.f32 %v2895_v50, %v2843_v27  ;;  %11061 = vst [vmem:[#allocation29_spill] sm:$0xff] %v8658_v59  ;;  %v8664_v55 = vld [vmem:[%s5271_s21 + $0xc8] sm:$0xff]  ;;  %v11067_v49 = vld [vmem:[#allocation56_spill] sm:$0xff]  ;;  %v11070_v51 = vld [vmem:[#allocation55_spill] sm:$0xff] }
 0x267   : > { %11062 = vst [vmem:[#allocation72_spill] sm:$0xff] %v8661_v7  ;;  %11063 = vst [vmem:[#allocation30_spill] sm:$0xff] %v8664_v55  ;;  %v2912_v38 = vadd.f32 %v2896_v23, %v8553_v16  ;;  %v2913_v56 = vadd.f32 %v2897_v24, %v8555_v53  ;;  %v2914_v58 = vadd.f32 %v2898_v18, %v8557_v28  ;;  %v11064_v13 = vld [vmem:[#allocation9_spill] sm:$0xff]  ;;  %v2974_v42 = vrot.slane %v8649_v63, 1  ;;  %v11065_v53 = vld [vmem:[#allocation10_spill] sm:$0xff] }
 0x268   : > { %v2915_v17 = vadd.f32 %v2899_v5, %v8559_v15  ;;  %v2938_v32 = vrot.slane %v8646_v31, %v11064_v13  ;;  %v2976_v27 = vrot.slane %v8652_v43, 1  ;;  %v2978_v46 = vrot.slane %v8655_v22, 1  ;;  %v11068_v21 = vld [vmem:[#allocation52_spill] sm:$0xff]  ;;  %v11071_v50 = vld [vmem:[#allocation63_spill] sm:$0xff]  ;;  %v11072_v5 = vld [vmem:[#allocation49_spill] sm:$0xff] }
 0x269   : > { %v2982_v60 = vrot.slane %v8658_v59, 1  ;;  %v2984_v11 = vrot.slane %v8661_v7, 1  ;;  %v2986_v16 = vrot.slane %v8664_v55, 1  ;;  %v3006_v28 = vrot.slane %v8646_v31, %v11065_v53 }
 0x26a   : > { %v2939_v15 = vmul.f32 %v11066_v41, %v2938_v32  ;;  %v2940_v48 = vmul.f32 %v11067_v49, %v2938_v32  ;;  %v2941_v45 = vmul.f32 %v11068_v21, %v2938_v32  ;;  %v2942_v37 = vmul.f32 %v11069_v2, %v2938_v32 }
 0x26b   : > { %v2943_v35 = vmul.f32 %v11070_v51, %v2938_v32  ;;  %v2944_v23 = vmul.f32 %v11071_v50, %v2938_v32  ;;  %v2945_v24 = vmul.f32 %v8649_v63, %v2938_v32  ;;  %v2946_v18 = vmul.f32 %v8658_v59, %v2938_v32 }
 0x26c   : > { %v2947_v8 = vmul.f32 %v11072_v5, %v2938_v32  ;;  %v2948_v53 = vmul.f32 %v11073_v57, %v2938_v32  ;;  %v2949_v41 = vmul.f32 %v8652_v43, %v2938_v32  ;;  %v2950_v49 = vmul.f32 %v8661_v7, %v2938_v32 }
 0x26d   : > { %v2951_v21 = vmul.f32 %v11074_v12, %v2938_v32  ;;  %v2952_v2 = vmul.f32 %v11075_v52, %v2938_v32  ;;  %v2953_v51 = vmul.f32 %v8655_v22, %v2938_v32  ;;  %v2954_v50 = vmul.f32 %v8664_v55, %v2938_v32 }
 0x26e   : > { %v2955_v10 = vadd.f32 %v2939_v15, %v2900_v29  ;;  %v2956_v63 = vadd.f32 %v2940_v48, %v2901_v19  ;;  %v2957_v40 = vadd.f32 %v2941_v45, %v2902_v26  ;;  %v2958_v59 = vadd.f32 %v2942_v37, %v2903_v25  ;;  %v11083_v26 = vld [vmem:[#allocation68_spill] sm:$0xff]  ;;  %v11090_v15 = vld [vmem:[#allocation61_spill] sm:$0xff] }
 0x26f   : > { %v2959_v9 = vadd.f32 %v2943_v35, %v2904_v1  ;;  %v2960_v5 = vadd.f32 %v2944_v23, %v2905_v44  ;;  %v2961_v30 = vadd.f32 %v2945_v24, %v2906_v36  ;;  %v2962_v57 = vadd.f32 %v2946_v18, %v2907_v20  ;;  %v11082_v20 = vld [vmem:[#allocation60_spill] sm:$0xff]  ;;  %v11085_v36 = vld [vmem:[#allocation71_spill] sm:$0xff]  ;;  %v11091_v45 = vld [vmem:[#allocation69_spill] sm:$0xff] }
 0x270   : > { %v2963_v61 = vadd.f32 %v2947_v8, %v2908_v0  ;;  %v2964_v43 = vadd.f32 %v2948_v53, %v2909_v62  ;;  %v2965_v34 = vadd.f32 %v2949_v41, %v2910_v39  ;;  %v2966_v7 = vadd.f32 %v2950_v49, %v2911_v6  ;;  %v11084_v1 = vld [vmem:[#allocation64_spill] sm:$0xff] }
 0x271   : > { %v2967_v47 = vadd.f32 %v2951_v21, %v2912_v38  ;;  %v2968_v12 = vadd.f32 %v2952_v2, %v2913_v56  ;;  %v2969_v54 = vadd.f32 %v2953_v51, %v2914_v58  ;;  %v2970_v52 = vadd.f32 %v2954_v50, %v2915_v17  ;;  %v11086_v38 = vld [vmem:[#allocation67_spill] sm:$0xff]  ;;  %v11087_v58 = vld [vmem:[#allocation62_spill] sm:$0xff] }
 0x272   : > { %v8698_v22 = vsel %vm331_vm0, %v2974_v42, %v2982_v60  ;;  %v8702_v29 = vsel %vm331_vm0, %v2976_v27, %v2984_v11  ;;  %v8706_v19 = vsel %vm331_vm0, %v2978_v46, %v2986_v16  ;;  %v8710_v8 = vsel %vm331_vm0, %v2982_v60, %v2974_v42 }
 0x273   : > { %11076 = vst [vmem:[#allocation37_spill] sm:$0xff] %v8698_v22  ;;  %11077 = vst [vmem:[#allocation18_spill] sm:$0xff] %v8702_v29  ;;  %v8714_v6 = vsel %vm331_vm0, %v2984_v11, %v2976_v27  ;;  %v8718_v39 = vsel %vm331_vm0, %v2986_v16, %v2978_v46  ;;  %v3007_v62 = vmul.f32 %v3006_v28, %v11082_v20  ;;  %v11088_v27 = vld [vmem:[#allocation58_spill] sm:$0xff] }
 0x274   : > { %11078 = vst [vmem:[#allocation31_spill] sm:$0xff] %v8706_v19  ;;  %11079 = vst [vmem:[#allocation45_spill] sm:$0xff] %v8710_v8  ;;  %v3008_v25 = vmul.f32 %v3006_v28, %v11083_v26  ;;  %v3009_v44 = vmul.f32 %v3006_v28, %v11084_v1  ;;  %v3010_v0 = vmul.f32 %v3006_v28, %v11085_v36  ;;  %v11089_v46 = vld [vmem:[#allocation78_spill] sm:$0xff] }
 0x275   : > { %11080 = vst [vmem:[#allocation38_spill] sm:$0xff] %v8714_v6  ;;  %11081 = vst [vmem:[#allocation33_spill] sm:$0xff] %v8718_v39  ;;  %v3011_v56 = vmul.f32 %v3006_v28, %v11086_v38  ;;  %v3012_v17 = vmul.f32 %v3006_v28, %v11087_v58  ;;  %v3013_v32 = vmul.f32 %v3006_v28, %v8698_v22 }
 0x276   : > { %v3014_v42 = vmul.f32 %v3006_v28, %v8710_v8  ;;  %v3015_v60 = vmul.f32 %v3006_v28, %v11088_v27  ;;  %v3016_v11 = vmul.f32 %v3006_v28, %v11089_v46  ;;  %v3017_v16 = vmul.f32 %v3006_v28, %v8702_v29 }
 0x277   : > { %v3018_v53 = vmul.f32 %v3006_v28, %v8714_v6  ;;  %v3019_v48 = vmul.f32 %v3006_v28, %v11090_v15  ;;  %v3020_v37 = vmul.f32 %v3006_v28, %v11091_v45  ;;  %v3021_v35 = vmul.f32 %v3006_v28, %v8706_v19 }
 0x278   : > { %v3022_v23 = vmul.f32 %v3006_v28, %v8718_v39  ;;  %v3023_v24 = vadd.f32 %v3007_v62, %v2955_v10  ;;  %v3024_v18 = vadd.f32 %v3008_v25, %v2956_v63  ;;  %v3025_v41 = vadd.f32 %v3009_v44, %v2957_v40  ;;  %v11101_v44 = vld [vmem:[#allocation76_spill] sm:$0xff] }
 0x279   : > { %v3026_v49 = vadd.f32 %v3010_v0, %v2958_v59  ;;  %v3027_v21 = vadd.f32 %v3011_v56, %v2959_v9  ;;  %v3028_v2 = vadd.f32 %v3012_v17, %v2960_v5  ;;  %v3029_v51 = vadd.f32 %v3013_v32, %v2961_v30  ;;  %v11095_v59 = vld [vmem:[#allocation14_spill] sm:$0xff]  ;;  %v11102_v56 = vld [vmem:[#allocation80_spill] sm:$0xff]  ;;  %v11103_v32 = vld [vmem:[#allocation79_spill] sm:$0xff] }
 0x27a   : > { %v3030_v50 = vadd.f32 %v3014_v42, %v2962_v57  ;;  %v3031_v20 = vadd.f32 %v3015_v60, %v2963_v61  ;;  %v3032_v26 = vadd.f32 %v3016_v11, %v2964_v43  ;;  %v3033_v1 = vadd.f32 %v3017_v16, %v2965_v34  ;;  %v11092_v61 = vld [vmem:[#allocation11_spill] sm:$0xff]  ;;  %v11093_v43 = vld [vmem:[#allocation12_spill] sm:$0xff]  ;;  %v11104_v60 = vld [vmem:[#allocation74_spill] sm:$0xff] }
 0x27b   : > { %v3034_v36 = vadd.f32 %v3018_v53, %v2966_v7  ;;  %v3035_v38 = vadd.f32 %v3019_v48, %v2967_v47  ;;  %v3036_v58 = vadd.f32 %v3020_v37, %v2968_v12  ;;  %v3037_v27 = vadd.f32 %v3021_v35, %v2969_v54  ;;  %v11094_v54 = vld [vmem:[#allocation13_spill] sm:$0xff]  ;;  %v11105_v16 = vld [vmem:[#allocation70_spill] sm:$0xff] }
 0x27c   : > { %v3038_v46 = vadd.f32 %v3022_v23, %v2970_v52  ;;  %v3042_v15 = vrot.slane %v8698_v22, 1  ;;  %v3044_v28 = vrot.slane %v8702_v29, 1  ;;  %v3046_v10 = vrot.slane %v8706_v19, 1  ;;  %v11106_v48 = vld [vmem:[#allocation90_spill] sm:$0xff]  ;;  %v11107_v23 = vld [vmem:[#allocation73_spill] sm:$0xff] }
 0x27d   : > { %v3050_v40 = vrot.slane %v8710_v8, 1  ;;  %v3052_v9 = vrot.slane %v8714_v6, 1  ;;  %v3054_v30 = vrot.slane %v8718_v39, 1  ;;  %v3074_v34 = vrot.slane %v8646_v31, %v11092_v61 }
 0x27e   : > { %v8746_v47 = vrot.slane %v8646_v31, %v11093_v43  ;;  %v8750_v63 = vrot.slane %v8646_v31, %v11094_v54  ;;  %v8754_v7 = vrot.slane %v8646_v31, %v11095_v59 }
 0x27f   : > { %v8758_v5 = vsel %vm331_vm0, %v3042_v15, %v3050_v40  ;;  %v8762_v57 = vsel %vm331_vm0, %v3044_v28, %v3052_v9  ;;  %v8766_v12 = vsel %vm331_vm0, %v3046_v10, %v3054_v30  ;;  %v8770_v52 = vsel %vm331_vm0, %v3050_v40, %v3042_v15 }
 0x280   : > { %11096 = vst [vmem:[#allocation39_spill] sm:$0xff] %v8762_v57  ;;  %11097 = vst [vmem:[#allocation40_spill] sm:$0xff] %v8766_v12  ;;  %v8774_v62 = vsel %vm331_vm0, %v3052_v9, %v3044_v28  ;;  %v8778_v25 = vsel %vm331_vm0, %v3054_v30, %v3046_v10  ;;  %v3075_v0 = vmul.f32 %v3074_v34, %v11101_v44  ;;  %v11108_v28 = vld [vmem:[#allocation81_spill] sm:$0xff]  ;;  %v3110_v4 = vrot.slane %v8758_v5, 1 }
 0x281   : > { %11098 = vst [vmem:[#allocation34_spill] sm:$0xff] %v8770_v52  ;;  %11099 = vst [vmem:[#allocation35_spill] sm:$0xff] %v8774_v62  ;;  %v3076_v17 = vmul.f32 %v3074_v34, %v11102_v56  ;;  %v3077_v42 = vmul.f32 %v3074_v34, %v11103_v32  ;;  %v3078_v11 = vmul.f32 %v3074_v34, %v11104_v60  ;;  %v11109_v30 = vld [vmem:[#allocation77_spill] sm:$0xff]  ;;  %v11110_v56 = vld [vmem:[#allocation84_spill] sm:$0xff] }
 0x282   : > { %11100 = vst [vmem:[#allocation41_spill] sm:$0xff] %v8778_v25  ;;  %v3079_v53 = vmul.f32 %v3074_v34, %v11105_v16  ;;  %v3080_v45 = vmul.f32 %v3074_v34, %v11106_v48  ;;  %v3081_v37 = vmul.f32 %v3074_v34, %v8758_v5  ;;  %v3082_v35 = vmul.f32 %v3074_v34, %v8770_v52 }
 0x283   : > { %v3083_v15 = vmul.f32 %v3074_v34, %v11107_v23  ;;  %v3084_v10 = vmul.f32 %v3074_v34, %v11108_v28  ;;  %v3085_v40 = vmul.f32 %v3074_v34, %v8762_v57  ;;  %v3086_v9 = vmul.f32 %v3074_v34, %v8774_v62 }
 0x284   : > { %v3087_v44 = vmul.f32 %v3074_v34, %v11109_v30  ;;  %v3088_v32 = vmul.f32 %v3074_v34, %v11110_v56  ;;  %v3089_v60 = vmul.f32 %v3074_v34, %v8766_v12  ;;  %v3090_v16 = vmul.f32 %v3074_v34, %v8778_v25 }
 0x285   : > { %v3091_v48 = vadd.f32 %v3075_v0, %v3023_v24  ;;  %v3092_v59 = vadd.f32 %v3076_v17, %v3024_v18  ;;  %v3093_v54 = vadd.f32 %v3077_v42, %v3025_v41  ;;  %v3094_v43 = vadd.f32 %v3078_v11, %v3026_v49  ;;  %v11121_v42 = vld [vmem:[#allocation85_spill] sm:$0xff] }
 0x286   : > { %v3095_v61 = vadd.f32 %v3079_v53, %v3027_v21  ;;  %v3096_v23 = vadd.f32 %v3080_v45, %v3028_v2  ;;  %v3097_v39 = vadd.f32 %v3081_v37, %v3029_v51  ;;  %v3098_v28 = vadd.f32 %v3082_v35, %v3030_v50  ;;  %v11111_v21 = vld [vmem:[#allocation75_spill] sm:$0xff]  ;;  %v11122_v53 = vld [vmem:[#allocation86_spill] sm:$0xff]  ;;  %v11123_v35 = vld [vmem:[#allocation89_spill] sm:$0xff] }
 0x287   : > { %v3099_v19 = vadd.f32 %v3083_v15, %v3031_v20  ;;  %v3100_v6 = vadd.f32 %v3084_v10, %v3032_v26  ;;  %v3101_v29 = vadd.f32 %v3085_v40, %v3033_v1  ;;  %v3102_v8 = vadd.f32 %v3086_v9, %v3034_v36  ;;  %v11112_v51 = vld [vmem:[#allocation91_spill] sm:$0xff]  ;;  %v11113_v20 = vld [vmem:[#allocation82_spill] sm:$0xff] }
 0x288   : > { %v3103_v22 = vadd.f32 %v3087_v44, %v3035_v38  ;;  %v3104_v30 = vadd.f32 %v3088_v32, %v3036_v58  ;;  %v3105_v55 = vadd.f32 %v3089_v60, %v3037_v27  ;;  %v3106_v56 = vadd.f32 %v3090_v16, %v3038_v46  ;;  %v11114_v1 = vld [vmem:[#allocation83_spill] sm:$0xff]  ;;  %v11125_v32 = vld [vmem:[#allocation92_spill] sm:$0xff]  ;;  %v11126_v16 = vld [vmem:[#allocation93_spill] sm:$0xff] }
 0x289   : > { %v3112_v34 = vrot.slane %v8762_v57, 1  ;;  %v3114_v24 = vrot.slane %v8766_v12, 1  ;;  %v3118_v18 = vrot.slane %v8770_v52, 1  ;;  %v3120_v41 = vrot.slane %v8774_v62, 1  ;;  %v11124_v10 = vld [vmem:[#allocation95_spill] sm:$0xff] }
 0x28a   : > { %v3122_v49 = vrot.slane %v8778_v25, 1  ;;  %v3143_v2 = vmul.f32 %v8746_v47, %v11111_v21  ;;  %v3144_v50 = vmul.f32 %v8746_v47, %v11112_v51  ;;  %v3145_v26 = vmul.f32 %v8746_v47, %v11113_v20 }
 0x28b   : > { %v3146_v36 = vmul.f32 %v8746_v47, %v11114_v1  ;;  %v8812_v38 = vsel %vm331_vm0, %v3110_v4, %v3118_v18  ;;  %v8816_v58 = vsel %vm331_vm0, %v3112_v34, %v3120_v41  ;;  %v8824_v46 = vsel %vm331_vm0, %v3118_v18, %v3110_v4 }
 0x28c   : > { %11115 = vst [vmem:[#allocation36_spill] sm:$0xff] %v8812_v38  ;;  %11116 = vst [vmem:[#allocation43_spill] sm:$0xff] %v8816_v58  ;;  %v8820_v27 = vsel %vm331_vm0, %v3114_v24, %v3122_v49  ;;  %v8828_v0 = vsel %vm331_vm0, %v3120_v41, %v3112_v34  ;;  %v8832_v17 = vsel %vm331_vm0, %v3122_v49, %v3114_v24  ;;  %v3178_v52 = vrot.slane %v8812_v38, 1 }
 0x28d   : > { %11117 = vst [vmem:[#allocation50_spill] sm:$0xff] %v8820_v27  ;;  %11118 = vst [vmem:[#allocation46_spill] sm:$0xff] %v8824_v46  ;;  %v3147_v11 = vmul.f32 %v8746_v47, %v11121_v42  ;;  %v3148_v45 = vmul.f32 %v8746_v47, %v11122_v53  ;;  %v3149_v37 = vmul.f32 %v8746_v47, %v8812_v38 }
 0x28e   : > { %11119 = vst [vmem:[#allocation53_spill] sm:$0xff] %v8828_v0  ;;  %11120 = vst [vmem:[#allocation44_spill] sm:$0xff] %v8832_v17  ;;  %v3150_v4 = vmul.f32 %v8746_v47, %v8824_v46  ;;  %v3151_v15 = vmul.f32 %v8746_v47, %v11123_v35  ;;  %v3152_v40 = vmul.f32 %v8746_v47, %v11124_v10 }
 0x28f   : > { %v3153_v9 = vmul.f32 %v8746_v47, %v8816_v58  ;;  %v3154_v44 = vmul.f32 %v8746_v47, %v8828_v0  ;;  %v3155_v60 = vmul.f32 %v8746_v47, %v11125_v32  ;;  %v3156_v34 = vmul.f32 %v8746_v47, %v11126_v16 }
 0x290   : > { %v3157_v24 = vmul.f32 %v8746_v47, %v8820_v27  ;;  %v3158_v18 = vmul.f32 %v8746_v47, %v8832_v17  ;;  %v3159_v41 = vadd.f32 %v3143_v2, %v3091_v48  ;;  %v3160_v49 = vadd.f32 %v3144_v50, %v3092_v59 }
 0x291   : > { %v3161_v21 = vadd.f32 %v3145_v26, %v3093_v54  ;;  %v3162_v51 = vadd.f32 %v3146_v36, %v3094_v43  ;;  %v3163_v20 = vadd.f32 %v3147_v11, %v3095_v61  ;;  %v3164_v1 = vadd.f32 %v3148_v45, %v3096_v23  ;;  %v11130_v54 = vld [vmem:[#allocation102_spill] sm:$0xff] }
 0x292   : > { %v3165_v42 = vadd.f32 %v3149_v37, %v3097_v39  ;;  %v3166_v53 = vadd.f32 %v3150_v4, %v3098_v28  ;;  %v3167_v35 = vadd.f32 %v3151_v15, %v3099_v19  ;;  %v3168_v10 = vadd.f32 %v3152_v40, %v3100_v6  ;;  %v11127_v19 = vld [vmem:[#allocation96_spill] sm:$0xff]  ;;  %v11137_v26 = vld [vmem:[#allocation94_spill] sm:$0xff]  ;;  %v11139_v4 = vld [vmem:[#allocation97_spill] sm:$0xff] }
 0x293   : > { %v3169_v32 = vadd.f32 %v3153_v9, %v3101_v29  ;;  %v3170_v25 = vadd.f32 %v3154_v44, %v3102_v8  ;;  %v3171_v12 = vadd.f32 %v3155_v60, %v3103_v22  ;;  %v3172_v16 = vadd.f32 %v3156_v34, %v3104_v30  ;;  %v11128_v8 = vld [vmem:[#allocation87_spill] sm:$0xff]  ;;  %v11138_v11 = vld [vmem:[#allocation98_spill] sm:$0xff]  ;;  %v11141_v34 = vld [vmem:[#allocation88_spill] sm:$0xff] }
 0x294   : > { %v3173_v62 = vadd.f32 %v3157_v24, %v3105_v55  ;;  %v3174_v57 = vadd.f32 %v3158_v18, %v3106_v56  ;;  %v3180_v47 = vrot.slane %v8816_v58, 1  ;;  %v3182_v59 = vrot.slane %v8820_v27, 1  ;;  %v11129_v55 = vld [vmem:[#allocation101_spill] sm:$0xff]  ;;  %v11140_v40 = vld [vmem:[#allocation103_spill] sm:$0xff]  ;;  %v11142_v18 = vld [vmem:[#allocation106_spill] sm:$0xff] }
 0x295   : > { %v3186_v43 = vrot.slane %v8824_v46, 1  ;;  %v3188_v61 = vrot.slane %v8828_v0, 1  ;;  %v3190_v39 = vrot.slane %v8832_v17, 1  ;;  %v3211_v29 = vmul.f32 %v8750_v63, %v11127_v19 }
 0x296   : > { %v3212_v22 = vmul.f32 %v8750_v63, %v11128_v8  ;;  %v3213_v6 = vmul.f32 %v8750_v63, %v11129_v55  ;;  %v3214_v48 = vmul.f32 %v8750_v63, %v11130_v54  ;;  %v3215_v36 = vmul.f32 %v8750_v63, %v11137_v26 }
 0x297   : > { %v8874_v23 = vsel %vm331_vm0, %v3178_v52, %v3186_v43  ;;  %v8878_v28 = vsel %vm331_vm0, %v3180_v47, %v3188_v61  ;;  %v8882_v30 = vsel %vm331_vm0, %v3182_v59, %v3190_v39  ;;  %v8886_v56 = vsel %vm331_vm0, %v3186_v43, %v3178_v52 }
 0x298   : > { %11131 = vst [vmem:[#allocation51_spill] sm:$0xff] %v8874_v23  ;;  %11132 = vst [vmem:[#allocation47_spill] sm:$0xff] %v8878_v28  ;;  %v8890_v2 = vsel %vm331_vm0, %v3188_v61, %v3180_v47  ;;  %v8894_v50 = vsel %vm331_vm0, %v3190_v39, %v3182_v59  ;;  %v3216_v45 = vmul.f32 %v8750_v63, %v11138_v11  ;;  %v3246_v46 = vrot.slane %v8874_v23, 1 }
 0x299   : > { %11133 = vst [vmem:[#allocation54_spill] sm:$0xff] %v8882_v30  ;;  %11134 = vst [vmem:[#allocation48_spill] sm:$0xff] %v8886_v56  ;;  %v3217_v37 = vmul.f32 %v8750_v63, %v8874_v23  ;;  %v3218_v52 = vmul.f32 %v8750_v63, %v8886_v56  ;;  %v3219_v15 = vmul.f32 %v8750_v63, %v11139_v4 }
 0x29a   : > { %11135 = vst [vmem:[#allocation56_spill] sm:$0xff] %v8890_v2  ;;  %11136 = vst [vmem:[#allocation52_spill] sm:$0xff] %v8894_v50  ;;  %v3220_v9 = vmul.f32 %v8750_v63, %v11140_v40  ;;  %v3221_v44 = vmul.f32 %v8750_v63, %v8878_v28  ;;  %v3222_v60 = vmul.f32 %v8750_v63, %v8890_v2 }
 0x29b   : > { %v3223_v24 = vmul.f32 %v8750_v63, %v11141_v34  ;;  %v3224_v47 = vmul.f32 %v8750_v63, %v11142_v18  ;;  %v3225_v59 = vmul.f32 %v8750_v63, %v8882_v30  ;;  %v3226_v43 = vmul.f32 %v8750_v63, %v8894_v50 }
 0x29c   : > { %v3227_v61 = vadd.f32 %v3211_v29, %v3159_v41  ;;  %v3228_v39 = vadd.f32 %v3212_v22, %v3160_v49  ;;  %v3229_v19 = vadd.f32 %v3213_v6, %v3161_v21  ;;  %v3230_v8 = vadd.f32 %v3214_v48, %v3162_v51  ;;  %v11152_v29 = vld [vmem:[#allocation24_spill] sm:$0xff]  ;;  %v11153_v6 = vld [vmem:[#allocation105_spill] sm:$0xff] }
 0x29d   : > { %v3231_v55 = vadd.f32 %v3215_v36, %v3163_v20  ;;  %v3232_v54 = vadd.f32 %v3216_v45, %v3164_v1  ;;  %v3233_v26 = vadd.f32 %v3217_v37, %v3165_v42  ;;  %v3234_v11 = vadd.f32 %v3218_v52, %v3166_v53  ;;  %v11145_v1 = vld [vmem:[#allocation107_spill] sm:$0xff]  ;;  %v11154_v45 = vld [vmem:[#allocation104_spill] sm:$0xff]  ;;  %v11155_v52 = vld [vmem:[#allocation114_spill] sm:$0xff] }
 0x29e   : > { %v3235_v4 = vadd.f32 %v3219_v15, %v3167_v35  ;;  %v3236_v40 = vadd.f32 %v3220_v9, %v3168_v10  ;;  %v3237_v34 = vadd.f32 %v3221_v44, %v3169_v32  ;;  %v3238_v17 = vadd.f32 %v3222_v60, %v3170_v25  ;;  %v11143_v25 = vld [vmem:[#allocation100_spill] sm:$0xff]  ;;  %v11156_v60 = vld [vmem:[#allocation113_spill] sm:$0xff] }
 0x29f   : > { %v3239_v27 = vadd.f32 %v3223_v24, %v3171_v12  ;;  %v3240_v18 = vadd.f32 %v3224_v47, %v3172_v16  ;;  %v3241_v0 = vadd.f32 %v3225_v59, %v3173_v62  ;;  %v3242_v58 = vadd.f32 %v3226_v43, %v3174_v57  ;;  %v11144_v62 = vld [vmem:[#allocation99_spill] sm:$0xff]  ;;  %v11157_v47 = vld [vmem:[#allocation108_spill] sm:$0xff] }
 0x2a0   : > { %v3248_v63 = vrot.slane %v8878_v28, 1  ;;  %v3250_v41 = vrot.slane %v8882_v30, 1  ;;  %v3254_v49 = vrot.slane %v8886_v56, 1  ;;  %v3256_v21 = vrot.slane %v8890_v2, 1  ;;  %v8986_v2 = vld [vmem:[%s5271_s21 + $0x60] sm:$0xff] }
 0x2a1   : > { %v3258_v51 = vrot.slane %v8894_v50, 1  ;;  %v3279_v20 = vmul.f32 %v8754_v7, %v8423_v3  ;;  %v3280_v12 = vmul.f32 %v8754_v7, %v11143_v25  ;;  %v3281_v57 = vmul.f32 %v8754_v7, %v11144_v62 }
 0x2a2   : > { %v3282_v42 = vmul.f32 %v8754_v7, %v11145_v1  ;;  %v8936_v53 = vsel %vm331_vm0, %v3246_v46, %v3254_v49  ;;  %v8940_v35 = vsel %vm331_vm0, %v3248_v63, %v3256_v21  ;;  %v8948_v10 = vsel %vm331_vm0, %v3254_v49, %v3246_v46 }
 0x2a3   : > { %11146 = vst [vmem:[#allocation59_spill] sm:$0xff] %v8936_v53  ;;  %11147 = vst [vmem:[#allocation55_spill] sm:$0xff] %v8940_v35  ;;  %v8944_v3 = vsel %vm331_vm0, %v3250_v41, %v3258_v51  ;;  %v8952_v32 = vsel %vm331_vm0, %v3256_v21, %v3248_v63  ;;  %v8956_v16 = vsel %vm331_vm0, %v3258_v51, %v3250_v41 }
 0x2a4   : > { %11148 = vst [vmem:[#allocation63_spill] sm:$0xff] %v8944_v3  ;;  %11149 = vst [vmem:[#allocation49_spill] sm:$0xff] %v8948_v10  ;;  %v3283_v22 = vmul.f32 %v8754_v7, %v11152_v29  ;;  %v3284_v48 = vmul.f32 %v8754_v7, %v11153_v6  ;;  %v3285_v36 = vmul.f32 %v8754_v7, %v8936_v53 }
 0x2a5   : > { %11150 = vst [vmem:[#allocation66_spill] sm:$0xff] %v8952_v32  ;;  %11151 = vst [vmem:[#allocation65_spill] sm:$0xff] %v8956_v16  ;;  %v3286_v46 = vmul.f32 %v8754_v7, %v8948_v10  ;;  %v3287_v37 = vmul.f32 %v8754_v7, %v11154_v45  ;;  %v3288_v15 = vmul.f32 %v8754_v7, %v11155_v52  ;;  %v8983_v52 = vld [vmem:[%s5241_s8 + $0x30] sm:$0xff] }
 0x2a6   : > { %v3289_v9 = vmul.f32 %v8754_v7, %v8940_v35  ;;  %v3290_v44 = vmul.f32 %v8754_v7, %v8952_v32  ;;  %v3291_v24 = vmul.f32 %v8754_v7, %v11156_v60  ;;  %v3292_v59 = vmul.f32 %v8754_v7, %v11157_v47 }
 0x2a7   : > { %v3293_v43 = vmul.f32 %v8754_v7, %v8944_v3  ;;  %v3294_v63 = vmul.f32 %v8754_v7, %v8956_v16  ;;  %v3295_v41 = vadd.f32 %v3279_v20, %v3227_v61  ;;  %v3296_v49 = vadd.f32 %v3280_v12, %v3228_v39 }
 0x2a8   : > { %v3297_v21 = vadd.f32 %v3281_v57, %v3229_v19  ;;  %v3298_v51 = vadd.f32 %v3282_v42, %v3230_v8  ;;  %v3299_v25 = vadd.f32 %v3283_v22, %v3231_v55  ;;  %v3300_v62 = vadd.f32 %v3284_v48, %v3232_v54  ;;  %v11166_v57 = vld [vmem:[#allocation19_spill] sm:$0xff] }
 0x2a9   : > { %v3301_v1 = vadd.f32 %v3285_v36, %v3233_v26  ;;  %v3302_v29 = vadd.f32 %v3286_v46, %v3234_v11  ;;  %v3303_v6 = vadd.f32 %v3287_v37, %v3235_v4  ;;  %v3304_v45 = vadd.f32 %v3288_v15, %v3236_v40  ;;  %v11158_v26 = vld [vmem:[#allocation15_spill] sm:$0xff]  ;;  %v11168_v36 = vld [vmem:[#allocation116_spill] sm:$0xff] }
 0x2aa   : > { %v3305_v60 = vadd.f32 %v3289_v9, %v3237_v34  ;;  %v3306_v47 = vadd.f32 %v3290_v44, %v3238_v17  ;;  %v3307_v50 = vadd.f32 %v3291_v24, %v3239_v27  ;;  %v3308_v30 = vadd.f32 %v3292_v59, %v3240_v18  ;;  %v11159_v17 = vld [vmem:[#allocation16_spill] sm:$0xff]  ;;  %v11167_v22 = vld [vmem:[#allocation119_spill] sm:$0xff]  ;;  %v11170_v9 = vld [vmem:[#allocation42_spill] sm:$0xff] }
 0x2ab   : > { %v3309_v7 = vadd.f32 %v3293_v43, %v3241_v0  ;;  %v3310_v28 = vadd.f32 %v3294_v63, %v3242_v58  ;;  %v3314_v61 = vrot.slane %v8936_v53, 1  ;;  %v3316_v39 = vrot.slane %v8940_v35, 1  ;;  %v11169_v37 = vld [vmem:[#allocation115_spill] sm:$0xff]  ;;  %v11171_v43 = vld [vmem:[#allocation17_spill] sm:$0xff] }
 0x2ac   : > { %v3318_v19 = vrot.slane %v8944_v3, 1  ;;  %v3322_v8 = vrot.slane %v8948_v10, 1  ;;  %v3324_v55 = vrot.slane %v8952_v32, 1  ;;  %v3326_v54 = vrot.slane %v8956_v16, 1 }
 0x2ad   : > { %v3346_v27 = vrot.slane %v8646_v31, %v11158_v26  ;;  %v8998_v11 = vrot.slane %v8646_v31, %v11159_v17  ;;  %v9002_v58 = vrot.slane %v8983_v52, %v11064_v13 }
 0x2ae   : > { %v9007_v4 = vsel %vm331_vm0, %v3314_v61, %v3322_v8  ;;  %v9011_v40 = vsel %vm331_vm0, %v3316_v39, %v3324_v55  ;;  %v9015_v34 = vsel %vm331_vm0, %v3318_v19, %v3326_v54  ;;  %v9019_v31 = vsel %vm331_vm0, %v3322_v8, %v3314_v61  ;;  %v11172_v61 = vld [vmem:[#allocation110_spill] sm:$0xff]  ;;  %v11173_v8 = vld [vmem:[#allocation109_spill] sm:$0xff] }
 0x2af   : > { %11160 = vst [vmem:[#allocation57_spill] sm:$0xff] %v9007_v4  ;;  %11161 = vst [vmem:[#allocation60_spill] sm:$0xff] %v9011_v40  ;;  %v9023_v18 = vsel %vm331_vm0, %v3324_v55, %v3316_v39  ;;  %v9027_v20 = vsel %vm331_vm0, %v3326_v54, %v3318_v19  ;;  %v3347_v12 = vmul.f32 %v3346_v27, %v8499_v33  ;;  %v11174_v54 = vld [vmem:[#allocation32_spill] sm:$0xff]  ;;  %v3382_v56 = vrot.slane %v9007_v4, 1 }
 0x2b0   : > { %11162 = vst [vmem:[#allocation68_spill] sm:$0xff] %v9015_v34  ;;  %11163 = vst [vmem:[#allocation64_spill] sm:$0xff] %v9019_v31  ;;  %v3348_v42 = vmul.f32 %v3346_v27, %v11166_v57  ;;  %v3349_v48 = vmul.f32 %v3346_v27, %v11167_v22  ;;  %v3350_v46 = vmul.f32 %v3346_v27, %v11168_v36 }
 0x2b1   : > { %11164 = vst [vmem:[#allocation71_spill] sm:$0xff] %v9023_v18  ;;  %11165 = vst [vmem:[#allocation67_spill] sm:$0xff] %v9027_v20  ;;  %v3351_v15 = vmul.f32 %v3346_v27, %v11169_v37  ;;  %v3352_v44 = vmul.f32 %v3346_v27, %v11170_v9  ;;  %v3353_v24 = vmul.f32 %v3346_v27, %v9007_v4 }
 0x2b2   : > { %v3354_v59 = vmul.f32 %v3346_v27, %v9019_v31  ;;  %v3355_v63 = vmul.f32 %v3346_v27, %v11171_v43  ;;  %v3356_v39 = vmul.f32 %v3346_v27, %v11172_v61  ;;  %v3357_v33 = vmul.f32 %v3346_v27, %v9011_v40 }
 0x2b3   : > { %v3358_v19 = vmul.f32 %v3346_v27, %v9023_v18  ;;  %v3359_v55 = vmul.f32 %v3346_v27, %v11173_v8  ;;  %v3360_v57 = vmul.f32 %v3346_v27, %v11174_v54  ;;  %v3361_v22 = vmul.f32 %v3346_v27, %v9015_v34 }
 0x2b4   : > { %v3362_v36 = vmul.f32 %v3346_v27, %v9027_v20  ;;  %v3363_v37 = vadd.f32 %v3347_v12, %v3295_v41  ;;  %v3364_v9 = vadd.f32 %v3348_v42, %v3296_v49  ;;  %v3365_v0 = vadd.f32 %v3349_v48, %v3297_v21  ;;  %v11185_v48 = vld [vmem:[#allocation111_spill] sm:$0xff] }
 0x2b5   : > { %v3366_v13 = vadd.f32 %v3350_v46, %v3298_v51  ;;  %v3367_v17 = vadd.f32 %v3351_v15, %v3299_v25  ;;  %v3368_v43 = vadd.f32 %v3352_v44, %v3300_v62  ;;  %v3369_v26 = vadd.f32 %v3353_v24, %v3301_v1  ;;  %v11175_v25 = vld [vmem:[#allocation112_spill] sm:$0xff]  ;;  %v11186_v15 = vld [vmem:[#allocation22_spill] sm:$0xff] }
 0x2b6   : > { %v3370_v61 = vadd.f32 %v3354_v59, %v3302_v29  ;;  %v3371_v16 = vadd.f32 %v3355_v63, %v3303_v6  ;;  %v3372_v3 = vadd.f32 %v3356_v39, %v3304_v45  ;;  %v3373_v32 = vadd.f32 %v3357_v33, %v3305_v60  ;;  %v11176_v1 = vld [vmem:[#allocation8_spill] sm:$0xff]  ;;  %v11178_v29 = vld [vmem:[#allocation21_spill] sm:$0xff]  ;;  %v11187_v59 = vld [vmem:[#allocation118_spill] sm:$0xff] }
 0x2b7   : > { %v3374_v35 = vadd.f32 %v3358_v19, %v3306_v47  ;;  %v3375_v10 = vadd.f32 %v3359_v55, %v3307_v50  ;;  %v3376_v8 = vadd.f32 %v3360_v57, %v3308_v30  ;;  %v3377_v53 = vadd.f32 %v3361_v22, %v3309_v7  ;;  %v11177_v50 = vld [vmem:[#allocation117_spill] sm:$0xff]  ;;  %v11188_v39 = vld [vmem:[#allocation23_spill] sm:$0xff]  ;;  %v11189_v57 = vld [vmem:[#allocation20_spill] sm:$0xff] }
 0x2b8   : > { %v3378_v54 = vadd.f32 %v3362_v36, %v3310_v28  ;;  %v3384_v27 = vrot.slane %v9011_v40, 1  ;;  %v3386_v41 = vrot.slane %v9015_v34, 1  ;;  %v3390_v49 = vrot.slane %v9019_v31, 1  ;;  %v11190_v36 = vld [vmem:[#allocation25_spill] sm:$0xff] }
 0x2b9   : > { %v3392_v21 = vrot.slane %v9023_v18, 1  ;;  %v3394_v51 = vrot.slane %v9027_v20, 1  ;;  %v3415_v62 = vmul.f32 %v8998_v11, %v11175_v25  ;;  %v3416_v30 = vmul.f32 %v8998_v11, %v11176_v1 }
 0x2ba   : > { %v3417_v28 = vmul.f32 %v8998_v11, %v11177_v50  ;;  %v3418_v6 = vmul.f32 %v8998_v11, %v11178_v29  ;;  %v9061_v45 = vsel %vm331_vm0, %v3382_v56, %v3390_v49  ;;  %v9073_v7 = vsel %vm331_vm0, %v3390_v49, %v3382_v56 }
 0x2bb   : > { %11179 = vst [vmem:[#allocation62_spill] sm:$0xff] %v9061_v45  ;;  %v9065_v60 = vsel %vm331_vm0, %v3384_v27, %v3392_v21  ;;  %v9069_v47 = vsel %vm331_vm0, %v3386_v41, %v3394_v51  ;;  %11182 = vst [vmem:[#allocation61_spill] sm:$0xff] %v9073_v7  ;;  %v9077_v12 = vsel %vm331_vm0, %v3392_v21, %v3384_v27 }
 0x2bc   : > { %11180 = vst [vmem:[#allocation58_spill] sm:$0xff] %v9065_v60  ;;  %11181 = vst [vmem:[#allocation78_spill] sm:$0xff] %v9069_v47  ;;  %v9081_v42 = vsel %vm331_vm0, %v3394_v51, %v3386_v41  ;;  %v3419_v46 = vmul.f32 %v8998_v11, %v11185_v48  ;;  %v3420_v44 = vmul.f32 %v8998_v11, %v11186_v15 }
 0x2bd   : > { %11183 = vst [vmem:[#allocation69_spill] sm:$0xff] %v9077_v12  ;;  %11184 = vst [vmem:[#allocation76_spill] sm:$0xff] %v9081_v42  ;;  %v3421_v24 = vmul.f32 %v8998_v11, %v9061_v45  ;;  %v3422_v56 = vmul.f32 %v8998_v11, %v9073_v7  ;;  %v3423_v63 = vmul.f32 %v8998_v11, %v11187_v59 }
 0x2be   : > { %v3424_v33 = vmul.f32 %v8998_v11, %v11188_v39  ;;  %v3425_v19 = vmul.f32 %v8998_v11, %v9065_v60  ;;  %v3426_v55 = vmul.f32 %v8998_v11, %v9077_v12  ;;  %v3427_v22 = vmul.f32 %v8998_v11, %v11189_v57 }
 0x2bf   : > { %v3428_v27 = vmul.f32 %v8998_v11, %v11190_v36  ;;  %v3429_v41 = vmul.f32 %v8998_v11, %v9069_v47  ;;  %v3430_v49 = vmul.f32 %v8998_v11, %v9081_v42  ;;  %v3431_v21 = vadd.f32 %v3415_v62, %v3363_v37  ;;  %v4805_v37 = vld [vmem:[%s5271_s21 + $0x68] sm:$0xff] }
 0x2c0   : > { %v3432_v51 = vadd.f32 %v3416_v30, %v3364_v9  ;;  %v3433_v25 = vadd.f32 %v3417_v28, %v3365_v0  ;;  %v3434_v1 = vadd.f32 %v3418_v6, %v3366_v13  ;;  %v3435_v50 = vadd.f32 %v3419_v46, %v3367_v17  ;;  %v9109_v0 = vld [vmem:[%s5271_s21 + $0x70] sm:$0xff]  ;;  %v9112_v13 = vld [vmem:[%s5271_s21 + $0x78] sm:$0xff] }
 0x2c1   : > { %v3436_v29 = vadd.f32 %v3420_v44, %v3368_v43  ;;  %v3437_v48 = vadd.f32 %v3421_v24, %v3369_v26  ;;  %v3438_v15 = vadd.f32 %v3422_v56, %v3370_v61  ;;  %v3439_v59 = vadd.f32 %v3423_v63, %v3371_v16  ;;  %11191 = vst [vmem:[#allocation80_spill] sm:$0xff] %v9109_v0  ;;  %v11195_v16 = vld [vmem:[#allocation26_spill] sm:$0xff]  ;;  %v11196_v43 = vld [vmem:[#allocation29_spill] sm:$0xff]  ;;  %v11199_v6 = vld [vmem:[#allocation27_spill] sm:$0xff] }
 0x2c2   : > { %v3440_v39 = vadd.f32 %v3424_v33, %v3372_v3  ;;  %v3441_v57 = vadd.f32 %v3425_v19, %v3373_v32  ;;  %v3442_v36 = vadd.f32 %v3426_v55, %v3374_v35  ;;  %v3443_v47 = vadd.f32 %v3427_v22, %v3375_v10  ;;  %11192 = vst [vmem:[#allocation79_spill] sm:$0xff] %v9112_v13  ;;  %v9118_v32 = vld [vmem:[%s5271_s21 + $0x90] sm:$0xff]  ;;  %v9121_v35 = vld [vmem:[%s5271_s21 + $0x98] sm:$0xff]  ;;  %v11200_v44 = vld [vmem:[#allocation72_spill] sm:$0xff] }
 0x2c3   : > { %v3444_v11 = vadd.f32 %v3428_v27, %v3376_v8  ;;  %v3445_v9 = vadd.f32 %v3429_v41, %v3377_v53  ;;  %v3446_v62 = vadd.f32 %v3430_v49, %v3378_v54  ;;  %v3470_v26 = vmul.f32 %v8986_v2, %v9002_v58  ;;  %11193 = vst [vmem:[#allocation74_spill] sm:$0xff] %v9118_v32  ;;  %v9132_v8 = vld [vmem:[%s5271_s21 + $0xb0] sm:$0xff]  ;;  %v9135_v54 = vld [vmem:[%s5271_s21 + $0xb8] sm:$0xff]  ;;  %v11203_v55 = vld [vmem:[#allocation28_spill] sm:$0xff] }
 0x2c4   : > { %v3471_v3 = vmul.f32 %v4805_v37, %v9002_v58  ;;  %11194 = vst [vmem:[#allocation70_spill] sm:$0xff] %v9121_v35  ;;  %v3472_v10 = vmul.f32 %v9109_v0, %v9002_v58  ;;  %v3473_v53 = vmul.f32 %v9112_v13, %v9002_v58  ;;  %v3474_v17 = vmul.f32 %v11195_v16, %v9002_v58  ;;  %v9146_v56 = vld [vmem:[%s5271_s21 + $0xd0] sm:$0xff]  ;;  %v9149_v63 = vld [vmem:[%s5271_s21 + $0xd8] sm:$0xff] }
 0x2c5   : > { %v3475_v61 = vmul.f32 %v11196_v43, %v9002_v58  ;;  %11197 = vst [vmem:[#allocation90_spill] sm:$0xff] %v9132_v8  ;;  %11198 = vst [vmem:[#allocation73_spill] sm:$0xff] %v9135_v54  ;;  %v3476_v30 = vmul.f32 %v9118_v32, %v9002_v58  ;;  %v3477_v28 = vmul.f32 %v9121_v35, %v9002_v58  ;;  %v11204_v27 = vld [vmem:[#allocation30_spill] sm:$0xff]  ;;  %v3503_v23 = vrot.slane %v9109_v0, 1 }
 0x2c6   : > { %v3478_v46 = vmul.f32 %v11199_v6, %v9002_v58  ;;  %v3479_v24 = vmul.f32 %v11200_v44, %v9002_v58  ;;  %11201 = vst [vmem:[#allocation81_spill] sm:$0xff] %v9146_v56  ;;  %11202 = vst [vmem:[#allocation77_spill] sm:$0xff] %v9149_v63  ;;  %v3480_v33 = vmul.f32 %v9132_v8, %v9002_v58 }
 0x2c7   : > { %v3481_v19 = vmul.f32 %v9135_v54, %v9002_v58  ;;  %v3482_v22 = vmul.f32 %v11203_v55, %v9002_v58  ;;  %v3483_v41 = vmul.f32 %v11204_v27, %v9002_v58  ;;  %v3484_v49 = vmul.f32 %v9146_v56, %v9002_v58 }
 0x2c8   : > { %v3485_v16 = vmul.f32 %v9149_v63, %v9002_v58  ;;  %v3486_v43 = vadd.f32 %v3470_v26, %v3431_v21  ;;  %v3487_v6 = vadd.f32 %v3471_v3, %v3432_v51  ;;  %v3488_v44 = vadd.f32 %v3472_v10, %v3433_v25 }
 0x2c9   : > { %v3489_v42 = vadd.f32 %v3473_v53, %v3434_v1  ;;  %v3490_v12 = vadd.f32 %v3474_v17, %v3435_v50  ;;  %v3491_v60 = vadd.f32 %v3475_v61, %v3436_v29  ;;  %v3492_v7 = vadd.f32 %v3476_v30, %v3437_v48  ;;  %v11205_v48 = vld [vmem:[#allocation10_spill] sm:$0xff]  ;;  %v11216_v30 = vld [vmem:[#allocation37_spill] sm:$0xff] }
 0x2ca   : > { %v3493_v45 = vadd.f32 %v3477_v28, %v3438_v15  ;;  %v3494_v20 = vadd.f32 %v3478_v46, %v3439_v59  ;;  %v3495_v34 = vadd.f32 %v3479_v24, %v3440_v39  ;;  %v3496_v55 = vadd.f32 %v3480_v33, %v3441_v57  ;;  %v11217_v46 = vld [vmem:[#allocation45_spill] sm:$0xff] }
 0x2cb   : > { %v3497_v18 = vadd.f32 %v3481_v19, %v3442_v36  ;;  %v3498_v40 = vadd.f32 %v3482_v22, %v3443_v47  ;;  %v3499_v27 = vadd.f32 %v3483_v41, %v3444_v11  ;;  %v3500_v31 = vadd.f32 %v3484_v49, %v3445_v9  ;;  %v11218_v22 = vld [vmem:[#allocation18_spill] sm:$0xff] }
 0x2cc   : > { %v3501_v4 = vadd.f32 %v3485_v16, %v3446_v62  ;;  %v3505_v58 = vrot.slane %v9118_v32, 1  ;;  %v3507_v21 = vrot.slane %v9132_v8, 1  ;;  %v3509_v51 = vrot.slane %v9146_v56, 1  ;;  %v11219_v49 = vld [vmem:[#allocation38_spill] sm:$0xff] }
 0x2cd   : > { %v3510_v25 = vrot.slane %v4805_v37, 1  ;;  %v3511_v1 = vrot.slane %v9112_v13, 1  ;;  %v3513_v50 = vrot.slane %v9121_v35, 1  ;;  %v3515_v29 = vrot.slane %v9135_v54, 1 }
 0x2ce   : > { %v3517_v47 = vrot.slane %v9149_v63, 1  ;;  %v3537_v15 = vrot.slane %v8983_v52, %v11205_v48  ;;  %v11206_v59 = vrot.slane %v8986_v2, 1 }
 0x2cf   : > { %v9179_v57 = vsel %vm331_vm0, %v3503_v23, %v3511_v1  ;;  %v9187_v37 = vsel %vm331_vm0, %v3511_v1, %v3503_v23  ;;  %v9191_v9 = vsel %vm331_vm0, %v3505_v58, %v3513_v50  ;;  %v9195_v62 = vsel %vm331_vm0, %v3507_v21, %v3515_v29  ;;  %v11221_v1 = vld [vmem:[#allocation33_spill] sm:$0xff] }
 0x2d0   : > { %v3518_v39 = vsel %vm331_vm0, %v11206_v59, %v3510_v25  ;;  %11207 = vst [vmem:[#allocation84_spill] sm:$0xff] %v9179_v57  ;;  %v11208_v36 = vmov %v11206_v59  ;;  %11209 = vst [vmem:[#allocation75_spill] sm:$0xff] %v9187_v37  ;;  %v9199_v26 = vsel %vm331_vm0, %v3509_v51, %v3517_v47  ;;  %v9203_v2 = vsel %vm331_vm0, %v3513_v50, %v3505_v58 }
 0x2d1   : > { %v3526_v11 = vsel %vm331_vm0, %v3510_v25, %v11208_v36  ;;  %11210 = vst [vmem:[#allocation91_spill] sm:$0xff] %v9191_v9  ;;  %11211 = vst [vmem:[#allocation82_spill] sm:$0xff] %v9195_v62  ;;  %v9207_v23 = vsel %vm331_vm0, %v3515_v29, %v3507_v21  ;;  %v9211_v3 = vsel %vm331_vm0, %v3517_v47, %v3509_v51  ;;  %v11220_v51 = vld [vmem:[#allocation31_spill] sm:$0xff]  ;;  %v3570_v0 = vrot.slane %v3518_v39, 1 }
 0x2d2   : > { %11212 = vst [vmem:[#allocation83_spill] sm:$0xff] %v9199_v26  ;;  %11213 = vst [vmem:[#allocation85_spill] sm:$0xff] %v9203_v2  ;;  %v3538_v10 = vmul.f32 %v3537_v15, %v3518_v39  ;;  %v3539_v53 = vmul.f32 %v3537_v15, %v3526_v11  ;;  %v3540_v17 = vmul.f32 %v3537_v15, %v9179_v57  ;;  %v3571_v38 = vrot.slane %v9179_v57, 1 }
 0x2d3   : > { %11214 = vst [vmem:[#allocation86_spill] sm:$0xff] %v9207_v23  ;;  %11215 = vst [vmem:[#allocation89_spill] sm:$0xff] %v9211_v3  ;;  %v3541_v61 = vmul.f32 %v3537_v15, %v9187_v37  ;;  %v3542_v28 = vmul.f32 %v3537_v15, %v11216_v30  ;;  %v3543_v24 = vmul.f32 %v3537_v15, %v11217_v46 }
 0x2d4   : > { %v3544_v33 = vmul.f32 %v3537_v15, %v9191_v9  ;;  %v3545_v19 = vmul.f32 %v3537_v15, %v9203_v2  ;;  %v3546_v41 = vmul.f32 %v3537_v15, %v11218_v22  ;;  %v3547_v16 = vmul.f32 %v3537_v15, %v11219_v49 }
 0x2d5   : > { %v3548_v58 = vmul.f32 %v3537_v15, %v9195_v62  ;;  %v3549_v21 = vmul.f32 %v3537_v15, %v9207_v23  ;;  %v3550_v25 = vmul.f32 %v3537_v15, %v11220_v51  ;;  %v3551_v50 = vmul.f32 %v3537_v15, %v11221_v1 }
 0x2d6   : > { %v3552_v29 = vmul.f32 %v3537_v15, %v9199_v26  ;;  %v3553_v47 = vmul.f32 %v3537_v15, %v9211_v3  ;;  %v3554_v59 = vadd.f32 %v3538_v10, %v3486_v43  ;;  %v3555_v36 = vadd.f32 %v3539_v53, %v3487_v6 }
 0x2d7   : > { %v3556_v30 = vadd.f32 %v3540_v17, %v3488_v44  ;;  %v3557_v46 = vadd.f32 %v3541_v61, %v3489_v42  ;;  %v3558_v48 = vadd.f32 %v3542_v28, %v3490_v12  ;;  %v3559_v22 = vadd.f32 %v3543_v24, %v3491_v60  ;;  %v11223_v42 = vld [vmem:[#allocation12_spill] sm:$0xff] }
 0x2d8   : > { %v3560_v63 = vadd.f32 %v3544_v33, %v3492_v7  ;;  %v3561_v49 = vadd.f32 %v3545_v19, %v3493_v45  ;;  %v3562_v56 = vadd.f32 %v3546_v41, %v3494_v20  ;;  %v3563_v54 = vadd.f32 %v3547_v16, %v3495_v34  ;;  %v11222_v20 = vld [vmem:[#allocation11_spill] sm:$0xff]  ;;  %v11232_v33 = vld [vmem:[#allocation34_spill] sm:$0xff] }
 0x2d9   : > { %v3564_v8 = vadd.f32 %v3548_v58, %v3496_v55  ;;  %v3565_v35 = vadd.f32 %v3549_v21, %v3497_v18  ;;  %v3566_v32 = vadd.f32 %v3550_v25, %v3498_v40  ;;  %v3567_v51 = vadd.f32 %v3551_v50, %v3499_v27  ;;  %v11233_v58 = vld [vmem:[#allocation39_spill] sm:$0xff] }
 0x2da   : > { %v3568_v13 = vadd.f32 %v3552_v29, %v3500_v31  ;;  %v3569_v1 = vadd.f32 %v3553_v47, %v3501_v4  ;;  %v3573_v43 = vrot.slane %v9191_v9, 1  ;;  %v3575_v6 = vrot.slane %v9195_v62, 1  ;;  %v11234_v25 = vld [vmem:[#allocation35_spill] sm:$0xff] }
 0x2db   : > { %v3577_v12 = vrot.slane %v9199_v26, 1  ;;  %v3578_v60 = vrot.slane %v3526_v11, 1  ;;  %v3579_v45 = vrot.slane %v9187_v37, 1  ;;  %v3581_v34 = vrot.slane %v9203_v2, 1 }
 0x2dc   : > { %v3583_v18 = vrot.slane %v9207_v23, 1  ;;  %v3585_v40 = vrot.slane %v9211_v3, 1  ;;  %v3605_v7 = vrot.slane %v8983_v52, %v11222_v20  ;;  %v9243_v44 = vrot.slane %v8983_v52, %v11223_v42 }
 0x2dd   : > { %v3586_v4 = vsel %vm331_vm0, %v3570_v0, %v3578_v60  ;;  %v3594_v31 = vsel %vm331_vm0, %v3578_v60, %v3570_v0  ;;  %v9247_v55 = vsel %vm331_vm0, %v3571_v38, %v3579_v45  ;;  %v9251_v27 = vsel %vm331_vm0, %v3573_v43, %v3581_v34 }
 0x2de   : > { %11224 = vst [vmem:[#allocation95_spill] sm:$0xff] %v9247_v55  ;;  %11225 = vst [vmem:[#allocation92_spill] sm:$0xff] %v9251_v27  ;;  %v9255_v15 = vsel %vm331_vm0, %v3575_v6, %v3583_v18  ;;  %v9259_v0 = vsel %vm331_vm0, %v3577_v12, %v3585_v40  ;;  %v9263_v39 = vsel %vm331_vm0, %v3579_v45, %v3571_v38  ;;  %v3638_v37 = vrot.slane %v3586_v4, 1 }
 0x2df   : > { %11226 = vst [vmem:[#allocation93_spill] sm:$0xff] %v9255_v15  ;;  %11227 = vst [vmem:[#allocation96_spill] sm:$0xff] %v9259_v0  ;;  %v9267_v11 = vsel %vm331_vm0, %v3581_v34, %v3573_v43  ;;  %v9271_v10 = vsel %vm331_vm0, %v3583_v18, %v3575_v6  ;;  %v9275_v53 = vsel %vm331_vm0, %v3585_v40, %v3577_v12  ;;  %v11235_v43 = vld [vmem:[#allocation40_spill] sm:$0xff]  ;;  %v11236_v12 = vld [vmem:[#allocation41_spill] sm:$0xff]  ;;  %v3639_v57 = vrot.slane %v9247_v55, 1 }
 0x2e0   : > { %11228 = vst [vmem:[#allocation87_spill] sm:$0xff] %v9263_v39  ;;  %11229 = vst [vmem:[#allocation101_spill] sm:$0xff] %v9267_v11  ;;  %v3606_v17 = vmul.f32 %v3605_v7, %v3586_v4  ;;  %v3607_v61 = vmul.f32 %v3605_v7, %v3594_v31  ;;  %v3608_v28 = vmul.f32 %v3605_v7, %v9247_v55 }
 0x2e1   : > { %11230 = vst [vmem:[#allocation102_spill] sm:$0xff] %v9271_v10  ;;  %11231 = vst [vmem:[#allocation94_spill] sm:$0xff] %v9275_v53  ;;  %v3609_v24 = vmul.f32 %v3605_v7, %v9263_v39  ;;  %v3610_v38 = vmul.f32 %v3605_v7, %v8758_v5  ;;  %v3611_v19 = vmul.f32 %v3605_v7, %v11232_v33 }
 0x2e2   : > { %v3612_v41 = vmul.f32 %v3605_v7, %v9251_v27  ;;  %v3613_v16 = vmul.f32 %v3605_v7, %v9267_v11  ;;  %v3614_v21 = vmul.f32 %v3605_v7, %v11233_v58  ;;  %v3615_v50 = vmul.f32 %v3605_v7, %v11234_v25 }
 0x2e3   : > { %v3616_v29 = vmul.f32 %v3605_v7, %v9255_v15  ;;  %v3617_v47 = vmul.f32 %v3605_v7, %v9271_v10  ;;  %v3618_v6 = vmul.f32 %v3605_v7, %v11235_v43  ;;  %v3619_v60 = vmul.f32 %v3605_v7, %v11236_v12 }
 0x2e4   : > { %v3620_v5 = vmul.f32 %v3605_v7, %v9259_v0  ;;  %v3621_v45 = vmul.f32 %v3605_v7, %v9275_v53  ;;  %v3622_v34 = vadd.f32 %v3606_v17, %v3554_v59  ;;  %v3623_v18 = vadd.f32 %v3607_v61, %v3555_v36 }
 0x2e5   : > { %v3624_v40 = vadd.f32 %v3608_v28, %v3556_v30  ;;  %v3625_v33 = vadd.f32 %v3609_v24, %v3557_v46  ;;  %v3626_v42 = vadd.f32 %v3610_v38, %v3558_v48  ;;  %v3627_v58 = vadd.f32 %v3611_v19, %v3559_v22 }
 0x2e6   : > { %v3628_v20 = vadd.f32 %v3612_v41, %v3560_v63  ;;  %v3629_v25 = vadd.f32 %v3613_v16, %v3561_v49  ;;  %v3630_v3 = vadd.f32 %v3614_v21, %v3562_v56  ;;  %v3631_v26 = vadd.f32 %v3615_v50, %v3563_v54  ;;  %v11238_v56 = vld [vmem:[#allocation46_spill] sm:$0xff]  ;;  %v11247_v16 = vld [vmem:[#allocation43_spill] sm:$0xff]  ;;  %v11248_v50 = vld [vmem:[#allocation53_spill] sm:$0xff] }
 0x2e7   : > { %v3632_v23 = vadd.f32 %v3616_v29, %v3564_v8  ;;  %v3633_v62 = vadd.f32 %v3617_v47, %v3565_v35  ;;  %v3634_v2 = vadd.f32 %v3618_v6, %v3566_v32  ;;  %v3635_v43 = vadd.f32 %v3619_v60, %v3567_v51  ;;  %v11249_v60 = vld [vmem:[#allocation50_spill] sm:$0xff] }
 0x2e8   : > { %v3636_v9 = vadd.f32 %v3620_v5, %v3568_v13  ;;  %v3637_v12 = vadd.f32 %v3621_v45, %v3569_v1  ;;  %v3641_v59 = vrot.slane %v9251_v27, 1  ;;  %v3643_v36 = vrot.slane %v9255_v15, 1  ;;  %v11237_v13 = vld [vmem:[#allocation36_spill] sm:$0xff] }
 0x2e9   : > { %v3645_v48 = vrot.slane %v9259_v0, 1  ;;  %v3646_v30 = vrot.slane %v3594_v31, 1  ;;  %v3647_v63 = vrot.slane %v9263_v39, 1  ;;  %v3649_v54 = vrot.slane %v9267_v11, 1  ;;  %v11250_v45 = vld [vmem:[#allocation44_spill] sm:$0xff] }
 0x2ea   : > { %v3651_v35 = vrot.slane %v9271_v10, 1  ;;  %v3653_v32 = vrot.slane %v9275_v53, 1  ;;  %v3678_v8 = vmul.f32 %v9243_v44, %v11237_v13  ;;  %v3679_v46 = vmul.f32 %v9243_v44, %v11238_v56 }
 0x2eb   : > { %v3654_v22 = vsel %vm331_vm0, %v3638_v37, %v3646_v30  ;;  %v9307_v49 = vsel %vm331_vm0, %v3639_v57, %v3647_v63  ;;  %v9311_v51 = vsel %vm331_vm0, %v3641_v59, %v3649_v54  ;;  %v3662_v1 = vsel %vm331_vm0, %v3646_v30, %v3638_v37 }
 0x2ec   : > { %11239 = vst [vmem:[#allocation98_spill] sm:$0xff] %v9307_v49  ;;  %11240 = vst [vmem:[#allocation97_spill] sm:$0xff] %v9311_v51  ;;  %v9317_v4 = vsel %vm331_vm0, %v3643_v36, %v3651_v35  ;;  %v9321_v31 = vsel %vm331_vm0, %v3645_v48, %v3653_v32  ;;  %v9325_v7 = vsel %vm331_vm0, %v3647_v63, %v3639_v57  ;;  %v3706_v27 = vrot.slane %v3654_v22, 1 }
 0x2ed   : > { %11241 = vst [vmem:[#allocation103_spill] sm:$0xff] %v9317_v4  ;;  %11242 = vst [vmem:[#allocation88_spill] sm:$0xff] %v9321_v31  ;;  %v9329_v17 = vsel %vm331_vm0, %v3649_v54, %v3641_v59  ;;  %v9333_v61 = vsel %vm331_vm0, %v3651_v35, %v3643_v36  ;;  %v9337_v37 = vsel %vm331_vm0, %v3653_v32, %v3645_v48  ;;  %v3707_v39 = vrot.slane %v9307_v49, 1 }
 0x2ee   : > { %11243 = vst [vmem:[#allocation106_spill] sm:$0xff] %v9325_v7  ;;  %11244 = vst [vmem:[#allocation100_spill] sm:$0xff] %v9329_v17  ;;  %v3674_v28 = vmul.f32 %v9243_v44, %v3654_v22  ;;  %v3675_v24 = vmul.f32 %v9243_v44, %v3662_v1  ;;  %v3676_v57 = vmul.f32 %v9243_v44, %v9307_v49 }
 0x2ef   : > { %11245 = vst [vmem:[#allocation99_spill] sm:$0xff] %v9333_v61  ;;  %11246 = vst [vmem:[#allocation107_spill] sm:$0xff] %v9337_v37  ;;  %v3677_v38 = vmul.f32 %v9243_v44, %v9325_v7  ;;  %v3680_v19 = vmul.f32 %v9243_v44, %v9311_v51  ;;  %v3681_v41 = vmul.f32 %v9243_v44, %v9329_v17 }
 0x2f0   : > { %v3682_v21 = vmul.f32 %v9243_v44, %v11247_v16  ;;  %v3683_v29 = vmul.f32 %v9243_v44, %v11248_v50  ;;  %v3684_v47 = vmul.f32 %v9243_v44, %v9317_v4  ;;  %v3685_v6 = vmul.f32 %v9243_v44, %v9333_v61 }
 0x2f1   : > { %v3686_v5 = vmul.f32 %v9243_v44, %v11249_v60  ;;  %v3687_v59 = vmul.f32 %v9243_v44, %v11250_v45  ;;  %v3688_v36 = vmul.f32 %v9243_v44, %v9321_v31  ;;  %v3689_v48 = vmul.f32 %v9243_v44, %v9337_v37 }
 0x2f2   : > { %v3690_v30 = vadd.f32 %v3674_v28, %v3622_v34  ;;  %v3691_v63 = vadd.f32 %v3675_v24, %v3623_v18  ;;  %v3692_v54 = vadd.f32 %v3676_v57, %v3624_v40  ;;  %v3693_v35 = vadd.f32 %v3677_v38, %v3625_v33 }
 0x2f3   : > { %v3694_v32 = vadd.f32 %v3678_v8, %v3626_v42  ;;  %v3695_v13 = vadd.f32 %v3679_v46, %v3627_v58  ;;  %v3696_v56 = vadd.f32 %v3680_v19, %v3628_v20  ;;  %v3697_v16 = vadd.f32 %v3681_v41, %v3629_v25  ;;  %v11262_v41 = vld [vmem:[#allocation48_spill] sm:$0xff] }
 0x2f4   : > { %v3698_v50 = vadd.f32 %v3682_v21, %v3630_v3  ;;  %v3699_v53 = vadd.f32 %v3683_v29, %v3631_v26  ;;  %v3700_v60 = vadd.f32 %v3684_v47, %v3632_v23  ;;  %v3701_v0 = vadd.f32 %v3685_v6, %v3633_v62  ;;  %v11252_v3 = vld [vmem:[#allocation14_spill] sm:$0xff]  ;;  %v11263_v6 = vld [vmem:[#allocation47_spill] sm:$0xff] }
 0x2f5   : > { %v3702_v10 = vadd.f32 %v3686_v5, %v3634_v2  ;;  %v3703_v45 = vadd.f32 %v3687_v59, %v3635_v43  ;;  %v3704_v15 = vadd.f32 %v3688_v36, %v3636_v9  ;;  %v3705_v11 = vadd.f32 %v3689_v48, %v3637_v12  ;;  %v11251_v9 = vld [vmem:[#allocation13_spill] sm:$0xff]  ;;  %v11264_v59 = vld [vmem:[#allocation56_spill] sm:$0xff] }
 0x2f6   : > { %v3709_v44 = vrot.slane %v9311_v51, 1  ;;  %v3711_v34 = vrot.slane %v9317_v4, 1  ;;  %v3713_v42 = vrot.slane %v9321_v31, 1  ;;  %v3714_v18 = vrot.slane %v3662_v1, 1 }
 0x2f7   : > { %v3715_v20 = vrot.slane %v9325_v7, 1  ;;  %v3717_v26 = vrot.slane %v9329_v17, 1  ;;  %v3719_v62 = vrot.slane %v9333_v61, 1  ;;  %v3721_v2 = vrot.slane %v9337_v37, 1 }
 0x2f8   : > { %v3741_v23 = vrot.slane %v8983_v52, %v11251_v9  ;;  %v9377_v40 = vrot.slane %v8983_v52, %v11252_v3  ;;  %v3722_v33 = vsel %vm331_vm0, %v3706_v27, %v3714_v18  ;;  %v3730_v43 = vsel %vm331_vm0, %v3714_v18, %v3706_v27  ;;  %v11266_v18 = vld [vmem:[#allocation52_spill] sm:$0xff] }
 0x2f9   : > { %v9383_v58 = vsel %vm331_vm0, %v3707_v39, %v3715_v20  ;;  %v9387_v25 = vsel %vm331_vm0, %v3709_v44, %v3717_v26  ;;  %v9393_v12 = vsel %vm331_vm0, %v3711_v34, %v3719_v62  ;;  %v9397_v8 = vsel %vm331_vm0, %v3713_v42, %v3721_v2 }
 0x2fa   : > { %11253 = vst [vmem:[#allocation24_spill] sm:$0xff] %v9383_v58  ;;  %11254 = vst [vmem:[#allocation105_spill] sm:$0xff] %v9387_v25  ;;  %v9401_v46 = vsel %vm331_vm0, %v3715_v20, %v3707_v39  ;;  %v9405_v22 = vsel %vm331_vm0, %v3717_v26, %v3709_v44  ;;  %v9409_v1 = vsel %vm331_vm0, %v3719_v62, %v3711_v34  ;;  %v11261_v39 = vld [vmem:[#allocation51_spill] sm:$0xff]  ;;  %v11265_v34 = vld [vmem:[#allocation54_spill] sm:$0xff]  ;;  %v3774_v49 = vrot.slane %v3722_v33, 1 }
 0x2fb   : > { %11255 = vst [vmem:[#allocation104_spill] sm:$0xff] %v9393_v12  ;;  %11256 = vst [vmem:[#allocation114_spill] sm:$0xff] %v9397_v8  ;;  %v9413_v27 = vsel %vm331_vm0, %v3721_v2, %v3713_v42  ;;  %v3742_v28 = vmul.f32 %v3741_v23, %v3722_v33  ;;  %v3743_v24 = vmul.f32 %v3741_v23, %v3730_v43  ;;  %v3775_v55 = vrot.slane %v9383_v58, 1 }
 0x2fc   : > { %11257 = vst [vmem:[#allocation113_spill] sm:$0xff] %v9401_v46  ;;  %11258 = vst [vmem:[#allocation108_spill] sm:$0xff] %v9405_v22  ;;  %v3744_v57 = vmul.f32 %v3741_v23, %v9383_v58  ;;  %v3745_v38 = vmul.f32 %v3741_v23, %v9401_v46  ;;  %v3746_v19 = vmul.f32 %v3741_v23, %v11261_v39 }
 0x2fd   : > { %11259 = vst [vmem:[#allocation19_spill] sm:$0xff] %v9409_v1  ;;  %11260 = vst [vmem:[#allocation119_spill] sm:$0xff] %v9413_v27  ;;  %v3747_v21 = vmul.f32 %v3741_v23, %v11262_v41  ;;  %v3748_v29 = vmul.f32 %v3741_v23, %v9387_v25  ;;  %v3749_v47 = vmul.f32 %v3741_v23, %v9405_v22 }
 0x2fe   : > { %v3750_v5 = vmul.f32 %v3741_v23, %v11263_v6  ;;  %v3751_v36 = vmul.f32 %v3741_v23, %v11264_v59  ;;  %v3752_v48 = vmul.f32 %v3741_v23, %v9393_v12  ;;  %v3753_v44 = vmul.f32 %v3741_v23, %v9409_v1 }
 0x2ff   : > { %v3754_v42 = vmul.f32 %v3741_v23, %v11265_v34  ;;  %v3755_v20 = vmul.f32 %v3741_v23, %v11266_v18  ;;  %v3756_v26 = vmul.f32 %v3741_v23, %v9397_v8  ;;  %v3757_v62 = vmul.f32 %v3741_v23, %v9413_v27 }
 0x300   : > { %v3758_v2 = vadd.f32 %v3742_v28, %v3690_v30  ;;  %v3759_v39 = vadd.f32 %v3743_v24, %v3691_v63  ;;  %v3760_v41 = vadd.f32 %v3744_v57, %v3692_v54  ;;  %v3761_v3 = vadd.f32 %v3745_v38, %v3693_v35 }
 0x301   : > { %v3762_v9 = vadd.f32 %v3746_v19, %v3694_v32  ;;  %v3763_v6 = vadd.f32 %v3747_v21, %v3695_v13  ;;  %v3764_v37 = vadd.f32 %v3748_v29, %v3696_v56  ;;  %v3765_v59 = vadd.f32 %v3749_v47, %v3697_v16  ;;  %v11267_v13 = vld [vmem:[#allocation59_spill] sm:$0xff]  ;;  %v11268_v16 = vld [vmem:[#allocation49_spill] sm:$0xff] }
 0x302   : > { %v3766_v31 = vadd.f32 %v3750_v5, %v3698_v50  ;;  %v3767_v61 = vadd.f32 %v3751_v36, %v3699_v53  ;;  %v3768_v4 = vadd.f32 %v3752_v48, %v3700_v60  ;;  %v3769_v17 = vadd.f32 %v3753_v44, %v3701_v0  ;;  %v11277_v47 = vld [vmem:[#allocation55_spill] sm:$0xff]  ;;  %v11278_v36 = vld [vmem:[#allocation66_spill] sm:$0xff] }
 0x303   : > { %v3770_v51 = vadd.f32 %v3754_v42, %v3702_v10  ;;  %v3771_v34 = vadd.f32 %v3755_v20, %v3703_v45  ;;  %v3772_v7 = vadd.f32 %v3756_v26, %v3704_v15  ;;  %v3773_v18 = vadd.f32 %v3757_v62, %v3705_v11  ;;  %v11279_v20 = vld [vmem:[#allocation63_spill] sm:$0xff]  ;;  %v11280_v62 = vld [vmem:[#allocation65_spill] sm:$0xff] }
 0x304   : > { %v3777_v30 = vrot.slane %v9387_v25, 1  ;;  %v3779_v63 = vrot.slane %v9393_v12, 1  ;;  %v3781_v54 = vrot.slane %v9397_v8, 1  ;;  %v3782_v35 = vrot.slane %v3730_v43, 1 }
 0x305   : > { %v3783_v32 = vrot.slane %v9401_v46, 1  ;;  %v3785_v53 = vrot.slane %v9405_v22, 1  ;;  %v3787_v0 = vrot.slane %v9409_v1, 1  ;;  %v3789_v10 = vrot.slane %v9413_v27, 1 }
 0x306   : > { %v3790_v15 = vsel %vm331_vm0, %v3774_v49, %v3782_v35  ;;  %v3798_v11 = vsel %vm331_vm0, %v3782_v35, %v3774_v49  ;;  %v3814_v56 = vmul.f32 %v9377_v40, %v11267_v13  ;;  %v3815_v50 = vmul.f32 %v9377_v40, %v11268_v16 }
 0x307   : > { %v9447_v60 = vsel %vm331_vm0, %v3775_v55, %v3783_v32  ;;  %v9451_v45 = vsel %vm331_vm0, %v3777_v30, %v3785_v53  ;;  %v9455_v23 = vsel %vm331_vm0, %v3779_v63, %v3787_v0  ;;  %v9459_v49 = vsel %vm331_vm0, %v3781_v54, %v3789_v10 }
 0x308   : > { %11269 = vst [vmem:[#allocation116_spill] sm:$0xff] %v9447_v60  ;;  %11270 = vst [vmem:[#allocation115_spill] sm:$0xff] %v9451_v45  ;;  %v9463_v33 = vsel %vm331_vm0, %v3783_v32, %v3775_v55  ;;  %v9467_v43 = vsel %vm331_vm0, %v3785_v53, %v3777_v30  ;;  %v9471_v28 = vsel %vm331_vm0, %v3787_v0, %v3779_v63  ;;  %v3842_v25 = vrot.slane %v3790_v15, 1 }
 0x309   : > { %11271 = vst [vmem:[#allocation42_spill] sm:$0xff] %v9455_v23  ;;  %11272 = vst [vmem:[#allocation17_spill] sm:$0xff] %v9459_v49  ;;  %v9475_v24 = vsel %vm331_vm0, %v3789_v10, %v3781_v54  ;;  %v3810_v57 = vmul.f32 %v9377_v40, %v3790_v15  ;;  %v3811_v38 = vmul.f32 %v9377_v40, %v3798_v11  ;;  %v3843_v46 = vrot.slane %v9447_v60, 1 }
 0x30a   : > { %11273 = vst [vmem:[#allocation110_spill] sm:$0xff] %v9463_v33  ;;  %11274 = vst [vmem:[#allocation109_spill] sm:$0xff] %v9467_v43  ;;  %v3812_v55 = vmul.f32 %v9377_v40, %v9447_v60  ;;  %v3813_v19 = vmul.f32 %v9377_v40, %v9463_v33  ;;  %v3816_v21 = vmul.f32 %v9377_v40, %v9451_v45 }
 0x30b   : > { %11275 = vst [vmem:[#allocation32_spill] sm:$0xff] %v9471_v28  ;;  %11276 = vst [vmem:[#allocation112_spill] sm:$0xff] %v9475_v24  ;;  %v3817_v29 = vmul.f32 %v9377_v40, %v9467_v43  ;;  %v3818_v5 = vmul.f32 %v9377_v40, %v11277_v47  ;;  %v3819_v48 = vmul.f32 %v9377_v40, %v11278_v36 }
 0x30c   : > { %v3820_v44 = vmul.f32 %v9377_v40, %v9455_v23  ;;  %v3821_v42 = vmul.f32 %v9377_v40, %v9471_v28  ;;  %v3822_v26 = vmul.f32 %v9377_v40, %v11279_v20  ;;  %v3823_v30 = vmul.f32 %v9377_v40, %v11280_v62 }
 0x30d   : > { %v3824_v63 = vmul.f32 %v9377_v40, %v9459_v49  ;;  %v3825_v54 = vmul.f32 %v9377_v40, %v9475_v24  ;;  %v3826_v35 = vadd.f32 %v3810_v57, %v3758_v2  ;;  %v3827_v32 = vadd.f32 %v3811_v38, %v3759_v39 }
 0x30e   : > { %v3828_v53 = vadd.f32 %v3812_v55, %v3760_v41  ;;  %v3829_v0 = vadd.f32 %v3813_v19, %v3761_v3  ;;  %v3830_v10 = vadd.f32 %v3814_v56, %v3762_v9  ;;  %v3831_v13 = vadd.f32 %v3815_v50, %v3763_v6  ;;  %v11282_v41 = vld [vmem:[#allocation16_spill] sm:$0xff] }
 0x30f   : > { %v3832_v16 = vadd.f32 %v3816_v21, %v3764_v37  ;;  %v3833_v47 = vadd.f32 %v3817_v29, %v3765_v59  ;;  %v3834_v36 = vadd.f32 %v3818_v5, %v3766_v31  ;;  %v3835_v27 = vadd.f32 %v3819_v48, %v3767_v61  ;;  %v11281_v61 = vld [vmem:[#allocation15_spill] sm:$0xff]  ;;  %v11292_v21 = vld [vmem:[#allocation64_spill] sm:$0xff] }
 0x310   : > { %v3836_v20 = vadd.f32 %v3820_v44, %v3768_v4  ;;  %v3837_v8 = vadd.f32 %v3821_v42, %v3769_v17  ;;  %v3838_v1 = vadd.f32 %v3822_v26, %v3770_v51  ;;  %v3839_v62 = vadd.f32 %v3823_v30, %v3771_v34  ;;  %v11293_v44 = vld [vmem:[#allocation60_spill] sm:$0xff]  ;;  %v11294_v26 = vld [vmem:[#allocation71_spill] sm:$0xff] }
 0x311   : > { %v3840_v12 = vadd.f32 %v3824_v63, %v3772_v7  ;;  %v3841_v22 = vadd.f32 %v3825_v54, %v3773_v18  ;;  %v3845_v40 = vrot.slane %v9451_v45, 1  ;;  %v3847_v2 = vrot.slane %v9455_v23, 1 }
 0x312   : > { %v3849_v9 = vrot.slane %v9459_v49, 1  ;;  %v3850_v3 = vrot.slane %v3798_v11, 1  ;;  %v3851_v37 = vrot.slane %v9463_v33, 1  ;;  %v3853_v31 = vrot.slane %v9467_v43, 1 }
 0x313   : > { %v3855_v4 = vrot.slane %v9471_v28, 1  ;;  %v3857_v51 = vrot.slane %v9475_v24, 1  ;;  %v3877_v39 = vrot.slane %v8983_v52, %v11281_v61  ;;  %v9519_v6 = vrot.slane %v8983_v52, %v11282_v41 }
 0x314   : > { %v3858_v7 = vsel %vm331_vm0, %v3842_v25, %v3850_v3  ;;  %v3866_v17 = vsel %vm331_vm0, %v3850_v3, %v3842_v25  ;;  %v9523_v59 = vsel %vm331_vm0, %v3843_v46, %v3851_v37  ;;  %v9527_v34 = vsel %vm331_vm0, %v3845_v40, %v3853_v31 }
 0x315   : > { %11283 = vst [vmem:[#allocation8_spill] sm:$0xff] %v9523_v59  ;;  %11284 = vst [vmem:[#allocation117_spill] sm:$0xff] %v9527_v34  ;;  %v9531_v18 = vsel %vm331_vm0, %v3847_v2, %v3855_v4  ;;  %v9535_v25 = vsel %vm331_vm0, %v3849_v9, %v3857_v51  ;;  %v9539_v52 = vsel %vm331_vm0, %v3851_v37, %v3843_v46  ;;  %v11291_v46 = vld [vmem:[#allocation57_spill] sm:$0xff]  ;;  %v3910_v58 = vrot.slane %v3858_v7, 1 }
 0x316   : > { %11285 = vst [vmem:[#allocation21_spill] sm:$0xff] %v9531_v18  ;;  %11286 = vst [vmem:[#allocation111_spill] sm:$0xff] %v9535_v25  ;;  %v9543_v15 = vsel %vm331_vm0, %v3853_v31, %v3845_v40  ;;  %v9547_v11 = vsel %vm331_vm0, %v3855_v4, %v3847_v2  ;;  %v9551_v56 = vsel %vm331_vm0, %v3857_v51, %v3849_v9  ;;  %v11295_v40 = vld [vmem:[#allocation68_spill] sm:$0xff]  ;;  %v11296_v9 = vld [vmem:[#allocation67_spill] sm:$0xff]  ;;  %v3911_v41 = vrot.slane %v9523_v59, 1 }
 0x317   : > { %11287 = vst [vmem:[#allocation22_spill] sm:$0xff] %v9539_v52  ;;  %11288 = vst [vmem:[#allocation118_spill] sm:$0xff] %v9543_v15  ;;  %v3878_v50 = vmul.f32 %v3877_v39, %v3858_v7  ;;  %v3879_v57 = vmul.f32 %v3877_v39, %v3866_v17  ;;  %v3880_v38 = vmul.f32 %v3877_v39, %v9523_v59 }
 0x318   : > { %11289 = vst [vmem:[#allocation23_spill] sm:$0xff] %v9547_v11  ;;  %11290 = vst [vmem:[#allocation20_spill] sm:$0xff] %v9551_v56  ;;  %v3881_v55 = vmul.f32 %v3877_v39, %v9539_v52  ;;  %v3882_v19 = vmul.f32 %v3877_v39, %v11291_v46  ;;  %v3883_v29 = vmul.f32 %v3877_v39, %v11292_v21 }
 0x319   : > { %v3884_v5 = vmul.f32 %v3877_v39, %v9527_v34  ;;  %v3885_v48 = vmul.f32 %v3877_v39, %v9543_v15  ;;  %v3886_v42 = vmul.f32 %v3877_v39, %v11293_v44  ;;  %v3887_v30 = vmul.f32 %v3877_v39, %v11294_v26 }
 0x31a   : > { %v3888_v63 = vmul.f32 %v3877_v39, %v9531_v18  ;;  %v3889_v54 = vmul.f32 %v3877_v39, %v9547_v11  ;;  %v3890_v2 = vmul.f32 %v3877_v39, %v11295_v40  ;;  %v3891_v3 = vmul.f32 %v3877_v39, %v11296_v9 }
 0x31b   : > { %v3892_v37 = vmul.f32 %v3877_v39, %v9535_v25  ;;  %v3893_v31 = vmul.f32 %v3877_v39, %v9551_v56  ;;  %v3894_v4 = vadd.f32 %v3878_v50, %v3826_v35  ;;  %v3895_v51 = vadd.f32 %v3879_v57, %v3827_v32 }
 0x31c   : > { %v3896_v46 = vadd.f32 %v3880_v38, %v3828_v53  ;;  %v3897_v21 = vadd.f32 %v3881_v55, %v3829_v0  ;;  %v3898_v24 = vadd.f32 %v3882_v19, %v3830_v10  ;;  %v3899_v44 = vadd.f32 %v3883_v29, %v3831_v13  ;;  %v11298_v13 = vld [vmem:[#allocation61_spill] sm:$0xff] }
 0x31d   : > { %v3900_v49 = vadd.f32 %v3884_v5, %v3832_v16  ;;  %v3901_v26 = vadd.f32 %v3885_v48, %v3833_v47  ;;  %v3902_v28 = vadd.f32 %v3886_v42, %v3834_v36  ;;  %v3903_v23 = vadd.f32 %v3887_v30, %v3835_v27  ;;  %v11307_v48 = vld [vmem:[#allocation58_spill] sm:$0xff]  ;;  %v11308_v30 = vld [vmem:[#allocation69_spill] sm:$0xff] }
 0x31e   : > { %v3904_v43 = vadd.f32 %v3888_v63, %v3836_v20  ;;  %v3905_v45 = vadd.f32 %v3889_v54, %v3837_v8  ;;  %v3906_v33 = vadd.f32 %v3890_v2, %v3838_v1  ;;  %v3907_v40 = vadd.f32 %v3891_v3, %v3839_v62  ;;  %v11309_v3 = vld [vmem:[#allocation78_spill] sm:$0xff] }
 0x31f   : > { %v3908_v60 = vadd.f32 %v3892_v37, %v3840_v12  ;;  %v3909_v9 = vadd.f32 %v3893_v31, %v3841_v22  ;;  %v3913_v35 = vrot.slane %v9527_v34, 1  ;;  %v3915_v32 = vrot.slane %v9531_v18, 1  ;;  %v11297_v12 = vld [vmem:[#allocation62_spill] sm:$0xff]  ;;  %v11310_v31 = vld [vmem:[#allocation76_spill] sm:$0xff] }
 0x320   : > { %v3917_v53 = vrot.slane %v9535_v25, 1  ;;  %v3918_v0 = vrot.slane %v3866_v17, 1  ;;  %v3919_v10 = vrot.slane %v9539_v52, 1  ;;  %v3921_v27 = vrot.slane %v9543_v15, 1 }
 0x321   : > { %v3923_v8 = vrot.slane %v9547_v11, 1  ;;  %v3925_v1 = vrot.slane %v9551_v56, 1  ;;  %v3950_v22 = vmul.f32 %v9519_v6, %v11297_v12  ;;  %v3951_v16 = vmul.f32 %v9519_v6, %v11298_v13  ;;  %v9645_v12 = vld [vmem:[%s5271_s21 + $0x80] sm:$0xff] }
 0x322   : > { %v3926_v47 = vsel %vm331_vm0, %v3910_v58, %v3918_v0  ;;  %v9583_v36 = vsel %vm331_vm0, %v3911_v41, %v3919_v10  ;;  %v9587_v20 = vsel %vm331_vm0, %v3913_v35, %v3921_v27  ;;  %v3934_v62 = vsel %vm331_vm0, %v3918_v0, %v3910_v58  ;;  %v9642_v0 = vld [vmem:[%s5241_s8 + $0x38] sm:$0xff] }
 0x323   : > { %11299 = vst [vmem:[#allocation25_spill] sm:$0xff] %v9583_v36  ;;  %11300 = vst [vmem:[#allocation26_spill] sm:$0xff] %v9587_v20  ;;  %v9593_v7 = vsel %vm331_vm0, %v3915_v32, %v3923_v8  ;;  %v9597_v17 = vsel %vm331_vm0, %v3917_v53, %v3925_v1  ;;  %v9601_v39 = vsel %vm331_vm0, %v3919_v10, %v3911_v41 }
 0x324   : > { %11301 = vst [vmem:[#allocation29_spill] sm:$0xff] %v9593_v7  ;;  %11302 = vst [vmem:[#allocation27_spill] sm:$0xff] %v9597_v17  ;;  %v9605_v50 = vsel %vm331_vm0, %v3921_v27, %v3913_v35  ;;  %v9609_v57 = vsel %vm331_vm0, %v3923_v8, %v3915_v32  ;;  %v9613_v58 = vsel %vm331_vm0, %v3925_v1, %v3917_v53 }
 0x325   : > { %11303 = vst [vmem:[#allocation72_spill] sm:$0xff] %v9601_v39  ;;  %11304 = vst [vmem:[#allocation28_spill] sm:$0xff] %v9605_v50  ;;  %v3946_v38 = vmul.f32 %v9519_v6, %v3926_v47  ;;  %v3947_v55 = vmul.f32 %v9519_v6, %v3934_v62  ;;  %v3948_v41 = vmul.f32 %v9519_v6, %v9583_v36 }
 0x326   : > { %11305 = vst [vmem:[#allocation30_spill] sm:$0xff] %v9609_v57  ;;  %11306 = vst [vmem:[#allocation37_spill] sm:$0xff] %v9613_v58  ;;  %v3949_v19 = vmul.f32 %v9519_v6, %v9601_v39  ;;  %v3952_v29 = vmul.f32 %v9519_v6, %v9587_v20  ;;  %v3953_v5 = vmul.f32 %v9519_v6, %v9605_v50  ;;  %v11318_v20 = vld [vmem:[#allocation81_spill] sm:$0xff] }
 0x327   : > { %v3954_v42 = vmul.f32 %v9519_v6, %v11307_v48  ;;  %v3955_v63 = vmul.f32 %v9519_v6, %v11308_v30  ;;  %v3956_v54 = vmul.f32 %v9519_v6, %v9593_v7  ;;  %v3957_v2 = vmul.f32 %v9519_v6, %v9609_v57  ;;  %v4825_v30 = vld [vmem:[%s5271_s21 + $0x88] sm:$0xff] }
 0x328   : > { %v3958_v37 = vmul.f32 %v9519_v6, %v11309_v3  ;;  %v3959_v35 = vmul.f32 %v9519_v6, %v11310_v31  ;;  %v3960_v32 = vmul.f32 %v9519_v6, %v9597_v17  ;;  %v3961_v53 = vmul.f32 %v9519_v6, %v9613_v58  ;;  %v4828_v3 = vld [vmem:[%s5271_s21 + $0xa0] sm:$0xff]  ;;  %v11319_v39 = vld [vmem:[#allocation77_spill] sm:$0xff] }
 0x329   : > { %v3962_v10 = vadd.f32 %v3946_v38, %v3894_v4  ;;  %v3963_v27 = vadd.f32 %v3947_v55, %v3895_v51  ;;  %v3964_v8 = vadd.f32 %v3948_v41, %v3896_v46  ;;  %v3965_v1 = vadd.f32 %v3949_v19, %v3897_v21  ;;  %v4832_v31 = vld [vmem:[%s5271_s21 + $0xc0] sm:$0xff]  ;;  %v4829_v4 = vld [vmem:[%s5271_s21 + $0xa8] sm:$0xff] }
 0x32a   : > { %v3966_v13 = vadd.f32 %v3950_v22, %v3898_v24  ;;  %v3967_v47 = vadd.f32 %v3951_v16, %v3899_v44  ;;  %v3968_v62 = vadd.f32 %v3952_v29, %v3900_v49  ;;  %v3969_v48 = vadd.f32 %v3953_v5, %v3901_v26  ;;  %v4833_v38 = vld [vmem:[%s5271_s21 + $0xc8] sm:$0xff]  ;;  %v4836_v51 = vld [vmem:[%s5271_s21 + $0xe0] sm:$0xff]  ;;  %v11313_v29 = vld [vmem:[#allocation79_spill] sm:$0xff] }
 0x32b   : > { %v3970_v17 = vadd.f32 %v3954_v42, %v3902_v28  ;;  %v3971_v6 = vadd.f32 %v3955_v63, %v3903_v23  ;;  %v3972_v58 = vadd.f32 %v3956_v54, %v3904_v43  ;;  %v3973_v57 = vadd.f32 %v3957_v2, %v3905_v45  ;;  %v11311_v19 = vld [vmem:[#allocation9_spill] sm:$0xff]  ;;  %v11312_v45 = vld [vmem:[#allocation80_spill] sm:$0xff]  ;;  %v11315_v42 = vld [vmem:[#allocation70_spill] sm:$0xff] }
 0x32c   : > { %v3974_v55 = vadd.f32 %v3958_v37, %v3906_v33  ;;  %v3975_v46 = vadd.f32 %v3959_v35, %v3907_v40  ;;  %v3976_v41 = vadd.f32 %v3960_v32, %v3908_v60  ;;  %v3977_v21 = vadd.f32 %v3961_v53, %v3909_v9  ;;  %v11314_v40 = vld [vmem:[#allocation74_spill] sm:$0xff]  ;;  %v4837_v37 = vld [vmem:[%s5271_s21 + $0xe8] sm:$0xff]  ;;  %v11381_v14 = vld [vmem:[#allocation27_spill] sm:$0xff] }
 0x32d   : > { %v4000_v24 = vrot.slane %v9642_v0, %v11311_v19  ;;  %v4034_v49 = vrot.slane %v9645_v12, 1  ;;  %v4036_v44 = vrot.slane %v4828_v3, 1  ;;  %v4038_v26 = vrot.slane %v4832_v31, 1  ;;  %v11316_v35 = vld [vmem:[#allocation90_spill] sm:$0xff]  ;;  %v11317_v53 = vld [vmem:[#allocation73_spill] sm:$0xff] }
 0x32e   : > { %v4040_v22 = vrot.slane %v4836_v51, 1  ;;  %v4042_v28 = vrot.slane %v4825_v30, 1  ;;  %v4044_v23 = vrot.slane %v4829_v4, 1  ;;  %v4046_v43 = vrot.slane %v4833_v38, 1 }
 0x32f   : > { %v4001_v16 = vmul.f32 %v11312_v45, %v4000_v24  ;;  %v4002_v5 = vmul.f32 %v11313_v29, %v4000_v24  ;;  %v4003_v33 = vmul.f32 %v9645_v12, %v4000_v24  ;;  %v4004_v60 = vmul.f32 %v4825_v30, %v4000_v24 }
 0x330   : > { %v4005_v9 = vmul.f32 %v11314_v40, %v4000_v24  ;;  %v4006_v63 = vmul.f32 %v11315_v42, %v4000_v24  ;;  %v4007_v54 = vmul.f32 %v4828_v3, %v4000_v24  ;;  %v4008_v2 = vmul.f32 %v4829_v4, %v4000_v24 }
 0x331   : > { %v4009_v32 = vmul.f32 %v11316_v35, %v4000_v24  ;;  %v4010_v19 = vmul.f32 %v11317_v53, %v4000_v24  ;;  %v4011_v7 = vmul.f32 %v4832_v31, %v4000_v24  ;;  %v4012_v50 = vmul.f32 %v4833_v38, %v4000_v24 }
 0x332   : > { %v4013_v45 = vmul.f32 %v11318_v20, %v4000_v24  ;;  %v4014_v29 = vmul.f32 %v11319_v39, %v4000_v24  ;;  %v4015_v36 = vmul.f32 %v4836_v51, %v4000_v24  ;;  %v4016_v12 = vmul.f32 %v4837_v37, %v4000_v24 }
 0x333   : > { %v4017_v30 = vadd.f32 %v4001_v16, %v3962_v10  ;;  %v4018_v56 = vadd.f32 %v4002_v5, %v3963_v27  ;;  %v4019_v40 = vadd.f32 %v4003_v33, %v3964_v8  ;;  %v4020_v25 = vadd.f32 %v4004_v60, %v3965_v1  ;;  %v11328_v33 = vld [vmem:[#allocation89_spill] sm:$0xff] }
 0x334   : > { %v4021_v42 = vadd.f32 %v4005_v9, %v3966_v13  ;;  %v4022_v3 = vadd.f32 %v4006_v63, %v3967_v47  ;;  %v4023_v4 = vadd.f32 %v4007_v54, %v3968_v62  ;;  %v4024_v11 = vadd.f32 %v4008_v2, %v3969_v48  ;;  %v11321_v47 = vld [vmem:[#allocation84_spill] sm:$0xff]  ;;  %v11322_v48 = vld [vmem:[#allocation75_spill] sm:$0xff] }
 0x335   : > { %v4025_v18 = vadd.f32 %v4009_v32, %v3970_v17  ;;  %v4026_v35 = vadd.f32 %v4010_v19, %v3971_v6  ;;  %v4027_v15 = vadd.f32 %v4011_v7, %v3972_v58  ;;  %v4028_v53 = vadd.f32 %v4012_v50, %v3973_v57  ;;  %v11320_v50 = vld [vmem:[#allocation10_spill] sm:$0xff] }
 0x336   : > { %v4029_v31 = vadd.f32 %v4013_v45, %v3974_v55  ;;  %v4030_v38 = vadd.f32 %v4014_v29, %v3975_v46  ;;  %v4031_v34 = vadd.f32 %v4015_v36, %v3976_v41  ;;  %v4032_v20 = vadd.f32 %v4016_v12, %v3977_v21  ;;  %v11323_v46 = vld [vmem:[#allocation91_spill] sm:$0xff]  ;;  %v11324_v21 = vld [vmem:[#allocation85_spill] sm:$0xff] }
 0x337   : > { %v4048_v52 = vrot.slane %v4837_v37, 1  ;;  %v4050_v39 = vsel %vm331_vm0, %v4034_v49, %v4042_v28  ;;  %v4052_v10 = vsel %vm331_vm0, %v4036_v44, %v4044_v23  ;;  %v4054_v27 = vsel %vm331_vm0, %v4038_v26, %v4046_v43 }
 0x338   : > { %v4058_v17 = vsel %vm331_vm0, %v4042_v28, %v4034_v49  ;;  %v4060_v7 = vsel %vm331_vm0, %v4044_v23, %v4036_v44  ;;  %v4062_v36 = vsel %vm331_vm0, %v4046_v43, %v4038_v26  ;;  %v4068_v57 = vrot.slane %v9642_v0, %v11320_v50  ;;  %v11325_v26 = vld [vmem:[#allocation82_spill] sm:$0xff] }
 0x339   : > { %v4056_v58 = vsel %vm331_vm0, %v4040_v22, %v4048_v52  ;;  %v4064_v8 = vsel %vm331_vm0, %v4048_v52, %v4040_v22  ;;  %v4102_v1 = vrot.slane %v4050_v39, 1  ;;  %v4104_v13 = vrot.slane %v4052_v10, 1  ;;  %v11326_v23 = vld [vmem:[#allocation86_spill] sm:$0xff]  ;;  %v11327_v22 = vld [vmem:[#allocation83_spill] sm:$0xff] }
 0x33a   : > { %v4069_v62 = vmul.f32 %v4068_v57, %v11321_v47  ;;  %v4070_v6 = vmul.f32 %v4068_v57, %v11322_v48  ;;  %v4071_v51 = vmul.f32 %v4068_v57, %v4050_v39  ;;  %v4072_v55 = vmul.f32 %v4068_v57, %v4058_v17 }
 0x33b   : > { %v4073_v41 = vmul.f32 %v4068_v57, %v11323_v46  ;;  %v4074_v24 = vmul.f32 %v4068_v57, %v11324_v21  ;;  %v4075_v49 = vmul.f32 %v4068_v57, %v4052_v10  ;;  %v4076_v44 = vmul.f32 %v4068_v57, %v4060_v7 }
 0x33c   : > { %v4077_v28 = vmul.f32 %v4068_v57, %v11325_v26  ;;  %v4078_v43 = vmul.f32 %v4068_v57, %v11326_v23  ;;  %v4079_v16 = vmul.f32 %v4068_v57, %v4054_v27  ;;  %v4080_v52 = vmul.f32 %v4068_v57, %v4062_v36 }
 0x33d   : > { %v4081_v5 = vmul.f32 %v4068_v57, %v11327_v22  ;;  %v4082_v60 = vmul.f32 %v4068_v57, %v11328_v33  ;;  %v4083_v9 = vmul.f32 %v4068_v57, %v4056_v58  ;;  %v4084_v63 = vmul.f32 %v4068_v57, %v4064_v8 }
 0x33e   : > { %v4085_v54 = vadd.f32 %v4069_v62, %v4017_v30  ;;  %v4086_v2 = vadd.f32 %v4070_v6, %v4018_v56  ;;  %v4087_v37 = vadd.f32 %v4071_v51, %v4019_v40  ;;  %v4088_v32 = vadd.f32 %v4072_v55, %v4020_v25  ;;  %v11329_v40 = vld [vmem:[#allocation11_spill] sm:$0xff]  ;;  %v11335_v51 = vld [vmem:[#allocation93_spill] sm:$0xff] }
 0x33f   : > { %v4089_v19 = vadd.f32 %v4073_v41, %v4021_v42  ;;  %v4090_v45 = vadd.f32 %v4074_v24, %v4022_v3  ;;  %v4091_v29 = vadd.f32 %v4075_v49, %v4023_v4  ;;  %v4092_v12 = vadd.f32 %v4076_v44, %v4024_v11  ;;  %v11330_v42 = vld [vmem:[#allocation12_spill] sm:$0xff]  ;;  %v11336_v41 = vld [vmem:[#allocation102_spill] sm:$0xff] }
 0x340   : > { %v4093_v39 = vadd.f32 %v4077_v28, %v4025_v18  ;;  %v4094_v10 = vadd.f32 %v4078_v43, %v4026_v35  ;;  %v4095_v50 = vadd.f32 %v4079_v16, %v4027_v15  ;;  %v4096_v47 = vadd.f32 %v4080_v52, %v4028_v53  ;;  %v11337_v28 = vld [vmem:[#allocation96_spill] sm:$0xff]  ;;  %v11338_v16 = vld [vmem:[#allocation94_spill] sm:$0xff] }
 0x341   : > { %v4097_v48 = vadd.f32 %v4081_v5, %v4029_v31  ;;  %v4098_v46 = vadd.f32 %v4082_v60, %v4030_v38  ;;  %v4099_v21 = vadd.f32 %v4083_v9, %v4031_v34  ;;  %v4100_v26 = vadd.f32 %v4084_v63, %v4032_v20  ;;  %v11331_v38 = vld [vmem:[#allocation95_spill] sm:$0xff] }
 0x342   : > { %v4106_v23 = vrot.slane %v4054_v27, 1  ;;  %v4108_v22 = vrot.slane %v4056_v58, 1  ;;  %v4110_v33 = vrot.slane %v4058_v17, 1  ;;  %v4112_v57 = vrot.slane %v4060_v7, 1  ;;  %v11332_v27 = vld [vmem:[#allocation87_spill] sm:$0xff]  ;;  %v11333_v58 = vld [vmem:[#allocation92_spill] sm:$0xff] }
 0x343   : > { %v4114_v30 = vrot.slane %v4062_v36, 1  ;;  %v4116_v56 = vrot.slane %v4064_v8, 1  ;;  %v4136_v25 = vrot.slane %v9642_v0, %v11329_v40  ;;  %v9696_v11 = vrot.slane %v9642_v0, %v11330_v42 }
 0x344   : > { %v4118_v18 = vsel %vm331_vm0, %v4102_v1, %v4110_v33  ;;  %v4120_v34 = vsel %vm331_vm0, %v4104_v13, %v4112_v57  ;;  %v4126_v15 = vsel %vm331_vm0, %v4110_v33, %v4102_v1  ;;  %v4128_v3 = vsel %vm331_vm0, %v4112_v57, %v4104_v13  ;;  %v11334_v1 = vld [vmem:[#allocation101_spill] sm:$0xff] }
 0x345   : > { %v4122_v4 = vsel %vm331_vm0, %v4106_v23, %v4114_v30  ;;  %v4124_v35 = vsel %vm331_vm0, %v4108_v22, %v4116_v56  ;;  %v4130_v53 = vsel %vm331_vm0, %v4114_v30, %v4106_v23  ;;  %v4132_v31 = vsel %vm331_vm0, %v4116_v56, %v4108_v22 }
 0x346   : > { %v4137_v20 = vmul.f32 %v4136_v25, %v11331_v38  ;;  %v4138_v17 = vmul.f32 %v4136_v25, %v11332_v27  ;;  %v4139_v7 = vmul.f32 %v4136_v25, %v4118_v18  ;;  %v4140_v36 = vmul.f32 %v4136_v25, %v4126_v15 }
 0x347   : > { %v4141_v8 = vmul.f32 %v4136_v25, %v11333_v58  ;;  %v4142_v13 = vmul.f32 %v4136_v25, %v11334_v1  ;;  %v4143_v62 = vmul.f32 %v4136_v25, %v4120_v34  ;;  %v4144_v6 = vmul.f32 %v4136_v25, %v4128_v3 }
 0x348   : > { %v4145_v55 = vmul.f32 %v4136_v25, %v11335_v51  ;;  %v4146_v24 = vmul.f32 %v4136_v25, %v11336_v41  ;;  %v4147_v49 = vmul.f32 %v4136_v25, %v4122_v4  ;;  %v4148_v44 = vmul.f32 %v4136_v25, %v4130_v53 }
 0x349   : > { %v4149_v43 = vmul.f32 %v4136_v25, %v11337_v28  ;;  %v4150_v52 = vmul.f32 %v4136_v25, %v11338_v16  ;;  %v4151_v5 = vmul.f32 %v4136_v25, %v4124_v35  ;;  %v4152_v60 = vmul.f32 %v4136_v25, %v4132_v31 }
 0x34a   : > { %v4153_v9 = vadd.f32 %v4137_v20, %v4085_v54  ;;  %v4154_v63 = vadd.f32 %v4138_v17, %v4086_v2  ;;  %v4155_v23 = vadd.f32 %v4139_v7, %v4087_v37  ;;  %v4156_v22 = vadd.f32 %v4140_v36, %v4088_v32  ;;  %v11343_v20 = vld [vmem:[#allocation103_spill] sm:$0xff] }
 0x34b   : > { %v4157_v33 = vadd.f32 %v4141_v8, %v4089_v19  ;;  %v4158_v57 = vadd.f32 %v4142_v13, %v4090_v45  ;;  %v4159_v30 = vadd.f32 %v4143_v62, %v4091_v29  ;;  %v4160_v56 = vadd.f32 %v4144_v6, %v4092_v12  ;;  %v11339_v19 = vld [vmem:[#allocation98_spill] sm:$0xff]  ;;  %v11344_v7 = vld [vmem:[#allocation99_spill] sm:$0xff]  ;;  %v11345_v13 = vld [vmem:[#allocation88_spill] sm:$0xff] }
 0x34c   : > { %v4161_v40 = vadd.f32 %v4145_v55, %v4093_v39  ;;  %v4162_v42 = vadd.f32 %v4146_v24, %v4094_v10  ;;  %v4163_v38 = vadd.f32 %v4147_v49, %v4095_v50  ;;  %v4164_v27 = vadd.f32 %v4148_v44, %v4096_v47  ;;  %v11340_v29 = vld [vmem:[#allocation106_spill] sm:$0xff]  ;;  %v11341_v39 = vld [vmem:[#allocation97_spill] sm:$0xff]  ;;  %v11342_v50 = vld [vmem:[#allocation100_spill] sm:$0xff] }
 0x34d   : > { %v4165_v58 = vadd.f32 %v4149_v43, %v4097_v48  ;;  %v4166_v1 = vadd.f32 %v4150_v52, %v4098_v46  ;;  %v4167_v51 = vadd.f32 %v4151_v5, %v4099_v21  ;;  %v4168_v41 = vadd.f32 %v4152_v60, %v4100_v26  ;;  %v11346_v6 = vld [vmem:[#allocation107_spill] sm:$0xff] }
 0x34e   : > { %v4170_v28 = vrot.slane %v4118_v18, 1  ;;  %v4172_v16 = vrot.slane %v4120_v34, 1  ;;  %v4174_v59 = vrot.slane %v4122_v4, 1  ;;  %v4176_v25 = vrot.slane %v4124_v35, 1 }
 0x34f   : > { %v4178_v54 = vrot.slane %v4126_v15, 1  ;;  %v4180_v2 = vrot.slane %v4128_v3, 1  ;;  %v4182_v37 = vrot.slane %v4130_v53, 1  ;;  %v4184_v32 = vrot.slane %v4132_v31, 1 }
 0x350   : > { %v4205_v45 = vmul.f32 %v9696_v11, %v11339_v19  ;;  %v4206_v12 = vmul.f32 %v9696_v11, %v11340_v29  ;;  %v4209_v10 = vmul.f32 %v9696_v11, %v11341_v39  ;;  %v4210_v47 = vmul.f32 %v9696_v11, %v11342_v50 }
 0x351   : > { %v4186_v48 = vsel %vm331_vm0, %v4170_v28, %v4178_v54  ;;  %v4188_v46 = vsel %vm331_vm0, %v4172_v16, %v4180_v2  ;;  %v4190_v21 = vsel %vm331_vm0, %v4174_v59, %v4182_v37  ;;  %v4192_v26 = vsel %vm331_vm0, %v4176_v25, %v4184_v32 }
 0x352   : > { %v4194_v18 = vsel %vm331_vm0, %v4178_v54, %v4170_v28  ;;  %v4196_v34 = vsel %vm331_vm0, %v4180_v2, %v4172_v16  ;;  %v4198_v15 = vsel %vm331_vm0, %v4182_v37, %v4174_v59  ;;  %v4200_v3 = vsel %vm331_vm0, %v4184_v32, %v4176_v25 }
 0x353   : > { %v4207_v4 = vmul.f32 %v9696_v11, %v4186_v48  ;;  %v4208_v35 = vmul.f32 %v9696_v11, %v4194_v18  ;;  %v4211_v53 = vmul.f32 %v9696_v11, %v4188_v46  ;;  %v4212_v31 = vmul.f32 %v9696_v11, %v4196_v34 }
 0x354   : > { %v4213_v17 = vmul.f32 %v9696_v11, %v11343_v20  ;;  %v4214_v36 = vmul.f32 %v9696_v11, %v11344_v7  ;;  %v4215_v8 = vmul.f32 %v9696_v11, %v4190_v21  ;;  %v4216_v59 = vmul.f32 %v9696_v11, %v4198_v15 }
 0x355   : > { %v4217_v62 = vmul.f32 %v9696_v11, %v11345_v13  ;;  %v4218_v55 = vmul.f32 %v9696_v11, %v11346_v6  ;;  %v4219_v24 = vmul.f32 %v9696_v11, %v4192_v26  ;;  %v4220_v49 = vmul.f32 %v9696_v11, %v4200_v3  ;;  %v11357_v6 = vld [vmem:[#allocation119_spill] sm:$0xff] }
 0x356   : > { %v4221_v44 = vadd.f32 %v4205_v45, %v4153_v9  ;;  %v4222_v43 = vadd.f32 %v4206_v12, %v4154_v63  ;;  %v4223_v52 = vadd.f32 %v4207_v4, %v4155_v23  ;;  %v4224_v5 = vadd.f32 %v4208_v35, %v4156_v22  ;;  %v11350_v12 = vld [vmem:[#allocation24_spill] sm:$0xff] }
 0x357   : > { %v4225_v60 = vadd.f32 %v4209_v10, %v4157_v33  ;;  %v4226_v28 = vadd.f32 %v4210_v47, %v4158_v57  ;;  %v4227_v16 = vadd.f32 %v4211_v53, %v4159_v30  ;;  %v4228_v25 = vadd.f32 %v4212_v31, %v4160_v56  ;;  %v11347_v33 = vld [vmem:[#allocation13_spill] sm:$0xff]  ;;  %v11348_v30 = vld [vmem:[#allocation14_spill] sm:$0xff]  ;;  %v11354_v35 = vld [vmem:[#allocation104_spill] sm:$0xff] }
 0x358   : > { %v4229_v54 = vadd.f32 %v4213_v17, %v4161_v40  ;;  %v4230_v2 = vadd.f32 %v4214_v36, %v4162_v42  ;;  %v4231_v37 = vadd.f32 %v4215_v8, %v4163_v38  ;;  %v4232_v32 = vadd.f32 %v4216_v59, %v4164_v27  ;;  %v11349_v42 = vld [vmem:[#allocation16_spill] sm:$0xff]  ;;  %v11351_v47 = vld [vmem:[#allocation113_spill] sm:$0xff]  ;;  %v11355_v31 = vld [vmem:[#allocation19_spill] sm:$0xff] }
 0x359   : > { %v4233_v19 = vadd.f32 %v4217_v62, %v4165_v58  ;;  %v4234_v29 = vadd.f32 %v4218_v55, %v4166_v1  ;;  %v4235_v39 = vadd.f32 %v4219_v24, %v4167_v51  ;;  %v4236_v50 = vadd.f32 %v4220_v49, %v4168_v41  ;;  %v11356_v59 = vld [vmem:[#allocation114_spill] sm:$0xff] }
 0x35a   : > { %v4238_v20 = vrot.slane %v4186_v48, 1  ;;  %v4240_v7 = vrot.slane %v4188_v46, 1  ;;  %v4242_v13 = vrot.slane %v4190_v21, 1  ;;  %v4244_v11 = vrot.slane %v4192_v26, 1  ;;  %v11352_v26 = vld [vmem:[#allocation105_spill] sm:$0xff] }
 0x35b   : > { %v4246_v9 = vrot.slane %v4194_v18, 1  ;;  %v4248_v63 = vrot.slane %v4196_v34, 1  ;;  %v4250_v23 = vrot.slane %v4198_v15, 1  ;;  %v4252_v22 = vrot.slane %v4200_v3, 1  ;;  %v11353_v34 = vld [vmem:[#allocation108_spill] sm:$0xff] }
 0x35c   : > { %v4272_v57 = vrot.slane %v9642_v0, %v11347_v33  ;;  %v9766_v56 = vrot.slane %v9642_v0, %v11348_v30  ;;  %v9770_v40 = vrot.slane %v9642_v0, %v11281_v61  ;;  %v9774_v38 = vrot.slane %v9642_v0, %v11349_v42 }
 0x35d   : > { %v4254_v27 = vsel %vm331_vm0, %v4238_v20, %v4246_v9  ;;  %v4256_v58 = vsel %vm331_vm0, %v4240_v7, %v4248_v63  ;;  %v4258_v1 = vsel %vm331_vm0, %v4242_v13, %v4250_v23  ;;  %v4260_v51 = vsel %vm331_vm0, %v4244_v11, %v4252_v22 }
 0x35e   : > { %v4262_v61 = vsel %vm331_vm0, %v4246_v9, %v4238_v20  ;;  %v4264_v41 = vsel %vm331_vm0, %v4248_v63, %v4240_v7  ;;  %v4266_v0 = vsel %vm331_vm0, %v4250_v23, %v4242_v13  ;;  %v4268_v45 = vsel %vm331_vm0, %v4252_v22, %v4244_v11 }
 0x35f   : > { %v4273_v10 = vmul.f32 %v4272_v57, %v11350_v12  ;;  %v4274_v48 = vmul.f32 %v4272_v57, %v11351_v47  ;;  %v4275_v46 = vmul.f32 %v4272_v57, %v4254_v27  ;;  %v4276_v21 = vmul.f32 %v4272_v57, %v4262_v61 }
 0x360   : > { %v4277_v18 = vmul.f32 %v4272_v57, %v11352_v26  ;;  %v4278_v15 = vmul.f32 %v4272_v57, %v11353_v34  ;;  %v4279_v3 = vmul.f32 %v4272_v57, %v4256_v58  ;;  %v4280_v4 = vmul.f32 %v4272_v57, %v4264_v41 }
 0x361   : > { %v4281_v53 = vmul.f32 %v4272_v57, %v11354_v35  ;;  %v4282_v17 = vmul.f32 %v4272_v57, %v11355_v31  ;;  %v4283_v36 = vmul.f32 %v4272_v57, %v4258_v1  ;;  %v4284_v8 = vmul.f32 %v4272_v57, %v4266_v0 }
 0x362   : > { %v4285_v62 = vmul.f32 %v4272_v57, %v11356_v59  ;;  %v4286_v55 = vmul.f32 %v4272_v57, %v11357_v6  ;;  %v4287_v24 = vmul.f32 %v4272_v57, %v4260_v51  ;;  %v4288_v49 = vmul.f32 %v4272_v57, %v4268_v45 }
 0x363   : > { %v4289_v20 = vadd.f32 %v4273_v10, %v4221_v44  ;;  %v4290_v7 = vadd.f32 %v4274_v48, %v4222_v43  ;;  %v4291_v13 = vadd.f32 %v4275_v46, %v4223_v52  ;;  %v4292_v11 = vadd.f32 %v4276_v21, %v4224_v5  ;;  %v11362_v10 = vld [vmem:[#allocation42_spill] sm:$0xff]  ;;  %v11363_v46 = vld [vmem:[#allocation32_spill] sm:$0xff] }
 0x364   : > { %v4293_v9 = vadd.f32 %v4277_v18, %v4225_v60  ;;  %v4294_v63 = vadd.f32 %v4278_v15, %v4226_v28  ;;  %v4295_v23 = vadd.f32 %v4279_v3, %v4227_v16  ;;  %v4296_v22 = vadd.f32 %v4280_v4, %v4228_v25  ;;  %v11358_v60 = vld [vmem:[#allocation116_spill] sm:$0xff]  ;;  %v11359_v16 = vld [vmem:[#allocation110_spill] sm:$0xff]  ;;  %v11364_v3 = vld [vmem:[#allocation17_spill] sm:$0xff] }
 0x365   : > { %v4297_v33 = vadd.f32 %v4281_v53, %v4229_v54  ;;  %v4298_v30 = vadd.f32 %v4282_v17, %v4230_v2  ;;  %v4299_v42 = vadd.f32 %v4283_v36, %v4231_v37  ;;  %v4300_v12 = vadd.f32 %v4284_v8, %v4232_v32  ;;  %v11360_v54 = vld [vmem:[#allocation115_spill] sm:$0xff]  ;;  %v11361_v37 = vld [vmem:[#allocation109_spill] sm:$0xff]  ;;  %v11365_v53 = vld [vmem:[#allocation112_spill] sm:$0xff] }
 0x366   : > { %v4301_v47 = vadd.f32 %v4285_v62, %v4233_v19  ;;  %v4302_v26 = vadd.f32 %v4286_v55, %v4234_v29  ;;  %v4303_v34 = vadd.f32 %v4287_v24, %v4235_v39  ;;  %v4304_v35 = vadd.f32 %v4288_v49, %v4236_v50 }
 0x367   : > { %v4306_v31 = vrot.slane %v4254_v27, 1  ;;  %v4308_v59 = vrot.slane %v4256_v58, 1  ;;  %v4310_v6 = vrot.slane %v4258_v1, 1  ;;  %v4312_v57 = vrot.slane %v4260_v51, 1 }
 0x368   : > { %v4314_v44 = vrot.slane %v4262_v61, 1  ;;  %v4316_v43 = vrot.slane %v4264_v41, 1  ;;  %v4318_v52 = vrot.slane %v4266_v0, 1  ;;  %v4320_v5 = vrot.slane %v4268_v45, 1 }
 0x369   : > { %v4341_v28 = vmul.f32 %v9766_v56, %v11358_v60  ;;  %v4342_v25 = vmul.f32 %v9766_v56, %v11359_v16  ;;  %v4345_v2 = vmul.f32 %v9766_v56, %v11360_v54  ;;  %v4346_v32 = vmul.f32 %v9766_v56, %v11361_v37 }
 0x36a   : > { %v4322_v19 = vsel %vm331_vm0, %v4306_v31, %v4314_v44  ;;  %v4324_v29 = vsel %vm331_vm0, %v4308_v59, %v4316_v43  ;;  %v4326_v39 = vsel %vm331_vm0, %v4310_v6, %v4318_v52  ;;  %v4328_v50 = vsel %vm331_vm0, %v4312_v57, %v4320_v5 }
 0x36b   : > { %v4330_v27 = vsel %vm331_vm0, %v4314_v44, %v4306_v31  ;;  %v4332_v58 = vsel %vm331_vm0, %v4316_v43, %v4308_v59  ;;  %v4334_v1 = vsel %vm331_vm0, %v4318_v52, %v4310_v6  ;;  %v4336_v51 = vsel %vm331_vm0, %v4320_v5, %v4312_v57 }
 0x36c   : > { %v4343_v61 = vmul.f32 %v9766_v56, %v4322_v19  ;;  %v4344_v41 = vmul.f32 %v9766_v56, %v4330_v27  ;;  %v4347_v0 = vmul.f32 %v9766_v56, %v4324_v29  ;;  %v4348_v45 = vmul.f32 %v9766_v56, %v4332_v58 }
 0x36d   : > { %v4349_v48 = vmul.f32 %v9766_v56, %v11362_v10  ;;  %v4350_v21 = vmul.f32 %v9766_v56, %v11363_v46  ;;  %v4351_v18 = vmul.f32 %v9766_v56, %v4326_v39  ;;  %v4352_v15 = vmul.f32 %v9766_v56, %v4334_v1 }
 0x36e   : > { %v4353_v4 = vmul.f32 %v9766_v56, %v11364_v3  ;;  %v4354_v17 = vmul.f32 %v9766_v56, %v11365_v53  ;;  %v4355_v36 = vmul.f32 %v9766_v56, %v4328_v50  ;;  %v4356_v8 = vmul.f32 %v9766_v56, %v4336_v51 }
 0x36f   : > { %v4357_v62 = vadd.f32 %v4341_v28, %v4289_v20  ;;  %v4358_v55 = vadd.f32 %v4342_v25, %v4290_v7  ;;  %v4359_v24 = vadd.f32 %v4343_v61, %v4291_v13  ;;  %v4360_v49 = vadd.f32 %v4344_v41, %v4292_v11  ;;  %v11372_v41 = vld [vmem:[#allocation23_spill] sm:$0xff] }
 0x370   : > { %v4361_v31 = vadd.f32 %v4345_v2, %v4293_v9  ;;  %v4362_v59 = vadd.f32 %v4346_v32, %v4294_v63  ;;  %v4363_v6 = vadd.f32 %v4347_v0, %v4295_v23  ;;  %v4364_v57 = vadd.f32 %v4348_v45, %v4296_v22  ;;  %v11367_v22 = vld [vmem:[#allocation8_spill] sm:$0xff] }
 0x371   : > { %v4365_v44 = vadd.f32 %v4349_v48, %v4297_v33  ;;  %v4366_v43 = vadd.f32 %v4350_v21, %v4298_v30  ;;  %v4367_v52 = vadd.f32 %v4351_v18, %v4299_v42  ;;  %v4368_v5 = vadd.f32 %v4352_v15, %v4300_v12  ;;  %v11368_v30 = vld [vmem:[#allocation22_spill] sm:$0xff]  ;;  %v11369_v12 = vld [vmem:[#allocation117_spill] sm:$0xff]  ;;  %v11373_v48 = vld [vmem:[#allocation111_spill] sm:$0xff] }
 0x372   : > { %v4369_v60 = vadd.f32 %v4353_v4, %v4301_v47  ;;  %v4370_v16 = vadd.f32 %v4354_v17, %v4302_v26  ;;  %v4371_v54 = vadd.f32 %v4355_v36, %v4303_v34  ;;  %v4372_v37 = vadd.f32 %v4356_v8, %v4304_v35  ;;  %v11370_v26 = vld [vmem:[#allocation118_spill] sm:$0xff]  ;;  %v11374_v21 = vld [vmem:[#allocation20_spill] sm:$0xff] }
 0x373   : > { %v4374_v56 = vrot.slane %v4322_v19, 1  ;;  %v4376_v20 = vrot.slane %v4324_v29, 1  ;;  %v4378_v7 = vrot.slane %v4326_v39, 1  ;;  %v4380_v13 = vrot.slane %v4328_v50, 1 }
 0x374   : > { %v4382_v11 = vrot.slane %v4330_v27, 1  ;;  %v4384_v9 = vrot.slane %v4332_v58, 1  ;;  %v4386_v63 = vrot.slane %v4334_v1, 1  ;;  %v4388_v23 = vrot.slane %v4336_v51, 1  ;;  %v11371_v51 = vld [vmem:[#allocation21_spill] sm:$0xff] }
 0x375   : > { %v4409_v33 = vmul.f32 %v9770_v40, %v11367_v22  ;;  %v4410_v42 = vmul.f32 %v9770_v40, %v11368_v30  ;;  %v4413_v47 = vmul.f32 %v9770_v40, %v11369_v12  ;;  %v4414_v34 = vmul.f32 %v9770_v40, %v11370_v26 }
 0x376   : > { %v4390_v35 = vsel %vm331_vm0, %v4374_v56, %v4382_v11  ;;  %v4392_v28 = vsel %vm331_vm0, %v4376_v20, %v4384_v9  ;;  %v4394_v25 = vsel %vm331_vm0, %v4378_v7, %v4386_v63  ;;  %v4396_v2 = vsel %vm331_vm0, %v4380_v13, %v4388_v23 }
 0x377   : > { %v4398_v32 = vsel %vm331_vm0, %v4382_v11, %v4374_v56  ;;  %v4400_v19 = vsel %vm331_vm0, %v4384_v9, %v4376_v20  ;;  %v4402_v29 = vsel %vm331_vm0, %v4386_v63, %v4378_v7  ;;  %v4404_v39 = vsel %vm331_vm0, %v4388_v23, %v4380_v13 }
 0x378   : > { %v4411_v50 = vmul.f32 %v9770_v40, %v4390_v35  ;;  %v4412_v27 = vmul.f32 %v9770_v40, %v4398_v32  ;;  %v4415_v58 = vmul.f32 %v9770_v40, %v4392_v28  ;;  %v4416_v1 = vmul.f32 %v9770_v40, %v4400_v19 }
 0x379   : > { %v4417_v61 = vmul.f32 %v9770_v40, %v11371_v51  ;;  %v4418_v0 = vmul.f32 %v9770_v40, %v11372_v41  ;;  %v4419_v45 = vmul.f32 %v9770_v40, %v4394_v25  ;;  %v4420_v10 = vmul.f32 %v9770_v40, %v4402_v29 }
 0x37a   : > { %v4421_v46 = vmul.f32 %v9770_v40, %v11373_v48  ;;  %v4422_v18 = vmul.f32 %v9770_v40, %v11374_v21  ;;  %v4423_v15 = vmul.f32 %v9770_v40, %v4396_v2  ;;  %v4424_v3 = vmul.f32 %v9770_v40, %v4404_v39 }
 0x37b   : > { %v4425_v4 = vadd.f32 %v4409_v33, %v4357_v62  ;;  %v4426_v53 = vadd.f32 %v4410_v42, %v4358_v55  ;;  %v4427_v17 = vadd.f32 %v4411_v50, %v4359_v24  ;;  %v4428_v36 = vadd.f32 %v4412_v27, %v4360_v49  ;;  %v11380_v50 = vld [vmem:[#allocation30_spill] sm:$0xff] }
 0x37c   : > { %v4429_v8 = vadd.f32 %v4413_v47, %v4361_v31  ;;  %v4430_v56 = vadd.f32 %v4414_v34, %v4362_v59  ;;  %v4431_v20 = vadd.f32 %v4415_v58, %v4363_v6  ;;  %v4432_v7 = vadd.f32 %v4416_v1, %v4364_v57  ;;  %v11375_v6 = vld [vmem:[#allocation25_spill] sm:$0xff] }
 0x37d   : > { %v4433_v13 = vadd.f32 %v4417_v61, %v4365_v44  ;;  %v4434_v11 = vadd.f32 %v4418_v0, %v4366_v43  ;;  %v4435_v9 = vadd.f32 %v4419_v45, %v4367_v52  ;;  %v4436_v63 = vadd.f32 %v4420_v10, %v4368_v5  ;;  %v11376_v44 = vld [vmem:[#allocation72_spill] sm:$0xff]  ;;  %v11377_v52 = vld [vmem:[#allocation26_spill] sm:$0xff]  ;;  %v11382_v61 = vld [vmem:[#allocation37_spill] sm:$0xff] }
 0x37e   : > { %v4437_v23 = vadd.f32 %v4421_v46, %v4369_v60  ;;  %v4438_v22 = vadd.f32 %v4422_v18, %v4370_v16  ;;  %v4439_v30 = vadd.f32 %v4423_v15, %v4371_v54  ;;  %v4440_v12 = vadd.f32 %v4424_v3, %v4372_v37  ;;  %v11378_v60 = vld [vmem:[#allocation28_spill] sm:$0xff] }
 0x37f   : > { %v4442_v26 = vrot.slane %v4390_v35, 1  ;;  %v4444_v40 = vrot.slane %v4392_v28, 1  ;;  %v4446_v62 = vrot.slane %v4394_v25, 1  ;;  %v4448_v55 = vrot.slane %v4396_v2, 1 }
 0x380   : > { %v4450_v24 = vrot.slane %v4398_v32, 1  ;;  %v4452_v49 = vrot.slane %v4400_v19, 1  ;;  %v4454_v31 = vrot.slane %v4402_v29, 1  ;;  %v4456_v59 = vrot.slane %v4404_v39, 1  ;;  %v11379_v29 = vld [vmem:[#allocation29_spill] sm:$0xff] }
 0x381   : > { %v4477_v57 = vmul.f32 %v9774_v38, %v11375_v6  ;;  %v4478_v43 = vmul.f32 %v9774_v38, %v11376_v44  ;;  %v4481_v5 = vmul.f32 %v9774_v38, %v11377_v52  ;;  %v4482_v16 = vmul.f32 %v9774_v38, %v11378_v60 }
 0x382   : > { %v4458_v54 = vsel %vm331_vm0, %v4442_v26, %v4450_v24  ;;  %v4460_v37 = vsel %vm331_vm0, %v4444_v40, %v4452_v49  ;;  %v4462_v33 = vsel %vm331_vm0, %v4446_v62, %v4454_v31  ;;  %v4464_v42 = vsel %vm331_vm0, %v4448_v55, %v4456_v59 }
 0x383   : > { %v4466_v47 = vsel %vm331_vm0, %v4450_v24, %v4442_v26  ;;  %v4468_v34 = vsel %vm331_vm0, %v4452_v49, %v4444_v40  ;;  %v4470_v35 = vsel %vm331_vm0, %v4454_v31, %v4446_v62  ;;  %v4472_v28 = vsel %vm331_vm0, %v4456_v59, %v4448_v55 }
 0x384   : > { %v4479_v25 = vmul.f32 %v9774_v38, %v4458_v54  ;;  %v4480_v2 = vmul.f32 %v9774_v38, %v4466_v47  ;;  %v4483_v32 = vmul.f32 %v9774_v38, %v4460_v37  ;;  %v4484_v19 = vmul.f32 %v9774_v38, %v4468_v34 }
 0x385   : > { %v4485_v39 = vmul.f32 %v9774_v38, %v11379_v29  ;;  %v4486_v27 = vmul.f32 %v9774_v38, %v11380_v50  ;;  %v4487_v58 = vmul.f32 %v9774_v38, %v4462_v33  ;;  %v4488_v1 = vmul.f32 %v9774_v38, %v4470_v35 }
 0x386   : > { %v4489_v51 = vmul.f32 %v9774_v38, %v11381_v14  ;;  %v4490_v41 = vmul.f32 %v9774_v38, %v11382_v61  ;;  %v4491_v0 = vmul.f32 %v9774_v38, %v4464_v42  ;;  %v4492_v45 = vmul.f32 %v9774_v38, %v4472_v28 }
 0x387   : > { %v4493_v10 = vadd.f32 %v4477_v57, %v4425_v4  ;;  %v4494_v48 = vadd.f32 %v4478_v43, %v4426_v53  ;;  %v4495_v46 = vadd.f32 %v4479_v25, %v4427_v17  ;;  %v4496_v21 = vadd.f32 %v4480_v2, %v4428_v36 }
 0x388   : > { %v4497_v18 = vadd.f32 %v4481_v5, %v4429_v8  ;;  %v4498_v15 = vadd.f32 %v4482_v16, %v4430_v56  ;;  %v4499_v3 = vadd.f32 %v4483_v32, %v4431_v20  ;;  %v4500_v26 = vadd.f32 %v4484_v19, %v4432_v7 }
 0x389   : > { %v4501_v40 = vadd.f32 %v4485_v39, %v4433_v13  ;;  %v4502_v62 = vadd.f32 %v4486_v27, %v4434_v11  ;;  %v4503_v55 = vadd.f32 %v4487_v58, %v4435_v9  ;;  %v4504_v38 = vadd.f32 %v4488_v1, %v4436_v63  ;;  %4509 = vst [vmem:[%s9938_s20] sm:$0xff] %v4493_v10 }
 0x38a   : > { %4510 = vst [vmem:[%s9938_s20 + $0x8] sm:$0x1] %v4494_v48  ;;  %4511 = vst [vmem:[%s9938_s20 + $0x10] sm:$0xff] %v4495_v46  ;;  %v4505_v4 = vadd.f32 %v4489_v51, %v4437_v23  ;;  %v4506_v53 = vadd.f32 %v4490_v41, %v4438_v22  ;;  %v4507_v17 = vadd.f32 %v4491_v0, %v4439_v30 }
 0x38b   : > { %4512 = vst [vmem:[%s9938_s20 + $0x18] sm:$0x1] %v4496_v21  ;;  %v4508_v36 = vadd.f32 %v4492_v45, %v4440_v12  ;;  %4513 = vst [vmem:[%s9938_s20 + $0x20] sm:$0xff] %v4497_v18 }
 0x38c   : > { %4514 = vst [vmem:[%s9938_s20 + $0x28] sm:$0x1] %v4498_v15  ;;  %4515 = vst [vmem:[%s9938_s20 + $0x30] sm:$0xff] %v4499_v3 }
 0x38d   : > { %4516 = vst [vmem:[%s9938_s20 + $0x38] sm:$0x1] %v4500_v26  ;;  %4517 = vst [vmem:[%s9938_s20 + $0x40] sm:$0xff] %v4501_v40 }
 0x38e   : > { %4518 = vst [vmem:[%s9938_s20 + $0x48] sm:$0x1] %v4502_v62  ;;  %4519 = vst [vmem:[%s9938_s20 + $0x50] sm:$0xff] %v4503_v55 }
 0x38f   : > { %4520 = vst [vmem:[%s9938_s20 + $0x58] sm:$0x1] %v4504_v38  ;;  %4521 = vst [vmem:[%s9938_s20 + $0x60] sm:$0xff] %v4505_v4 }
 0x390   : > { %4522 = vst [vmem:[%s9938_s20 + $0x68] sm:$0x1] %v4506_v53  ;;  %4523 = vst [vmem:[%s9938_s20 + $0x70] sm:$0xff] %v4507_v17 }
 0x391   : > { %4524 = vst [vmem:[%s9938_s20 + $0x78] sm:$0x1] %v4508_v36 }
 0x392 PF: > { %s18_s16 = sadd.s32 1, %s5061_s16   ;;  %s11383_s9 = smov %s5037_s10 }
 0x393   : > { %p15_p5 = scmp.ge.s32.totalorder %s18_s16, 6   ;;  %s11384_s10 = smov %s5041_s11 }
 0x394   : > { %s11385_s11 = smov %s5149_s26  ;;  %s11386_s12 = smov %s5053_s14 }
 0x395   : > { %s11387_s13 = smov %s5057_s15  ;;  %s11388_s14 = smov %s11391_s18 }
 0x396   : > { %s11389_s15 = smov %s11395_s19  ;;  %17 = sbr.rel (!%p15_p5) target bundleno = 7 (0x7), region = 89 }
 0x39d   :  { %4563 = vsyncpa [#allocation3], 1 }
 0x39e   :  { %4565 = vsyncpa [#allocation3 + $0x1], 1 }
 0x39f   :  { %4566 = vsyncpa [#allocation5], 1 }
 0x3a0   :  { %4568 = vsyncpa [#allocation5 + $0x1], 1 }

</bundles_post_ra>
